<compile_context>
chip_gen: v5e
topology: v5e:2x2
jax: 0.10.0
libtpu: 0.0.40
codegen_flags: <defaults>
</compile_context>

<pallas_src>
import functools

import jax
import jax.numpy as jnp
from jax.experimental import pallas as pl
from jax.experimental.pallas import tpu as pltpu


def _round_up(x, m):
    return (x + m - 1) // m * m


def _pick_tile(dim, desired, unit=128):
    """Largest multiple of `unit` that divides `dim` and is <= desired (dim % unit == 0)."""
    t = max(unit, min(desired, dim))
    t = (t // unit) * unit
    while dim % t:
        t -= unit
    return t


def _tile_bytes(shape, itemsize):
    """VMEM bytes for one tile (last dim padded to 128 lanes, 2nd-last to 8 sublanes)."""
    s = list(shape)
    s[-1] = _round_up(s[-1], 128)
    if len(s) >= 2:
        s[-2] = _round_up(s[-2], 8)
    n = 1
    for d in s:
        n *= d
    return n * itemsize


def _vmem_limit(tile_byte_list, scratch_bytes, headroom=4 * 1024 * 1024):
    # Each in/out block is double-buffered by the auto pipeline.
    return int(2 * sum(tile_byte_list) + scratch_bytes + headroom)


# --------------------------------------------------------------------------------------
# Kernel 1: fused projection  proj = X @ [W_self | W_neigh] + [bias | 0]
# --------------------------------------------------------------------------------------
def _linear_kernel(x_ref, w_ref, b_ref, o_ref, acc_ref):
    k = pl.program_id(2)

    @pl.when(k == 0)
    def _():
        # Initialize the accumulator with the broadcast bias row (removes the epilogue add).
        acc_ref[...] = jnp.broadcast_to(b_ref[...], acc_ref.shape).astype(jnp.float32)

    acc_ref[...] += jnp.dot(x_ref[...], w_ref[...],
                            preferred_element_type=jnp.float32)

    @pl.when(k == pl.num_programs(2) - 1)
    def _():
        o_ref[...] = acc_ref[...].astype(o_ref.dtype)


def linear(x, w, b2d, *, out_dtype, tm=512, tn=512, tk=256):
    """out = x[M,K] @ w[K,N] + b2d[1,N], emitted in `out_dtype` (f32 accumulation)."""
    M, K = x.shape
    _, N = w.shape
    tm = _pick_tile(M, tm)
    tn = _pick_tile(N, tn)
    tk = _pick_tile(K, tk)

    tiles = [
        _tile_bytes((tm, tk), x.dtype.itemsize),
        _tile_bytes((tk, tn), w.dtype.itemsize),
        _tile_bytes((1, tn), b2d.dtype.itemsize),
        _tile_bytes((tm, tn), jnp.dtype(out_dtype).itemsize),
    ]
    return pl.pallas_call(
        _linear_kernel,
        out_shape=jax.ShapeDtypeStruct((M, N), out_dtype),
        grid_spec=pltpu.PrefetchScalarGridSpec(
            num_scalar_prefetch=0,
            grid=(M // tm, N // tn, K // tk),
            in_specs=[
                pl.BlockSpec((tm, tk), lambda i, j, k: (i, k)),
                pl.BlockSpec((tk, tn), lambda i, j, k: (k, j)),
                pl.BlockSpec((1, tn), lambda i, j, k: (0, j)),
            ],
            out_specs=pl.BlockSpec((tm, tn), lambda i, j, k: (i, j)),
            scratch_shapes=[pltpu.VMEM((tm, tn), jnp.float32)],
        ),
        compiler_params=pltpu.CompilerParams(
            dimension_semantics=("parallel", "parallel", "arbitrary"),
            vmem_limit_bytes=_vmem_limit(tiles, tm * tn * 4),
        ),
    )(x, w, b2d)


# --------------------------------------------------------------------------------------
# Kernel 2: mean aggregation + self term
#   out = diag(1/in_deg) @ (A_bin @ Hn) + Hs,  Hn/Hs being the two halves of `proj`.
# --------------------------------------------------------------------------------------
def _aggregate_kernel(a_ref, hn_ref, hs_ref, inv_ref, o_ref, acc_ref):
    k = pl.program_id(1)

    @pl.when(k == 0)
    def _():
        acc_ref[...] = jnp.zeros_like(acc_ref)

    # acc += A_binary_tile @ Hn_tile  (bf16 streams, f32 accumulation on the MXU).
    acc_ref[...] += jnp.dot(a_ref[...], hn_ref[...],
                            preferred_element_type=jnp.float32)

    @pl.when(k == pl.num_programs(1) - 1)
    def _():
        # Exact mean: scale the binary-adjacency sum by 1/in_degree in f32, add self term.
        o_ref[...] = (acc_ref[...] * inv_ref[...]
                      + hs_ref[...].astype(jnp.float32)).astype(o_ref.dtype)


def aggregate(a, proj, inv_deg, *, f, out_dtype, tile_n=512, tile_k=256):
    """out = diag(inv_deg) @ (A_bin @ proj[:, f:2f]) + proj[:, 0:f].

    `proj` holds the fused projection [Hs | Hn] (Hs already contains the bias); the two
    halves are addressed via BlockSpec feature-block indices, so no column-slice copies.
    """
    n_dst, n_src = a.shape
    assert proj.shape == (n_src, 2 * f)
    tile_n = _pick_tile(n_dst, tile_n)
    tile_k = _pick_tile(n_src, tile_k)

    tiles = [
        _tile_bytes((tile_n, tile_k), a.dtype.itemsize),
        _tile_bytes((tile_k, f), proj.dtype.itemsize),
        _tile_bytes((tile_n, f), proj.dtype.itemsize),
        _tile_bytes((tile_n, 1), inv_deg.dtype.itemsize),
        _tile_bytes((tile_n, f), jnp.dtype(out_dtype).itemsize),
    ]
    return pl.pallas_call(
        _aggregate_kernel,
        out_shape=jax.ShapeDtypeStruct((n_dst, f), out_dtype),
        grid_spec=pltpu.PrefetchScalarGridSpec(
            num_scalar_prefetch=0,
            grid=(n_dst // tile_n, n_src // tile_k),
            in_specs=[
                pl.BlockSpec((tile_n, tile_k), lambda i, k: (i, k)),  # A_bin tile
                pl.BlockSpec((tile_k, f), lambda i, k: (k, 1)),       # Hn = proj[:, f:2f]
                pl.BlockSpec((tile_n, f), lambda i, k: (i, 0)),       # Hs = proj[:, 0:f]
                pl.BlockSpec((tile_n, 1), lambda i, k: (i, 0)),       # 1/in_degree
            ],
            out_specs=pl.BlockSpec((tile_n, f), lambda i, k: (i, 0)),
            scratch_shapes=[pltpu.VMEM((tile_n, f), jnp.float32)],
        ),
        compiler_params=pltpu.CompilerParams(
            dimension_semantics=("parallel", "arbitrary"),
            vmem_limit_bytes=_vmem_limit(tiles, tile_n * f * 4),
        ),
    )(a, proj, proj, inv_deg)


# --------------------------------------------------------------------------------------
# SAGEConv('mean') layer + 2-layer SAGE forward
# --------------------------------------------------------------------------------------
def sage_conv(a_bin, inv_deg, x, w_cat, b_cat, *, f_out, out_dtype,
              tile_n=512, tile_k=256):
    """One SAGEConv('mean') layer on padded, lane-dense shapes."""
    # Fused projection: one pass over x; emitted in bf16 so aggregation streams it
    # without a post-hoc cast.  Weights follow x's dtype (bf16 for layer 2's hidden).
    proj = linear(x, w_cat.astype(x.dtype), b_cat, out_dtype=jnp.bfloat16)
    return aggregate(a_bin, proj, inv_deg, f=f_out, out_dtype=out_dtype,
                     tile_n=tile_n, tile_k=tile_k)


def sage_forward(adj, x, params, *, tile_n=512, tile_k=256):
    """SAGE.forward: conv1 -> conv2 (no nonlinearity, matching the PyTorch module).

    `adj` is the dense binary (0/1) adjacency, adj[i, j] = 1 iff edge j -> i.
    """
    n, f_in = x.shape
    hid = params["w_self1"].shape[1]
    f_out = params["w_self2"].shape[1]

    lane = 128
    n_pad = _round_up(n, max(tile_n, tile_k, lane))
    f_in_p, hid_p, f_out_p = (_round_up(d, lane) for d in (f_in, hid, f_out))

    # Binary adjacency is exact in bf16; pad straight into bf16 once and share it across
    # both layers (no per-layer f32 padded copy / cast of the N^2 object).
    a_bin = jnp.zeros((n_pad, n_pad), jnp.bfloat16).at[:n, :n].set(adj.astype(jnp.bfloat16))

    # 1/in_degree row scale (0 for isolated and padded rows), applied in f32 inside the
    # aggregation epilogue so the mean stays exact despite bf16 streaming.
    deg = adj.astype(jnp.float32).sum(axis=1, keepdims=True)
    inv_deg = jnp.where(deg > 0, 1.0 / deg, 0.0)
    inv_p = jnp.zeros((n_pad, 1), jnp.float32).at[:n].set(inv_deg)

    x_p = jnp.zeros((n_pad, f_in_p), jnp.float32).at[:n, :f_in].set(x)

    def pad_w(w, r, c):
        return jnp.zeros((r, c), jnp.float32).at[:w.shape[0], :w.shape[1]].set(w)

    def pad_b(b, c):
        return jnp.zeros((c,), jnp.float32).at[:b.shape[0]].set(b)

    # Fused weights per layer: [W_self | W_neigh], bias [b | 0].
    w1 = jnp.concatenate([pad_w(params["w_self1"], f_in_p, hid_p),
                          pad_w(params["w_neigh1"], f_in_p, hid_p)], axis=1)
    b1 = jnp.concatenate([pad_b(params["b1"], hid_p),
                          jnp.zeros((hid_p,), jnp.float32)]).reshape(1, 2 * hid_p)
    w2 = jnp.concatenate([pad_w(params["w_self2"], hid_p, f_out_p),
                          pad_w(params["w_neigh2"], hid_p, f_out_p)], axis=1)
    b2 = jnp.concatenate([pad_b(params["b2"], f_out_p),
                          jnp.zeros((f_out_p,), jnp.float32)]).reshape(1, 2 * f_out_p)

    # Padded destination rows end up holding the bias (nonzero) but padded A columns are
    # zero, so real rows are never contaminated; padded rows are sliced off at the end.
    h = sage_conv(a_bin, inv_p, x_p, w1, b1, f_out=hid_p, out_dtype=jnp.bfloat16,
                  tile_n=tile_n, tile_k=tile_k)       # layer-1 hidden kept in bf16
    out = sage_conv(a_bin, inv_p, h, w2, b2, f_out=f_out_p, out_dtype=jnp.float32,
                    tile_n=tile_n, tile_k=tile_k)
    return out[:n, :f_out]


if __name__ == "__main__":
    # Small shapes consistent with the module (N not a multiple of 128 to exercise padding;
    # padded N=512 with tile_k=256 gives a 2-step contraction so the accumulator path runs).
    N, in_feats, hid_feats, out_feats = 200, 8, 32, 16

    key = jax.random.PRNGKey(0)
    k_adj, k_x, k1, k2, k3, k4, k5, k6 = jax.random.split(key, 8)

    # Deterministic synthetic graph: dense binary adjacency.
    # TODO(synk): real DGL graphs are sparse CSR; here message passing is a dense
    # binary-adjacency matmul with a 1/in-degree row scale in the kernel epilogue.
    adj = (jax.random.uniform(k_adj, (N, N)) < 0.05).astype(jnp.float32)

    x = jax.random.normal(k_x, (N, in_feats), dtype=jnp.float32)

    params = {
        "w_self1": 0.1 * jax.random.normal(k1, (in_feats, hid_feats), jnp.float32),
        "w_neigh1": 0.1 * jax.random.normal(k2, (in_feats, hid_feats), jnp.float32),
        "b1": 0.01 * jax.random.normal(k3, (hid_feats,), jnp.float32),
        "w_self2": 0.1 * jax.random.normal(k4, (hid_feats, out_feats), jnp.float32),
        "w_neigh2": 0.1 * jax.random.normal(k5, (hid_feats, out_feats), jnp.float32),
        "b2": 0.01 * jax.random.normal(k6, (out_feats,), jnp.float32),
    }

    fwd = jax.jit(functools.partial(sage_forward, tile_n=512, tile_k=256))
    out = jax.block_until_ready(fwd(adj, x, params))

    # Pure-JAX f32 reference (DGL SAGEConv 'mean': h@W_self + mean_nbr(h)@W_neigh + b).
    deg = jnp.clip(adj.sum(axis=1, keepdims=True), 1.0, None)
    a_norm = adj / deg

    def ref_conv(a, h, ws, wn, b):
        return h @ ws + (a @ h) @ wn + b

    ref = ref_conv(
        a_norm,
        ref_conv(a_norm, x, params["w_self1"], params["w_neigh1"], params["b1"]),
        params["w_self2"], params["w_neigh2"], params["b2"],
    )

    assert out.shape == (N, out_feats)
    # Adjacency is exact (binary bf16 + f32 degree scale); remaining deviation comes from
    # the bf16 Hs/Hn/hidden streams (f32 accumulation) -> ~1e-3.
    assert jnp.allclose(out, ref, atol=1e-2, rtol=1e-2), float(jnp.abs(out - ref).max())

    print("KERNEL_OK")
</pallas_src>

<mosaic_0001>
module attributes {stable_mosaic.version = 11 : i64} {
  func.func @_aggregate_kernel(%arg0: i32, %arg1: i32, %arg2: memref<512x256xbf16, #tpu.memory_space<vmem>>, %arg3: memref<256x128xbf16, #tpu.memory_space<vmem>>, %arg4: memref<512x128xbf16, #tpu.memory_space<vmem>>, %arg5: memref<512x1xf32, #tpu.memory_space<vmem>>, %arg6: memref<512x128xbf16, #tpu.memory_space<vmem>>, %arg7: memref<512x128xf32, #tpu.memory_space<vmem>>) attributes {dimension_semantics = [#tpu.dimension_semantics<parallel>, #tpu.dimension_semantics<arbitrary>], iteration_bounds = array<i64: 1, 2>, scalar_prefetch = 0 : i64, scratch_operands = 1 : i64, tpu.core_type = #tpu.core_type<tc>, window_params = [{transform_indices = @transform_0, window_bounds = array<i64: 512, 256>}, {transform_indices = @transform_1, window_bounds = array<i64: 256, 128>}, {transform_indices = @transform_2, window_bounds = array<i64: 512, 128>}, {transform_indices = @transform_3, window_bounds = array<i64: 512, 1>}, {transform_indices = @transform_4, window_bounds = array<i64: 512, 128>}]} {
    %c0_i32 = arith.constant 0 : i32
    %0 = arith.cmpi eq, %arg1, %c0_i32 : i32
    %1 = arith.extui %0 : i1 to i32
    %c0_i32_0 = arith.constant 0 : i32
    %2 = arith.cmpi ne, %1, %c0_i32_0 : i32
    scf.if %2 {
      %cst_9 = arith.constant 0.000000e+00 : f32
      %12 = vector.broadcast %cst_9 : f32 to vector<512x128xf32>
      %c0_10 = arith.constant 0 : index
      %c0_11 = arith.constant 0 : index
      %13 = vector.load %arg7[%c0_10, %c0_11] : memref<512x128xf32, #tpu.memory_space<vmem>>, vector<512x128xf32>
      tpu.vector_store %arg7[%c0_10, %c0_11], %12 {strides = array<i32>} : memref<512x128xf32, #tpu.memory_space<vmem>>, vector<512x128xf32>,
    } else {
    }
    %c0 = arith.constant 0 : index
    %c0_1 = arith.constant 0 : index
    %3 = vector.load %arg7[%c0, %c0_1] : memref<512x128xf32, #tpu.memory_space<vmem>>, vector<512x128xf32>
    %c0_2 = arith.constant 0 : index
    %c0_3 = arith.constant 0 : index
    %4 = vector.load %arg2[%c0_2, %c0_3] : memref<512x256xbf16, #tpu.memory_space<vmem>>, vector<512x256xbf16>
    %c0_4 = arith.constant 0 : index
    %c0_5 = arith.constant 0 : index
    %5 = vector.load %arg3[%c0_4, %c0_5] : memref<256x128xbf16, #tpu.memory_space<vmem>>, vector<256x128xbf16>
    %cst = arith.constant dense<0.000000e+00> : vector<512x128xf32>
    %6 = tpu.matmul %4, %5, %cst {dimension_numbers = #tpu.dot_dimension_numbers<[1], [0], [0], [1], [0, 0, 1, 1], [], []>} : vector<512x256xbf16>, vector<256x128xbf16>, vector<512x128xf32> -> vector<512x128xf32>
    %7 = arith.addf %3, %6 : vector<512x128xf32>
    %c0_6 = arith.constant 0 : index
    %c0_7 = arith.constant 0 : index
    %8 = vector.load %arg7[%c0_6, %c0_7] : memref<512x128xf32, #tpu.memory_space<vmem>>, vector<512x128xf32>
    tpu.vector_store %arg7[%c0_6, %c0_7], %7 {strides = array<i32>} : memref<512x128xf32, #tpu.memory_space<vmem>>, vector<512x128xf32>,
    %c1_i32 = arith.constant 1 : i32
    %9 = arith.cmpi eq, %arg1, %c1_i32 : i32
    %10 = arith.extui %9 : i1 to i32
    %c0_i32_8 = arith.constant 0 : i32
    %11 = arith.cmpi ne, %10, %c0_i32_8 : i32
    scf.if %11 {
      %c0_9 = arith.constant 0 : index
      %c0_10 = arith.constant 0 : index
      %12 = vector.load %arg7[%c0_9, %c0_10] : memref<512x128xf32, #tpu.memory_space<vmem>>, vector<512x128xf32>
      %c0_11 = arith.constant 0 : index
      %c0_12 = arith.constant 0 : index
      %13 = vector.load %arg5[%c0_11, %c0_12] : memref<512x1xf32, #tpu.memory_space<vmem>>, vector<512x1xf32>
      %14 = vector.broadcast %13 : vector<512x1xf32> to vector<512x128xf32>
      %15 = arith.mulf %12, %14 : vector<512x128xf32>
      %c0_13 = arith.constant 0 : index
      %c0_14 = arith.constant 0 : index
      %16 = vector.load %arg4[%c0_13, %c0_14] : memref<512x128xbf16, #tpu.memory_space<vmem>>, vector<512x128xbf16>
      %17 = arith.extf %16 : vector<512x128xbf16> to vector<512x128xf32>
      %18 = arith.addf %15, %17 : vector<512x128xf32>
      %19 = arith.truncf %18 : vector<512x128xf32> to vector<512x128xbf16>
      %c0_15 = arith.constant 0 : index
      %c0_16 = arith.constant 0 : index
      %20 = vector.load %arg6[%c0_15, %c0_16] : memref<512x128xbf16, #tpu.memory_space<vmem>>, vector<512x128xbf16>
      tpu.vector_store %arg6[%c0_15, %c0_16], %19 {strides = array<i32>} : memref<512x128xbf16, #tpu.memory_space<vmem>>, vector<512x128xbf16>,
    } else {
    }
    return
  }
  func.func @transform_0(%arg0: i32, %arg1: i32) -> (i32, i32) {
    %c0_i32 = arith.constant 0 : i32
    return %arg0, %arg1 : i32, i32
  }
  func.func @transform_1(%arg0: i32, %arg1: i32) -> (i32, i32) {
    %c1_i32 = arith.constant 1 : i32
    %c0_i32 = arith.constant 0 : i32
    return %arg1, %c1_i32 : i32, i32
  }
  func.func @transform_2(%arg0: i32, %arg1: i32) -> (i32, i32) {
    %c0_i32 = arith.constant 0 : i32
    %c0_i32_0 = arith.constant 0 : i32
    return %arg0, %c0_i32 : i32, i32
  }
  func.func @transform_3(%arg0: i32, %arg1: i32) -> (i32, i32) {
    %c0_i32 = arith.constant 0 : i32
    %c0_i32_0 = arith.constant 0 : i32
    return %arg0, %c0_i32 : i32, i32
  }
  func.func @transform_4(%arg0: i32, %arg1: i32) -> (i32, i32) {
    %c0_i32 = arith.constant 0 : i32
    %c0_i32_0 = arith.constant 0 : i32
    return %arg0, %c0_i32 : i32, i32
  }
}

module attributes {stable_mosaic.version = 11 : i64} {
  func.func @_linear_kernel(%arg0: i32, %arg1: i32, %arg2: i32, %arg3: memref<512x128xbf16, #tpu.memory_space<vmem>>, %arg4: memref<128x256xbf16, #tpu.memory_space<vmem>>, %arg5: memref<1x256xf32, #tpu.memory_space<vmem>>, %arg6: memref<512x256xbf16, #tpu.memory_space<vmem>>, %arg7: memref<512x256xf32, #tpu.memory_space<vmem>>) attributes {dimension_semantics = [#tpu.dimension_semantics<parallel>, #tpu.dimension_semantics<parallel>, #tpu.dimension_semantics<arbitrary>], iteration_bounds = array<i64: 1, 1, 1>, scalar_prefetch = 0 : i64, scratch_operands = 1 : i64, tpu.core_type = #tpu.core_type<tc>, window_params = [{transform_indices = @transform_0, window_bounds = array<i64: 512, 128>}, {transform_indices = @transform_1, window_bounds = array<i64: 128, 256>}, {transform_indices = @transform_2, window_bounds = array<i64: 1, 256>}, {transform_indices = @transform_3, window_bounds = array<i64: 512, 256>}]} {
    %c0_i32 = arith.constant 0 : i32
    %0 = arith.cmpi eq, %arg2, %c0_i32 : i32
    %1 = arith.extui %0 : i1 to i32
    %c0_i32_0 = arith.constant 0 : i32
    %2 = arith.cmpi ne, %1, %c0_i32_0 : i32
    scf.if %2 {
      %c0_10 = arith.constant 0 : index
      %c0_11 = arith.constant 0 : index
      %12 = vector.load %arg5[%c0_10, %c0_11] : memref<1x256xf32, #tpu.memory_space<vmem>>, vector<1x256xf32>
      %13 = vector.shape_cast %12 : vector<1x256xf32> to vector<1x256xf32>
      %14 = vector.broadcast %13 : vector<1x256xf32> to vector<512x256xf32>
      %c0_12 = arith.constant 0 : index
      %c0_13 = arith.constant 0 : index
      %15 = vector.load %arg7[%c0_12, %c0_13] : memref<512x256xf32, #tpu.memory_space<vmem>>, vector<512x256xf32>
      tpu.vector_store %arg7[%c0_12, %c0_13], %14 {strides = array<i32>} : memref<512x256xf32, #tpu.memory_space<vmem>>, vector<512x256xf32>,
    } else {
    }
    %c0 = arith.constant 0 : index
    %c0_1 = arith.constant 0 : index
    %3 = vector.load %arg7[%c0, %c0_1] : memref<512x256xf32, #tpu.memory_space<vmem>>, vector<512x256xf32>
    %c0_2 = arith.constant 0 : index
    %c0_3 = arith.constant 0 : index
    %4 = vector.load %arg3[%c0_2, %c0_3] : memref<512x128xbf16, #tpu.memory_space<vmem>>, vector<512x128xbf16>
    %c0_4 = arith.constant 0 : index
    %c0_5 = arith.constant 0 : index
    %5 = vector.load %arg4[%c0_4, %c0_5] : memref<128x256xbf16, #tpu.memory_space<vmem>>, vector<128x256xbf16>
    %cst = arith.constant dense<0.000000e+00> : vector<512x256xf32>
    %6 = tpu.matmul %4, %5, %cst {dimension_numbers = #tpu.dot_dimension_numbers<[1], [0], [0], [1], [0, 0, 1, 1], [], []>} : vector<512x128xbf16>, vector<128x256xbf16>, vector<512x256xf32> -> vector<512x256xf32>
    %7 = arith.addf %3, %6 : vector<512x256xf32>
    %c0_6 = arith.constant 0 : index
    %c0_7 = arith.constant 0 : index
    %8 = vector.load %arg7[%c0_6, %c0_7] : memref<512x256xf32, #tpu.memory_space<vmem>>, vector<512x256xf32>
    tpu.vector_store %arg7[%c0_6, %c0_7], %7 {strides = array<i32>} : memref<512x256xf32, #tpu.memory_space<vmem>>, vector<512x256xf32>,
    %c0_i32_8 = arith.constant 0 : i32
    %9 = arith.cmpi eq, %arg2, %c0_i32_8 : i32
    %10 = arith.extui %9 : i1 to i32
    %c0_i32_9 = arith.constant 0 : i32
    %11 = arith.cmpi ne, %10, %c0_i32_9 : i32
    scf.if %11 {
      %c0_10 = arith.constant 0 : index
      %c0_11 = arith.constant 0 : index
      %12 = vector.load %arg7[%c0_10, %c0_11] : memref<512x256xf32, #tpu.memory_space<vmem>>, vector<512x256xf32>
      %13 = arith.truncf %12 : vector<512x256xf32> to vector<512x256xbf16>
      %c0_12 = arith.constant 0 : index
      %c0_13 = arith.constant 0 : index
      %14 = vector.load %arg6[%c0_12, %c0_13] : memref<512x256xbf16, #tpu.memory_space<vmem>>, vector<512x256xbf16>
      tpu.vector_store %arg6[%c0_12, %c0_13], %13 {strides = array<i32>} : memref<512x256xbf16, #tpu.memory_space<vmem>>, vector<512x256xbf16>,
    } else {
    }
    return
  }
  func.func @transform_0(%arg0: i32, %arg1: i32, %arg2: i32) -> (i32, i32) {
    %c0_i32 = arith.constant 0 : i32
    return %arg0, %arg2 : i32, i32
  }
  func.func @transform_1(%arg0: i32, %arg1: i32, %arg2: i32) -> (i32, i32) {
    %c0_i32 = arith.constant 0 : i32
    return %arg2, %arg1 : i32, i32
  }
  func.func @transform_2(%arg0: i32, %arg1: i32, %arg2: i32) -> (i32, i32) {
    %c0_i32 = arith.constant 0 : i32
    %c0_i32_0 = arith.constant 0 : i32
    return %c0_i32, %arg1 : i32, i32
  }
  func.func @transform_3(%arg0: i32, %arg1: i32, %arg2: i32) -> (i32, i32) {
    %c0_i32 = arith.constant 0 : i32
    return %arg0, %arg1 : i32, i32
  }
}

module attributes {stable_mosaic.version = 11 : i64} {
  func.func @_linear_kernel(%arg0: i32, %arg1: i32, %arg2: i32, %arg3: memref<512x128xf32, #tpu.memory_space<vmem>>, %arg4: memref<128x256xf32, #tpu.memory_space<vmem>>, %arg5: memref<1x256xf32, #tpu.memory_space<vmem>>, %arg6: memref<512x256xbf16, #tpu.memory_space<vmem>>, %arg7: memref<512x256xf32, #tpu.memory_space<vmem>>) attributes {dimension_semantics = [#tpu.dimension_semantics<parallel>, #tpu.dimension_semantics<parallel>, #tpu.dimension_semantics<arbitrary>], iteration_bounds = array<i64: 1, 1, 1>, scalar_prefetch = 0 : i64, scratch_operands = 1 : i64, tpu.core_type = #tpu.core_type<tc>, window_params = [{transform_indices = @transform_0, window_bounds = array<i64: 512, 128>}, {transform_indices = @transform_1, window_bounds = array<i64: 128, 256>}, {transform_indices = @transform_2, window_bounds = array<i64: 1, 256>}, {transform_indices = @transform_3, window_bounds = array<i64: 512, 256>}]} {
    %c0_i32 = arith.constant 0 : i32
    %0 = arith.cmpi eq, %arg2, %c0_i32 : i32
    %1 = arith.extui %0 : i1 to i32
    %c0_i32_0 = arith.constant 0 : i32
    %2 = arith.cmpi ne, %1, %c0_i32_0 : i32
    scf.if %2 {
      %c0_10 = arith.constant 0 : index
      %c0_11 = arith.constant 0 : index
      %12 = vector.load %arg5[%c0_10, %c0_11] : memref<1x256xf32, #tpu.memory_space<vmem>>, vector<1x256xf32>
      %13 = vector.shape_cast %12 : vector<1x256xf32> to vector<1x256xf32>
      %14 = vector.broadcast %13 : vector<1x256xf32> to vector<512x256xf32>
      %c0_12 = arith.constant 0 : index
      %c0_13 = arith.constant 0 : index
      %15 = vector.load %arg7[%c0_12, %c0_13] : memref<512x256xf32, #tpu.memory_space<vmem>>, vector<512x256xf32>
      tpu.vector_store %arg7[%c0_12, %c0_13], %14 {strides = array<i32>} : memref<512x256xf32, #tpu.memory_space<vmem>>, vector<512x256xf32>,
    } else {
    }
    %c0 = arith.constant 0 : index
    %c0_1 = arith.constant 0 : index
    %3 = vector.load %arg7[%c0, %c0_1] : memref<512x256xf32, #tpu.memory_space<vmem>>, vector<512x256xf32>
    %c0_2 = arith.constant 0 : index
    %c0_3 = arith.constant 0 : index
    %4 = vector.load %arg3[%c0_2, %c0_3] : memref<512x128xf32, #tpu.memory_space<vmem>>, vector<512x128xf32>
    %c0_4 = arith.constant 0 : index
    %c0_5 = arith.constant 0 : index
    %5 = vector.load %arg4[%c0_4, %c0_5] : memref<128x256xf32, #tpu.memory_space<vmem>>, vector<128x256xf32>
    %cst = arith.constant dense<0.000000e+00> : vector<512x256xf32>
    %6 = tpu.matmul %4, %5, %cst {dimension_numbers = #tpu.dot_dimension_numbers<[1], [0], [0], [1], [0, 0, 1, 1], [], []>} : vector<512x128xf32>, vector<128x256xf32>, vector<512x256xf32> -> vector<512x256xf32>
    %7 = arith.addf %3, %6 : vector<512x256xf32>
    %c0_6 = arith.constant 0 : index
    %c0_7 = arith.constant 0 : index
    %8 = vector.load %arg7[%c0_6, %c0_7] : memref<512x256xf32, #tpu.memory_space<vmem>>, vector<512x256xf32>
    tpu.vector_store %arg7[%c0_6, %c0_7], %7 {strides = array<i32>} : memref<512x256xf32, #tpu.memory_space<vmem>>, vector<512x256xf32>,
    %c0_i32_8 = arith.constant 0 : i32
    %9 = arith.cmpi eq, %arg2, %c0_i32_8 : i32
    %10 = arith.extui %9 : i1 to i32
    %c0_i32_9 = arith.constant 0 : i32
    %11 = arith.cmpi ne, %10, %c0_i32_9 : i32
    scf.if %11 {
      %c0_10 = arith.constant 0 : index
      %c0_11 = arith.constant 0 : index
      %12 = vector.load %arg7[%c0_10, %c0_11] : memref<512x256xf32, #tpu.memory_space<vmem>>, vector<512x256xf32>
      %13 = arith.truncf %12 : vector<512x256xf32> to vector<512x256xbf16>
      %c0_12 = arith.constant 0 : index
      %c0_13 = arith.constant 0 : index
      %14 = vector.load %arg6[%c0_12, %c0_13] : memref<512x256xbf16, #tpu.memory_space<vmem>>, vector<512x256xbf16>
      tpu.vector_store %arg6[%c0_12, %c0_13], %13 {strides = array<i32>} : memref<512x256xbf16, #tpu.memory_space<vmem>>, vector<512x256xbf16>,
    } else {
    }
    return
  }
  func.func @transform_0(%arg0: i32, %arg1: i32, %arg2: i32) -> (i32, i32) {
    %c0_i32 = arith.constant 0 : i32
    return %arg0, %arg2 : i32, i32
  }
  func.func @transform_1(%arg0: i32, %arg1: i32, %arg2: i32) -> (i32, i32) {
    %c0_i32 = arith.constant 0 : i32
    return %arg2, %arg1 : i32, i32
  }
  func.func @transform_2(%arg0: i32, %arg1: i32, %arg2: i32) -> (i32, i32) {
    %c0_i32 = arith.constant 0 : i32
    %c0_i32_0 = arith.constant 0 : i32
    return %c0_i32, %arg1 : i32, i32
  }
  func.func @transform_3(%arg0: i32, %arg1: i32, %arg2: i32) -> (i32, i32) {
    %c0_i32 = arith.constant 0 : i32
    return %arg0, %arg1 : i32, i32
  }
}

module attributes {stable_mosaic.version = 11 : i64} {
  func.func @_aggregate_kernel(%arg0: i32, %arg1: i32, %arg2: memref<512x256xbf16, #tpu.memory_space<vmem>>, %arg3: memref<256x128xbf16, #tpu.memory_space<vmem>>, %arg4: memref<512x128xbf16, #tpu.memory_space<vmem>>, %arg5: memref<512x1xf32, #tpu.memory_space<vmem>>, %arg6: memref<512x128xf32, #tpu.memory_space<vmem>>, %arg7: memref<512x128xf32, #tpu.memory_space<vmem>>) attributes {dimension_semantics = [#tpu.dimension_semantics<parallel>, #tpu.dimension_semantics<arbitrary>], iteration_bounds = array<i64: 1, 2>, scalar_prefetch = 0 : i64, scratch_operands = 1 : i64, tpu.core_type = #tpu.core_type<tc>, window_params = [{transform_indices = @transform_0, window_bounds = array<i64: 512, 256>}, {transform_indices = @transform_1, window_bounds = array<i64: 256, 128>}, {transform_indices = @transform_2, window_bounds = array<i64: 512, 128>}, {transform_indices = @transform_3, window_bounds = array<i64: 512, 1>}, {transform_indices = @transform_4, window_bounds = array<i64: 512, 128>}]} {
    %c0_i32 = arith.constant 0 : i32
    %0 = arith.cmpi eq, %arg1, %c0_i32 : i32
    %1 = arith.extui %0 : i1 to i32
    %c0_i32_0 = arith.constant 0 : i32
    %2 = arith.cmpi ne, %1, %c0_i32_0 : i32
    scf.if %2 {
      %cst_9 = arith.constant 0.000000e+00 : f32
      %12 = vector.broadcast %cst_9 : f32 to vector<512x128xf32>
      %c0_10 = arith.constant 0 : index
      %c0_11 = arith.constant 0 : index
      %13 = vector.load %arg7[%c0_10, %c0_11] : memref<512x128xf32, #tpu.memory_space<vmem>>, vector<512x128xf32>
      tpu.vector_store %arg7[%c0_10, %c0_11], %12 {strides = array<i32>} : memref<512x128xf32, #tpu.memory_space<vmem>>, vector<512x128xf32>,
    } else {
    }
    %c0 = arith.constant 0 : index
    %c0_1 = arith.constant 0 : index
    %3 = vector.load %arg7[%c0, %c0_1] : memref<512x128xf32, #tpu.memory_space<vmem>>, vector<512x128xf32>
    %c0_2 = arith.constant 0 : index
    %c0_3 = arith.constant 0 : index
    %4 = vector.load %arg2[%c0_2, %c0_3] : memref<512x256xbf16, #tpu.memory_space<vmem>>, vector<512x256xbf16>
    %c0_4 = arith.constant 0 : index
    %c0_5 = arith.constant 0 : index
    %5 = vector.load %arg3[%c0_4, %c0_5] : memref<256x128xbf16, #tpu.memory_space<vmem>>, vector<256x128xbf16>
    %cst = arith.constant dense<0.000000e+00> : vector<512x128xf32>
    %6 = tpu.matmul %4, %5, %cst {dimension_numbers = #tpu.dot_dimension_numbers<[1], [0], [0], [1], [0, 0, 1, 1], [], []>} : vector<512x256xbf16>, vector<256x128xbf16>, vector<512x128xf32> -> vector<512x128xf32>
    %7 = arith.addf %3, %6 : vector<512x128xf32>
    %c0_6 = arith.constant 0 : index
    %c0_7 = arith.constant 0 : index
    %8 = vector.load %arg7[%c0_6, %c0_7] : memref<512x128xf32, #tpu.memory_space<vmem>>, vector<512x128xf32>
    tpu.vector_store %arg7[%c0_6, %c0_7], %7 {strides = array<i32>} : memref<512x128xf32, #tpu.memory_space<vmem>>, vector<512x128xf32>,
    %c1_i32 = arith.constant 1 : i32
    %9 = arith.cmpi eq, %arg1, %c1_i32 : i32
    %10 = arith.extui %9 : i1 to i32
    %c0_i32_8 = arith.constant 0 : i32
    %11 = arith.cmpi ne, %10, %c0_i32_8 : i32
    scf.if %11 {
      %c0_9 = arith.constant 0 : index
      %c0_10 = arith.constant 0 : index
      %12 = vector.load %arg7[%c0_9, %c0_10] : memref<512x128xf32, #tpu.memory_space<vmem>>, vector<512x128xf32>
      %c0_11 = arith.constant 0 : index
      %c0_12 = arith.constant 0 : index
      %13 = vector.load %arg5[%c0_11, %c0_12] : memref<512x1xf32, #tpu.memory_space<vmem>>, vector<512x1xf32>
      %14 = vector.broadcast %13 : vector<512x1xf32> to vector<512x128xf32>
      %15 = arith.mulf %12, %14 : vector<512x128xf32>
      %c0_13 = arith.constant 0 : index
      %c0_14 = arith.constant 0 : index
      %16 = vector.load %arg4[%c0_13, %c0_14] : memref<512x128xbf16, #tpu.memory_space<vmem>>, vector<512x128xbf16>
      %17 = arith.extf %16 : vector<512x128xbf16> to vector<512x128xf32>
      %18 = arith.addf %15, %17 : vector<512x128xf32>
      %c0_15 = arith.constant 0 : index
      %c0_16 = arith.constant 0 : index
      %19 = vector.load %arg6[%c0_15, %c0_16] : memref<512x128xf32, #tpu.memory_space<vmem>>, vector<512x128xf32>
      tpu.vector_store %arg6[%c0_15, %c0_16], %18 {strides = array<i32>} : memref<512x128xf32, #tpu.memory_space<vmem>>, vector<512x128xf32>,
    } else {
    }
    return
  }
  func.func @transform_0(%arg0: i32, %arg1: i32) -> (i32, i32) {
    %c0_i32 = arith.constant 0 : i32
    return %arg0, %arg1 : i32, i32
  }
  func.func @transform_1(%arg0: i32, %arg1: i32) -> (i32, i32) {
    %c1_i32 = arith.constant 1 : i32
    %c0_i32 = arith.constant 0 : i32
    return %arg1, %c1_i32 : i32, i32
  }
  func.func @transform_2(%arg0: i32, %arg1: i32) -> (i32, i32) {
    %c0_i32 = arith.constant 0 : i32
    %c0_i32_0 = arith.constant 0 : i32
    return %arg0, %c0_i32 : i32, i32
  }
  func.func @transform_3(%arg0: i32, %arg1: i32) -> (i32, i32) {
    %c0_i32 = arith.constant 0 : i32
    %c0_i32_0 = arith.constant 0 : i32
    return %arg0, %c0_i32 : i32, i32
  }
  func.func @transform_4(%arg0: i32, %arg1: i32) -> (i32, i32) {
    %c0_i32 = arith.constant 0 : i32
    %c0_i32_0 = arith.constant 0 : i32
    return %arg0, %c0_i32 : i32, i32
  }
}

</mosaic_0001>

<bundles_post_ra>
// kernel: sage_forward.5
= control target key start
LH: loop header
LB: loop body
LE: loop exit
PB: predicated region body
PF: predicated region fallthrough
CT: control target
= control target key end

     0   :  { %s4024_s15 = smov 0   ;;  %s4026_s16 = smov 0   ;;  %s5028_s0 = inlined_call_operand.vmem [shape: bf16[512,512], index: 0, kind: input, shape index: {}]   ;;  %s5029_s1 = inlined_call_operand.vmem [shape: bf16[512,256], index: 1, kind: input, shape index: {}, may-alias: {1,2}]   ;;  %s5030_s2 = inlined_call_operand.vmem [shape: bf16[512,256], index: 2, kind: input, shape index: {}, may-alias: {1,2}]   ;;  %s5031_s3 = inlined_call_operand.vmem [shape: f32[512,1], index: 3, kind: input, shape index: {}]   ;;  %s5032_s4 = inlined_call_operand.vmem [shape: bf16[512,128], index: 4, kind: output, shape index: {}]  }
   0x1   :  { %s4028_s17 = smov 0   ;;  %s4030_s18 = smov 0  }
   0x2   :  { %s4032_s19 = smov 0  }
   0x3 LB: > { %s3092_s20 = sadd.s32 4294967295, %s3995_s19   ;;  %s23_s21 = sadd.s32 1, %s3991_s18  ;;  %s3995_s19 = sphi %s4032_s19, %s14_s19   ;;  %s3991_s18 = sphi %s4030_s18, %s5038_s18   ;;  %s3987_s17 = sphi %s4028_s17, %s5037_s17   ;;  %s3983_s16 = sphi %s4026_s16, %s5036_s16   ;;  %s3979_s15 = sphi %s4024_s15, %s5035_s15  }
   0x4   : > { %p24_p0 = scmp.ge.s32.totalorder %s23_s21, 2  ;;  %s35_s22 = sadd.s32 1, %s3983_s16 }
   0x5   : > { %p42_p1 = scmp.ne.s32.totalorder %s3983_s16, %s3979_s15  ;;  %p43_p2 = scmp.eq.s32.totalorder %s3995_s19, 0 }
   0x6   : > { %s5040_s21 = smov (%p24_p0, %s23_s21), 0  ;;  %p3093_p4 = scmp.ge.s32.totalorder %s3995_s19, 1 }
   0x7   : > { %p4057_p3 = por %p43_p2, %p42_p1  ;;  %s31_s24 = ssub.s32 %s3991_s18, %s5040_s21 }
   0x8   : > { %p163_p5 = scmp.lt.s32.totalorder %s3995_s19, 3  ;;  %p33_p6 = scmp.eq.s32.totalorder %s31_s24, 0 }
   0xa   : > { %p4065_p7 = pnand %p3093_p4, %p163_p5 }
   0xb   : > { %s4070_s26 = scalar_select %p33_p6, %s3983_s16, %s35_s22  }
   0xc   : > { %167 = sbr.rel (%p4065_p7) target bundleno = 87 (0x57), region = 12  ;;  %p3094_p8 = scmp.ne.s32.totalorder (!%p4065_p7), %s3092_s20, 0 }
  0x11   : > { %171 = sbr.rel (%p3094_p8) target bundleno = 87 (0x57), region = 16 }
  0x16   : > { %v192_v0 = vld [vmem:[%s5030_s2] sm:$0xf]  ;;  %v194_v1 = vld [vmem:[%s5030_s2 + $0x8] sm:$0xf]  ;;  %v196_v2 = vld [vmem:[%s5030_s2 + $0x10] sm:$0xf] }
  0x17   : > { %193 = vst [vmem:[#allocation5] sm:$0xf] %v192_v0  ;;  %v198_v3 = vld [vmem:[%s5030_s2 + $0x18] sm:$0xf]  ;;  %v200_v4 = vld [vmem:[%s5030_s2 + $0x20] sm:$0xf] }
  0x18   : > { %195 = vst [vmem:[#allocation5 + $0x4] sm:$0xf] %v194_v1  ;;  %v202_v5 = vld [vmem:[%s5030_s2 + $0x28] sm:$0xf]  ;;  %v204_v6 = vld [vmem:[%s5030_s2 + $0x30] sm:$0xf] }
  0x19   : > { %197 = vst [vmem:[#allocation5 + $0x8] sm:$0xf] %v196_v2  ;;  %v206_v7 = vld [vmem:[%s5030_s2 + $0x38] sm:$0xf]  ;;  %v208_v8 = vld [vmem:[%s5030_s2 + $0x40] sm:$0xf] }
  0x1a   : > { %199 = vst [vmem:[#allocation5 + $0xc] sm:$0xf] %v198_v3  ;;  %v210_v9 = vld [vmem:[%s5030_s2 + $0x48] sm:$0xf]  ;;  %v212_v10 = vld [vmem:[%s5030_s2 + $0x50] sm:$0xf] }
  0x1b   : > { %201 = vst [vmem:[#allocation5 + $0x10] sm:$0xf] %v200_v4  ;;  %v214_v11 = vld [vmem:[%s5030_s2 + $0x58] sm:$0xf]  ;;  %v216_v12 = vld [vmem:[%s5030_s2 + $0x60] sm:$0xf] }
  0x1c   : > { %203 = vst [vmem:[#allocation5 + $0x14] sm:$0xf] %v202_v5  ;;  %v218_v13 = vld [vmem:[%s5030_s2 + $0x68] sm:$0xf]  ;;  %v220_v14 = vld [vmem:[%s5030_s2 + $0x70] sm:$0xf] }
  0x1d   : > { %205 = vst [vmem:[#allocation5 + $0x18] sm:$0xf] %v204_v6  ;;  %v222_v15 = vld [vmem:[%s5030_s2 + $0x78] sm:$0xf]  ;;  %v224_v16 = vld [vmem:[%s5030_s2 + $0x80] sm:$0xf] }
  0x1e   : > { %207 = vst [vmem:[#allocation5 + $0x1c] sm:$0xf] %v206_v7  ;;  %v226_v17 = vld [vmem:[%s5030_s2 + $0x88] sm:$0xf]  ;;  %v228_v18 = vld [vmem:[%s5030_s2 + $0x90] sm:$0xf] }
  0x1f   : > { %209 = vst [vmem:[#allocation5 + $0x20] sm:$0xf] %v208_v8  ;;  %v230_v19 = vld [vmem:[%s5030_s2 + $0x98] sm:$0xf]  ;;  %v232_v20 = vld [vmem:[%s5030_s2 + $0xa0] sm:$0xf] }
  0x20   : > { %211 = vst [vmem:[#allocation5 + $0x24] sm:$0xf] %v210_v9  ;;  %v234_v21 = vld [vmem:[%s5030_s2 + $0xa8] sm:$0xf]  ;;  %v236_v22 = vld [vmem:[%s5030_s2 + $0xb0] sm:$0xf] }
  0x21   : > { %213 = vst [vmem:[#allocation5 + $0x28] sm:$0xf] %v212_v10  ;;  %v238_v23 = vld [vmem:[%s5030_s2 + $0xb8] sm:$0xf]  ;;  %v240_v24 = vld [vmem:[%s5030_s2 + $0xc0] sm:$0xf] }
  0x22   : > { %215 = vst [vmem:[#allocation5 + $0x2c] sm:$0xf] %v214_v11  ;;  %v242_v25 = vld [vmem:[%s5030_s2 + $0xc8] sm:$0xf]  ;;  %v244_v26 = vld [vmem:[%s5030_s2 + $0xd0] sm:$0xf] }
  0x23   : > { %217 = vst [vmem:[#allocation5 + $0x30] sm:$0xf] %v216_v12  ;;  %v246_v27 = vld [vmem:[%s5030_s2 + $0xd8] sm:$0xf]  ;;  %v248_v28 = vld [vmem:[%s5030_s2 + $0xe0] sm:$0xf] }
  0x24   : > { %219 = vst [vmem:[#allocation5 + $0x34] sm:$0xf] %v218_v13  ;;  %v250_v29 = vld [vmem:[%s5030_s2 + $0xe8] sm:$0xf]  ;;  %v252_v30 = vld [vmem:[%s5030_s2 + $0xf0] sm:$0xf] }
  0x25   : > { %221 = vst [vmem:[#allocation5 + $0x38] sm:$0xf] %v220_v14  ;;  %v254_v31 = vld [vmem:[%s5030_s2 + $0xf8] sm:$0xf]  ;;  %v256_v32 = vld [vmem:[%s5030_s2 + $0x100] sm:$0xf] }
  0x26   : > { %223 = vst [vmem:[#allocation5 + $0x3c] sm:$0xf] %v222_v15  ;;  %v258_v33 = vld [vmem:[%s5030_s2 + $0x108] sm:$0xf]  ;;  %v260_v34 = vld [vmem:[%s5030_s2 + $0x110] sm:$0xf] }
  0x27   : > { %225 = vst [vmem:[#allocation5 + $0x40] sm:$0xf] %v224_v16  ;;  %v262_v35 = vld [vmem:[%s5030_s2 + $0x118] sm:$0xf]  ;;  %v264_v36 = vld [vmem:[%s5030_s2 + $0x120] sm:$0xf] }
  0x28   : > { %227 = vst [vmem:[#allocation5 + $0x44] sm:$0xf] %v226_v17  ;;  %v266_v37 = vld [vmem:[%s5030_s2 + $0x128] sm:$0xf]  ;;  %v268_v38 = vld [vmem:[%s5030_s2 + $0x130] sm:$0xf] }
  0x29   : > { %229 = vst [vmem:[#allocation5 + $0x48] sm:$0xf] %v228_v18  ;;  %v270_v39 = vld [vmem:[%s5030_s2 + $0x138] sm:$0xf]  ;;  %v272_v40 = vld [vmem:[%s5030_s2 + $0x140] sm:$0xf] }
  0x2a   : > { %231 = vst [vmem:[#allocation5 + $0x4c] sm:$0xf] %v230_v19  ;;  %v274_v41 = vld [vmem:[%s5030_s2 + $0x148] sm:$0xf]  ;;  %v276_v42 = vld [vmem:[%s5030_s2 + $0x150] sm:$0xf] }
  0x2b   : > { %233 = vst [vmem:[#allocation5 + $0x50] sm:$0xf] %v232_v20  ;;  %v278_v43 = vld [vmem:[%s5030_s2 + $0x158] sm:$0xf]  ;;  %v280_v44 = vld [vmem:[%s5030_s2 + $0x160] sm:$0xf] }
  0x2c   : > { %235 = vst [vmem:[#allocation5 + $0x54] sm:$0xf] %v234_v21  ;;  %v282_v45 = vld [vmem:[%s5030_s2 + $0x168] sm:$0xf]  ;;  %v284_v46 = vld [vmem:[%s5030_s2 + $0x170] sm:$0xf] }
  0x2d   : > { %237 = vst [vmem:[#allocation5 + $0x58] sm:$0xf] %v236_v22  ;;  %v286_v47 = vld [vmem:[%s5030_s2 + $0x178] sm:$0xf]  ;;  %v288_v48 = vld [vmem:[%s5030_s2 + $0x180] sm:$0xf] }
  0x2e   : > { %239 = vst [vmem:[#allocation5 + $0x5c] sm:$0xf] %v238_v23  ;;  %v290_v49 = vld [vmem:[%s5030_s2 + $0x188] sm:$0xf]  ;;  %v292_v50 = vld [vmem:[%s5030_s2 + $0x190] sm:$0xf] }
  0x2f   : > { %241 = vst [vmem:[#allocation5 + $0x60] sm:$0xf] %v240_v24  ;;  %v294_v51 = vld [vmem:[%s5030_s2 + $0x198] sm:$0xf]  ;;  %v296_v52 = vld [vmem:[%s5030_s2 + $0x1a0] sm:$0xf] }
  0x30   : > { %243 = vst [vmem:[#allocation5 + $0x64] sm:$0xf] %v242_v25  ;;  %v298_v53 = vld [vmem:[%s5030_s2 + $0x1a8] sm:$0xf]  ;;  %v300_v54 = vld [vmem:[%s5030_s2 + $0x1b0] sm:$0xf] }
  0x31   : > { %245 = vst [vmem:[#allocation5 + $0x68] sm:$0xf] %v244_v26  ;;  %v302_v55 = vld [vmem:[%s5030_s2 + $0x1b8] sm:$0xf]  ;;  %v304_v56 = vld [vmem:[%s5030_s2 + $0x1c0] sm:$0xf] }
  0x32   : > { %247 = vst [vmem:[#allocation5 + $0x6c] sm:$0xf] %v246_v27  ;;  %v306_v57 = vld [vmem:[%s5030_s2 + $0x1c8] sm:$0xf]  ;;  %v308_v58 = vld [vmem:[%s5030_s2 + $0x1d0] sm:$0xf] }
  0x33   : > { %249 = vst [vmem:[#allocation5 + $0x70] sm:$0xf] %v248_v28  ;;  %v310_v59 = vld [vmem:[%s5030_s2 + $0x1d8] sm:$0xf]  ;;  %v312_v60 = vld [vmem:[%s5030_s2 + $0x1e0] sm:$0xf] }
  0x34   : > { %251 = vst [vmem:[#allocation5 + $0x74] sm:$0xf] %v250_v29  ;;  %v314_v61 = vld [vmem:[%s5030_s2 + $0x1e8] sm:$0xf]  ;;  %v316_v62 = vld [vmem:[%s5030_s2 + $0x1f0] sm:$0xf] }
  0x35   : > { %253 = vst [vmem:[#allocation5 + $0x78] sm:$0xf] %v252_v30  ;;  %v318_v63 = vld [vmem:[%s5030_s2 + $0x1f8] sm:$0xf] }
  0x36   : > { %255 = vst [vmem:[#allocation5 + $0x7c] sm:$0xf] %v254_v31 }
  0x37   : > { %257 = vst [vmem:[#allocation5 + $0x80] sm:$0xf] %v256_v32 }
  0x38   : > { %259 = vst [vmem:[#allocation5 + $0x84] sm:$0xf] %v258_v33 }
  0x39   : > { %261 = vst [vmem:[#allocation5 + $0x88] sm:$0xf] %v260_v34 }
  0x3a   : > { %263 = vst [vmem:[#allocation5 + $0x8c] sm:$0xf] %v262_v35 }
  0x3b   : > { %265 = vst [vmem:[#allocation5 + $0x90] sm:$0xf] %v264_v36 }
  0x3c   : > { %267 = vst [vmem:[#allocation5 + $0x94] sm:$0xf] %v266_v37 }
  0x3d   : > { %269 = vst [vmem:[#allocation5 + $0x98] sm:$0xf] %v268_v38 }
  0x3e   : > { %271 = vst [vmem:[#allocation5 + $0x9c] sm:$0xf] %v270_v39 }
  0x3f   : > { %273 = vst [vmem:[#allocation5 + $0xa0] sm:$0xf] %v272_v40 }
  0x40   : > { %275 = vst [vmem:[#allocation5 + $0xa4] sm:$0xf] %v274_v41 }
  0x41   : > { %277 = vst [vmem:[#allocation5 + $0xa8] sm:$0xf] %v276_v42 }
  0x42   : > { %279 = vst [vmem:[#allocation5 + $0xac] sm:$0xf] %v278_v43 }
  0x43   : > { %281 = vst [vmem:[#allocation5 + $0xb0] sm:$0xf] %v280_v44 }
  0x44   : > { %283 = vst [vmem:[#allocation5 + $0xb4] sm:$0xf] %v282_v45 }
  0x45   : > { %285 = vst [vmem:[#allocation5 + $0xb8] sm:$0xf] %v284_v46 }
  0x46   : > { %287 = vst [vmem:[#allocation5 + $0xbc] sm:$0xf] %v286_v47 }
  0x47   : > { %289 = vst [vmem:[#allocation5 + $0xc0] sm:$0xf] %v288_v48 }
  0x48   : > { %291 = vst [vmem:[#allocation5 + $0xc4] sm:$0xf] %v290_v49 }
  0x49   : > { %293 = vst [vmem:[#allocation5 + $0xc8] sm:$0xf] %v292_v50 }
  0x4a   : > { %295 = vst [vmem:[#allocation5 + $0xcc] sm:$0xf] %v294_v51 }
  0x4b   : > { %297 = vst [vmem:[#allocation5 + $0xd0] sm:$0xf] %v296_v52 }
  0x4c   : > { %299 = vst [vmem:[#allocation5 + $0xd4] sm:$0xf] %v298_v53 }
  0x4d   : > { %301 = vst [vmem:[#allocation5 + $0xd8] sm:$0xf] %v300_v54 }
  0x4e   : > { %303 = vst [vmem:[#allocation5 + $0xdc] sm:$0xf] %v302_v55 }
  0x4f   : > { %305 = vst [vmem:[#allocation5 + $0xe0] sm:$0xf] %v304_v56 }
  0x50   : > { %307 = vst [vmem:[#allocation5 + $0xe4] sm:$0xf] %v306_v57 }
  0x51   : > { %309 = vst [vmem:[#allocation5 + $0xe8] sm:$0xf] %v308_v58 }
  0x52   : > { %311 = vst [vmem:[#allocation5 + $0xec] sm:$0xf] %v310_v59 }
  0x53   : > { %313 = vst [vmem:[#allocation5 + $0xf0] sm:$0xf] %v312_v60 }
  0x54   : > { %315 = vst [vmem:[#allocation5 + $0xf4] sm:$0xf] %v314_v61 }
  0x55   : > { %317 = vst [vmem:[#allocation5 + $0xf8] sm:$0xf] %v316_v62 }
  0x56   : > { %319 = vst [vmem:[#allocation5 + $0xfc] sm:$0xf] %v318_v63 }
  0x57 PF: > { %p3096_p9 = scmp.ge.s32.totalorder %s3995_s19, 2 }
  0x59   : > { %481 = sbr.rel (%p3096_p9) target bundleno = 198 (0xc6), region = 61 }
  0x5e   : > { %484 = sbr.rel (!%p4057_p3) target bundleno = 162 (0xa2), region = 65  ;;  %s486_s10 = sand.u32 (%p4057_p3), 1, %s3983_s16  }
  0x5f   : > { %s3464_s11 = sshll.u32 (%p4057_p3), %s3991_s18, 3  ;;  %s3097_s12 = sshll.u32 (%p4057_p3), %s486_s10, 9 }
  0x60   : > { %s4274_s20 = scalar_lea.vmem (%p4057_p3), %s5028_s0, %s3464_s11  ;;  %s4279_s22 = scalar_lea.vmem (%p4057_p3), [#allocation3], %s3097_s12 }
  0x61   : > { %v649_v0 = vld [vmem:[%s4274_s20] sm:$0xff] (%p4057_p3)  ;;  %v651_v1 = vld [vmem:[%s4274_s20 + $0x10] sm:$0xff] (%p4057_p3) }
  0x62   : > { %v653_v2 = vld [vmem:[%s4274_s20 + $0x20] sm:$0xff] (%p4057_p3)  ;;  %650 = vst [vmem:[%s4279_s22] sm:$0xff] (%p4057_p3), %v649_v0  ;;  %v655_v3 = vld [vmem:[%s4274_s20 + $0x30] sm:$0xff] (%p4057_p3) }
  0x63   : > { %652 = vst [vmem:[%s4279_s22 + $0x8] sm:$0xff] %v651_v1  ;;  %v657_v4 = vld [vmem:[%s4274_s20 + $0x40] sm:$0xff]  ;;  %v659_v5 = vld [vmem:[%s4274_s20 + $0x50] sm:$0xff] }
  0x64   : > { %654 = vst [vmem:[%s4279_s22 + $0x10] sm:$0xff] %v653_v2  ;;  %v661_v6 = vld [vmem:[%s4274_s20 + $0x60] sm:$0xff]  ;;  %v663_v7 = vld [vmem:[%s4274_s20 + $0x70] sm:$0xff] }
  0x65   : > { %656 = vst [vmem:[%s4279_s22 + $0x18] sm:$0xff] %v655_v3  ;;  %v665_v8 = vld [vmem:[%s4274_s20 + $0x80] sm:$0xff]  ;;  %v667_v9 = vld [vmem:[%s4274_s20 + $0x90] sm:$0xff] }
  0x66   : > { %658 = vst [vmem:[%s4279_s22 + $0x20] sm:$0xff] %v657_v4  ;;  %v669_v10 = vld [vmem:[%s4274_s20 + $0xa0] sm:$0xff]  ;;  %v671_v11 = vld [vmem:[%s4274_s20 + $0xb0] sm:$0xff] }
  0x67   : > { %660 = vst [vmem:[%s4279_s22 + $0x28] sm:$0xff] %v659_v5  ;;  %v673_v12 = vld [vmem:[%s4274_s20 + $0xc0] sm:$0xff]  ;;  %v675_v13 = vld [vmem:[%s4274_s20 + $0xd0] sm:$0xff] }
  0x68   : > { %662 = vst [vmem:[%s4279_s22 + $0x30] sm:$0xff] %v661_v6  ;;  %v677_v14 = vld [vmem:[%s4274_s20 + $0xe0] sm:$0xff]  ;;  %v679_v15 = vld [vmem:[%s4274_s20 + $0xf0] sm:$0xff] }
  0x69   : > { %664 = vst [vmem:[%s4279_s22 + $0x38] sm:$0xff] %v663_v7  ;;  %v681_v16 = vld [vmem:[%s4274_s20 + $0x100] sm:$0xff]  ;;  %v683_v17 = vld [vmem:[%s4274_s20 + $0x110] sm:$0xff] }
  0x6a   : > { %666 = vst [vmem:[%s4279_s22 + $0x40] sm:$0xff] %v665_v8  ;;  %v685_v18 = vld [vmem:[%s4274_s20 + $0x120] sm:$0xff]  ;;  %v687_v19 = vld [vmem:[%s4274_s20 + $0x130] sm:$0xff] }
  0x6b   : > { %668 = vst [vmem:[%s4279_s22 + $0x48] sm:$0xff] %v667_v9  ;;  %v689_v20 = vld [vmem:[%s4274_s20 + $0x140] sm:$0xff]  ;;  %v691_v21 = vld [vmem:[%s4274_s20 + $0x150] sm:$0xff] }
  0x6c   : > { %670 = vst [vmem:[%s4279_s22 + $0x50] sm:$0xff] %v669_v10  ;;  %v693_v22 = vld [vmem:[%s4274_s20 + $0x160] sm:$0xff]  ;;  %v695_v23 = vld [vmem:[%s4274_s20 + $0x170] sm:$0xff] }
  0x6d   : > { %672 = vst [vmem:[%s4279_s22 + $0x58] sm:$0xff] %v671_v11  ;;  %v697_v24 = vld [vmem:[%s4274_s20 + $0x180] sm:$0xff]  ;;  %v699_v25 = vld [vmem:[%s4274_s20 + $0x190] sm:$0xff] }
  0x6e   : > { %674 = vst [vmem:[%s4279_s22 + $0x60] sm:$0xff] %v673_v12  ;;  %v701_v26 = vld [vmem:[%s4274_s20 + $0x1a0] sm:$0xff]  ;;  %v703_v27 = vld [vmem:[%s4274_s20 + $0x1b0] sm:$0xff] }
  0x6f   : > { %676 = vst [vmem:[%s4279_s22 + $0x68] sm:$0xff] %v675_v13  ;;  %v705_v28 = vld [vmem:[%s4274_s20 + $0x1c0] sm:$0xff]  ;;  %v707_v29 = vld [vmem:[%s4274_s20 + $0x1d0] sm:$0xff] }
  0x70   : > { %678 = vst [vmem:[%s4279_s22 + $0x70] sm:$0xff] %v677_v14  ;;  %v709_v30 = vld [vmem:[%s4274_s20 + $0x1e0] sm:$0xff]  ;;  %v711_v31 = vld [vmem:[%s4274_s20 + $0x1f0] sm:$0xff] }
  0x71   : > { %680 = vst [vmem:[%s4279_s22 + $0x78] sm:$0xff] %v679_v15  ;;  %v713_v32 = vld [vmem:[%s4274_s20 + $0x200] sm:$0xff]  ;;  %v715_v33 = vld [vmem:[%s4274_s20 + $0x210] sm:$0xff] }
  0x72   : > { %682 = vst [vmem:[%s4279_s22 + $0x80] sm:$0xff] %v681_v16  ;;  %v717_v34 = vld [vmem:[%s4274_s20 + $0x220] sm:$0xff]  ;;  %v719_v35 = vld [vmem:[%s4274_s20 + $0x230] sm:$0xff] }
  0x73   : > { %684 = vst [vmem:[%s4279_s22 + $0x88] sm:$0xff] %v683_v17  ;;  %v721_v36 = vld [vmem:[%s4274_s20 + $0x240] sm:$0xff]  ;;  %v723_v37 = vld [vmem:[%s4274_s20 + $0x250] sm:$0xff] }
  0x74   : > { %686 = vst [vmem:[%s4279_s22 + $0x90] sm:$0xff] %v685_v18  ;;  %v725_v38 = vld [vmem:[%s4274_s20 + $0x260] sm:$0xff]  ;;  %v727_v39 = vld [vmem:[%s4274_s20 + $0x270] sm:$0xff] }
  0x75   : > { %688 = vst [vmem:[%s4279_s22 + $0x98] sm:$0xff] %v687_v19  ;;  %v729_v40 = vld [vmem:[%s4274_s20 + $0x280] sm:$0xff]  ;;  %v731_v41 = vld [vmem:[%s4274_s20 + $0x290] sm:$0xff] }
  0x76   : > { %690 = vst [vmem:[%s4279_s22 + $0xa0] sm:$0xff] %v689_v20  ;;  %v733_v42 = vld [vmem:[%s4274_s20 + $0x2a0] sm:$0xff]  ;;  %v735_v43 = vld [vmem:[%s4274_s20 + $0x2b0] sm:$0xff] }
  0x77   : > { %692 = vst [vmem:[%s4279_s22 + $0xa8] sm:$0xff] %v691_v21  ;;  %v737_v44 = vld [vmem:[%s4274_s20 + $0x2c0] sm:$0xff]  ;;  %v739_v45 = vld [vmem:[%s4274_s20 + $0x2d0] sm:$0xff] }
  0x78   : > { %694 = vst [vmem:[%s4279_s22 + $0xb0] sm:$0xff] %v693_v22  ;;  %v741_v46 = vld [vmem:[%s4274_s20 + $0x2e0] sm:$0xff]  ;;  %v743_v47 = vld [vmem:[%s4274_s20 + $0x2f0] sm:$0xff] }
  0x79   : > { %696 = vst [vmem:[%s4279_s22 + $0xb8] sm:$0xff] %v695_v23  ;;  %v745_v48 = vld [vmem:[%s4274_s20 + $0x300] sm:$0xff]  ;;  %v747_v49 = vld [vmem:[%s4274_s20 + $0x310] sm:$0xff] }
  0x7a   : > { %698 = vst [vmem:[%s4279_s22 + $0xc0] sm:$0xff] %v697_v24  ;;  %v749_v50 = vld [vmem:[%s4274_s20 + $0x320] sm:$0xff]  ;;  %v751_v51 = vld [vmem:[%s4274_s20 + $0x330] sm:$0xff] }
  0x7b   : > { %700 = vst [vmem:[%s4279_s22 + $0xc8] sm:$0xff] %v699_v25  ;;  %v753_v52 = vld [vmem:[%s4274_s20 + $0x340] sm:$0xff]  ;;  %v755_v53 = vld [vmem:[%s4274_s20 + $0x350] sm:$0xff] }
  0x7c   : > { %702 = vst [vmem:[%s4279_s22 + $0xd0] sm:$0xff] %v701_v26  ;;  %v757_v54 = vld [vmem:[%s4274_s20 + $0x360] sm:$0xff]  ;;  %v759_v55 = vld [vmem:[%s4274_s20 + $0x370] sm:$0xff] }
  0x7d   : > { %704 = vst [vmem:[%s4279_s22 + $0xd8] sm:$0xff] %v703_v27  ;;  %v761_v56 = vld [vmem:[%s4274_s20 + $0x380] sm:$0xff]  ;;  %v763_v57 = vld [vmem:[%s4274_s20 + $0x390] sm:$0xff] }
  0x7e   : > { %706 = vst [vmem:[%s4279_s22 + $0xe0] sm:$0xff] %v705_v28  ;;  %v765_v58 = vld [vmem:[%s4274_s20 + $0x3a0] sm:$0xff]  ;;  %v767_v59 = vld [vmem:[%s4274_s20 + $0x3b0] sm:$0xff] }
  0x7f   : > { %708 = vst [vmem:[%s4279_s22 + $0xe8] sm:$0xff] %v707_v29  ;;  %v769_v60 = vld [vmem:[%s4274_s20 + $0x3c0] sm:$0xff]  ;;  %v771_v61 = vld [vmem:[%s4274_s20 + $0x3d0] sm:$0xff] }
  0x80   : > { %710 = vst [vmem:[%s4279_s22 + $0xf0] sm:$0xff] %v709_v30  ;;  %v773_v62 = vld [vmem:[%s4274_s20 + $0x3e0] sm:$0xff]  ;;  %v775_v63 = vld [vmem:[%s4274_s20 + $0x3f0] sm:$0xff] }
  0x81   : > { %712 = vst [vmem:[%s4279_s22 + $0xf8] sm:$0xff] %v711_v31 }
  0x82   : > { %714 = vst [vmem:[%s4279_s22 + $0x100] sm:$0xff] %v713_v32 }
  0x83   : > { %716 = vst [vmem:[%s4279_s22 + $0x108] sm:$0xff] %v715_v33 }
  0x84   : > { %718 = vst [vmem:[%s4279_s22 + $0x110] sm:$0xff] %v717_v34 }
  0x85   : > { %720 = vst [vmem:[%s4279_s22 + $0x118] sm:$0xff] %v719_v35 }
  0x86   : > { %722 = vst [vmem:[%s4279_s22 + $0x120] sm:$0xff] %v721_v36 }
  0x87   : > { %724 = vst [vmem:[%s4279_s22 + $0x128] sm:$0xff] %v723_v37 }
  0x88   : > { %726 = vst [vmem:[%s4279_s22 + $0x130] sm:$0xff] %v725_v38 }
  0x89   : > { %728 = vst [vmem:[%s4279_s22 + $0x138] sm:$0xff] %v727_v39 }
  0x8a   : > { %730 = vst [vmem:[%s4279_s22 + $0x140] sm:$0xff] %v729_v40 }
  0x8b   : > { %732 = vst [vmem:[%s4279_s22 + $0x148] sm:$0xff] %v731_v41 }
  0x8c   : > { %734 = vst [vmem:[%s4279_s22 + $0x150] sm:$0xff] %v733_v42 }
  0x8d   : > { %736 = vst [vmem:[%s4279_s22 + $0x158] sm:$0xff] %v735_v43 }
  0x8e   : > { %738 = vst [vmem:[%s4279_s22 + $0x160] sm:$0xff] %v737_v44 }
  0x8f   : > { %740 = vst [vmem:[%s4279_s22 + $0x168] sm:$0xff] %v739_v45 }
  0x90   : > { %742 = vst [vmem:[%s4279_s22 + $0x170] sm:$0xff] %v741_v46 }
  0x91   : > { %744 = vst [vmem:[%s4279_s22 + $0x178] sm:$0xff] %v743_v47 }
  0x92   : > { %746 = vst [vmem:[%s4279_s22 + $0x180] sm:$0xff] %v745_v48 }
  0x93   : > { %748 = vst [vmem:[%s4279_s22 + $0x188] sm:$0xff] %v747_v49 }
  0x94   : > { %750 = vst [vmem:[%s4279_s22 + $0x190] sm:$0xff] %v749_v50 }
  0x95   : > { %752 = vst [vmem:[%s4279_s22 + $0x198] sm:$0xff] %v751_v51 }
  0x96   : > { %754 = vst [vmem:[%s4279_s22 + $0x1a0] sm:$0xff] %v753_v52 }
  0x97   : > { %756 = vst [vmem:[%s4279_s22 + $0x1a8] sm:$0xff] %v755_v53 }
  0x98   : > { %758 = vst [vmem:[%s4279_s22 + $0x1b0] sm:$0xff] %v757_v54 }
  0x99   : > { %760 = vst [vmem:[%s4279_s22 + $0x1b8] sm:$0xff] %v759_v55 }
  0x9a   : > { %762 = vst [vmem:[%s4279_s22 + $0x1c0] sm:$0xff] %v761_v56 }
  0x9b   : > { %764 = vst [vmem:[%s4279_s22 + $0x1c8] sm:$0xff] %v763_v57 }
  0x9c   : > { %766 = vst [vmem:[%s4279_s22 + $0x1d0] sm:$0xff] %v765_v58 }
  0x9d   : > { %768 = vst [vmem:[%s4279_s22 + $0x1d8] sm:$0xff] %v767_v59 }
  0x9e   : > { %770 = vst [vmem:[%s4279_s22 + $0x1e0] sm:$0xff] %v769_v60 }
  0x9f   : > { %772 = vst [vmem:[%s4279_s22 + $0x1e8] sm:$0xff] %v771_v61 }
  0xa0   : > { %774 = vst [vmem:[%s4279_s22 + $0x1f0] sm:$0xff] %v773_v62 }
  0xa1   : > { %776 = vst [vmem:[%s4279_s22 + $0x1f8] sm:$0xff] %v775_v63 }
  0xa2 PF: > { %782 = sbr.rel (!%p4057_p3) target bundleno = 198 (0xc6), region = 103  ;;  %s784_s24 = sand.u32 (%p4057_p3), 1, %s3983_s16  }
  0xa3   : > { %s3465_s27 = sshll.u32 (%p4057_p3), %s3991_s18, 8  ;;  %s3100_s28 = sshll.u32 (%p4057_p3), %s784_s24, 7 }
  0xa4   : > { %s4413_s5 = scalar_lea.vmem (%p4057_p3), %s5029_s1, %s3465_s27  ;;  %s4417_s23 = scalar_lea.vmem (%p4057_p3), [#allocation4], %s3100_s28 }
  0xa5   : > { %v3103_v0 = vld [vmem:[%s4413_s5 + $0x4] sm:$0xf] (%p4057_p3)  ;;  %v3104_v1 = vld [vmem:[%s4413_s5 + $0xc] sm:$0xf] (%p4057_p3)  ;;  %v3105_v2 = vld [vmem:[%s4413_s5 + $0x14] sm:$0xf] (%p4057_p3) }
  0xa6   : > { %809 = vst [vmem:[%s4417_s23] sm:$0xf] (%p4057_p3), %v3103_v0  ;;  %v3106_v3 = vld [vmem:[%s4413_s5 + $0x1c] sm:$0xf] (%p4057_p3)  ;;  %v3107_v4 = vld [vmem:[%s4413_s5 + $0x24] sm:$0xf] (%p4057_p3) }
  0xa7   : > { %811 = vst [vmem:[%s4417_s23 + $0x4] sm:$0xf] %v3104_v1  ;;  %v3108_v5 = vld [vmem:[%s4413_s5 + $0x2c] sm:$0xf]  ;;  %v3109_v6 = vld [vmem:[%s4413_s5 + $0x34] sm:$0xf] }
  0xa8   : > { %813 = vst [vmem:[%s4417_s23 + $0x8] sm:$0xf] %v3105_v2  ;;  %v3110_v7 = vld [vmem:[%s4413_s5 + $0x3c] sm:$0xf]  ;;  %v3111_v8 = vld [vmem:[%s4413_s5 + $0x44] sm:$0xf] }
  0xa9   : > { %815 = vst [vmem:[%s4417_s23 + $0xc] sm:$0xf] %v3106_v3  ;;  %v3112_v9 = vld [vmem:[%s4413_s5 + $0x4c] sm:$0xf]  ;;  %v3113_v10 = vld [vmem:[%s4413_s5 + $0x54] sm:$0xf] }
  0xaa   : > { %817 = vst [vmem:[%s4417_s23 + $0x10] sm:$0xf] %v3107_v4  ;;  %v3114_v11 = vld [vmem:[%s4413_s5 + $0x5c] sm:$0xf]  ;;  %v3115_v12 = vld [vmem:[%s4413_s5 + $0x64] sm:$0xf] }
  0xab   : > { %819 = vst [vmem:[%s4417_s23 + $0x14] sm:$0xf] %v3108_v5  ;;  %v3116_v13 = vld [vmem:[%s4413_s5 + $0x6c] sm:$0xf]  ;;  %v3117_v14 = vld [vmem:[%s4413_s5 + $0x74] sm:$0xf] }
  0xac   : > { %821 = vst [vmem:[%s4417_s23 + $0x18] sm:$0xf] %v3109_v6  ;;  %v3118_v15 = vld [vmem:[%s4413_s5 + $0x7c] sm:$0xf]  ;;  %v3119_v16 = vld [vmem:[%s4413_s5 + $0x84] sm:$0xf] }
  0xad   : > { %823 = vst [vmem:[%s4417_s23 + $0x1c] sm:$0xf] %v3110_v7  ;;  %v3120_v17 = vld [vmem:[%s4413_s5 + $0x8c] sm:$0xf]  ;;  %v3121_v18 = vld [vmem:[%s4413_s5 + $0x94] sm:$0xf] }
  0xae   : > { %825 = vst [vmem:[%s4417_s23 + $0x20] sm:$0xf] %v3111_v8  ;;  %v3122_v19 = vld [vmem:[%s4413_s5 + $0x9c] sm:$0xf]  ;;  %v3123_v20 = vld [vmem:[%s4413_s5 + $0xa4] sm:$0xf] }
  0xaf   : > { %827 = vst [vmem:[%s4417_s23 + $0x24] sm:$0xf] %v3112_v9  ;;  %v3124_v21 = vld [vmem:[%s4413_s5 + $0xac] sm:$0xf]  ;;  %v3125_v22 = vld [vmem:[%s4413_s5 + $0xb4] sm:$0xf] }
  0xb0   : > { %829 = vst [vmem:[%s4417_s23 + $0x28] sm:$0xf] %v3113_v10  ;;  %v3126_v23 = vld [vmem:[%s4413_s5 + $0xbc] sm:$0xf]  ;;  %v3127_v24 = vld [vmem:[%s4413_s5 + $0xc4] sm:$0xf] }
  0xb1   : > { %831 = vst [vmem:[%s4417_s23 + $0x2c] sm:$0xf] %v3114_v11  ;;  %v3128_v25 = vld [vmem:[%s4413_s5 + $0xcc] sm:$0xf]  ;;  %v3129_v26 = vld [vmem:[%s4413_s5 + $0xd4] sm:$0xf] }
  0xb2   : > { %833 = vst [vmem:[%s4417_s23 + $0x30] sm:$0xf] %v3115_v12  ;;  %v3130_v27 = vld [vmem:[%s4413_s5 + $0xdc] sm:$0xf]  ;;  %v3131_v28 = vld [vmem:[%s4413_s5 + $0xe4] sm:$0xf] }
  0xb3   : > { %835 = vst [vmem:[%s4417_s23 + $0x34] sm:$0xf] %v3116_v13  ;;  %v3132_v29 = vld [vmem:[%s4413_s5 + $0xec] sm:$0xf]  ;;  %v3133_v30 = vld [vmem:[%s4413_s5 + $0xf4] sm:$0xf] }
  0xb4   : > { %837 = vst [vmem:[%s4417_s23 + $0x38] sm:$0xf] %v3117_v14  ;;  %v3134_v31 = vld [vmem:[%s4413_s5 + $0xfc] sm:$0xf] }
  0xb5   : > { %839 = vst [vmem:[%s4417_s23 + $0x3c] sm:$0xf] %v3118_v15 }
  0xb6   : > { %841 = vst [vmem:[%s4417_s23 + $0x40] sm:$0xf] %v3119_v16 }
  0xb7   : > { %843 = vst [vmem:[%s4417_s23 + $0x44] sm:$0xf] %v3120_v17 }
  0xb8   : > { %845 = vst [vmem:[%s4417_s23 + $0x48] sm:$0xf] %v3121_v18 }
  0xb9   : > { %847 = vst [vmem:[%s4417_s23 + $0x4c] sm:$0xf] %v3122_v19 }
  0xba   : > { %849 = vst [vmem:[%s4417_s23 + $0x50] sm:$0xf] %v3123_v20 }
  0xbb   : > { %851 = vst [vmem:[%s4417_s23 + $0x54] sm:$0xf] %v3124_v21 }
  0xbc   : > { %853 = vst [vmem:[%s4417_s23 + $0x58] sm:$0xf] %v3125_v22 }
  0xbd   : > { %855 = vst [vmem:[%s4417_s23 + $0x5c] sm:$0xf] %v3126_v23 }
  0xbe   : > { %857 = vst [vmem:[%s4417_s23 + $0x60] sm:$0xf] %v3127_v24 }
  0xbf   : > { %859 = vst [vmem:[%s4417_s23 + $0x64] sm:$0xf] %v3128_v25 }
  0xc0   : > { %861 = vst [vmem:[%s4417_s23 + $0x68] sm:$0xf] %v3129_v26 }
  0xc1   : > { %863 = vst [vmem:[%s4417_s23 + $0x6c] sm:$0xf] %v3130_v27 }
  0xc2   : > { %865 = vst [vmem:[%s4417_s23 + $0x70] sm:$0xf] %v3131_v28 }
  0xc3   : > { %867 = vst [vmem:[%s4417_s23 + $0x74] sm:$0xf] %v3132_v29 }
  0xc4   : > { %869 = vst [vmem:[%s4417_s23 + $0x78] sm:$0xf] %v3133_v30 }
  0xc5   : > { %871 = vst [vmem:[%s4417_s23 + $0x7c] sm:$0xf] %v3134_v31 }
  0xc6 PF: > { %962 = sbr.rel (%p4065_p7) target bundleno = 984 (0x3d8), region = 144  ;;  %s965_s6 = sand.u32 (!%p4065_p7), 1, %s3979_s15  }
  0xc7   : > { %s3136_s7 = sshll.u32 (!%p4065_p7), %s965_s6, 9  ;;  %s3137_s8 = sshll.u32 (!%p4065_p7), %s965_s6, 7 }
  0xc8   : > { %s4484_s9 = scalar_lea.vmem (!%p4065_p7), [#allocation3], %s3136_s7  ;;  %s4486_s10 = scalar_lea.vmem (!%p4065_p7), [#allocation4], %s3137_s8 }
  0xc9   : > { %p3138_p10 = scmp.ne.s32.totalorder (!%p4065_p7), %s3987_s17, 0 }
  0xcb   : > { %1028 = sbr.rel (%p3138_p10) target bundleno = 273 (0x111), region = 160 }
  0xd0   : > { %v3997_v32 = vmov 0.0  }
  0xd1   : > { %1029 = vst [vmem:[#allocation2 + $0xb0] sm:$0xff] %v3997_v32 }
  0xd2   : > { %1030 = vst [vmem:[#allocation2 + $0x1b0] sm:$0xff] %v3997_v32 }
  0xd3   : > { %1031 = vst [vmem:[#allocation2 + $0xd8] sm:$0xff] %v3997_v32 }
  0xd4   : > { %1032 = vst [vmem:[#allocation2 + $0x18] sm:$0xff] %v3997_v32 }
  0xd5   : > { %1033 = vst [vmem:[#allocation2 + $0x50] sm:$0xff] %v3997_v32 }
  0xd6   : > { %1034 = vst [vmem:[#allocation2 + $0x168] sm:$0xff] %v3997_v32 }
  0xd7   : > { %1035 = vst [vmem:[#allocation2 + $0x130] sm:$0xff] %v3997_v32 }
  0xd8   : > { %1036 = vst [vmem:[#allocation2 + $0x48] sm:$0xff] %v3997_v32 }
  0xd9   : > { %1037 = vst [vmem:[#allocation2 + $0x180] sm:$0xff] %v3997_v32 }
  0xda   : > { %1038 = vst [vmem:[#allocation2 + $0x110] sm:$0xff] %v3997_v32 }
  0xdb   : > { %1039 = vst [vmem:[#allocation2 + $0x118] sm:$0xff] %v3997_v32 }
  0xdc   : > { %1040 = vst [vmem:[#allocation2 + $0x98] sm:$0xff] %v3997_v32 }
  0xdd   : > { %1041 = vst [vmem:[#allocation2 + $0x120] sm:$0xff] %v3997_v32 }
  0xde   : > { %1042 = vst [vmem:[#allocation2 + $0x150] sm:$0xff] %v3997_v32 }
  0xdf   : > { %1043 = vst [vmem:[#allocation2 + $0x108] sm:$0xff] %v3997_v32 }
  0xe0   : > { %1044 = vst [vmem:[#allocation2 + $0x60] sm:$0xff] %v3997_v32 }
  0xe1   : > { %1045 = vst [vmem:[#allocation2 + $0xe0] sm:$0xff] %v3997_v32 }
  0xe2   : > { %1046 = vst [vmem:[#allocation2 + $0x188] sm:$0xff] %v3997_v32 }
  0xe3   : > { %1047 = vst [vmem:[#allocation2 + $0x138] sm:$0xff] %v3997_v32 }
  0xe4   : > { %1048 = vst [vmem:[#allocation2 + $0x140] sm:$0xff] %v3997_v32 }
  0xe5   : > { %1049 = vst [vmem:[#allocation2 + $0x80] sm:$0xff] %v3997_v32 }
  0xe6   : > { %1050 = vst [vmem:[#allocation2 + $0x1a8] sm:$0xff] %v3997_v32 }
  0xe7   : > { %1051 = vst [vmem:[#allocation2 + $0x1b8] sm:$0xff] %v3997_v32 }
  0xe8   : > { %1052 = vst [vmem:[#allocation2 + $0x28] sm:$0xff] %v3997_v32 }
  0xe9   : > { %1053 = vst [vmem:[#allocation2 + $0x1e8] sm:$0xff] %v3997_v32 }
  0xea   : > { %1054 = vst [vmem:[#allocation2 + $0xf8] sm:$0xff] %v3997_v32 }
  0xeb   : > { %1055 = vst [vmem:[#allocation2 + $0x160] sm:$0xff] %v3997_v32 }
  0xec   : > { %1056 = vst [vmem:[#allocation2 + $0x30] sm:$0xff] %v3997_v32 }
  0xed   : > { %1057 = vst [vmem:[#allocation2 + $0x1e0] sm:$0xff] %v3997_v32 }
  0xee   : > { %1058 = vst [vmem:[#allocation2] sm:$0xff] %v3997_v32 }
  0xef   : > { %1059 = vst [vmem:[#allocation2 + $0xf0] sm:$0xff] %v3997_v32 }
  0xf0   : > { %1060 = vst [vmem:[#allocation2 + $0x8] sm:$0xff] %v3997_v32 }
  0xf1   : > { %1061 = vst [vmem:[#allocation2 + $0x148] sm:$0xff] %v3997_v32 }
  0xf2   : > { %1062 = vst [vmem:[#allocation2 + $0x1d0] sm:$0xff] %v3997_v32 }
  0xf3   : > { %1063 = vst [vmem:[#allocation2 + $0x100] sm:$0xff] %v3997_v32 }
  0xf4   : > { %1064 = vst [vmem:[#allocation2 + $0xc8] sm:$0xff] %v3997_v32 }
  0xf5   : > { %1065 = vst [vmem:[#allocation2 + $0x40] sm:$0xff] %v3997_v32 }
  0xf6   : > { %1066 = vst [vmem:[#allocation2 + $0x1f8] sm:$0xff] %v3997_v32 }
  0xf7   : > { %1067 = vst [vmem:[#allocation2 + $0x20] sm:$0xff] %v3997_v32 }
  0xf8   : > { %1068 = vst [vmem:[#allocation2 + $0x128] sm:$0xff] %v3997_v32 }
  0xf9   : > { %1069 = vst [vmem:[#allocation2 + $0x1a0] sm:$0xff] %v3997_v32 }
  0xfa   : > { %1070 = vst [vmem:[#allocation2 + $0x1f0] sm:$0xff] %v3997_v32 }
  0xfb   : > { %1071 = vst [vmem:[#allocation2 + $0xe8] sm:$0xff] %v3997_v32 }
  0xfc   : > { %1072 = vst [vmem:[#allocation2 + $0x78] sm:$0xff] %v3997_v32 }
  0xfd   : > { %1073 = vst [vmem:[#allocation2 + $0x70] sm:$0xff] %v3997_v32 }
  0xfe   : > { %1074 = vst [vmem:[#allocation2 + $0x90] sm:$0xff] %v3997_v32 }
  0xff   : > { %1075 = vst [vmem:[#allocation2 + $0x1d8] sm:$0xff] %v3997_v32 }
 0x100   : > { %1076 = vst [vmem:[#allocation2 + $0xd0] sm:$0xff] %v3997_v32 }
 0x101   : > { %1077 = vst [vmem:[#allocation2 + $0xb8] sm:$0xff] %v3997_v32 }
 0x102   : > { %1078 = vst [vmem:[#allocation2 + $0x88] sm:$0xff] %v3997_v32 }
 0x103   : > { %1079 = vst [vmem:[#allocation2 + $0xa8] sm:$0xff] %v3997_v32 }
 0x104   : > { %1080 = vst [vmem:[#allocation2 + $0x1c8] sm:$0xff] %v3997_v32 }
 0x105   : > { %1081 = vst [vmem:[#allocation2 + $0x170] sm:$0xff] %v3997_v32 }
 0x106   : > { %1082 = vst [vmem:[#allocation2 + $0x178] sm:$0xff] %v3997_v32 }
 0x107   : > { %1083 = vst [vmem:[#allocation2 + $0x68] sm:$0xff] %v3997_v32 }
 0x108   : > { %1084 = vst [vmem:[#allocation2 + $0x190] sm:$0xff] %v3997_v32 }
 0x109   : > { %1085 = vst [vmem:[#allocation2 + $0x198] sm:$0xff] %v3997_v32 }
 0x10a   : > { %1086 = vst [vmem:[#allocation2 + $0x38] sm:$0xff] %v3997_v32 }
 0x10b   : > { %1087 = vst [vmem:[#allocation2 + $0xc0] sm:$0xff] %v3997_v32 }
 0x10c   : > { %1088 = vst [vmem:[#allocation2 + $0x1c0] sm:$0xff] %v3997_v32 }
 0x10d   : > { %1089 = vst [vmem:[#allocation2 + $0x158] sm:$0xff] %v3997_v32 }
 0x10e   : > { %1090 = vst [vmem:[#allocation2 + $0x10] sm:$0xff] %v3997_v32 }
 0x10f   : > { %1091 = vst [vmem:[#allocation2 + $0x58] sm:$0xff] %v3997_v32 }
 0x110   : > { %1092 = vst [vmem:[#allocation2 + $0xa0] sm:$0xff] %v3997_v32 }
 0x111 PF: > { %v3537_v33 = vld [vmem:[%s4486_s10 + $0x38] sm:$0xff]  ;;  %v3536_v35 = vld [vmem:[%s4486_s10 + $0x30] sm:$0xff]  ;;  %v3535_v37 = vld [vmem:[%s4486_s10 + $0x28] sm:$0xff]  ;;  %p3459_p11 = scmp.ne.s32.totalorder %s3987_s17, 1 }
 0x112   : > { %v3545_v34 = vld [vmem:[%s4486_s10 + $0x78] sm:$0xff]  ;;  %1669 = vmatpush.bf16.msra.mxu0 %v3537_v33  ;;  %3896 = vmatpush.bf16.msra.mxu2 %v3537_v33  ;;  %v3544_v36 = vld [vmem:[%s4486_s10 + $0x70] sm:$0xff]  ;;  %v3543_v38 = vld [vmem:[%s4486_s10 + $0x68] sm:$0xff] }
 0x113   : > { %1838 = vmatpush.bf16.msra.mxu1 %v3545_v34  ;;  %3904 = vmatpush.bf16.msra.mxu3 %v3545_v34  ;;  %v3534_v39 = vld [vmem:[%s4486_s10 + $0x20] sm:$0xff]  ;;  %v3533_v41 = vld [vmem:[%s4486_s10 + $0x18] sm:$0xff]  ;;  %v3532_v43 = vld [vmem:[%s4486_s10 + $0x10] sm:$0xff] }
 0x114   : > { %v3542_v40 = vld [vmem:[%s4486_s10 + $0x60] sm:$0xff]  ;;  %v3541_v42 = vld [vmem:[%s4486_s10 + $0x58] sm:$0xff]  ;;  %v3540_v44 = vld [vmem:[%s4486_s10 + $0x50] sm:$0xff] }
 0x115   : > { %v3531_v45 = vld [vmem:[%s4486_s10 + $0x8] sm:$0xff]  ;;  %v3530_v47 = vld [vmem:[%s4486_s10] sm:$0xff]  ;;  %v3149_v61 = vld [vmem:[%s4484_s9 + $0x10] sm:$0xf] }
 0x116   : > { %1670 = vmatpush.bf16.msra.mxu0 %v3536_v35  ;;  %3897 = vmatpush.bf16.msra.mxu2 %v3536_v35  ;;  %v3539_v46 = vld [vmem:[%s4486_s10 + $0x48] sm:$0xff]  ;;  %v3538_v48 = vld [vmem:[%s4486_s10 + $0x40] sm:$0xff]  ;;  %v3469_v62 = vld [vmem:[%s4484_s9 + $0x14] sm:$0xf0] }
 0x117   : > { %1839 = vmatpush.bf16.msra.mxu1 %v3544_v36  ;;  %3905 = vmatpush.bf16.msra.mxu3 %v3544_v36  ;;  %v3141_v49 = vld [vmem:[%s4484_s9] sm:$0xf]  ;;  %v3467_v50 = vld [vmem:[%s4484_s9 + $0x4] sm:$0xf0]  ;;  %v3466_v53 = vld [vmem:[%s4484_s9 + $0x4] sm:$0xf]  ;;  %v3150_v5 = vor.u32 %v3469_v62, %v3149_v61 }
 0x118   : > { %v3269_v51 = vld [vmem:[%s4484_s9 + $0x100] sm:$0xf]  ;;  %v3499_v52 = vld [vmem:[%s4484_s9 + $0x104] sm:$0xf0]  ;;  %v3143_v54 = vld [vmem:[%s4484_s9 + $0x8] sm:$0xf0]  ;;  %v3142_v57 = vor.u32 %v3467_v50, %v3141_v49 }
 0x119   : > { %v3498_v55 = vld [vmem:[%s4484_s9 + $0x104] sm:$0xf]  ;;  %v3271_v56 = vld [vmem:[%s4484_s9 + $0x108] sm:$0xf0]  ;;  %v3270_v58 = vor.u32 %v3499_v52, %v3269_v51  ;;  %v3146_v59 = vor.u32 %v3466_v53, %v3143_v54  ;;  %v3277_v63 = vld [vmem:[%s4484_s9 + $0x110] sm:$0xf] }
 0x11a   : > { %1671 = vmatpush.bf16.msra.mxu0 %v3535_v37  ;;  %3898 = vmatpush.bf16.msra.mxu2 %v3535_v37  ;;  %v3274_v60 = vor.u32 %v3498_v55, %v3271_v56  ;;  %v3501_v0 = vld [vmem:[%s4484_s9 + $0x114] sm:$0xf0]  ;;  %v3468_v1 = vld [vmem:[%s4484_s9 + $0x14] sm:$0xf]  ;;  %v3151_v2 = vld [vmem:[%s4484_s9 + $0x18] sm:$0xf0] }
 0x11b   : > { %1840 = vmatpush.bf16.msra.mxu1 %v3543_v38  ;;  %3906 = vmatpush.bf16.msra.mxu3 %v3543_v38  ;;  %v3500_v3 = vld [vmem:[%s4484_s9 + $0x114] sm:$0xf]  ;;  %v3279_v4 = vld [vmem:[%s4484_s9 + $0x118] sm:$0xf0]  ;;  %v3278_v6 = vor.u32 %v3501_v0, %v3277_v63  ;;  %v3154_v7 = vor.u32 %v3468_v1, %v3151_v2  ;;  %v3157_v9 = vld [vmem:[%s4484_s9 + $0x20] sm:$0xf] }
 0x11c   : > { %v3282_v8 = vor.u32 %v3500_v3, %v3279_v4  ;;  %v3471_v10 = vld [vmem:[%s4484_s9 + $0x24] sm:$0xf0]  ;;  %v3285_v11 = vld [vmem:[%s4484_s9 + $0x120] sm:$0xf]  ;;  %v3470_v13 = vld [vmem:[%s4484_s9 + $0x24] sm:$0xf] }
 0x11d   : > { %v3503_v12 = vld [vmem:[%s4484_s9 + $0x124] sm:$0xf0]  ;;  %v3159_v14 = vld [vmem:[%s4484_s9 + $0x28] sm:$0xf0]  ;;  %v3502_v15 = vld [vmem:[%s4484_s9 + $0x124] sm:$0xf]  ;;  %v3158_v17 = vor.u32 %v3471_v10, %v3157_v9 }
 0x11e   : > { %1672 = vmatpush.bf16.msra.mxu0 %v3534_v39  ;;  %3899 = vmatpush.bf16.msra.mxu2 %v3534_v39  ;;  %v3287_v16 = vld [vmem:[%s4484_s9 + $0x128] sm:$0xf0]  ;;  %v3286_v18 = vor.u32 %v3503_v12, %v3285_v11  ;;  %v3162_v19 = vor.u32 %v3470_v13, %v3159_v14  ;;  %v3165_v21 = vld [vmem:[%s4484_s9 + $0x30] sm:$0xf]  ;;  %v3473_v22 = vld [vmem:[%s4484_s9 + $0x34] sm:$0xf0] }
 0x11f   : > { %1841 = vmatpush.bf16.msra.mxu1 %v3542_v40  ;;  %3907 = vmatpush.bf16.msra.mxu3 %v3542_v40  ;;  %v3290_v20 = vor.u32 %v3502_v15, %v3287_v16  ;;  %v3293_v23 = vld [vmem:[%s4484_s9 + $0x130] sm:$0xf]  ;;  %v3505_v24 = vld [vmem:[%s4484_s9 + $0x134] sm:$0xf0]  ;;  %v3472_v25 = vld [vmem:[%s4484_s9 + $0x34] sm:$0xf]  ;;  %v3166_v29 = vor.u32 %v3473_v22, %v3165_v21 }
 0x120   : > { %v3167_v26 = vld [vmem:[%s4484_s9 + $0x38] sm:$0xf0]  ;;  %v3504_v27 = vld [vmem:[%s4484_s9 + $0x134] sm:$0xf]  ;;  %v3294_v30 = vor.u32 %v3505_v24, %v3293_v23  ;;  %v3173_v33 = vld [vmem:[%s4484_s9 + $0x40] sm:$0xf] }
 0x121   : > { %v3295_v28 = vld [vmem:[%s4484_s9 + $0x138] sm:$0xf0]  ;;  %v3170_v31 = vor.u32 %v3472_v25, %v3167_v26  ;;  %v3475_v34 = vld [vmem:[%s4484_s9 + $0x44] sm:$0xf0]  ;;  %v3301_v35 = vld [vmem:[%s4484_s9 + $0x140] sm:$0xf] }
 0x122   : > { %1673 = vmatpush.bf16.msra.mxu0 %v3533_v41  ;;  %3900 = vmatpush.bf16.msra.mxu2 %v3533_v41  ;;  %v3298_v32 = vor.u32 %v3504_v27, %v3295_v28  ;;  %v3507_v36 = vld [vmem:[%s4484_s9 + $0x144] sm:$0xf0]  ;;  %v3474_v37 = vld [vmem:[%s4484_s9 + $0x44] sm:$0xf]  ;;  %v3175_v38 = vld [vmem:[%s4484_s9 + $0x48] sm:$0xf0]  ;;  %v3174_v41 = vor.u32 %v3475_v34, %v3173_v33 }
 0x123   : > { %1842 = vmatpush.bf16.msra.mxu1 %v3541_v42  ;;  %3908 = vmatpush.bf16.msra.mxu3 %v3541_v42  ;;  %v3506_v39 = vld [vmem:[%s4484_s9 + $0x144] sm:$0xf]  ;;  %v3303_v40 = vld [vmem:[%s4484_s9 + $0x148] sm:$0xf0]  ;;  %v3302_v42 = vor.u32 %v3507_v36, %v3301_v35  ;;  %v3476_v49 = vld [vmem:[%s4484_s9 + $0x54] sm:$0xf] }
 0x124   : > { %v3183_v50 = vld [vmem:[%s4484_s9 + $0x58] sm:$0xf0]  ;;  %v3508_v51 = vld [vmem:[%s4484_s9 + $0x154] sm:$0xf]  ;;  %v3478_v61 = vld [vmem:[%s4484_s9 + $0x64] sm:$0xf] }
 0x125   : > { %v3311_v52 = vld [vmem:[%s4484_s9 + $0x158] sm:$0xf0]  ;;  %v3186_v55 = vor.u32 %v3476_v49, %v3183_v50  ;;  %v3191_v62 = vld [vmem:[%s4484_s9 + $0x68] sm:$0xf0]  ;;  %v3510_v63 = vld [vmem:[%s4484_s9 + $0x164] sm:$0xf] }
 0x126   : > { %1674 = vmatpush.bf16.msra.mxu0 %v3532_v43  ;;  %3901 = vmatpush.bf16.msra.mxu2 %v3532_v43  ;;  %v3178_v43 = vor.u32 %v3474_v37, %v3175_v38  ;;  %v3314_v56 = vor.u32 %v3508_v51, %v3311_v52  ;;  %v3319_v0 = vld [vmem:[%s4484_s9 + $0x168] sm:$0xf0]  ;;  %v3194_v3 = vor.u32 %v3478_v61, %v3191_v62  ;;  %v3480_v9 = vld [vmem:[%s4484_s9 + $0x74] sm:$0xf]  ;;  %v3199_v10 = vld [vmem:[%s4484_s9 + $0x78] sm:$0xf0] }
 0x127   : > { %1843 = vmatpush.bf16.msra.mxu1 %v3540_v44  ;;  %3909 = vmatpush.bf16.msra.mxu3 %v3540_v44  ;;  %v3306_v44 = vor.u32 %v3506_v39, %v3303_v40  ;;  %v3322_v4 = vor.u32 %v3510_v63, %v3319_v0  ;;  %v3512_v11 = vld [vmem:[%s4484_s9 + $0x174] sm:$0xf]  ;;  %v3327_v12 = vld [vmem:[%s4484_s9 + $0x178] sm:$0xf0]  ;;  %v3202_v15 = vor.u32 %v3480_v9, %v3199_v10  ;;  %v3482_v21 = vld [vmem:[%s4484_s9 + $0x84] sm:$0xf] }
 0x128   : > { %v3330_v16 = vor.u32 %v3512_v11, %v3327_v12  ;;  %v3207_v22 = vld [vmem:[%s4484_s9 + $0x88] sm:$0xf0]  ;;  %v3514_v23 = vld [vmem:[%s4484_s9 + $0x184] sm:$0xf]  ;;  %v1094_v39 = vld [vmem:[#allocation2 + $0x1b0] sm:$0xff] }
 0x129   : > { %v3335_v24 = vld [vmem:[%s4484_s9 + $0x188] sm:$0xf0]  ;;  %v3210_v28 = vor.u32 %v3482_v21, %v3207_v22  ;;  %v3215_v49 = vld [vmem:[%s4484_s9 + $0x98] sm:$0xf0]  ;;  %v3516_v50 = vld [vmem:[%s4484_s9 + $0x194] sm:$0xf] }
 0x12a   : > { %1675 = vmatpush.bf16.msra.mxu0 %v3531_v45  ;;  %3902 = vmatpush.bf16.msra.mxu2 %v3531_v45  ;;  %v3181_v45 = vld [vmem:[%s4484_s9 + $0x50] sm:$0xf]  ;;  %v1125_v35 = vld [vmem:[#allocation2 + $0x148] sm:$0xff]  ;;  %v3343_v51 = vld [vmem:[%s4484_s9 + $0x198] sm:$0xf0] }
 0x12b   : > { %1844 = vmatpush.bf16.msra.mxu1 %v3539_v46  ;;  %3910 = vmatpush.bf16.msra.mxu3 %v3539_v46  ;;  %v3477_v46 = vld [vmem:[%s4484_s9 + $0x54] sm:$0xf0]  ;;  %v3221_v11 = vld [vmem:[%s4484_s9 + $0xa0] sm:$0xf]  ;;  %v3487_v12 = vld [vmem:[%s4484_s9 + $0xa4] sm:$0xf0] }
 0x12c   : > { %v3182_v53 = vor.u32 %v3477_v46, %v3181_v45  ;;  %v3341_v45 = vld [vmem:[%s4484_s9 + $0x190] sm:$0xf]  ;;  %v1095_v61 = vld [vmem:[#allocation2 + $0xd8] sm:$0xff]  ;;  %v1128_v21 = vld [vmem:[#allocation2 + $0xc8] sm:$0xff] }
 0x12e   : > { %1676 = vmatpush.bf16.msra.mxu0 %v3530_v47  ;;  %3903 = vmatpush.bf16.msra.mxu2 %v3530_v47  ;;  %v3309_v47 = vld [vmem:[%s4484_s9 + $0x150] sm:$0xf] }
 0x12f   : > { %1845 = vmatpush.bf16.msra.mxu1 %v3538_v48  ;;  %3911 = vmatpush.bf16.msra.mxu3 %v3538_v48  ;;  %v3509_v48 = vld [vmem:[%s4484_s9 + $0x154] sm:$0xf0] }
 0x130   : > { %v3310_v54 = vor.u32 %v3509_v48, %v3309_v47  ;;  %v3517_v47 = vld [vmem:[%s4484_s9 + $0x194] sm:$0xf0]  ;;  %v3484_v48 = vld [vmem:[%s4484_s9 + $0x94] sm:$0xf] }
 0x131   : > { %1677 = vmatmul.bf16.vlgmr.msra.gmra.mxu0 %v3142_v57  ;;  %1757 = vmatmul.bf16.vlgmr.msra.gmra.mxu2 %v3270_v58  ;;  %v3189_v57 = vld [vmem:[%s4484_s9 + $0x60] sm:$0xf]  ;;  %v3479_v58 = vld [vmem:[%s4484_s9 + $0x64] sm:$0xf0] }
 0x132   : > { %1846 = vmatmul.bf16.vlgmr.msra.gmra.mxu1 %v3146_v59  ;;  %1926 = vmatmul.bf16.vlgmr.msra.gmra.mxu3 %v3274_v60  ;;  %v3317_v59 = vld [vmem:[%s4484_s9 + $0x160] sm:$0xf]  ;;  %v3511_v60 = vld [vmem:[%s4484_s9 + $0x164] sm:$0xf0]  ;;  %v3190_v1 = vor.u32 %v3479_v58, %v3189_v57 }
 0x133   : > { %v3318_v2 = vor.u32 %v3511_v60, %v3317_v59  ;;  %v3218_v59 = vor.u32 %v3484_v48, %v3215_v49  ;;  %v3346_v60 = vor.u32 %v3516_v50, %v3343_v51  ;;  %v3488_v48 = vld [vmem:[%s4484_s9 + $0xb4] sm:$0xf]  ;;  %v3231_v49 = vld [vmem:[%s4484_s9 + $0xb8] sm:$0xf0] }
 0x134   : > { %v3520_v50 = vld [vmem:[%s4484_s9 + $0x1b4] sm:$0xf]  ;;  %v3359_v51 = vld [vmem:[%s4484_s9 + $0x1b8] sm:$0xf0] }
 0x141   : > { %1682 = vmatmul.bf16.gmra.mxu0 %v3150_v5  ;;  %1762 = vmatmul.bf16.gmra.mxu2 %v3278_v6  ;;  %v3197_v5 = vld [vmem:[%s4484_s9 + $0x70] sm:$0xf]  ;;  %v3481_v6 = vld [vmem:[%s4484_s9 + $0x74] sm:$0xf0] }
 0x142   : > { %1851 = vmatmul.bf16.gmra.mxu1 %v3154_v7  ;;  %1931 = vmatmul.bf16.gmra.mxu3 %v3282_v8  ;;  %v3325_v7 = vld [vmem:[%s4484_s9 + $0x170] sm:$0xf]  ;;  %v3513_v8 = vld [vmem:[%s4484_s9 + $0x174] sm:$0xf0]  ;;  %v3198_v13 = vor.u32 %v3481_v6, %v3197_v5 }
 0x143   : > { %v3326_v14 = vor.u32 %v3513_v8, %v3325_v7  ;;  %v1096_v7 = vld [vmem:[#allocation2 + $0x18] sm:$0xff] }
 0x151   : > { %1687 = vmatmul.bf16.gmra.mxu0 %v3158_v17  ;;  %1767 = vmatmul.bf16.gmra.mxu2 %v3286_v18  ;;  %v3205_v17 = vld [vmem:[%s4484_s9 + $0x80] sm:$0xf]  ;;  %v3483_v18 = vld [vmem:[%s4484_s9 + $0x84] sm:$0xf0] }
 0x152   : > { %1856 = vmatmul.bf16.gmra.mxu1 %v3162_v19  ;;  %1936 = vmatmul.bf16.gmra.mxu3 %v3290_v20  ;;  %v3333_v19 = vld [vmem:[%s4484_s9 + $0x180] sm:$0xf]  ;;  %v3515_v20 = vld [vmem:[%s4484_s9 + $0x184] sm:$0xf0]  ;;  %v3206_v25 = vor.u32 %v3483_v18, %v3205_v17  ;;  %v3223_v17 = vld [vmem:[%s4484_s9 + $0xa8] sm:$0xf0] }
 0x153   : > { %v3334_v26 = vor.u32 %v3515_v20, %v3333_v19  ;;  %v3518_v18 = vld [vmem:[%s4484_s9 + $0x1a4] sm:$0xf]  ;;  %v3351_v19 = vld [vmem:[%s4484_s9 + $0x1a8] sm:$0xf0] }
 0x161   : > { %1692 = vmatmul.bf16.gmra.mxu0 %v3166_v29  ;;  %1772 = vmatmul.bf16.gmra.mxu2 %v3294_v30  ;;  %v3338_v29 = vor.u32 %v3514_v23, %v3335_v24  ;;  %v1093_v30 = vld [vmem:[#allocation2 + $0xb0] sm:$0xff]  ;;  %v3222_v23 = vor.u32 %v3487_v12, %v3221_v11  ;;  %v3237_v11 = vld [vmem:[%s4484_s9 + $0xc0] sm:$0xf]  ;;  %v3491_v12 = vld [vmem:[%s4484_s9 + $0xc4] sm:$0xf0] }
 0x162   : > { %1861 = vmatmul.bf16.gmra.mxu1 %v3170_v31  ;;  %1941 = vmatmul.bf16.gmra.mxu3 %v3298_v32 }
 0x171   : > { %1697 = vmatmul.bf16.gmra.mxu0 %v3174_v41  ;;  %1777 = vmatmul.bf16.gmra.mxu2 %v3302_v42 }
 0x172   : > { %1866 = vmatmul.bf16.gmra.mxu1 %v3178_v43  ;;  %1946 = vmatmul.bf16.gmra.mxu3 %v3306_v44  ;;  %v3213_v43 = vld [vmem:[%s4484_s9 + $0x90] sm:$0xf]  ;;  %v3485_v44 = vld [vmem:[%s4484_s9 + $0x94] sm:$0xf0] }
 0x181   : > { %1702 = vmatmul.bf16.gmra.mxu0 %v3182_v53  ;;  %1782 = vmatmul.bf16.gmra.mxu2 %v3310_v54  ;;  %v1126_v53 = vld [vmem:[#allocation2 + $0x1d0] sm:$0xff] }
 0x182   : > { %1871 = vmatmul.bf16.gmra.mxu1 %v3186_v55  ;;  %1951 = vmatmul.bf16.gmra.mxu3 %v3314_v56  ;;  %v3214_v55 = vor.u32 %v3485_v44, %v3213_v43  ;;  %v3342_v56 = vor.u32 %v3517_v47, %v3341_v45  ;;  %v3229_v43 = vld [vmem:[%s4484_s9 + $0xb0] sm:$0xf]  ;;  %v3489_v44 = vld [vmem:[%s4484_s9 + $0xb4] sm:$0xf0] }
 0x183   : > { %v3357_v45 = vld [vmem:[%s4484_s9 + $0x1b0] sm:$0xf]  ;;  %v3521_v47 = vld [vmem:[%s4484_s9 + $0x1b4] sm:$0xf0] }
 0x191   : > { %1707 = vmatmul.bf16.gmra.mxu0 %v3190_v1  ;;  %1787 = vmatmul.bf16.gmra.mxu2 %v3318_v2 }
 0x192   : > { %1876 = vmatmul.bf16.gmra.mxu1 %v3194_v3  ;;  %1956 = vmatmul.bf16.gmra.mxu3 %v3322_v4  ;;  %v1127_v3 = vld [vmem:[#allocation2 + $0x100] sm:$0xff] }
 0x1a1   : > { %1712 = vmatmul.bf16.gmra.mxu0 %v3198_v13  ;;  %1792 = vmatmul.bf16.gmra.mxu2 %v3326_v14  ;;  %v3349_v13 = vld [vmem:[%s4484_s9 + $0x1a0] sm:$0xf] }
 0x1a2   : > { %1881 = vmatmul.bf16.gmra.mxu1 %v3202_v15  ;;  %1961 = vmatmul.bf16.gmra.mxu3 %v3330_v16  ;;  %v3519_v15 = vld [vmem:[%s4484_s9 + $0x1a4] sm:$0xf0]  ;;  %v3486_v16 = vld [vmem:[%s4484_s9 + $0xa4] sm:$0xf] }
 0x1a3   : > { %v3350_v24 = vor.u32 %v3519_v15, %v3349_v13  ;;  %v3365_v13 = vld [vmem:[%s4484_s9 + $0x1c0] sm:$0xf]  ;;  %v3523_v15 = vld [vmem:[%s4484_s9 + $0x1c4] sm:$0xf0] }
 0x1ae   : > { %v1678_v27 = vpop.f32.mrf.mxu0 }
 0x1af   : > { %v1847_v31 = vpop.f32.mrf.mxu1 }
 0x1b0   : > { %v1848_v32 = vadd.f32 %v1847_v31, %v1678_v27  ;;  %v3226_v27 = vor.u32 %v3486_v16, %v3223_v17  ;;  %v3490_v16 = vld [vmem:[%s4484_s9 + $0xc4] sm:$0xf]  ;;  %v3239_v17 = vld [vmem:[%s4484_s9 + $0xc8] sm:$0xf0] }
 0x1b1   : > { %1717 = vmatmul.bf16.gmra.mxu0 %v3206_v25  ;;  %1797 = vmatmul.bf16.gmra.mxu2 %v3334_v26 }
 0x1b2   : > { %v2007_v33 = vadd.f32 %v1848_v32, %v1093_v30  ;;  %1886 = vmatmul.bf16.gmra.mxu1 %v3210_v28  ;;  %1966 = vmatmul.bf16.gmra.mxu3 %v3338_v29  ;;  %v3354_v28 = vor.u32 %v3518_v18, %v3351_v19  ;;  %v1097_v29 = vld [vmem:[#allocation2 + $0x50] sm:$0xff]  ;;  %v3522_v18 = vld [vmem:[%s4484_s9 + $0x1c4] sm:$0xf]  ;;  %v3367_v19 = vld [vmem:[%s4484_s9 + $0x1c8] sm:$0xf0] }
 0x1b4   : > { %2071 = vst [vmem:[#allocation2 + $0xb0] sm:$0xff] %v2007_v33  ;;  %v1758_v34 = vpop.f32.mrf.mxu2 }
 0x1b5   : > { %v1927_v36 = vpop.f32.mrf.mxu3 }
 0x1b6   : > { %v1928_v37 = vadd.f32 %v1927_v36, %v1758_v34  ;;  %v1680_v38 = vpop.f32.mrf.mxu0 }
 0x1b7   : > { %v1849_v40 = vpop.f32.mrf.mxu1 }
 0x1b8   : > { %v2039_v41 = vadd.f32 %v1928_v37, %v1125_v35  ;;  %v1850_v42 = vadd.f32 %v1849_v40, %v1680_v38  ;;  %v1129_v35 = vld [vmem:[#allocation2 + $0x40] sm:$0xff] }
 0x1ba   : > { %2103 = vst [vmem:[#allocation2 + $0x148] sm:$0xff] %v2039_v41  ;;  %v2008_v46 = vadd.f32 %v1850_v42, %v1094_v39  ;;  %v1098_v39 = vld [vmem:[#allocation2 + $0x168] sm:$0xff] }
 0x1bc   : > { %2072 = vst [vmem:[#allocation2 + $0x1b0] sm:$0xff] %v2008_v46  ;;  %v1760_v52 = vpop.f32.mrf.mxu2 }
 0x1bd   : > { %v1929_v54 = vpop.f32.mrf.mxu3 }
 0x1be   : > { %v1930_v57 = vadd.f32 %v1929_v54, %v1760_v52  ;;  %v1683_v58 = vpop.f32.mrf.mxu0 }
 0x1bf   : > { %v1852_v62 = vpop.f32.mrf.mxu1 }
 0x1c0   : > { %v2040_v63 = vadd.f32 %v1930_v57, %v1126_v53  ;;  %v1853_v0 = vadd.f32 %v1852_v62, %v1683_v58  ;;  %v1130_v53 = vld [vmem:[#allocation2 + $0x1f8] sm:$0xff] }
 0x1c1   : > { %1722 = vmatmul.bf16.gmra.mxu0 %v3214_v55  ;;  %1802 = vmatmul.bf16.gmra.mxu2 %v3342_v56  ;;  %v3230_v55 = vor.u32 %v3489_v44, %v3229_v43  ;;  %v3358_v56 = vor.u32 %v3521_v47, %v3357_v45  ;;  %v3245_v43 = vld [vmem:[%s4484_s9 + $0xd0] sm:$0xf]  ;;  %v3493_v44 = vld [vmem:[%s4484_s9 + $0xd4] sm:$0xf0] }
 0x1c2   : > { %2104 = vst [vmem:[#allocation2 + $0x1d0] sm:$0xff] %v2040_v63  ;;  %v2009_v1 = vadd.f32 %v1853_v0, %v1095_v61  ;;  %1891 = vmatmul.bf16.gmra.mxu1 %v3218_v59  ;;  %1971 = vmatmul.bf16.gmra.mxu3 %v3346_v60  ;;  %v3234_v59 = vor.u32 %v3488_v48, %v3231_v49  ;;  %v1099_v61 = vld [vmem:[#allocation2 + $0x130] sm:$0xff]  ;;  %v3525_v47 = vld [vmem:[%s4484_s9 + $0x1d4] sm:$0xf0]  ;;  %v3247_v49 = vld [vmem:[%s4484_s9 + $0xd8] sm:$0xf0] }
 0x1c3   : > { %v3362_v60 = vor.u32 %v3520_v50, %v3359_v51  ;;  %v3373_v45 = vld [vmem:[%s4484_s9 + $0x1d0] sm:$0xf]  ;;  %v3492_v48 = vld [vmem:[%s4484_s9 + $0xd4] sm:$0xf]  ;;  %v3375_v51 = vld [vmem:[%s4484_s9 + $0x1d8] sm:$0xf0] }
 0x1c4   : > { %2073 = vst [vmem:[#allocation2 + $0xd8] sm:$0xff] %v2009_v1  ;;  %v1763_v2 = vpop.f32.mrf.mxu2  ;;  %v3524_v50 = vld [vmem:[%s4484_s9 + $0x1d4] sm:$0xf] }
 0x1c5   : > { %v1932_v4 = vpop.f32.mrf.mxu3 }
 0x1c6   : > { %v1933_v5 = vadd.f32 %v1932_v4, %v1763_v2  ;;  %v1685_v6 = vpop.f32.mrf.mxu0 }
 0x1c7   : > { %v1854_v8 = vpop.f32.mrf.mxu1 }
 0x1c8   : > { %v2041_v9 = vadd.f32 %v1933_v5, %v1127_v3  ;;  %v1855_v10 = vadd.f32 %v1854_v8, %v1685_v6  ;;  %v1131_v3 = vld [vmem:[#allocation2 + $0x20] sm:$0xff] }
 0x1ca   : > { %2105 = vst [vmem:[#allocation2 + $0x100] sm:$0xff] %v2041_v9  ;;  %v2010_v14 = vadd.f32 %v1855_v10, %v1096_v7  ;;  %v1100_v7 = vld [vmem:[#allocation2 + $0x48] sm:$0xff] }
 0x1cc   : > { %2074 = vst [vmem:[#allocation2 + $0x18] sm:$0xff] %v2010_v14  ;;  %v1765_v20 = vpop.f32.mrf.mxu2 }
 0x1cd   : > { %v1934_v22 = vpop.f32.mrf.mxu3 }
 0x1ce   : > { %v1935_v25 = vadd.f32 %v1934_v22, %v1765_v20  ;;  %v1688_v26 = vpop.f32.mrf.mxu0 }
 0x1cf   : > { %v1857_v30 = vpop.f32.mrf.mxu1 }
 0x1d0   : > { %v2042_v31 = vadd.f32 %v1935_v25, %v1128_v21  ;;  %v1858_v32 = vadd.f32 %v1857_v30, %v1688_v26  ;;  %v1132_v21 = vld [vmem:[#allocation2 + $0x128] sm:$0xff] }
 0x1d1   : > { %1727 = vmatmul.bf16.gmra.mxu0 %v3222_v23  ;;  %1807 = vmatmul.bf16.gmra.mxu2 %v3350_v24  ;;  %v3238_v23 = vor.u32 %v3491_v12, %v3237_v11  ;;  %v3366_v24 = vor.u32 %v3523_v15, %v3365_v13  ;;  %v3253_v11 = vld [vmem:[%s4484_s9 + $0xe0] sm:$0xf]  ;;  %v3495_v12 = vld [vmem:[%s4484_s9 + $0xe4] sm:$0xf0] }
 0x1d2   : > { %2106 = vst [vmem:[#allocation2 + $0xc8] sm:$0xff] %v2042_v31  ;;  %v2011_v33 = vadd.f32 %v1858_v32, %v1097_v29  ;;  %1896 = vmatmul.bf16.gmra.mxu1 %v3226_v27  ;;  %1976 = vmatmul.bf16.gmra.mxu3 %v3354_v28  ;;  %v3242_v27 = vor.u32 %v3490_v16, %v3239_v17  ;;  %v1101_v29 = vld [vmem:[#allocation2 + $0x180] sm:$0xff]  ;;  %v3527_v15 = vld [vmem:[%s4484_s9 + $0x1e4] sm:$0xf0]  ;;  %v3255_v17 = vld [vmem:[%s4484_s9 + $0xe8] sm:$0xf0] }
 0x1d3   : > { %v3370_v28 = vor.u32 %v3522_v18, %v3367_v19  ;;  %v3381_v13 = vld [vmem:[%s4484_s9 + $0x1e0] sm:$0xf]  ;;  %v3494_v16 = vld [vmem:[%s4484_s9 + $0xe4] sm:$0xf]  ;;  %v3383_v19 = vld [vmem:[%s4484_s9 + $0x1e8] sm:$0xf0] }
 0x1d4   : > { %2075 = vst [vmem:[#allocation2 + $0x50] sm:$0xff] %v2011_v33  ;;  %v1768_v34 = vpop.f32.mrf.mxu2  ;;  %v3526_v18 = vld [vmem:[%s4484_s9 + $0x1e4] sm:$0xf] }
 0x1d5   : > { %v1937_v36 = vpop.f32.mrf.mxu3 }
 0x1d6   : > { %v1938_v37 = vadd.f32 %v1937_v36, %v1768_v34  ;;  %v1690_v38 = vpop.f32.mrf.mxu0 }
 0x1d7   : > { %v1859_v40 = vpop.f32.mrf.mxu1 }
 0x1d8   : > { %v2043_v41 = vadd.f32 %v1938_v37, %v1129_v35  ;;  %v1860_v42 = vadd.f32 %v1859_v40, %v1690_v38  ;;  %v1133_v35 = vld [vmem:[#allocation2 + $0x1a0] sm:$0xff] }
 0x1da   : > { %2107 = vst [vmem:[#allocation2 + $0x40] sm:$0xff] %v2043_v41  ;;  %v2012_v46 = vadd.f32 %v1860_v42, %v1098_v39  ;;  %v1102_v39 = vld [vmem:[#allocation2 + $0x110] sm:$0xff] }
 0x1dc   : > { %2076 = vst [vmem:[#allocation2 + $0x168] sm:$0xff] %v2012_v46  ;;  %v1770_v52 = vpop.f32.mrf.mxu2 }
 0x1dd   : > { %v1939_v54 = vpop.f32.mrf.mxu3 }
 0x1de   : > { %v1940_v57 = vadd.f32 %v1939_v54, %v1770_v52  ;;  %v1693_v58 = vpop.f32.mrf.mxu0 }
 0x1df   : > { %v1862_v62 = vpop.f32.mrf.mxu1 }
 0x1e0   : > { %v2044_v63 = vadd.f32 %v1940_v57, %v1130_v53  ;;  %v1863_v0 = vadd.f32 %v1862_v62, %v1693_v58  ;;  %v1134_v53 = vld [vmem:[#allocation2 + $0x1f0] sm:$0xff] }
 0x1e1   : > { %1732 = vmatmul.bf16.gmra.mxu0 %v3230_v55  ;;  %1812 = vmatmul.bf16.gmra.mxu2 %v3358_v56  ;;  %v3246_v55 = vor.u32 %v3493_v44, %v3245_v43  ;;  %v3374_v56 = vor.u32 %v3525_v47, %v3373_v45  ;;  %v3261_v43 = vld [vmem:[%s4484_s9 + $0xf0] sm:$0xf]  ;;  %v3497_v44 = vld [vmem:[%s4484_s9 + $0xf4] sm:$0xf0] }
 0x1e2   : > { %2108 = vst [vmem:[#allocation2 + $0x1f8] sm:$0xff] %v2044_v63  ;;  %v2013_v1 = vadd.f32 %v1863_v0, %v1099_v61  ;;  %1901 = vmatmul.bf16.gmra.mxu1 %v3234_v59  ;;  %1981 = vmatmul.bf16.gmra.mxu3 %v3362_v60  ;;  %v3250_v59 = vor.u32 %v3492_v48, %v3247_v49  ;;  %v1103_v61 = vld [vmem:[#allocation2 + $0x118] sm:$0xff]  ;;  %v3389_v45 = vld [vmem:[%s4484_s9 + $0x1f0] sm:$0xf]  ;;  %v3496_v48 = vld [vmem:[%s4484_s9 + $0xf4] sm:$0xf] }
 0x1e3   : > { %v3378_v60 = vor.u32 %v3524_v50, %v3375_v51  ;;  %v3529_v47 = vld [vmem:[%s4484_s9 + $0x1f4] sm:$0xf0]  ;;  %v3263_v49 = vld [vmem:[%s4484_s9 + $0xf8] sm:$0xf0]  ;;  %v3528_v50 = vld [vmem:[%s4484_s9 + $0x1f4] sm:$0xf] }
 0x1e4   : > { %2077 = vst [vmem:[#allocation2 + $0x130] sm:$0xff] %v2013_v1  ;;  %v1773_v2 = vpop.f32.mrf.mxu2  ;;  %v3391_v51 = vld [vmem:[%s4484_s9 + $0x1f8] sm:$0xf0] }
 0x1e5   : > { %v1942_v4 = vpop.f32.mrf.mxu3 }
 0x1e6   : > { %v1943_v5 = vadd.f32 %v1942_v4, %v1773_v2  ;;  %v1695_v6 = vpop.f32.mrf.mxu0 }
 0x1e7   : > { %v1864_v8 = vpop.f32.mrf.mxu1 }
 0x1e8   : > { %v2045_v9 = vadd.f32 %v1943_v5, %v1131_v3  ;;  %v1865_v10 = vadd.f32 %v1864_v8, %v1695_v6  ;;  %v1135_v3 = vld [vmem:[#allocation2 + $0xe8] sm:$0xff] }
 0x1ea   : > { %2109 = vst [vmem:[#allocation2 + $0x20] sm:$0xff] %v2045_v9  ;;  %v2014_v14 = vadd.f32 %v1865_v10, %v1100_v7  ;;  %v1104_v7 = vld [vmem:[#allocation2 + $0x98] sm:$0xff] }
 0x1ec   : > { %2078 = vst [vmem:[#allocation2 + $0x48] sm:$0xff] %v2014_v14  ;;  %v1775_v20 = vpop.f32.mrf.mxu2 }
 0x1ed   : > { %v1944_v22 = vpop.f32.mrf.mxu3 }
 0x1ee   : > { %v1945_v25 = vadd.f32 %v1944_v22, %v1775_v20  ;;  %v1698_v26 = vpop.f32.mrf.mxu0 }
 0x1ef   : > { %v1867_v30 = vpop.f32.mrf.mxu1 }
 0x1f0   : > { %v2046_v31 = vadd.f32 %v1945_v25, %v1132_v21  ;;  %v1868_v32 = vadd.f32 %v1867_v30, %v1698_v26  ;;  %v1136_v21 = vld [vmem:[#allocation2 + $0x78] sm:$0xff] }
 0x1f1   : > { %1737 = vmatmul.bf16.gmra.mxu0 %v3238_v23  ;;  %1817 = vmatmul.bf16.gmra.mxu2 %v3366_v24  ;;  %v3254_v23 = vor.u32 %v3495_v12, %v3253_v11  ;;  %v3382_v24 = vor.u32 %v3527_v15, %v3381_v13  ;;  %v1140_v13 = vld [vmem:[#allocation2 + $0xd0] sm:$0xff] }
 0x1f2   : > { %2110 = vst [vmem:[#allocation2 + $0x128] sm:$0xff] %v2046_v31  ;;  %v2015_v33 = vadd.f32 %v1868_v32, %v1101_v29  ;;  %1906 = vmatmul.bf16.gmra.mxu1 %v3242_v27  ;;  %1986 = vmatmul.bf16.gmra.mxu3 %v3370_v28  ;;  %v3258_v27 = vor.u32 %v3494_v16, %v3255_v17  ;;  %v1105_v29 = vld [vmem:[#allocation2 + $0x120] sm:$0xff] }
 0x1f3   : > { %v3386_v28 = vor.u32 %v3526_v18, %v3383_v19  ;;  %v1109_v17 = vld [vmem:[#allocation2 + $0xe0] sm:$0xff] }
 0x1f4   : > { %2079 = vst [vmem:[#allocation2 + $0x180] sm:$0xff] %v2015_v33  ;;  %v1778_v34 = vpop.f32.mrf.mxu2 }
 0x1f5   : > { %v1947_v36 = vpop.f32.mrf.mxu3 }
 0x1f6   : > { %v1948_v37 = vadd.f32 %v1947_v36, %v1778_v34  ;;  %v1700_v38 = vpop.f32.mrf.mxu0 }
 0x1f7   : > { %v1869_v40 = vpop.f32.mrf.mxu1 }
 0x1f8   : > { %v2047_v41 = vadd.f32 %v1948_v37, %v1133_v35  ;;  %v1870_v42 = vadd.f32 %v1869_v40, %v1700_v38  ;;  %v1137_v35 = vld [vmem:[#allocation2 + $0x70] sm:$0xff] }
 0x1fa   : > { %2111 = vst [vmem:[#allocation2 + $0x1a0] sm:$0xff] %v2047_v41  ;;  %v2016_v46 = vadd.f32 %v1870_v42, %v1102_v39  ;;  %v1106_v39 = vld [vmem:[#allocation2 + $0x150] sm:$0xff] }
 0x1fc   : > { %2080 = vst [vmem:[#allocation2 + $0x110] sm:$0xff] %v2016_v46  ;;  %v1780_v52 = vpop.f32.mrf.mxu2 }
 0x1fd   : > { %v1949_v54 = vpop.f32.mrf.mxu3 }
 0x1fe   : > { %v1950_v57 = vadd.f32 %v1949_v54, %v1780_v52  ;;  %v1703_v58 = vpop.f32.mrf.mxu0 }
 0x1ff   : > { %v1872_v62 = vpop.f32.mrf.mxu1 }
 0x200   : > { %v2048_v63 = vadd.f32 %v1950_v57, %v1134_v53  ;;  %v1873_v0 = vadd.f32 %v1872_v62, %v1703_v58  ;;  %v1138_v53 = vld [vmem:[#allocation2 + $0x90] sm:$0xff] }
 0x201   : > { %1742 = vmatmul.bf16.gmra.mxu0 %v3246_v55  ;;  %1822 = vmatmul.bf16.gmra.mxu2 %v3374_v56  ;;  %v3262_v55 = vor.u32 %v3497_v44, %v3261_v43  ;;  %v3390_v56 = vor.u32 %v3529_v47, %v3389_v45  ;;  %v1143_v43 = vld [vmem:[#allocation2 + $0xa8] sm:$0xff]  ;;  %v1112_v47 = vld [vmem:[#allocation2 + $0x140] sm:$0xff] }
 0x202   : > { %2112 = vst [vmem:[#allocation2 + $0x1f0] sm:$0xff] %v2048_v63  ;;  %v2017_v1 = vadd.f32 %v1873_v0, %v1103_v61  ;;  %1911 = vmatmul.bf16.gmra.mxu1 %v3250_v59  ;;  %1991 = vmatmul.bf16.gmra.mxu3 %v3378_v60  ;;  %v3266_v59 = vor.u32 %v3496_v48, %v3263_v49  ;;  %v1107_v61 = vld [vmem:[#allocation2 + $0x108] sm:$0xff] }
 0x203   : > { %v3394_v60 = vor.u32 %v3528_v50, %v3391_v51 }
 0x204   : > { %2081 = vst [vmem:[#allocation2 + $0x118] sm:$0xff] %v2017_v1  ;;  %v1783_v2 = vpop.f32.mrf.mxu2 }
 0x205   : > { %v1952_v4 = vpop.f32.mrf.mxu3 }
 0x206   : > { %v1953_v5 = vadd.f32 %v1952_v4, %v1783_v2  ;;  %v1705_v6 = vpop.f32.mrf.mxu0 }
 0x207   : > { %v1874_v8 = vpop.f32.mrf.mxu1 }
 0x208   : > { %v2049_v9 = vadd.f32 %v1953_v5, %v1135_v3  ;;  %v1875_v10 = vadd.f32 %v1874_v8, %v1705_v6  ;;  %v1139_v3 = vld [vmem:[#allocation2 + $0x1d8] sm:$0xff] }
 0x20a   : > { %2113 = vst [vmem:[#allocation2 + $0xe8] sm:$0xff] %v2049_v9  ;;  %v2018_v14 = vadd.f32 %v1875_v10, %v1104_v7  ;;  %v1108_v7 = vld [vmem:[#allocation2 + $0x60] sm:$0xff] }
 0x20c   : > { %2082 = vst [vmem:[#allocation2 + $0x98] sm:$0xff] %v2018_v14  ;;  %v1785_v20 = vpop.f32.mrf.mxu2 }
 0x20d   : > { %v1954_v22 = vpop.f32.mrf.mxu3 }
 0x20e   : > { %v1955_v25 = vadd.f32 %v1954_v22, %v1785_v20  ;;  %v1708_v26 = vpop.f32.mrf.mxu0 }
 0x20f   : > { %v1877_v30 = vpop.f32.mrf.mxu1 }
 0x210   : > { %v2050_v31 = vadd.f32 %v1955_v25, %v1136_v21  ;;  %v1878_v32 = vadd.f32 %v1877_v30, %v1708_v26 }
 0x211   : > { %1747 = vmatmul.bf16.gmra.mxu0 %v3254_v23  ;;  %1827 = vmatmul.bf16.gmra.mxu2 %v3382_v24  ;;  %v1141_v23 = vld [vmem:[#allocation2 + $0xb8] sm:$0xff] }
 0x212   : > { %2114 = vst [vmem:[#allocation2 + $0x78] sm:$0xff] %v2050_v31  ;;  %v2019_v33 = vadd.f32 %v1878_v32, %v1105_v29  ;;  %1916 = vmatmul.bf16.gmra.mxu1 %v3258_v27  ;;  %1996 = vmatmul.bf16.gmra.mxu3 %v3386_v28  ;;  %v1110_v27 = vld [vmem:[#allocation2 + $0x188] sm:$0xff] }
 0x214   : > { %2083 = vst [vmem:[#allocation2 + $0x120] sm:$0xff] %v2019_v33  ;;  %v1788_v34 = vpop.f32.mrf.mxu2  ;;  %v1142_v33 = vld [vmem:[#allocation2 + $0x88] sm:$0xff] }
 0x215   : > { %v1957_v36 = vpop.f32.mrf.mxu3 }
 0x216   : > { %v1958_v37 = vadd.f32 %v1957_v36, %v1788_v34  ;;  %v1710_v38 = vpop.f32.mrf.mxu0 }
 0x217   : > { %v1879_v40 = vpop.f32.mrf.mxu1 }
 0x218   : > { %v2051_v41 = vadd.f32 %v1958_v37, %v1137_v35  ;;  %v1880_v42 = vadd.f32 %v1879_v40, %v1710_v38  ;;  %v1111_v37 = vld [vmem:[#allocation2 + $0x138] sm:$0xff] }
 0x21a   : > { %2115 = vst [vmem:[#allocation2 + $0x70] sm:$0xff] %v2051_v41  ;;  %v2020_v46 = vadd.f32 %v1880_v42, %v1106_v39 }
 0x21c   : > { %2084 = vst [vmem:[#allocation2 + $0x150] sm:$0xff] %v2020_v46  ;;  %v1790_v52 = vpop.f32.mrf.mxu2 }
 0x21d   : > { %v1959_v54 = vpop.f32.mrf.mxu3 }
 0x21e   : > { %v1960_v57 = vadd.f32 %v1959_v54, %v1790_v52  ;;  %v1713_v58 = vpop.f32.mrf.mxu0 }
 0x21f   : > { %v1882_v62 = vpop.f32.mrf.mxu1 }
 0x220   : > { %v2052_v63 = vadd.f32 %v1960_v57, %v1138_v53  ;;  %v1883_v0 = vadd.f32 %v1882_v62, %v1713_v58  ;;  %v1144_v53 = vld [vmem:[#allocation2 + $0x1c8] sm:$0xff]  ;;  %v1113_v57 = vld [vmem:[#allocation2 + $0x80] sm:$0xff] }
 0x221   : > { %1752 = vmatmul.bf16.gmra.mxu0 %v3262_v55  ;;  %1832 = vmatmul.bf16.gmra.mxu2 %v3390_v56 }
 0x222   : > { %2116 = vst [vmem:[#allocation2 + $0x90] sm:$0xff] %v2052_v63  ;;  %v2021_v1 = vadd.f32 %v1883_v0, %v1107_v61  ;;  %1921 = vmatmul.bf16.gmra.mxu1 %v3266_v59  ;;  %2001 = vmatmul.bf16.gmra.mxu3 %v3394_v60  ;;  %v1145_v63 = vld [vmem:[#allocation2 + $0x170] sm:$0xff] }
 0x224   : > { %2085 = vst [vmem:[#allocation2 + $0x108] sm:$0xff] %v2021_v1  ;;  %v1793_v2 = vpop.f32.mrf.mxu2 }
 0x225   : > { %v1962_v4 = vpop.f32.mrf.mxu3 }
 0x226   : > { %v1963_v5 = vadd.f32 %v1962_v4, %v1793_v2  ;;  %v1715_v6 = vpop.f32.mrf.mxu0 }
 0x227   : > { %v1884_v8 = vpop.f32.mrf.mxu1 }
 0x228   : > { %v2053_v9 = vadd.f32 %v1963_v5, %v1139_v3  ;;  %v1885_v10 = vadd.f32 %v1884_v8, %v1715_v6  ;;  %v1114_v3 = vld [vmem:[#allocation2 + $0x1a8] sm:$0xff] }
 0x22a   : > { %2117 = vst [vmem:[#allocation2 + $0x1d8] sm:$0xff] %v2053_v9  ;;  %v2022_v11 = vadd.f32 %v1885_v10, %v1108_v7  ;;  %v1146_v9 = vld [vmem:[#allocation2 + $0x178] sm:$0xff] }
 0x22c   : > { %2086 = vst [vmem:[#allocation2 + $0x60] sm:$0xff] %v2022_v11  ;;  %v1795_v12 = vpop.f32.mrf.mxu2 }
 0x22d   : > { %v1964_v14 = vpop.f32.mrf.mxu3 }
 0x22e   : > { %v1965_v15 = vadd.f32 %v1964_v14, %v1795_v12  ;;  %v1718_v16 = vpop.f32.mrf.mxu0 }
 0x22f   : > { %v1887_v18 = vpop.f32.mrf.mxu1 }
 0x230   : > { %v2054_v19 = vadd.f32 %v1965_v15, %v1140_v13  ;;  %v1888_v20 = vadd.f32 %v1887_v18, %v1718_v16  ;;  %v1115_v13 = vld [vmem:[#allocation2 + $0x1b8] sm:$0xff] }
 0x232   : > { %2118 = vst [vmem:[#allocation2 + $0xd0] sm:$0xff] %v2054_v19  ;;  %v2023_v21 = vadd.f32 %v1888_v20, %v1109_v17  ;;  %v1147_v19 = vld [vmem:[#allocation2 + $0x68] sm:$0xff] }
 0x234   : > { %2087 = vst [vmem:[#allocation2 + $0xe0] sm:$0xff] %v2023_v21  ;;  %v1798_v22 = vpop.f32.mrf.mxu2 }
 0x235   : > { %v1967_v24 = vpop.f32.mrf.mxu3 }
 0x236   : > { %v1968_v25 = vadd.f32 %v1967_v24, %v1798_v22  ;;  %v1720_v26 = vpop.f32.mrf.mxu0 }
 0x237   : > { %v1889_v28 = vpop.f32.mrf.mxu1 }
 0x238   : > { %v2055_v29 = vadd.f32 %v1968_v25, %v1141_v23  ;;  %v1890_v30 = vadd.f32 %v1889_v28, %v1720_v26  ;;  %v1116_v23 = vld [vmem:[#allocation2 + $0x28] sm:$0xff] }
 0x23a   : > { %2119 = vst [vmem:[#allocation2 + $0xb8] sm:$0xff] %v2055_v29  ;;  %v2024_v31 = vadd.f32 %v1890_v30, %v1110_v27  ;;  %v1148_v29 = vld [vmem:[#allocation2 + $0x190] sm:$0xff] }
 0x23c   : > { %2088 = vst [vmem:[#allocation2 + $0x188] sm:$0xff] %v2024_v31  ;;  %v1800_v32 = vpop.f32.mrf.mxu2 }
 0x23d   : > { %v1969_v34 = vpop.f32.mrf.mxu3 }
 0x23e   : > { %v1970_v35 = vadd.f32 %v1969_v34, %v1800_v32  ;;  %v1723_v36 = vpop.f32.mrf.mxu0 }
 0x23f   : > { %v1892_v38 = vpop.f32.mrf.mxu1 }
 0x240   : > { %v2056_v39 = vadd.f32 %v1970_v35, %v1142_v33  ;;  %v1893_v40 = vadd.f32 %v1892_v38, %v1723_v36  ;;  %v1117_v33 = vld [vmem:[#allocation2 + $0x1e8] sm:$0xff] }
 0x242   : > { %2120 = vst [vmem:[#allocation2 + $0x88] sm:$0xff] %v2056_v39  ;;  %v2025_v41 = vadd.f32 %v1893_v40, %v1111_v37  ;;  %v1149_v39 = vld [vmem:[#allocation2 + $0x198] sm:$0xff] }
 0x244   : > { %2089 = vst [vmem:[#allocation2 + $0x138] sm:$0xff] %v2025_v41  ;;  %v1803_v42 = vpop.f32.mrf.mxu2 }
 0x245   : > { %v1972_v44 = vpop.f32.mrf.mxu3 }
 0x246   : > { %v1973_v45 = vadd.f32 %v1972_v44, %v1803_v42  ;;  %v1725_v46 = vpop.f32.mrf.mxu0 }
 0x247   : > { %v1894_v48 = vpop.f32.mrf.mxu1 }
 0x248   : > { %v2057_v49 = vadd.f32 %v1973_v45, %v1143_v43  ;;  %v1895_v50 = vadd.f32 %v1894_v48, %v1725_v46  ;;  %v1118_v43 = vld [vmem:[#allocation2 + $0xf8] sm:$0xff] }
 0x24a   : > { %2121 = vst [vmem:[#allocation2 + $0xa8] sm:$0xff] %v2057_v49  ;;  %v2026_v51 = vadd.f32 %v1895_v50, %v1112_v47  ;;  %v1150_v49 = vld [vmem:[#allocation2 + $0x38] sm:$0xff] }
 0x24c   : > { %2090 = vst [vmem:[#allocation2 + $0x140] sm:$0xff] %v2026_v51  ;;  %v1805_v52 = vpop.f32.mrf.mxu2 }
 0x24d   : > { %v1974_v54 = vpop.f32.mrf.mxu3 }
 0x24e   : > { %v1975_v55 = vadd.f32 %v1974_v54, %v1805_v52  ;;  %v1728_v56 = vpop.f32.mrf.mxu0 }
 0x24f   : > { %v1897_v58 = vpop.f32.mrf.mxu1 }
 0x250   : > { %v2058_v59 = vadd.f32 %v1975_v55, %v1144_v53  ;;  %v1898_v60 = vadd.f32 %v1897_v58, %v1728_v56  ;;  %v1119_v53 = vld [vmem:[#allocation2 + $0x160] sm:$0xff] }
 0x252   : > { %2122 = vst [vmem:[#allocation2 + $0x1c8] sm:$0xff] %v2058_v59  ;;  %v2027_v61 = vadd.f32 %v1898_v60, %v1113_v57  ;;  %v1151_v59 = vld [vmem:[#allocation2 + $0xc0] sm:$0xff] }
 0x254   : > { %2091 = vst [vmem:[#allocation2 + $0x80] sm:$0xff] %v2027_v61  ;;  %v1808_v62 = vpop.f32.mrf.mxu2 }
 0x255   : > { %v1977_v0 = vpop.f32.mrf.mxu3 }
 0x256   : > { %v1978_v1 = vadd.f32 %v1977_v0, %v1808_v62  ;;  %v1730_v2 = vpop.f32.mrf.mxu0 }
 0x257   : > { %v1899_v4 = vpop.f32.mrf.mxu1 }
 0x258   : > { %v2059_v5 = vadd.f32 %v1978_v1, %v1145_v63  ;;  %v1900_v6 = vadd.f32 %v1899_v4, %v1730_v2  ;;  %v1120_v63 = vld [vmem:[#allocation2 + $0x30] sm:$0xff] }
 0x25a   : > { %2123 = vst [vmem:[#allocation2 + $0x170] sm:$0xff] %v2059_v5  ;;  %v2028_v7 = vadd.f32 %v1900_v6, %v1114_v3  ;;  %v1152_v5 = vld [vmem:[#allocation2 + $0x1c0] sm:$0xff] }
 0x25c   : > { %2092 = vst [vmem:[#allocation2 + $0x1a8] sm:$0xff] %v2028_v7  ;;  %v1810_v8 = vpop.f32.mrf.mxu2 }
 0x25d   : > { %v1979_v10 = vpop.f32.mrf.mxu3 }
 0x25e   : > { %v1980_v11 = vadd.f32 %v1979_v10, %v1810_v8  ;;  %v1733_v12 = vpop.f32.mrf.mxu0 }
 0x25f   : > { %v1902_v14 = vpop.f32.mrf.mxu1 }
 0x260   : > { %v2060_v15 = vadd.f32 %v1980_v11, %v1146_v9  ;;  %v1903_v16 = vadd.f32 %v1902_v14, %v1733_v12  ;;  %v1121_v9 = vld [vmem:[#allocation2 + $0x1e0] sm:$0xff] }
 0x262   : > { %2124 = vst [vmem:[#allocation2 + $0x178] sm:$0xff] %v2060_v15  ;;  %v2029_v17 = vadd.f32 %v1903_v16, %v1115_v13  ;;  %v1153_v15 = vld [vmem:[#allocation2 + $0x158] sm:$0xff] }
 0x264   : > { %2093 = vst [vmem:[#allocation2 + $0x1b8] sm:$0xff] %v2029_v17  ;;  %v1813_v18 = vpop.f32.mrf.mxu2 }
 0x265   : > { %v1982_v20 = vpop.f32.mrf.mxu3 }
 0x266   : > { %v1983_v21 = vadd.f32 %v1982_v20, %v1813_v18  ;;  %v1735_v22 = vpop.f32.mrf.mxu0 }
 0x267   : > { %v1904_v24 = vpop.f32.mrf.mxu1 }
 0x268   : > { %v2061_v25 = vadd.f32 %v1983_v21, %v1147_v19  ;;  %v1905_v26 = vadd.f32 %v1904_v24, %v1735_v22  ;;  %v1122_v19 = vld [vmem:[#allocation2] sm:$0xff] }
 0x26a   : > { %2125 = vst [vmem:[#allocation2 + $0x68] sm:$0xff] %v2061_v25  ;;  %v2030_v27 = vadd.f32 %v1905_v26, %v1116_v23  ;;  %v1154_v25 = vld [vmem:[#allocation2 + $0x10] sm:$0xff] }
 0x26c   : > { %2094 = vst [vmem:[#allocation2 + $0x28] sm:$0xff] %v2030_v27  ;;  %v1815_v28 = vpop.f32.mrf.mxu2 }
 0x26d   : > { %v1984_v30 = vpop.f32.mrf.mxu3 }
 0x26e   : > { %v1985_v31 = vadd.f32 %v1984_v30, %v1815_v28  ;;  %v1738_v32 = vpop.f32.mrf.mxu0 }
 0x26f   : > { %v1907_v34 = vpop.f32.mrf.mxu1 }
 0x270   : > { %v2062_v35 = vadd.f32 %v1985_v31, %v1148_v29  ;;  %v1908_v36 = vadd.f32 %v1907_v34, %v1738_v32  ;;  %v1123_v29 = vld [vmem:[#allocation2 + $0xf0] sm:$0xff] }
 0x272   : > { %2126 = vst [vmem:[#allocation2 + $0x190] sm:$0xff] %v2062_v35  ;;  %v2031_v37 = vadd.f32 %v1908_v36, %v1117_v33  ;;  %v1155_v35 = vld [vmem:[#allocation2 + $0x58] sm:$0xff] }
 0x274   : > { %2095 = vst [vmem:[#allocation2 + $0x1e8] sm:$0xff] %v2031_v37  ;;  %v1818_v38 = vpop.f32.mrf.mxu2 }
 0x275   : > { %v1987_v40 = vpop.f32.mrf.mxu3 }
 0x276   : > { %v1988_v41 = vadd.f32 %v1987_v40, %v1818_v38  ;;  %v1740_v42 = vpop.f32.mrf.mxu0 }
 0x277   : > { %v1909_v44 = vpop.f32.mrf.mxu1 }
 0x278   : > { %v2063_v45 = vadd.f32 %v1988_v41, %v1149_v39  ;;  %v1910_v46 = vadd.f32 %v1909_v44, %v1740_v42  ;;  %v1124_v39 = vld [vmem:[#allocation2 + $0x8] sm:$0xff] }
 0x27a   : > { %2127 = vst [vmem:[#allocation2 + $0x198] sm:$0xff] %v2063_v45  ;;  %v2032_v47 = vadd.f32 %v1910_v46, %v1118_v43  ;;  %v1156_v45 = vld [vmem:[#allocation2 + $0xa0] sm:$0xff] }
 0x27c   : > { %2096 = vst [vmem:[#allocation2 + $0xf8] sm:$0xff] %v2032_v47  ;;  %v1820_v48 = vpop.f32.mrf.mxu2 }
 0x27d   : > { %v1989_v50 = vpop.f32.mrf.mxu3 }
 0x27e   : > { %v1990_v51 = vadd.f32 %v1989_v50, %v1820_v48  ;;  %v1743_v52 = vpop.f32.mrf.mxu0 }
 0x27f   : > { %v1912_v54 = vpop.f32.mrf.mxu1 }
 0x280   : > { %v2064_v55 = vadd.f32 %v1990_v51, %v1150_v49  ;;  %v1913_v56 = vadd.f32 %v1912_v54, %v1743_v52 }
 0x282   : > { %2128 = vst [vmem:[#allocation2 + $0x38] sm:$0xff] %v2064_v55  ;;  %v2033_v57 = vadd.f32 %v1913_v56, %v1119_v53 }
 0x284   : > { %2097 = vst [vmem:[#allocation2 + $0x160] sm:$0xff] %v2033_v57  ;;  %v1823_v58 = vpop.f32.mrf.mxu2 }
 0x285   : > { %v1992_v60 = vpop.f32.mrf.mxu3 }
 0x286   : > { %v1993_v61 = vadd.f32 %v1992_v60, %v1823_v58  ;;  %v1745_v62 = vpop.f32.mrf.mxu0 }
 0x287   : > { %v1914_v0 = vpop.f32.mrf.mxu1 }
 0x288   : > { %v2065_v1 = vadd.f32 %v1993_v61, %v1151_v59  ;;  %v1915_v2 = vadd.f32 %v1914_v0, %v1745_v62 }
 0x28a   : > { %2129 = vst [vmem:[#allocation2 + $0xc0] sm:$0xff] %v2065_v1  ;;  %v2034_v3 = vadd.f32 %v1915_v2, %v1120_v63 }
 0x28c   : > { %2098 = vst [vmem:[#allocation2 + $0x30] sm:$0xff] %v2034_v3  ;;  %v1825_v4 = vpop.f32.mrf.mxu2 }
 0x28d   : > { %v1994_v6 = vpop.f32.mrf.mxu3 }
 0x28e   : > { %v1995_v7 = vadd.f32 %v1994_v6, %v1825_v4  ;;  %v1748_v8 = vpop.f32.mrf.mxu0 }
 0x28f   : > { %v1917_v10 = vpop.f32.mrf.mxu1 }
 0x290   : > { %v2066_v11 = vadd.f32 %v1995_v7, %v1152_v5  ;;  %v1918_v12 = vadd.f32 %v1917_v10, %v1748_v8 }
 0x292   : > { %2130 = vst [vmem:[#allocation2 + $0x1c0] sm:$0xff] %v2066_v11  ;;  %v2035_v13 = vadd.f32 %v1918_v12, %v1121_v9 }
 0x294   : > { %2099 = vst [vmem:[#allocation2 + $0x1e0] sm:$0xff] %v2035_v13  ;;  %v1828_v14 = vpop.f32.mrf.mxu2 }
 0x295   : > { %v1997_v16 = vpop.f32.mrf.mxu3 }
 0x296   : > { %v1998_v17 = vadd.f32 %v1997_v16, %v1828_v14  ;;  %v1750_v18 = vpop.f32.mrf.mxu0 }
 0x297   : > { %v1919_v20 = vpop.f32.mrf.mxu1 }
 0x298   : > { %v2067_v21 = vadd.f32 %v1998_v17, %v1153_v15  ;;  %v1920_v22 = vadd.f32 %v1919_v20, %v1750_v18 }
 0x29a   : > { %2131 = vst [vmem:[#allocation2 + $0x158] sm:$0xff] %v2067_v21  ;;  %v2036_v23 = vadd.f32 %v1920_v22, %v1122_v19 }
 0x29c   : > { %2100 = vst [vmem:[#allocation2] sm:$0xff] %v2036_v23  ;;  %v1830_v24 = vpop.f32.mrf.mxu2 }
 0x29d   : > { %v1999_v26 = vpop.f32.mrf.mxu3 }
 0x29e   : > { %v2000_v27 = vadd.f32 %v1999_v26, %v1830_v24  ;;  %v1753_v28 = vpop.f32.mrf.mxu0 }
 0x29f   : > { %v1922_v30 = vpop.f32.mrf.mxu1 }
 0x2a0   : > { %v2068_v31 = vadd.f32 %v2000_v27, %v1154_v25  ;;  %v1923_v32 = vadd.f32 %v1922_v30, %v1753_v28 }
 0x2a2   : > { %2132 = vst [vmem:[#allocation2 + $0x10] sm:$0xff] %v2068_v31  ;;  %v2037_v33 = vadd.f32 %v1923_v32, %v1123_v29 }
 0x2a4   : > { %2101 = vst [vmem:[#allocation2 + $0xf0] sm:$0xff] %v2037_v33  ;;  %v1833_v34 = vpop.f32.mrf.mxu2 }
 0x2a5   : > { %v2002_v36 = vpop.f32.mrf.mxu3 }
 0x2a6   : > { %v2003_v37 = vadd.f32 %v2002_v36, %v1833_v34  ;;  %v1755_v38 = vpop.f32.mrf.mxu0 }
 0x2a7   : > { %v1924_v40 = vpop.f32.mrf.mxu1 }
 0x2a8   : > { %v2069_v41 = vadd.f32 %v2003_v37, %v1155_v35  ;;  %v1925_v42 = vadd.f32 %v1924_v40, %v1755_v38 }
 0x2aa   : > { %2133 = vst [vmem:[#allocation2 + $0x58] sm:$0xff] %v2069_v41  ;;  %v2038_v43 = vadd.f32 %v1925_v42, %v1124_v39 }
 0x2ac   : > { %2102 = vst [vmem:[#allocation2 + $0x8] sm:$0xff] %v2038_v43  ;;  %v1835_v44 = vpop.f32.mrf.mxu2 }
 0x2ad   : > { %v2004_v46 = vpop.f32.mrf.mxu3 }
 0x2ae   : > { %v2005_v47 = vadd.f32 %v2004_v46, %v1835_v44  ;;  %2138 = sbr.rel (%p3459_p11) target bundleno = 984 (0x3d8), region = 164 }
 0x2b0   : > { %v2070_v48 = vadd.f32 %v2005_v47, %v1156_v45 }
 0x2b2   : > { %2134 = vst [vmem:[#allocation2 + $0xa0] sm:$0xff] %v2070_v48 }
 0x2b3   : > { %v2207_v49 = vld [vmem:[%s5031_s3 + $0x20] sm:$0xff]  ;;  %v2205_v50 = vld [vmem:[%s5031_s3 + $0x10] sm:$0xff]  ;;  %v3998_v52 = vmov 0   ;;  %v2208_v53 = vld [vmem:[%s5031_s3 + $0x28] sm:$0xff] }
 0x2b4   : > { %v2203_v51 = vld [vmem:[%s5031_s3] sm:$0xff]  ;;  %3956 = vset.pattern.permute.xlu2 %v3998_v52  ;;  %3955 = vset.pattern.permute.xlu1 %v3998_v52  ;;  %v2206_v54 = vld [vmem:[%s5031_s3 + $0x18] sm:$0xff]  ;;  %v2204_v55 = vld [vmem:[%s5031_s3 + $0x8] sm:$0xff] }
 0x2b5   : > { %3954 = vset.pattern.permute.xlu0 %v3998_v52  ;;  %2289 = vperm.xlu2 %3956, %v2207_v49   ;;  %v2211_v56 = vld [vmem:[%s5031_s3 + $0x40] sm:$0xff]  ;;  %v2210_v57 = vld [vmem:[%s5031_s3 + $0x38] sm:$0xff]  ;;  %v2209_v58 = vld [vmem:[%s5031_s3 + $0x30] sm:$0xff] }
 0x2b6   : > { %2279 = vperm.xlu1 %3955, %v2205_v50   ;;  %2269 = vperm.xlu0 %3954, %v2203_v51   ;;  %v2214_v59 = vld [vmem:[%s5031_s3 + $0x58] sm:$0xff]  ;;  %v2213_v60 = vld [vmem:[%s5031_s3 + $0x50] sm:$0xff]  ;;  %v2212_v61 = vld [vmem:[%s5031_s3 + $0x48] sm:$0xff] }
 0x2b7   : > { %v2217_v62 = vld [vmem:[%s5031_s3 + $0x70] sm:$0xff]  ;;  %v2216_v63 = vld [vmem:[%s5031_s3 + $0x68] sm:$0xff]  ;;  %v2215_v0 = vld [vmem:[%s5031_s3 + $0x60] sm:$0xff] }
 0x2b8   : > { %v2220_v1 = vld [vmem:[%s5031_s3 + $0x88] sm:$0xff]  ;;  %v2219_v2 = vld [vmem:[%s5031_s3 + $0x80] sm:$0xff]  ;;  %v2218_v3 = vld [vmem:[%s5031_s3 + $0x78] sm:$0xff] }
 0x2b9   : > { %v2223_v4 = vld [vmem:[%s5031_s3 + $0xa0] sm:$0xff]  ;;  %v2222_v5 = vld [vmem:[%s5031_s3 + $0x98] sm:$0xff]  ;;  %v2221_v6 = vld [vmem:[%s5031_s3 + $0x90] sm:$0xff] }
 0x2ba   : > { %v2226_v7 = vld [vmem:[%s5031_s3 + $0xb8] sm:$0xff]  ;;  %v2225_v8 = vld [vmem:[%s5031_s3 + $0xb0] sm:$0xff]  ;;  %v2224_v9 = vld [vmem:[%s5031_s3 + $0xa8] sm:$0xff] }
 0x2bb   : > { %v2229_v10 = vld [vmem:[%s5031_s3 + $0xd0] sm:$0xff]  ;;  %v2228_v11 = vld [vmem:[%s5031_s3 + $0xc8] sm:$0xff]  ;;  %v2227_v12 = vld [vmem:[%s5031_s3 + $0xc0] sm:$0xff] }
 0x2bc   : > { %v2232_v13 = vld [vmem:[%s5031_s3 + $0xe8] sm:$0xff]  ;;  %v2231_v14 = vld [vmem:[%s5031_s3 + $0xe0] sm:$0xff]  ;;  %v2230_v15 = vld [vmem:[%s5031_s3 + $0xd8] sm:$0xff] }
 0x2bd   : > { %2294 = vperm.xlu2 %3956, %v2208_v53   ;;  %v2235_v16 = vld [vmem:[%s5031_s3 + $0x100] sm:$0xff]  ;;  %v2234_v17 = vld [vmem:[%s5031_s3 + $0xf8] sm:$0xff]  ;;  %v2233_v18 = vld [vmem:[%s5031_s3 + $0xf0] sm:$0xff] }
 0x2be   : > { %2284 = vperm.xlu1 %3955, %v2206_v54   ;;  %2274 = vperm.xlu0 %3954, %v2204_v55   ;;  %v2238_v19 = vld [vmem:[%s5031_s3 + $0x118] sm:$0xff]  ;;  %v2237_v20 = vld [vmem:[%s5031_s3 + $0x110] sm:$0xff]  ;;  %v2236_v21 = vld [vmem:[%s5031_s3 + $0x108] sm:$0xff] }
 0x2bf   : > { %v3835_v23 = vld [vmem:[#allocation5 + $0x10] sm:$0xff]   ;;  %v2240_v26 = vld [vmem:[%s5031_s3 + $0x128] sm:$0xff]  ;;  %v2239_v27 = vld [vmem:[%s5031_s3 + $0x120] sm:$0xff] }
 0x2c0   : > { %v2143_v24 = vld [vmem:[#allocation2 + $0x50] sm:$0xff]  ;;  %v3556_v28 = vunpack.c.l.bf16 %v3835_v23  ;;  %v2144_v30 = vld [vmem:[#allocation2 + $0x168] sm:$0xff]  ;;  %v3557_v31 = vunpack.c.h.bf16 %v3835_v23  ;;  %v2243_v37 = vld [vmem:[%s5031_s3 + $0x140] sm:$0xff] }
 0x2c1   : > { %v2241_v25 = vld [vmem:[%s5031_s3 + $0x130] sm:$0xff]  ;;  %v2244_v36 = vld [vmem:[%s5031_s3 + $0x148] sm:$0xff]  ;;  %v2242_v38 = vld [vmem:[%s5031_s3 + $0x138] sm:$0xff] }
 0x2c2   : > { %v2247_v41 = vld [vmem:[%s5031_s3 + $0x160] sm:$0xff]  ;;  %v2246_v42 = vld [vmem:[%s5031_s3 + $0x158] sm:$0xff]  ;;  %v2245_v43 = vld [vmem:[%s5031_s3 + $0x150] sm:$0xff] }
 0x2c3   : > { %v3834_v47 = vld [vmem:[#allocation5 + $0x8] sm:$0xff]   ;;  %v2141_v48 = vld [vmem:[#allocation2 + $0xd8] sm:$0xff]  ;;  %v2249_v50 = vld [vmem:[%s5031_s3 + $0x170] sm:$0xff] }
 0x2c4   : > { %v2250_v49 = vld [vmem:[%s5031_s3 + $0x178] sm:$0xff]  ;;  %v2248_v51 = vld [vmem:[%s5031_s3 + $0x168] sm:$0xff]  ;;  %v3547_v52 = vld [vmem:[#allocation5] sm:$0xff]   ;;  %v3552_v54 = vunpack.c.l.bf16 %v3834_v47 }
 0x2c5   : > { %2309 = vperm.xlu2 %3956, %v2211_v56   ;;  %v2139_v53 = vld [vmem:[#allocation2 + $0xb0] sm:$0xff]  ;;  %v2142_v56 = vld [vmem:[#allocation2 + $0x18] sm:$0xff]  ;;  %v2256_v23 = vld [vmem:[%s5031_s3 + $0x1a8] sm:$0xff] }
 0x2c6   : > { %2304 = vperm.xlu1 %3955, %v2210_v57   ;;  %2299 = vperm.xlu0 %3954, %v2209_v58   ;;  %v2140_v57 = vld [vmem:[#allocation2 + $0x1b0] sm:$0xff]  ;;  %v3548_v58 = vunpack.c.l.bf16 %v3547_v52 }
 0x2cd   : > { %2324 = vperm.xlu2 %3956, %v2214_v59  }
 0x2ce   : > { %2319 = vperm.xlu1 %3955, %v2213_v60   ;;  %2314 = vperm.xlu0 %3954, %v2212_v61   ;;  %v3553_v61 = vunpack.c.h.bf16 %v3834_v47  ;;  %v2259_v47 = vld [vmem:[%s5031_s3 + $0x1c0] sm:$0xff] }
 0x2d5   : > { %2339 = vperm.xlu2 %3956, %v2217_v62   ;;  %v3549_v62 = vunpack.c.h.bf16 %v3547_v52  ;;  %v3839_v52 = vld [vmem:[#allocation5 + $0x30] sm:$0xff]  }
 0x2d6   : > { %2334 = vperm.xlu1 %3955, %v2216_v63   ;;  %2329 = vperm.xlu0 %3954, %v2215_v0  }
 0x2dd   : > { %2354 = vperm.xlu2 %3956, %v2220_v1  }
 0x2de   : > { %2349 = vperm.xlu1 %3955, %v2219_v2   ;;  %2344 = vperm.xlu0 %3954, %v2218_v3  }
 0x2e5   : > { %2369 = vperm.xlu2 %3956, %v2223_v4   ;;  %v2253_v4 = vld [vmem:[%s5031_s3 + $0x190] sm:$0xff] }
 0x2e6   : > { %2364 = vperm.xlu1 %3955, %v2222_v5   ;;  %2359 = vperm.xlu0 %3954, %v2221_v6  }
 0x2ed   : > { %2384 = vperm.xlu2 %3956, %v2226_v7  }
 0x2ee   : > { %2379 = vperm.xlu1 %3955, %v2225_v8   ;;  %2374 = vperm.xlu0 %3954, %v2224_v9   ;;  %v2252_v8 = vld [vmem:[%s5031_s3 + $0x188] sm:$0xff]  ;;  %v2251_v9 = vld [vmem:[%s5031_s3 + $0x180] sm:$0xff] }
 0x2f5   : > { %2399 = vperm.xlu2 %3956, %v2229_v10   ;;  %v3836_v10 = vld [vmem:[#allocation5 + $0x18] sm:$0xff]  }
 0x2f6   : > { %2394 = vperm.xlu1 %3955, %v2228_v11   ;;  %2389 = vperm.xlu0 %3954, %v2227_v12  }
 0x2fd   : > { %2414 = vperm.xlu2 %3956, %v2232_v13   ;;  %v2146_v13 = vld [vmem:[#allocation2 + $0x48] sm:$0xff] }
 0x2fe   : > { %2409 = vperm.xlu1 %3955, %v2231_v14   ;;  %2404 = vperm.xlu0 %3954, %v2230_v15   ;;  %v2145_v14 = vld [vmem:[#allocation2 + $0x130] sm:$0xff] }
 0x305   : > { %2429 = vperm.xlu2 %3956, %v2235_v16   ;;  %v3561_v16 = vunpack.c.h.bf16 %v3836_v10 }
 0x306   : > { %2424 = vperm.xlu1 %3955, %v2234_v17   ;;  %2419 = vperm.xlu0 %3954, %v2233_v18   ;;  %v3560_v17 = vunpack.c.l.bf16 %v3836_v10 }
 0x30d   : > { %2444 = vperm.xlu2 %3956, %v2238_v19  }
 0x30e   : > { %2439 = vperm.xlu1 %3955, %v2237_v20   ;;  %2434 = vperm.xlu0 %3954, %v2236_v21  }
 0x30f   : > { %v2290_v22 = vpop.permute.xlu2 %2289 }
 0x310   : > { %v2591_v29 = vmul.f32 %v2290_v22, %v2143_v24  ;;  %v3837_v22 = vld [vmem:[#allocation5 + $0x20] sm:$0xff]   ;;  %v3838_v24 = vld [vmem:[#allocation5 + $0x28] sm:$0xff]  }
 0x312   : > { %v2783_v33 = vadd.f32 %v3556_v28, %v2591_v29  ;;  %v2254_v28 = vld [vmem:[%s5031_s3 + $0x198] sm:$0xff]  ;;  %v2147_v29 = vld [vmem:[#allocation2 + $0x180] sm:$0xff] }
 0x315   : > { %2459 = vperm.xlu2 %3956, %v2241_v25  }
 0x316   : > { %2454 = vperm.xlu1 %3955, %v2240_v26   ;;  %2449 = vperm.xlu0 %3954, %v2239_v27   ;;  %v2255_v27 = vld [vmem:[%s5031_s3 + $0x1a0] sm:$0xff] }
 0x317   : > { %v2295_v32 = vpop.permute.xlu2 %2294 }
 0x318   : > { %v2592_v34 = vmul.f32 %v2295_v32, %v2144_v30  ;;  %v2150_v30 = vld [vmem:[#allocation2 + $0x98] sm:$0xff]  ;;  %v3564_v32 = vunpack.c.l.bf16 %v3837_v22 }
 0x31a   : > { %v2784_v35 = vadd.f32 %v3557_v31, %v2592_v34  ;;  %v2149_v34 = vld [vmem:[#allocation2 + $0x118] sm:$0xff] }
 0x31c   : > { %v3687_v39 = vpack.c.bf16 %v2784_v35, %v2783_v33  ;;  %v3569_v33 = vunpack.c.h.bf16 %v3838_v24  ;;  %v2148_v35 = vld [vmem:[#allocation2 + $0x110] sm:$0xff] }
 0x31d   : > { %2474 = vperm.xlu2 %3956, %v2244_v36  }
 0x31e   : > { %3866 = vst [vmem:[%s5032_s4 + $0x10] sm:$0xff] %v3687_v39   ;;  %2469 = vperm.xlu1 %3955, %v2243_v37   ;;  %2464 = vperm.xlu0 %3954, %v2242_v38   ;;  %v3568_v39 = vunpack.c.l.bf16 %v3838_v24 }
 0x31f   : > { %v4827_v40 = vpop.permute.xlu2 %2309 }
 0x320   : > { %v2595_v36 = vmul.f32 %v4827_v40, %v2147_v29  ;;  %v2263_v29 = vld [vmem:[%s5031_s3 + $0x1e0] sm:$0xff] }
 0x325   : > { %2489 = vperm.xlu2 %3956, %v2247_v41   ;;  %v3565_v41 = vunpack.c.h.bf16 %v3837_v22 }
 0x326   : > { %2484 = vperm.xlu1 %3955, %v2246_v42   ;;  %2479 = vperm.xlu0 %3954, %v2245_v43  }
 0x327   : > { %v4838_v44 = vpop.permute.xlu2 %2324 }
 0x328   : > { %v2280_v45 = vpop.permute.xlu1 %2279  ;;  %v2270_v46 = vpop.permute.xlu0 %2269  ;;  %v2598_v37 = vmul.f32 %v4838_v44, %v2150_v30  ;;  %v3842_v30 = vld [vmem:[#allocation5 + $0x48] sm:$0xff]  }
 0x329   : > { %v2589_v55 = vmul.f32 %v2280_v45, %v2141_v48  ;;  %v2587_v59 = vmul.f32 %v2270_v46, %v2139_v53  ;;  %v2787_v48 = vadd.f32 %v3564_v32, %v2595_v36  ;;  %v3585_v36 = vunpack.c.h.bf16 %v3842_v30 }
 0x32a   : > { %v2790_v40 = vadd.f32 %v3569_v33, %v2598_v37  ;;  %v2158_v33 = vld [vmem:[#allocation2 + $0x140] sm:$0xff]  ;;  %v3584_v37 = vunpack.c.l.bf16 %v3842_v30 }
 0x32b   : > { %v2781_v1 = vadd.f32 %v3552_v54, %v2589_v55  ;;  %v2779_v5 = vadd.f32 %v3548_v58, %v2587_v59  ;;  %v2152_v55 = vld [vmem:[#allocation2 + $0x150] sm:$0xff]  ;;  %v3573_v58 = vunpack.c.h.bf16 %v3839_v52  ;;  %v3572_v59 = vunpack.c.l.bf16 %v3839_v52 }
 0x32d   : > { %2504 = vperm.xlu2 %3956, %v2250_v49  }
 0x32e   : > { %2499 = vperm.xlu1 %3955, %v2249_v50   ;;  %2494 = vperm.xlu0 %3954, %v2248_v51   ;;  %v2258_v50 = vld [vmem:[%s5031_s3 + $0x1b8] sm:$0xff]  ;;  %v2257_v51 = vld [vmem:[%s5031_s3 + $0x1b0] sm:$0xff] }
 0x32f   : > { %v4849_v60 = vpop.permute.xlu2 %2339 }
 0x330   : > { %v2285_v63 = vpop.permute.xlu1 %2284  ;;  %v2275_v0 = vpop.permute.xlu0 %2274 }
 0x331   : > { %v2590_v2 = vmul.f32 %v2285_v63, %v2142_v56  ;;  %v2588_v3 = vmul.f32 %v2275_v0, %v2140_v57  ;;  %v2151_v56 = vld [vmem:[#allocation2 + $0x120] sm:$0xff] }
 0x333   : > { %v2782_v6 = vadd.f32 %v3553_v61, %v2590_v2  ;;  %v2780_v7 = vadd.f32 %v3549_v62, %v2588_v3  ;;  %v2262_v2 = vld [vmem:[%s5031_s3 + $0x1d8] sm:$0xff]  ;;  %v3841_v3 = vld [vmem:[#allocation5 + $0x40] sm:$0xff]  }
 0x335   : > { %v3682_v11 = vpack.c.bf16 %v2782_v6, %v2781_v1  ;;  %v3677_v12 = vpack.c.bf16 %v2780_v7, %v2779_v5  ;;  %2519 = vperm.xlu2 %3956, %v2253_v4   ;;  %v3840_v1 = vld [vmem:[#allocation5 + $0x38] sm:$0xff]   ;;  %v2261_v6 = vld [vmem:[%s5031_s3 + $0x1d0] sm:$0xff]  ;;  %v2260_v7 = vld [vmem:[%s5031_s3 + $0x1c8] sm:$0xff] }
 0x336   : > { %2514 = vperm.xlu1 %3955, %v2252_v8   ;;  %2509 = vperm.xlu0 %3954, %v2251_v9   ;;  %v2153_v8 = vld [vmem:[#allocation2 + $0x108] sm:$0xff] }
 0x337   : > { %3865 = vst [vmem:[%s5032_s4 + $0x8] sm:$0xff] %v3682_v11   ;;  %v4863_v15 = vpop.permute.xlu2 %2354  ;;  %v2156_v9 = vld [vmem:[#allocation2 + $0x188] sm:$0xff]  ;;  %v3576_v11 = vunpack.c.l.bf16 %v3840_v1 }
 0x338   : > { %3678 = vst [vmem:[%s5032_s4] sm:$0xff] %v3677_v12   ;;  %v2305_v18 = vpop.permute.xlu1 %2304  ;;  %v2300_v19 = vpop.permute.xlu0 %2299  ;;  %v3581_v12 = vunpack.c.h.bf16 %v3841_v3 }
 0x339   : > { %v2594_v20 = vmul.f32 %v2305_v18, %v2146_v13  ;;  %v2593_v21 = vmul.f32 %v2300_v19, %v2145_v14  ;;  %v2155_v13 = vld [vmem:[#allocation2 + $0xe0] sm:$0xff]  ;;  %v3580_v19 = vunpack.c.l.bf16 %v3841_v3 }
 0x33a   : > { %v2154_v14 = vld [vmem:[#allocation2 + $0x60] sm:$0xff] }
 0x33b   : > { %v2786_v25 = vadd.f32 %v3561_v16, %v2594_v20  ;;  %v2785_v26 = vadd.f32 %v3560_v17, %v2593_v21  ;;  %v2601_v16 = vmul.f32 %v4849_v60, %v2153_v8  ;;  %v2604_v17 = vmul.f32 %v4863_v15, %v2156_v9  ;;  %v2163_v8 = vld [vmem:[#allocation2 + $0x1e8] sm:$0xff] }
 0x33c   : > { %v3577_v20 = vunpack.c.h.bf16 %v3840_v1 }
 0x33d   : > { %v3692_v31 = vpack.c.bf16 %v2786_v25, %v2785_v26  ;;  %2534 = vperm.xlu2 %3956, %v2256_v23   ;;  %v2265_v25 = vld [vmem:[%s5031_s3 + $0x1f0] sm:$0xff]  ;;  %v2793_v26 = vadd.f32 %v3576_v11, %v2601_v16  ;;  %v2796_v60 = vadd.f32 %v3581_v12, %v2604_v17  ;;  %v3846_v16 = vld [vmem:[#allocation5 + $0x68] sm:$0xff]  }
 0x33e   : > { %2529 = vperm.xlu1 %3955, %v2255_v27   ;;  %2524 = vperm.xlu0 %3954, %v2254_v28   ;;  %v2264_v28 = vld [vmem:[%s5031_s3 + $0x1e8] sm:$0xff]  ;;  %v3847_v17 = vld [vmem:[#allocation5 + $0x70] sm:$0xff]   ;;  %v3601_v30 = vunpack.c.h.bf16 %v3846_v16 }
 0x33f   : > { %3867 = vst [vmem:[%s5032_s4 + $0x18] sm:$0xff] %v3692_v31   ;;  %v4882_v38 = vpop.permute.xlu2 %2369 }
 0x340   : > { %v2320_v42 = vpop.permute.xlu1 %2319  ;;  %v2315_v43 = vpop.permute.xlu0 %2314 }
 0x341   : > { %v2597_v45 = vmul.f32 %v2320_v42, %v2149_v34  ;;  %v2596_v46 = vmul.f32 %v2315_v43, %v2148_v35  ;;  %v2157_v34 = vld [vmem:[#allocation2 + $0x138] sm:$0xff] }
 0x343   : > { %v2789_v49 = vadd.f32 %v3568_v39, %v2597_v45  ;;  %v2788_v44 = vadd.f32 %v3565_v41, %v2596_v46  ;;  %v3843_v45 = vld [vmem:[#allocation5 + $0x50] sm:$0xff]   ;;  %v3844_v46 = vld [vmem:[#allocation5 + $0x58] sm:$0xff]  }
 0x344   : > { %v3593_v52 = vunpack.c.h.bf16 %v3844_v46 }
 0x345   : > { %v3702_v53 = vpack.c.bf16 %v2790_v40, %v2789_v49  ;;  %v3697_v54 = vpack.c.bf16 %v2788_v44, %v2787_v48  ;;  %2549 = vperm.xlu2 %3956, %v2259_v47   ;;  %v2266_v40 = vld [vmem:[%s5031_s3 + $0x1f8] sm:$0xff]  ;;  %v2159_v49 = vld [vmem:[#allocation2 + $0x80] sm:$0xff]  ;;  %v2162_v44 = vld [vmem:[#allocation2 + $0x28] sm:$0xff] }
 0x346   : > { %2544 = vperm.xlu1 %3955, %v2258_v50   ;;  %2539 = vperm.xlu0 %3954, %v2257_v51   ;;  %v3588_v51 = vunpack.c.l.bf16 %v3843_v45 }
 0x347   : > { %3869 = vst [vmem:[%s5032_s4 + $0x28] sm:$0xff] %v3702_v53   ;;  %v4896_v57 = vpop.permute.xlu2 %2384  ;;  %v2161_v53 = vld [vmem:[#allocation2 + $0x1b8] sm:$0xff] }
 0x348   : > { %3868 = vst [vmem:[%s5032_s4 + $0x20] sm:$0xff] %v3697_v54   ;;  %v2335_v61 = vpop.permute.xlu1 %2334  ;;  %v2330_v62 = vpop.permute.xlu0 %2329  ;;  %v2160_v54 = vld [vmem:[#allocation2 + $0x1a8] sm:$0xff] }
 0x349   : > { %v2600_v63 = vmul.f32 %v2335_v61, %v2152_v55  ;;  %v2599_v0 = vmul.f32 %v2330_v62, %v2151_v56  ;;  %v2607_v55 = vmul.f32 %v4882_v38, %v2159_v49  ;;  %v2610_v56 = vmul.f32 %v4896_v57, %v2162_v44  ;;  %v2164_v57 = vld [vmem:[#allocation2 + $0xf8] sm:$0xff] }
 0x34b   : > { %v2792_v4 = vadd.f32 %v3573_v58, %v2600_v63  ;;  %v2791_v5 = vadd.f32 %v3572_v59, %v2599_v0  ;;  %v3592_v58 = vunpack.c.l.bf16 %v3844_v46  ;;  %v3589_v59 = vunpack.c.h.bf16 %v3843_v45  ;;  %v2169_v46 = vld [vmem:[#allocation2 + $0xf0] sm:$0xff] }
 0x34c   : > { %v2802_v3 = vadd.f32 %v3593_v52, %v2610_v56  ;;  %v3850_v52 = vld [vmem:[#allocation5 + $0x88] sm:$0xff]  }
 0x34d   : > { %v3707_v10 = vpack.c.bf16 %v2792_v4, %v2791_v5  ;;  %2564 = vperm.xlu2 %3956, %v2262_v2   ;;  %v2799_v2 = vadd.f32 %v3588_v51, %v2607_v55  ;;  %v3849_v51 = vld [vmem:[#allocation5 + $0x80] sm:$0xff]   ;;  %v2171_v55 = vld [vmem:[#allocation2 + $0x148] sm:$0xff] }
 0x34e   : > { %2559 = vperm.xlu1 %3955, %v2261_v6   ;;  %2554 = vperm.xlu0 %3954, %v2260_v7   ;;  %v3845_v6 = vld [vmem:[#allocation5 + $0x60] sm:$0xff]   ;;  %v2174_v56 = vld [vmem:[#allocation2 + $0xc8] sm:$0xff] }
 0x34f   : > { %3870 = vst [vmem:[%s5032_s4 + $0x30] sm:$0xff] %v3707_v10   ;;  %v4915_v18 = vpop.permute.xlu2 %2399  ;;  %v3597_v9 = vunpack.c.h.bf16 %v3845_v6  ;;  %v3596_v10 = vunpack.c.l.bf16 %v3845_v6 }
 0x350   : > { %v2350_v21 = vpop.permute.xlu1 %2349  ;;  %v2345_v22 = vpop.permute.xlu0 %2344 }
 0x351   : > { %v2603_v23 = vmul.f32 %v2350_v21, %v2155_v13  ;;  %v2602_v24 = vmul.f32 %v2345_v22, %v2154_v14  ;;  %v2165_v22 = vld [vmem:[#allocation2 + $0x160] sm:$0xff] }
 0x353   : > { %v2795_v27 = vadd.f32 %v3580_v19, %v2603_v23  ;;  %v2794_v15 = vadd.f32 %v3577_v20, %v2602_v24  ;;  %v2168_v23 = vld [vmem:[#allocation2] sm:$0xff] }
 0x355   : > { %v3717_v31 = vpack.c.bf16 %v2796_v60, %v2795_v27  ;;  %v3712_v32 = vpack.c.bf16 %v2794_v15, %v2793_v26  ;;  %2579 = vperm.xlu2 %3956, %v2265_v25   ;;  %v3600_v25 = vunpack.c.l.bf16 %v3846_v16  ;;  %v3605_v26 = vunpack.c.h.bf16 %v3847_v17  ;;  %v2167_v60 = vld [vmem:[#allocation2 + $0x1e0] sm:$0xff]  ;;  %v2166_v27 = vld [vmem:[#allocation2 + $0x30] sm:$0xff] }
 0x356   : > { %2574 = vperm.xlu1 %3955, %v2264_v28   ;;  %2569 = vperm.xlu0 %3954, %v2263_v29   ;;  %v2613_v15 = vmul.f32 %v4915_v18, %v2165_v22  ;;  %v3604_v29 = vunpack.c.l.bf16 %v3847_v17  ;;  %v2175_v16 = vld [vmem:[#allocation2 + $0x40] sm:$0xff] }
 0x357   : > { %3872 = vst [vmem:[%s5032_s4 + $0x40] sm:$0xff] %v3717_v31   ;;  %v2415_v35 = vpop.permute.xlu2 %2414 }
 0x358   : > { %3871 = vst [vmem:[%s5032_s4 + $0x38] sm:$0xff] %v3712_v32   ;;  %v2365_v39 = vpop.permute.xlu1 %2364  ;;  %v2360_v41 = vpop.permute.xlu0 %2359  ;;  %v2616_v28 = vmul.f32 %v2415_v35, %v2168_v23  ;;  %v2170_v35 = vld [vmem:[#allocation2 + $0x8] sm:$0xff] }
 0x359   : > { %v2606_v42 = vmul.f32 %v2365_v39, %v2158_v33  ;;  %v2605_v43 = vmul.f32 %v2360_v41, %v2157_v34 }
 0x35b   : > { %v2798_v47 = vadd.f32 %v3585_v36, %v2606_v42  ;;  %v2797_v48 = vadd.f32 %v3584_v37, %v2605_v43  ;;  %v2805_v36 = vadd.f32 %v3600_v25, %v2613_v15  ;;  %v2808_v37 = vadd.f32 %v3605_v26, %v2616_v28  ;;  %v3848_v42 = vld [vmem:[#allocation5 + $0x78] sm:$0xff]   ;;  %v3853_v26 = vld [vmem:[#allocation5 + $0xa0] sm:$0xff]   ;;  %v2180_v28 = vld [vmem:[#allocation2 + $0x1f0] sm:$0xff] }
 0x35c   : > { %v3852_v25 = vld [vmem:[#allocation5 + $0x98] sm:$0xff]   ;;  %v2177_v15 = vld [vmem:[#allocation2 + $0x20] sm:$0xff] }
 0x35d   : > { %v3722_v50 = vpack.c.bf16 %v2798_v47, %v2797_v48  ;;  %v3609_v47 = vunpack.c.h.bf16 %v3848_v42  ;;  %v3608_v48 = vunpack.c.l.bf16 %v3848_v42 }
 0x35e   : > { %2584 = vperm.xlu0 %3954, %v2266_v40  }
 0x35f   : > { %3873 = vst [vmem:[%s5032_s4 + $0x48] sm:$0xff] %v3722_v50   ;;  %v4940_v63 = vpop.permute.xlu2 %2429 }
 0x360   : > { %v2380_v61 = vpop.permute.xlu1 %2379  ;;  %v2375_v62 = vpop.permute.xlu0 %2374 }
 0x361   : > { %v2609_v0 = vmul.f32 %v2380_v61, %v2161_v53  ;;  %v2608_v1 = vmul.f32 %v2375_v62, %v2160_v54  ;;  %v3617_v61 = vunpack.c.h.bf16 %v3850_v52  ;;  %v2173_v62 = vld [vmem:[#allocation2 + $0x100] sm:$0xff] }
 0x363   : > { %v2801_v4 = vadd.f32 %v3592_v58, %v2609_v0  ;;  %v2800_v5 = vadd.f32 %v3589_v59, %v2608_v1  ;;  %v3612_v59 = vunpack.c.l.bf16 %v3849_v51  ;;  %v2172_v0 = vld [vmem:[#allocation2 + $0x1d0] sm:$0xff]  ;;  %v2619_v1 = vmul.f32 %v4940_v63, %v2171_v55  ;;  %v2176_v63 = vld [vmem:[#allocation2 + $0x1f8] sm:$0xff] }
 0x365   : > { %v3732_v38 = vpack.c.bf16 %v2802_v3, %v2801_v4  ;;  %v3727_v7 = vpack.c.bf16 %v2800_v5, %v2799_v2  ;;  %v3616_v4 = vunpack.c.l.bf16 %v3850_v52  ;;  %v3613_v5 = vunpack.c.h.bf16 %v3849_v51  ;;  %v2181_v51 = vld [vmem:[#allocation2 + $0xe8] sm:$0xff] }
 0x367   : > { %3875 = vst [vmem:[%s5032_s4 + $0x58] sm:$0xff] %v3732_v38   ;;  %v2445_v19 = vpop.permute.xlu2 %2444 }
 0x368   : > { %3874 = vst [vmem:[%s5032_s4 + $0x50] sm:$0xff] %v3727_v7   ;;  %v2395_v11 = vpop.permute.xlu1 %2394  ;;  %v2390_v12 = vpop.permute.xlu0 %2389  ;;  %v2622_v2 = vmul.f32 %v2445_v19, %v2174_v56 }
 0x369   : > { %v2612_v13 = vmul.f32 %v2395_v11, %v2164_v57  ;;  %v2611_v14 = vmul.f32 %v2390_v12, %v2163_v8  ;;  %v2811_v8 = vadd.f32 %v3612_v59, %v2619_v1  ;;  %v3851_v12 = vld [vmem:[#allocation5 + $0x90] sm:$0xff]  }
 0x36a   : > { %v3621_v17 = vunpack.c.h.bf16 %v3851_v12  ;;  %v3620_v19 = vunpack.c.l.bf16 %v3851_v12  ;;  %v3855_v59 = vld [vmem:[#allocation5 + $0xb0] sm:$0xff]  }
 0x36b   : > { %v2804_v20 = vadd.f32 %v3597_v9, %v2612_v13  ;;  %v2803_v21 = vadd.f32 %v3596_v10, %v2611_v14  ;;  %v2814_v9 = vadd.f32 %v3617_v61, %v2622_v2  ;;  %v3856_v61 = vld [vmem:[#allocation5 + $0xb8] sm:$0xff]   ;;  %v2183_v1 = vld [vmem:[#allocation2 + $0x70] sm:$0xff] }
 0x36c   : > { %v2186_v2 = vld [vmem:[#allocation2 + $0xd0] sm:$0xff] }
 0x36d   : > { %v3737_v24 = vpack.c.bf16 %v2804_v20, %v2803_v21 }
 0x36f   : > { %3876 = vst [vmem:[%s5032_s4 + $0x60] sm:$0xff] %v3737_v24   ;;  %v4952_v43 = vpop.permute.xlu2 %2459 }
 0x370   : > { %v2410_v31 = vpop.permute.xlu1 %2409  ;;  %v2405_v32 = vpop.permute.xlu0 %2404 }
 0x371   : > { %v2615_v33 = vmul.f32 %v2410_v31, %v2167_v60  ;;  %v2614_v34 = vmul.f32 %v2405_v32, %v2166_v27  ;;  %v3629_v31 = vunpack.c.h.bf16 %v3853_v26  ;;  %v2179_v32 = vld [vmem:[#allocation2 + $0x1a0] sm:$0xff] }
 0x373   : > { %v2807_v39 = vadd.f32 %v3604_v29, %v2615_v33  ;;  %v2806_v41 = vadd.f32 %v3601_v30, %v2614_v34  ;;  %v3624_v30 = vunpack.c.l.bf16 %v3852_v25  ;;  %v2178_v33 = vld [vmem:[#allocation2 + $0x128] sm:$0xff]  ;;  %v2625_v34 = vmul.f32 %v4952_v43, %v2177_v15  ;;  %v2182_v43 = vld [vmem:[#allocation2 + $0x78] sm:$0xff] }
 0x375   : > { %v3747_v45 = vpack.c.bf16 %v2808_v37, %v2807_v39  ;;  %v3742_v18 = vpack.c.bf16 %v2806_v41, %v2805_v36  ;;  %v3628_v37 = vunpack.c.l.bf16 %v3853_v26  ;;  %v3625_v39 = vunpack.c.h.bf16 %v3852_v25 }
 0x377   : > { %3878 = vst [vmem:[%s5032_s4 + $0x70] sm:$0xff] %v3747_v45   ;;  %v2475_v3 = vpop.permute.xlu2 %2474 }
 0x378   : > { %3877 = vst [vmem:[%s5032_s4 + $0x68] sm:$0xff] %v3742_v18   ;;  %v2425_v40 = vpop.permute.xlu1 %2424  ;;  %v2420_v49 = vpop.permute.xlu0 %2419  ;;  %v2628_v36 = vmul.f32 %v2475_v3, %v2180_v28 }
 0x379   : > { %v2618_v44 = vmul.f32 %v2425_v40, %v2170_v35  ;;  %v2617_v50 = vmul.f32 %v2420_v49, %v2169_v46  ;;  %v2817_v35 = vadd.f32 %v3624_v30, %v2625_v34  ;;  %v3854_v49 = vld [vmem:[#allocation5 + $0xa8] sm:$0xff]  }
 0x37a   : > { %v2820_v46 = vadd.f32 %v3629_v31, %v2628_v36  ;;  %v3633_v52 = vunpack.c.h.bf16 %v3854_v49  ;;  %v3858_v30 = vld [vmem:[#allocation5 + $0xc8] sm:$0xff]   ;;  %v3859_v31 = vld [vmem:[#allocation5 + $0xd0] sm:$0xff]   ;;  %v2192_v36 = vld [vmem:[#allocation2 + $0x178] sm:$0xff] }
 0x37b   : > { %v2810_v53 = vadd.f32 %v3609_v47, %v2618_v44  ;;  %v2809_v54 = vadd.f32 %v3608_v48, %v2617_v50  ;;  %v2189_v34 = vld [vmem:[#allocation2 + $0xa8] sm:$0xff] }
 0x37d   : > { %v3752_v58 = vpack.c.bf16 %v2810_v53, %v2809_v54  ;;  %v3632_v53 = vunpack.c.l.bf16 %v3854_v49 }
 0x37f   : > { %3879 = vst [vmem:[%s5032_s4 + $0x78] sm:$0xff] %v3752_v58   ;;  %v2490_v22 = vpop.permute.xlu2 %2489 }
 0x380   : > { %v2440_v6 = vpop.permute.xlu1 %2439  ;;  %v2435_v38 = vpop.permute.xlu0 %2434 }
 0x381   : > { %v2621_v7 = vmul.f32 %v2440_v6, %v2173_v62  ;;  %v2620_v57 = vmul.f32 %v2435_v38, %v2172_v0  ;;  %v3641_v6 = vunpack.c.h.bf16 %v3856_v61  ;;  %v2185_v38 = vld [vmem:[#allocation2 + $0x1d8] sm:$0xff] }
 0x383   : > { %v2813_v10 = vadd.f32 %v3616_v4, %v2621_v7  ;;  %v2812_v11 = vadd.f32 %v3613_v5, %v2620_v57  ;;  %v3636_v5 = vunpack.c.l.bf16 %v3855_v59  ;;  %v2184_v7 = vld [vmem:[#allocation2 + $0x90] sm:$0xff]  ;;  %v2631_v57 = vmul.f32 %v2490_v22, %v2183_v1  ;;  %v2187_v22 = vld [vmem:[#allocation2 + $0xb8] sm:$0xff] }
 0x385   : > { %v3762_v13 = vpack.c.bf16 %v2814_v9, %v2813_v10  ;;  %v3757_v14 = vpack.c.bf16 %v2812_v11, %v2811_v8  ;;  %v3640_v9 = vunpack.c.l.bf16 %v3856_v61  ;;  %v3637_v10 = vunpack.c.h.bf16 %v3855_v59  ;;  %v2193_v59 = vld [vmem:[#allocation2 + $0x68] sm:$0xff] }
 0x387   : > { %3881 = vst [vmem:[%s5032_s4 + $0x88] sm:$0xff] %v3762_v13   ;;  %v2505_v47 = vpop.permute.xlu2 %2504 }
 0x388   : > { %3880 = vst [vmem:[%s5032_s4 + $0x80] sm:$0xff] %v3757_v14   ;;  %v2455_v20 = vpop.permute.xlu1 %2454  ;;  %v2450_v21 = vpop.permute.xlu0 %2449  ;;  %v2634_v8 = vmul.f32 %v2505_v47, %v2186_v2  ;;  %v3649_v47 = vunpack.c.h.bf16 %v3858_v30 }
 0x389   : > { %v2624_v23 = vmul.f32 %v2455_v20, %v2176_v63  ;;  %v2623_v24 = vmul.f32 %v2450_v21, %v2175_v16  ;;  %v2823_v63 = vadd.f32 %v3636_v5, %v2631_v57  ;;  %v3857_v20 = vld [vmem:[#allocation5 + $0xc0] sm:$0xff]   ;;  %v3862_v5 = vld [vmem:[#allocation5 + $0xe8] sm:$0xff]  }
 0x38a   : > { %v2826_v16 = vadd.f32 %v3641_v6, %v2634_v8  ;;  %v3645_v26 = vunpack.c.h.bf16 %v3857_v20  ;;  %v2198_v8 = vld [vmem:[#allocation2 + $0x1c0] sm:$0xff] }
 0x38b   : > { %v2816_v60 = vadd.f32 %v3621_v17, %v2624_v23  ;;  %v2815_v27 = vadd.f32 %v3620_v19, %v2623_v24  ;;  %v2188_v24 = vld [vmem:[#allocation2 + $0x88] sm:$0xff] }
 0x38d   : > { %v3767_v29 = vpack.c.bf16 %v2816_v60, %v2815_v27  ;;  %v3644_v60 = vunpack.c.l.bf16 %v3857_v20 }
 0x38f   : > { %3882 = vst [vmem:[%s5032_s4 + $0x90] sm:$0xff] %v3767_v29   ;;  %v2520_v3 = vpop.permute.xlu2 %2519 }
 0x390   : > { %v2470_v41 = vpop.permute.xlu1 %2469  ;;  %v2465_v42 = vpop.permute.xlu0 %2464 }
 0x391   : > { %v2627_v45 = vmul.f32 %v2470_v41, %v2179_v32  ;;  %v2626_v18 = vmul.f32 %v2465_v42, %v2178_v33  ;;  %v3653_v41 = vunpack.c.h.bf16 %v3859_v31  ;;  %v2191_v42 = vld [vmem:[#allocation2 + $0x170] sm:$0xff] }
 0x393   : > { %v2819_v48 = vadd.f32 %v3628_v37, %v2627_v45  ;;  %v2818_v40 = vadd.f32 %v3625_v39, %v2626_v18  ;;  %v3648_v39 = vunpack.c.l.bf16 %v3858_v30  ;;  %v2190_v45 = vld [vmem:[#allocation2 + $0x1c8] sm:$0xff]  ;;  %v2637_v18 = vmul.f32 %v2520_v3, %v2189_v34 }
 0x395   : > { %v3777_v44 = vpack.c.bf16 %v2820_v46, %v2819_v48  ;;  %v3772_v50 = vpack.c.bf16 %v2818_v40, %v2817_v35  ;;  %v3652_v46 = vunpack.c.l.bf16 %v3859_v31 }
 0x397   : > { %3884 = vst [vmem:[%s5032_s4 + $0xa0] sm:$0xff] %v3777_v44   ;;  %v2535_v25 = vpop.permute.xlu2 %2534 }
 0x398   : > { %3883 = vst [vmem:[%s5032_s4 + $0x98] sm:$0xff] %v3772_v50   ;;  %v2485_v54 = vpop.permute.xlu1 %2484  ;;  %v2480_v55 = vpop.permute.xlu0 %2479  ;;  %v2640_v35 = vmul.f32 %v2535_v25, %v2192_v36 }
 0x399   : > { %v2630_v56 = vmul.f32 %v2485_v54, %v2182_v43  ;;  %v2629_v58 = vmul.f32 %v2480_v55, %v2181_v51  ;;  %v2829_v43 = vadd.f32 %v3648_v39, %v2637_v18  ;;  %v3860_v54 = vld [vmem:[#allocation5 + $0xd8] sm:$0xff]  }
 0x39a   : > { %v2832_v51 = vadd.f32 %v3653_v41, %v2640_v35  ;;  %v3657_v61 = vunpack.c.h.bf16 %v3860_v54  ;;  %v3864_v41 = vld [vmem:[#allocation5 + $0xf8] sm:$0xff]   ;;  %v2202_v35 = vld [vmem:[#allocation2 + $0xa0] sm:$0xff] }
 0x39b   : > { %v2822_v62 = vadd.f32 %v3633_v52, %v2630_v56  ;;  %v2821_v0 = vadd.f32 %v3632_v53, %v2629_v58  ;;  %v2194_v58 = vld [vmem:[#allocation2 + $0x190] sm:$0xff] }
 0x39d   : > { %v3782_v4 = vpack.c.bf16 %v2822_v62, %v2821_v0  ;;  %v3656_v62 = vunpack.c.l.bf16 %v3860_v54 }
 0x39f   : > { %3885 = vst [vmem:[%s5032_s4 + $0xa8] sm:$0xff] %v3782_v4   ;;  %v2550_v50 = vpop.permute.xlu2 %2549  ;;  %v3861_v4 = vld [vmem:[#allocation5 + $0xe0] sm:$0xff]  }
 0x3a0   : > { %v2500_v11 = vpop.permute.xlu1 %2499  ;;  %v2495_v12 = vpop.permute.xlu0 %2494 }
 0x3a1   : > { %v2633_v13 = vmul.f32 %v2500_v11, %v2185_v38  ;;  %v2632_v14 = vmul.f32 %v2495_v12, %v2184_v7  ;;  %v2195_v7 = vld [vmem:[#allocation2 + $0x198] sm:$0xff]  ;;  %v3665_v11 = vunpack.c.h.bf16 %v3862_v5  ;;  %v2197_v12 = vld [vmem:[#allocation2 + $0xc0] sm:$0xff] }
 0x3a3   : > { %v2825_v17 = vadd.f32 %v3640_v9, %v2633_v13  ;;  %v2824_v19 = vadd.f32 %v3637_v10, %v2632_v14  ;;  %v3660_v10 = vunpack.c.l.bf16 %v3861_v4  ;;  %v2196_v13 = vld [vmem:[#allocation2 + $0x38] sm:$0xff]  ;;  %v2643_v14 = vmul.f32 %v2550_v50, %v2195_v7 }
 0x3a5   : > { %v3792_v21 = vpack.c.bf16 %v2826_v16, %v2825_v17  ;;  %v3787_v23 = vpack.c.bf16 %v2824_v19, %v2823_v63  ;;  %v3664_v16 = vunpack.c.l.bf16 %v3862_v5  ;;  %v3661_v17 = vunpack.c.h.bf16 %v3861_v4 }
 0x3a7   : > { %3887 = vst [vmem:[%s5032_s4 + $0xb8] sm:$0xff] %v3792_v21   ;;  %v2565_v57 = vpop.permute.xlu2 %2564 }
 0x3a8   : > { %3886 = vst [vmem:[%s5032_s4 + $0xb0] sm:$0xff] %v3787_v23   ;;  %v2515_v27 = vpop.permute.xlu1 %2514  ;;  %v2510_v15 = vpop.permute.xlu0 %2509  ;;  %v2646_v63 = vmul.f32 %v2565_v57, %v2198_v8 }
 0x3a9   : > { %v2636_v28 = vmul.f32 %v2515_v27, %v2188_v24  ;;  %v2635_v29 = vmul.f32 %v2510_v15, %v2187_v22  ;;  %v2835_v24 = vadd.f32 %v3660_v10, %v2643_v14 }
 0x3aa   : > { %v2838_v22 = vadd.f32 %v3665_v11, %v2646_v63 }
 0x3ab   : > { %v2828_v32 = vadd.f32 %v3645_v26, %v2636_v28  ;;  %v2827_v33 = vadd.f32 %v3644_v60, %v2635_v29  ;;  %v3863_v60 = vld [vmem:[#allocation5 + $0xf0] sm:$0xff]   ;;  %v2199_v29 = vld [vmem:[#allocation2 + $0x158] sm:$0xff] }
 0x3ac   : > { %v2200_v28 = vld [vmem:[#allocation2 + $0x10] sm:$0xff]  ;;  %v3669_v30 = vunpack.c.h.bf16 %v3863_v60  ;;  %v3668_v31 = vunpack.c.l.bf16 %v3863_v60 }
 0x3ad   : > { %v3797_v37 = vpack.c.bf16 %v2828_v32, %v2827_v33 }
 0x3af   : > { %3888 = vst [vmem:[%s5032_s4 + $0xc0] sm:$0xff] %v3797_v37  }
 0x3b0   : > { %v2530_v48 = vpop.permute.xlu1 %2529  ;;  %v2525_v40 = vpop.permute.xlu0 %2524 }
 0x3b1   : > { %v2639_v49 = vmul.f32 %v2530_v48, %v2191_v42  ;;  %v2638_v44 = vmul.f32 %v2525_v40, %v2190_v45  ;;  %v2580_v42 = vpop.permute.xlu2 %2579  ;;  %v2201_v45 = vld [vmem:[#allocation2 + $0x58] sm:$0xff]  ;;  %v3673_v48 = vunpack.c.h.bf16 %v3864_v41 }
 0x3b3   : > { %v2831_v52 = vadd.f32 %v3652_v46, %v2639_v49  ;;  %v2830_v53 = vadd.f32 %v3649_v47, %v2638_v44  ;;  %v3672_v46 = vunpack.c.l.bf16 %v3864_v41  ;;  %v2649_v47 = vmul.f32 %v2580_v42, %v2201_v45 }
 0x3b5   : > { %v3807_v55 = vpack.c.bf16 %v2832_v51, %v2831_v52  ;;  %v3802_v56 = vpack.c.bf16 %v2830_v53, %v2829_v43  ;;  %v2841_v44 = vadd.f32 %v3672_v46, %v2649_v47 }
 0x3b7   : > { %3890 = vst [vmem:[%s5032_s4 + $0xd0] sm:$0xff] %v3807_v55  }
 0x3b8   : > { %3889 = vst [vmem:[%s5032_s4 + $0xc8] sm:$0xff] %v3802_v56   ;;  %v2545_v0 = vpop.permute.xlu1 %2544  ;;  %v2540_v1 = vpop.permute.xlu0 %2539 }
 0x3b9   : > { %v2642_v2 = vmul.f32 %v2545_v0, %v2194_v58  ;;  %v2641_v3 = vmul.f32 %v2540_v1, %v2193_v59 }
 0x3bb   : > { %v2834_v6 = vadd.f32 %v3657_v61, %v2642_v2  ;;  %v2833_v38 = vadd.f32 %v3656_v62, %v2641_v3 }
 0x3bd   : > { %v3812_v9 = vpack.c.bf16 %v2834_v6, %v2833_v38 }
 0x3bf   : > { %3891 = vst [vmem:[%s5032_s4 + $0xd8] sm:$0xff] %v3812_v9  }
 0x3c0   : > { %v2560_v19 = vpop.permute.xlu1 %2559  ;;  %v2555_v20 = vpop.permute.xlu0 %2554 }
 0x3c1   : > { %v2645_v21 = vmul.f32 %v2560_v19, %v2197_v12  ;;  %v2644_v23 = vmul.f32 %v2555_v20, %v2196_v13 }
 0x3c3   : > { %v2837_v25 = vadd.f32 %v3664_v16, %v2645_v21  ;;  %v2836_v26 = vadd.f32 %v3661_v17, %v2644_v23 }
 0x3c5   : > { %v3822_v27 = vpack.c.bf16 %v2838_v22, %v2837_v25  ;;  %v3817_v15 = vpack.c.bf16 %v2836_v26, %v2835_v24 }
 0x3c7   : > { %3893 = vst [vmem:[%s5032_s4 + $0xe8] sm:$0xff] %v3822_v27  }
 0x3c8   : > { %3892 = vst [vmem:[%s5032_s4 + $0xe0] sm:$0xff] %v3817_v15   ;;  %v2575_v32 = vpop.permute.xlu1 %2574  ;;  %v2570_v33 = vpop.permute.xlu0 %2569 }
 0x3c9   : > { %v2648_v34 = vmul.f32 %v2575_v32, %v2200_v28  ;;  %v2647_v36 = vmul.f32 %v2570_v33, %v2199_v29 }
 0x3cb   : > { %v2840_v37 = vadd.f32 %v3669_v30, %v2648_v34  ;;  %v2839_v39 = vadd.f32 %v3668_v31, %v2647_v36 }
 0x3cd   : > { %v3827_v18 = vpack.c.bf16 %v2840_v37, %v2839_v39 }
 0x3cf   : > { %3894 = vst [vmem:[%s5032_s4 + $0xf0] sm:$0xff] %v3827_v18  }
 0x3d0   : > { %v2585_v40 = vpop.permute.xlu0 %2584 }
 0x3d1   : > { %v2650_v49 = vmul.f32 %v2585_v40, %v2202_v35 }
 0x3d3   : > { %v2842_v50 = vadd.f32 %v3673_v48, %v2650_v49 }
 0x3d5   : > { %v3832_v43 = vpack.c.bf16 %v2842_v50, %v2841_v44 }
 0x3d7   : > { %3895 = vst [vmem:[%s5032_s4 + $0xf8] sm:$0xff] %v3832_v43  }
 0x3d8 PF: > { %s14_s19 = sadd.s32 1, %s3995_s19   ;;  %s5035_s15 = smov %s3983_s16 }
 0x3d9   : > { %p11_p12 = scmp.ge.s32.totalorder %s14_s19, 4   ;;  %s5036_s16 = smov %s4070_s26 }
 0x3da   : > { %s5037_s17 = smov %s3991_s18  ;;  %s5038_s18 = smov %s5040_s21 }
 0x3db   :  { %13 = sbr.rel (!%p11_p12) target bundleno = 3 (0x3), region = 215 }

// kernel: sage_forward.6
= control target key start
LH: loop header
LB: loop body
LE: loop exit
PB: predicated region body
PF: predicated region fallthrough
CT: control target
= control target key end

     0   :  { %s2284_s1 = inlined_call_operand.vmem [shape: bf16[128,256], index: 1, kind: input, shape index: {}]   ;;  %s2285_s0 = inlined_call_operand.vmem [shape: bf16[512,128], index: 0, kind: input, shape index: {}]   ;;  %s2286_s2 = inlined_call_operand.vmem [shape: f32[1,256], index: 2, kind: input, shape index: {}]   ;;  %s2287_s3 = inlined_call_operand.vmem [shape: bf16[512,256], index: 3, kind: output, shape index: {}]  }
   0x1   :  { %v1675_v0 = vld [vmem:[%s2284_s1 + $0x70] sm:$0xf]  ;;  %v1728_v1 = vld [vmem:[%s2284_s1 + $0x74] sm:$0xf0]  ;;  %v1727_v2 = vld [vmem:[%s2284_s1 + $0x74] sm:$0xf] }
   0x2   :  { %v1676_v3 = vor.u32 %v1728_v1, %v1675_v0  ;;  %v1677_v4 = vld [vmem:[%s2284_s1 + $0x78] sm:$0xf0]  ;;  %v1667_v5 = vld [vmem:[%s2284_s1 + $0x60] sm:$0xf]  ;;  %v1726_v6 = vld [vmem:[%s2284_s1 + $0x64] sm:$0xf0] }
   0x3   :  { %v1680_v7 = vor.u32 %v1727_v2, %v1677_v4  ;;  %v1725_v8 = vld [vmem:[%s2284_s1 + $0x64] sm:$0xf]  ;;  %v1669_v9 = vld [vmem:[%s2284_s1 + $0x68] sm:$0xf0]  ;;  %v1668_v10 = vor.u32 %v1726_v6, %v1667_v5  ;;  %v1659_v12 = vld [vmem:[%s2284_s1 + $0x50] sm:$0xf] }
   0x4   :  { %632 = vmatpush.bf16.msra.mxu0 %v1676_v3  ;;  %1729 = vmatpush.bf16.msra.mxu2 %v1676_v3  ;;  %v1672_v11 = vor.u32 %v1725_v8, %v1669_v9  ;;  %v1724_v13 = vld [vmem:[%s2284_s1 + $0x54] sm:$0xf0]  ;;  %v1723_v14 = vld [vmem:[%s2284_s1 + $0x54] sm:$0xf]  ;;  %v1661_v15 = vld [vmem:[%s2284_s1 + $0x58] sm:$0xf0] }
   0x5   :  { %801 = vmatpush.bf16.msra.mxu1 %v1680_v7  ;;  %1737 = vmatpush.bf16.msra.mxu3 %v1680_v7  ;;  %v1660_v16 = vor.u32 %v1724_v13, %v1659_v12  ;;  %v1664_v17 = vor.u32 %v1723_v14, %v1661_v15  ;;  %v1651_v18 = vld [vmem:[%s2284_s1 + $0x40] sm:$0xf]  ;;  %v1722_v19 = vld [vmem:[%s2284_s1 + $0x44] sm:$0xf0]  ;;  %v1721_v20 = vld [vmem:[%s2284_s1 + $0x44] sm:$0xf] }
   0x6   :  { %v1653_v21 = vld [vmem:[%s2284_s1 + $0x48] sm:$0xf0]  ;;  %v1652_v22 = vor.u32 %v1722_v19, %v1651_v18  ;;  %v1643_v24 = vld [vmem:[%s2284_s1 + $0x30] sm:$0xf]  ;;  %v1720_v25 = vld [vmem:[%s2284_s1 + $0x34] sm:$0xf0] }
   0x7   :  { %v1656_v23 = vor.u32 %v1721_v20, %v1653_v21  ;;  %v1719_v26 = vld [vmem:[%s2284_s1 + $0x34] sm:$0xf]  ;;  %v1645_v27 = vld [vmem:[%s2284_s1 + $0x38] sm:$0xf0]  ;;  %v1644_v28 = vor.u32 %v1720_v25, %v1643_v24  ;;  %v1635_v30 = vld [vmem:[%s2284_s1 + $0x20] sm:$0xf] }
   0x8   :  { %633 = vmatpush.bf16.msra.mxu0 %v1668_v10  ;;  %1730 = vmatpush.bf16.msra.mxu2 %v1668_v10  ;;  %v1648_v29 = vor.u32 %v1719_v26, %v1645_v27  ;;  %v1718_v31 = vld [vmem:[%s2284_s1 + $0x24] sm:$0xf0]  ;;  %v1717_v32 = vld [vmem:[%s2284_s1 + $0x24] sm:$0xf]  ;;  %v1637_v33 = vld [vmem:[%s2284_s1 + $0x28] sm:$0xf0] }
   0x9   :  { %802 = vmatpush.bf16.msra.mxu1 %v1672_v11  ;;  %1738 = vmatpush.bf16.msra.mxu3 %v1672_v11  ;;  %v1636_v34 = vor.u32 %v1718_v31, %v1635_v30  ;;  %v1640_v35 = vor.u32 %v1717_v32, %v1637_v33  ;;  %v1627_v36 = vld [vmem:[%s2284_s1 + $0x10] sm:$0xf]  ;;  %v1716_v37 = vld [vmem:[%s2284_s1 + $0x14] sm:$0xf0]  ;;  %v1715_v38 = vld [vmem:[%s2284_s1 + $0x14] sm:$0xf] }
   0xa   :  { %v1629_v39 = vld [vmem:[%s2284_s1 + $0x18] sm:$0xf0]  ;;  %v1628_v40 = vor.u32 %v1716_v37, %v1627_v36  ;;  %v1619_v42 = vld [vmem:[%s2284_s1] sm:$0xf]  ;;  %v1714_v43 = vld [vmem:[%s2284_s1 + $0x4] sm:$0xf0] }
   0xb   :  { %v1632_v41 = vor.u32 %v1715_v38, %v1629_v39  ;;  %v1713_v44 = vld [vmem:[%s2284_s1 + $0x4] sm:$0xf]  ;;  %v1621_v45 = vld [vmem:[%s2284_s1 + $0x8] sm:$0xf0]  ;;  %v1620_v46 = vor.u32 %v1714_v43, %v1619_v42  ;;  %v1683_v52 = vld [vmem:[%s2285_s0 + $0x10] sm:$0xff] }
   0xc   :  { %634 = vmatpush.bf16.msra.mxu0 %v1660_v16  ;;  %1731 = vmatpush.bf16.msra.mxu2 %v1660_v16  ;;  %v1624_v47 = vor.u32 %v1713_v44, %v1621_v45  ;;  %v1681_v48 = vld [vmem:[%s2285_s0] sm:$0xff]  ;;  %v1682_v50 = vld [vmem:[%s2285_s0 + $0x8] sm:$0xff]  ;;  %v1699_v53 = vld [vmem:[%s2285_s0 + $0x90] sm:$0xff] }
   0xd   :  { %803 = vmatpush.bf16.msra.mxu1 %v1664_v17  ;;  %1739 = vmatpush.bf16.msra.mxu3 %v1664_v17  ;;  %v1697_v49 = vld [vmem:[%s2285_s0 + $0x80] sm:$0xff]  ;;  %v1698_v51 = vld [vmem:[%s2285_s0 + $0x88] sm:$0xff]  ;;  %v1684_v54 = vld [vmem:[%s2285_s0 + $0x18] sm:$0xff] }
   0xe   :  { %v1700_v55 = vld [vmem:[%s2285_s0 + $0x98] sm:$0xff]  ;;  %v1685_v56 = vld [vmem:[%s2285_s0 + $0x20] sm:$0xff]  ;;  %v1686_v58 = vld [vmem:[%s2285_s0 + $0x28] sm:$0xff] }
   0xf   :  { %v1701_v57 = vld [vmem:[%s2285_s0 + $0xa0] sm:$0xff]  ;;  %v1702_v59 = vld [vmem:[%s2285_s0 + $0xa8] sm:$0xff]  ;;  %v1687_v60 = vld [vmem:[%s2285_s0 + $0x30] sm:$0xff] }
  0x10   :  { %635 = vmatpush.bf16.msra.mxu0 %v1652_v22  ;;  %1732 = vmatpush.bf16.msra.mxu2 %v1652_v22  ;;  %v1703_v61 = vld [vmem:[%s2285_s0 + $0xb0] sm:$0xff]  ;;  %v1688_v62 = vld [vmem:[%s2285_s0 + $0x38] sm:$0xff]  ;;  %v18_v0 = vld [vmem:[%s2286_s2] sm:$0x3] }
  0x11   :  { %804 = vmatpush.bf16.msra.mxu1 %v1656_v23  ;;  %1740 = vmatpush.bf16.msra.mxu3 %v1656_v23  ;;  %v1704_v63 = vld [vmem:[%s2285_s0 + $0xb8] sm:$0xff]  ;;  %v1912_v1 = vperm.slane %v18_v0, 0  ;;  %v1914_v2 = vperm.slane %v18_v0, 1  ;;  %v1689_v3 = vld [vmem:[%s2285_s0 + $0x40] sm:$0xff]  ;;  %v1690_v23 = vld [vmem:[%s2285_s0 + $0x48] sm:$0xff] }
  0x12   :  { %v1705_v4 = vld [vmem:[%s2285_s0 + $0xc0] sm:$0xff]  ;;  %v1706_v24 = vld [vmem:[%s2285_s0 + $0xc8] sm:$0xff]  ;;  %v1691_v45 = vld [vmem:[%s2285_s0 + $0x50] sm:$0xff] }
  0x14   :  { %636 = vmatpush.bf16.msra.mxu0 %v1644_v28  ;;  %1733 = vmatpush.bf16.msra.mxu2 %v1644_v28 }
  0x15   :  { %805 = vmatpush.bf16.msra.mxu1 %v1648_v29  ;;  %1741 = vmatpush.bf16.msra.mxu3 %v1648_v29 }
  0x18   :  { %637 = vmatpush.bf16.msra.mxu0 %v1636_v34  ;;  %1734 = vmatpush.bf16.msra.mxu2 %v1636_v34 }
  0x19   :  { %806 = vmatpush.bf16.msra.mxu1 %v1640_v35  ;;  %1742 = vmatpush.bf16.msra.mxu3 %v1640_v35 }
  0x1c   :  { %638 = vmatpush.bf16.msra.mxu0 %v1628_v40  ;;  %1735 = vmatpush.bf16.msra.mxu2 %v1628_v40 }
  0x1d   :  { %807 = vmatpush.bf16.msra.mxu1 %v1632_v41  ;;  %1743 = vmatpush.bf16.msra.mxu3 %v1632_v41 }
  0x20   :  { %639 = vmatpush.bf16.msra.mxu0 %v1620_v46  ;;  %1736 = vmatpush.bf16.msra.mxu2 %v1620_v46  ;;  %v1707_v46 = vld [vmem:[%s2285_s0 + $0xd0] sm:$0xff] }
  0x21   :  { %808 = vmatpush.bf16.msra.mxu1 %v1624_v47  ;;  %1744 = vmatpush.bf16.msra.mxu3 %v1624_v47 }
  0x23   :  { %640 = vmatmul.bf16.vlgmr.msra.gmra.mxu0 %v1681_v48  ;;  %720 = vmatmul.bf16.vlgmr.msra.gmra.mxu2 %v1697_v49 }
  0x24   :  { %809 = vmatmul.bf16.vlgmr.msra.gmra.mxu1 %v1681_v48  ;;  %889 = vmatmul.bf16.vlgmr.msra.gmra.mxu3 %v1697_v49 }
  0x33   :  { %645 = vmatmul.bf16.gmra.mxu0 %v1682_v50  ;;  %725 = vmatmul.bf16.gmra.mxu2 %v1698_v51 }
  0x34   :  { %814 = vmatmul.bf16.gmra.mxu1 %v1682_v50  ;;  %894 = vmatmul.bf16.gmra.mxu3 %v1698_v51 }
  0x43   :  { %650 = vmatmul.bf16.gmra.mxu0 %v1683_v52  ;;  %730 = vmatmul.bf16.gmra.mxu2 %v1699_v53 }
  0x44   :  { %819 = vmatmul.bf16.gmra.mxu1 %v1683_v52  ;;  %899 = vmatmul.bf16.gmra.mxu3 %v1699_v53 }
  0x53   :  { %655 = vmatmul.bf16.gmra.mxu0 %v1684_v54  ;;  %735 = vmatmul.bf16.gmra.mxu2 %v1700_v55 }
  0x54   :  { %824 = vmatmul.bf16.gmra.mxu1 %v1684_v54  ;;  %904 = vmatmul.bf16.gmra.mxu3 %v1700_v55 }
  0x63   :  { %660 = vmatmul.bf16.gmra.mxu0 %v1685_v56  ;;  %740 = vmatmul.bf16.gmra.mxu2 %v1701_v57 }
  0x64   :  { %829 = vmatmul.bf16.gmra.mxu1 %v1685_v56  ;;  %909 = vmatmul.bf16.gmra.mxu3 %v1701_v57 }
  0x73   :  { %665 = vmatmul.bf16.gmra.mxu0 %v1686_v58  ;;  %745 = vmatmul.bf16.gmra.mxu2 %v1702_v59 }
  0x74   :  { %834 = vmatmul.bf16.gmra.mxu1 %v1686_v58  ;;  %914 = vmatmul.bf16.gmra.mxu3 %v1702_v59 }
  0x83   :  { %670 = vmatmul.bf16.gmra.mxu0 %v1687_v60  ;;  %750 = vmatmul.bf16.gmra.mxu2 %v1703_v61 }
  0x84   :  { %839 = vmatmul.bf16.gmra.mxu1 %v1687_v60  ;;  %919 = vmatmul.bf16.gmra.mxu3 %v1703_v61 }
  0x93   :  { %675 = vmatmul.bf16.gmra.mxu0 %v1688_v62  ;;  %755 = vmatmul.bf16.gmra.mxu2 %v1704_v63 }
  0x94   :  { %844 = vmatmul.bf16.gmra.mxu1 %v1688_v62  ;;  %924 = vmatmul.bf16.gmra.mxu3 %v1704_v63 }
  0xa0   :  { %v641_v5 = vpop.f32.mrf.mxu0 }
  0xa1   :  { %v970_v6 = vadd.f32 %v641_v5, %v1912_v1  ;;  %v810_v7 = vpop.f32.mrf.mxu1  ;;  %v1692_v5 = vld [vmem:[%s2285_s0 + $0x58] sm:$0xff] }
  0xa2   :  { %v971_v8 = vadd.f32 %v810_v7, %v1914_v2 }
  0xa3   :  { %680 = vmatmul.bf16.gmra.mxu0 %v1689_v3  ;;  %760 = vmatmul.bf16.gmra.mxu2 %v1705_v4 }
  0xa4   :  { %v1357_v9 = vpack.c.bf16 %v971_v8, %v970_v6  ;;  %849 = vmatmul.bf16.gmra.mxu1 %v1689_v3  ;;  %929 = vmatmul.bf16.gmra.mxu3 %v1705_v4  ;;  %v1708_v6 = vld [vmem:[%s2285_s0 + $0xd8] sm:$0xff] }
  0xa6   :  { %1421 = vst [vmem:[%s2287_s3] sm:$0xff] %v1357_v9  ;;  %v721_v10 = vpop.f32.mrf.mxu2 }
  0xa7   :  { %v1034_v11 = vadd.f32 %v721_v10, %v1912_v1  ;;  %v890_v12 = vpop.f32.mrf.mxu3 }
  0xa8   :  { %v1035_v13 = vadd.f32 %v890_v12, %v1914_v2  ;;  %v643_v14 = vpop.f32.mrf.mxu0 }
  0xa9   :  { %v972_v15 = vadd.f32 %v643_v14, %v1912_v1  ;;  %v812_v16 = vpop.f32.mrf.mxu1 }
  0xaa   :  { %v1389_v17 = vpack.c.bf16 %v1035_v13, %v1034_v11  ;;  %v973_v18 = vadd.f32 %v812_v16, %v1914_v2 }
  0xac   :  { %1453 = vst [vmem:[%s2287_s3 + $0x100] sm:$0xff] %v1389_v17  ;;  %v1358_v19 = vpack.c.bf16 %v973_v18, %v972_v15 }
  0xae   :  { %1422 = vst [vmem:[%s2287_s3 + $0x8] sm:$0xff] %v1358_v19  ;;  %v723_v20 = vpop.f32.mrf.mxu2 }
  0xaf   :  { %v1036_v21 = vadd.f32 %v723_v20, %v1912_v1  ;;  %v892_v22 = vpop.f32.mrf.mxu3 }
  0xb0   :  { %v1037_v25 = vadd.f32 %v892_v22, %v1914_v2  ;;  %v646_v26 = vpop.f32.mrf.mxu0 }
  0xb1   :  { %v974_v27 = vadd.f32 %v646_v26, %v1912_v1  ;;  %v815_v28 = vpop.f32.mrf.mxu1 }
  0xb2   :  { %v1390_v29 = vpack.c.bf16 %v1037_v25, %v1036_v21  ;;  %v975_v30 = vadd.f32 %v815_v28, %v1914_v2  ;;  %v1709_v28 = vld [vmem:[%s2285_s0 + $0xe0] sm:$0xff] }
  0xb3   :  { %685 = vmatmul.bf16.gmra.mxu0 %v1690_v23  ;;  %765 = vmatmul.bf16.gmra.mxu2 %v1706_v24 }
  0xb4   :  { %1454 = vst [vmem:[%s2287_s3 + $0x108] sm:$0xff] %v1390_v29  ;;  %v1359_v31 = vpack.c.bf16 %v975_v30, %v974_v27  ;;  %854 = vmatmul.bf16.gmra.mxu1 %v1690_v23  ;;  %934 = vmatmul.bf16.gmra.mxu3 %v1706_v24  ;;  %v1693_v27 = vld [vmem:[%s2285_s0 + $0x60] sm:$0xff] }
  0xb6   :  { %1423 = vst [vmem:[%s2287_s3 + $0x10] sm:$0xff] %v1359_v31  ;;  %v726_v32 = vpop.f32.mrf.mxu2 }
  0xb7   :  { %v1038_v33 = vadd.f32 %v726_v32, %v1912_v1  ;;  %v895_v34 = vpop.f32.mrf.mxu3 }
  0xb8   :  { %v1039_v35 = vadd.f32 %v895_v34, %v1914_v2  ;;  %v648_v36 = vpop.f32.mrf.mxu0 }
  0xb9   :  { %v976_v37 = vadd.f32 %v648_v36, %v1912_v1  ;;  %v817_v38 = vpop.f32.mrf.mxu1 }
  0xba   :  { %v1391_v39 = vpack.c.bf16 %v1039_v35, %v1038_v33  ;;  %v977_v40 = vadd.f32 %v817_v38, %v1914_v2 }
  0xbc   :  { %1455 = vst [vmem:[%s2287_s3 + $0x110] sm:$0xff] %v1391_v39  ;;  %v1360_v41 = vpack.c.bf16 %v977_v40, %v976_v37 }
  0xbe   :  { %1424 = vst [vmem:[%s2287_s3 + $0x18] sm:$0xff] %v1360_v41  ;;  %v728_v42 = vpop.f32.mrf.mxu2 }
  0xbf   :  { %v1040_v43 = vadd.f32 %v728_v42, %v1912_v1  ;;  %v897_v44 = vpop.f32.mrf.mxu3 }
  0xc0   :  { %v1041_v47 = vadd.f32 %v897_v44, %v1914_v2  ;;  %v651_v48 = vpop.f32.mrf.mxu0 }
  0xc1   :  { %v978_v49 = vadd.f32 %v651_v48, %v1912_v1  ;;  %v820_v50 = vpop.f32.mrf.mxu1 }
  0xc2   :  { %v1392_v51 = vpack.c.bf16 %v1041_v47, %v1040_v43  ;;  %v979_v52 = vadd.f32 %v820_v50, %v1914_v2  ;;  %v1710_v50 = vld [vmem:[%s2285_s0 + $0xe8] sm:$0xff] }
  0xc3   :  { %690 = vmatmul.bf16.gmra.mxu0 %v1691_v45  ;;  %770 = vmatmul.bf16.gmra.mxu2 %v1707_v46 }
  0xc4   :  { %1456 = vst [vmem:[%s2287_s3 + $0x118] sm:$0xff] %v1392_v51  ;;  %v1361_v53 = vpack.c.bf16 %v979_v52, %v978_v49  ;;  %859 = vmatmul.bf16.gmra.mxu1 %v1691_v45  ;;  %939 = vmatmul.bf16.gmra.mxu3 %v1707_v46  ;;  %v1694_v49 = vld [vmem:[%s2285_s0 + $0x68] sm:$0xff] }
  0xc6   :  { %1425 = vst [vmem:[%s2287_s3 + $0x20] sm:$0xff] %v1361_v53  ;;  %v731_v54 = vpop.f32.mrf.mxu2 }
  0xc7   :  { %v1042_v55 = vadd.f32 %v731_v54, %v1912_v1  ;;  %v900_v56 = vpop.f32.mrf.mxu3 }
  0xc8   :  { %v1043_v57 = vadd.f32 %v900_v56, %v1914_v2  ;;  %v653_v58 = vpop.f32.mrf.mxu0 }
  0xc9   :  { %v980_v59 = vadd.f32 %v653_v58, %v1912_v1  ;;  %v822_v60 = vpop.f32.mrf.mxu1 }
  0xca   :  { %v1393_v61 = vpack.c.bf16 %v1043_v57, %v1042_v55  ;;  %v981_v62 = vadd.f32 %v822_v60, %v1914_v2 }
  0xcc   :  { %1457 = vst [vmem:[%s2287_s3 + $0x120] sm:$0xff] %v1393_v61  ;;  %v1362_v63 = vpack.c.bf16 %v981_v62, %v980_v59 }
  0xce   :  { %1426 = vst [vmem:[%s2287_s3 + $0x28] sm:$0xff] %v1362_v63  ;;  %v733_v0 = vpop.f32.mrf.mxu2 }
  0xcf   :  { %v1044_v3 = vadd.f32 %v733_v0, %v1912_v1  ;;  %v902_v4 = vpop.f32.mrf.mxu3 }
  0xd0   :  { %v1045_v7 = vadd.f32 %v902_v4, %v1914_v2  ;;  %v656_v8 = vpop.f32.mrf.mxu0 }
  0xd1   :  { %v982_v9 = vadd.f32 %v656_v8, %v1912_v1  ;;  %v825_v10 = vpop.f32.mrf.mxu1 }
  0xd2   :  { %v1394_v11 = vpack.c.bf16 %v1045_v7, %v1044_v3  ;;  %v983_v12 = vadd.f32 %v825_v10, %v1914_v2  ;;  %v1711_v10 = vld [vmem:[%s2285_s0 + $0xf0] sm:$0xff] }
  0xd3   :  { %695 = vmatmul.bf16.gmra.mxu0 %v1692_v5  ;;  %775 = vmatmul.bf16.gmra.mxu2 %v1708_v6 }
  0xd4   :  { %1458 = vst [vmem:[%s2287_s3 + $0x128] sm:$0xff] %v1394_v11  ;;  %v1363_v13 = vpack.c.bf16 %v983_v12, %v982_v9  ;;  %864 = vmatmul.bf16.gmra.mxu1 %v1692_v5  ;;  %944 = vmatmul.bf16.gmra.mxu3 %v1708_v6  ;;  %v1695_v9 = vld [vmem:[%s2285_s0 + $0x70] sm:$0xff] }
  0xd6   :  { %1427 = vst [vmem:[%s2287_s3 + $0x30] sm:$0xff] %v1363_v13  ;;  %v736_v14 = vpop.f32.mrf.mxu2 }
  0xd7   :  { %v1046_v15 = vadd.f32 %v736_v14, %v1912_v1  ;;  %v905_v16 = vpop.f32.mrf.mxu3 }
  0xd8   :  { %v1047_v17 = vadd.f32 %v905_v16, %v1914_v2  ;;  %v658_v18 = vpop.f32.mrf.mxu0 }
  0xd9   :  { %v984_v19 = vadd.f32 %v658_v18, %v1912_v1  ;;  %v827_v20 = vpop.f32.mrf.mxu1 }
  0xda   :  { %v1395_v21 = vpack.c.bf16 %v1047_v17, %v1046_v15  ;;  %v985_v22 = vadd.f32 %v827_v20, %v1914_v2 }
  0xdc   :  { %1459 = vst [vmem:[%s2287_s3 + $0x130] sm:$0xff] %v1395_v21  ;;  %v1364_v23 = vpack.c.bf16 %v985_v22, %v984_v19 }
  0xde   :  { %1428 = vst [vmem:[%s2287_s3 + $0x38] sm:$0xff] %v1364_v23  ;;  %v738_v24 = vpop.f32.mrf.mxu2 }
  0xdf   :  { %v1048_v25 = vadd.f32 %v738_v24, %v1912_v1  ;;  %v907_v26 = vpop.f32.mrf.mxu3 }
  0xe0   :  { %v1049_v29 = vadd.f32 %v907_v26, %v1914_v2  ;;  %v661_v30 = vpop.f32.mrf.mxu0 }
  0xe1   :  { %v986_v31 = vadd.f32 %v661_v30, %v1912_v1  ;;  %v830_v32 = vpop.f32.mrf.mxu1 }
  0xe2   :  { %v1396_v33 = vpack.c.bf16 %v1049_v29, %v1048_v25  ;;  %v987_v34 = vadd.f32 %v830_v32, %v1914_v2  ;;  %v1712_v32 = vld [vmem:[%s2285_s0 + $0xf8] sm:$0xff] }
  0xe3   :  { %700 = vmatmul.bf16.gmra.mxu0 %v1693_v27  ;;  %780 = vmatmul.bf16.gmra.mxu2 %v1709_v28 }
  0xe4   :  { %1460 = vst [vmem:[%s2287_s3 + $0x138] sm:$0xff] %v1396_v33  ;;  %v1365_v35 = vpack.c.bf16 %v987_v34, %v986_v31  ;;  %869 = vmatmul.bf16.gmra.mxu1 %v1693_v27  ;;  %949 = vmatmul.bf16.gmra.mxu3 %v1709_v28  ;;  %v1696_v31 = vld [vmem:[%s2285_s0 + $0x78] sm:$0xff] }
  0xe6   :  { %1429 = vst [vmem:[%s2287_s3 + $0x40] sm:$0xff] %v1365_v35  ;;  %v741_v36 = vpop.f32.mrf.mxu2 }
  0xe7   :  { %v1050_v37 = vadd.f32 %v741_v36, %v1912_v1  ;;  %v910_v38 = vpop.f32.mrf.mxu3 }
  0xe8   :  { %v1051_v39 = vadd.f32 %v910_v38, %v1914_v2  ;;  %v663_v40 = vpop.f32.mrf.mxu0 }
  0xe9   :  { %v988_v41 = vadd.f32 %v663_v40, %v1912_v1  ;;  %v832_v42 = vpop.f32.mrf.mxu1 }
  0xea   :  { %v1397_v43 = vpack.c.bf16 %v1051_v39, %v1050_v37  ;;  %v989_v44 = vadd.f32 %v832_v42, %v1914_v2 }
  0xec   :  { %1461 = vst [vmem:[%s2287_s3 + $0x140] sm:$0xff] %v1397_v43  ;;  %v1366_v45 = vpack.c.bf16 %v989_v44, %v988_v41 }
  0xee   :  { %1430 = vst [vmem:[%s2287_s3 + $0x48] sm:$0xff] %v1366_v45  ;;  %v743_v46 = vpop.f32.mrf.mxu2 }
  0xef   :  { %v1052_v47 = vadd.f32 %v743_v46, %v1912_v1  ;;  %v912_v48 = vpop.f32.mrf.mxu3 }
  0xf0   :  { %v1053_v51 = vadd.f32 %v912_v48, %v1914_v2  ;;  %v666_v52 = vpop.f32.mrf.mxu0 }
  0xf1   :  { %v990_v53 = vadd.f32 %v666_v52, %v1912_v1  ;;  %v835_v54 = vpop.f32.mrf.mxu1 }
  0xf2   :  { %v1398_v55 = vpack.c.bf16 %v1053_v51, %v1052_v47  ;;  %v991_v56 = vadd.f32 %v835_v54, %v1914_v2 }
  0xf3   :  { %705 = vmatmul.bf16.gmra.mxu0 %v1694_v49  ;;  %785 = vmatmul.bf16.gmra.mxu2 %v1710_v50 }
  0xf4   :  { %1462 = vst [vmem:[%s2287_s3 + $0x148] sm:$0xff] %v1398_v55  ;;  %v1367_v57 = vpack.c.bf16 %v991_v56, %v990_v53  ;;  %874 = vmatmul.bf16.gmra.mxu1 %v1694_v49  ;;  %954 = vmatmul.bf16.gmra.mxu3 %v1710_v50 }
  0xf6   :  { %1431 = vst [vmem:[%s2287_s3 + $0x50] sm:$0xff] %v1367_v57  ;;  %v746_v58 = vpop.f32.mrf.mxu2 }
  0xf7   :  { %v1054_v59 = vadd.f32 %v746_v58, %v1912_v1  ;;  %v915_v60 = vpop.f32.mrf.mxu3 }
  0xf8   :  { %v1055_v61 = vadd.f32 %v915_v60, %v1914_v2  ;;  %v668_v62 = vpop.f32.mrf.mxu0 }
  0xf9   :  { %v992_v63 = vadd.f32 %v668_v62, %v1912_v1  ;;  %v837_v0 = vpop.f32.mrf.mxu1 }
  0xfa   :  { %v1399_v3 = vpack.c.bf16 %v1055_v61, %v1054_v59  ;;  %v993_v4 = vadd.f32 %v837_v0, %v1914_v2 }
  0xfc   :  { %1463 = vst [vmem:[%s2287_s3 + $0x150] sm:$0xff] %v1399_v3  ;;  %v1368_v5 = vpack.c.bf16 %v993_v4, %v992_v63 }
  0xfe   :  { %1432 = vst [vmem:[%s2287_s3 + $0x58] sm:$0xff] %v1368_v5  ;;  %v748_v6 = vpop.f32.mrf.mxu2 }
  0xff   :  { %v1056_v7 = vadd.f32 %v748_v6, %v1912_v1  ;;  %v917_v8 = vpop.f32.mrf.mxu3 }
 0x100   :  { %v1057_v11 = vadd.f32 %v917_v8, %v1914_v2  ;;  %v671_v12 = vpop.f32.mrf.mxu0 }
 0x101   :  { %v994_v13 = vadd.f32 %v671_v12, %v1912_v1  ;;  %v840_v14 = vpop.f32.mrf.mxu1 }
 0x102   :  { %v1400_v15 = vpack.c.bf16 %v1057_v11, %v1056_v7  ;;  %v995_v16 = vadd.f32 %v840_v14, %v1914_v2 }
 0x103   :  { %710 = vmatmul.bf16.gmra.mxu0 %v1695_v9  ;;  %790 = vmatmul.bf16.gmra.mxu2 %v1711_v10 }
 0x104   :  { %1464 = vst [vmem:[%s2287_s3 + $0x158] sm:$0xff] %v1400_v15  ;;  %v1369_v17 = vpack.c.bf16 %v995_v16, %v994_v13  ;;  %879 = vmatmul.bf16.gmra.mxu1 %v1695_v9  ;;  %959 = vmatmul.bf16.gmra.mxu3 %v1711_v10 }
 0x106   :  { %1433 = vst [vmem:[%s2287_s3 + $0x60] sm:$0xff] %v1369_v17  ;;  %v751_v18 = vpop.f32.mrf.mxu2 }
 0x107   :  { %v1058_v19 = vadd.f32 %v751_v18, %v1912_v1  ;;  %v920_v20 = vpop.f32.mrf.mxu3 }
 0x108   :  { %v1059_v21 = vadd.f32 %v920_v20, %v1914_v2  ;;  %v673_v22 = vpop.f32.mrf.mxu0 }
 0x109   :  { %v996_v23 = vadd.f32 %v673_v22, %v1912_v1  ;;  %v842_v24 = vpop.f32.mrf.mxu1 }
 0x10a   :  { %v1401_v25 = vpack.c.bf16 %v1059_v21, %v1058_v19  ;;  %v997_v26 = vadd.f32 %v842_v24, %v1914_v2 }
 0x10c   :  { %1465 = vst [vmem:[%s2287_s3 + $0x160] sm:$0xff] %v1401_v25  ;;  %v1370_v27 = vpack.c.bf16 %v997_v26, %v996_v23 }
 0x10e   :  { %1434 = vst [vmem:[%s2287_s3 + $0x68] sm:$0xff] %v1370_v27  ;;  %v753_v28 = vpop.f32.mrf.mxu2 }
 0x10f   :  { %v1060_v29 = vadd.f32 %v753_v28, %v1912_v1  ;;  %v922_v30 = vpop.f32.mrf.mxu3 }
 0x110   :  { %v1061_v33 = vadd.f32 %v922_v30, %v1914_v2  ;;  %v676_v34 = vpop.f32.mrf.mxu0 }
 0x111   :  { %v998_v35 = vadd.f32 %v676_v34, %v1912_v1  ;;  %v845_v36 = vpop.f32.mrf.mxu1 }
 0x112   :  { %v1402_v37 = vpack.c.bf16 %v1061_v33, %v1060_v29  ;;  %v999_v38 = vadd.f32 %v845_v36, %v1914_v2 }
 0x113   :  { %715 = vmatmul.bf16.gmra.mxu0 %v1696_v31  ;;  %795 = vmatmul.bf16.gmra.mxu2 %v1712_v32 }
 0x114   :  { %1466 = vst [vmem:[%s2287_s3 + $0x168] sm:$0xff] %v1402_v37  ;;  %v1371_v39 = vpack.c.bf16 %v999_v38, %v998_v35  ;;  %884 = vmatmul.bf16.gmra.mxu1 %v1696_v31  ;;  %964 = vmatmul.bf16.gmra.mxu3 %v1712_v32 }
 0x116   :  { %1435 = vst [vmem:[%s2287_s3 + $0x70] sm:$0xff] %v1371_v39  ;;  %v756_v40 = vpop.f32.mrf.mxu2 }
 0x117   :  { %v1062_v41 = vadd.f32 %v756_v40, %v1912_v1  ;;  %v925_v42 = vpop.f32.mrf.mxu3 }
 0x118   :  { %v1063_v43 = vadd.f32 %v925_v42, %v1914_v2  ;;  %v678_v44 = vpop.f32.mrf.mxu0 }
 0x119   :  { %v1000_v45 = vadd.f32 %v678_v44, %v1912_v1  ;;  %v847_v46 = vpop.f32.mrf.mxu1 }
 0x11a   :  { %v1403_v47 = vpack.c.bf16 %v1063_v43, %v1062_v41  ;;  %v1001_v48 = vadd.f32 %v847_v46, %v1914_v2 }
 0x11c   :  { %1467 = vst [vmem:[%s2287_s3 + $0x170] sm:$0xff] %v1403_v47  ;;  %v1372_v49 = vpack.c.bf16 %v1001_v48, %v1000_v45 }
 0x11e   :  { %1436 = vst [vmem:[%s2287_s3 + $0x78] sm:$0xff] %v1372_v49  ;;  %v758_v50 = vpop.f32.mrf.mxu2 }
 0x11f   :  { %v1064_v51 = vadd.f32 %v758_v50, %v1912_v1  ;;  %v927_v52 = vpop.f32.mrf.mxu3 }
 0x120   :  { %v1065_v53 = vadd.f32 %v927_v52, %v1914_v2  ;;  %v681_v54 = vpop.f32.mrf.mxu0 }
 0x121   :  { %v1002_v55 = vadd.f32 %v681_v54, %v1912_v1  ;;  %v850_v56 = vpop.f32.mrf.mxu1 }
 0x122   :  { %v1404_v57 = vpack.c.bf16 %v1065_v53, %v1064_v51  ;;  %v1003_v58 = vadd.f32 %v850_v56, %v1914_v2 }
 0x124   :  { %1468 = vst [vmem:[%s2287_s3 + $0x178] sm:$0xff] %v1404_v57  ;;  %v1373_v59 = vpack.c.bf16 %v1003_v58, %v1002_v55 }
 0x126   :  { %1437 = vst [vmem:[%s2287_s3 + $0x80] sm:$0xff] %v1373_v59  ;;  %v761_v60 = vpop.f32.mrf.mxu2 }
 0x127   :  { %v1066_v61 = vadd.f32 %v761_v60, %v1912_v1  ;;  %v930_v62 = vpop.f32.mrf.mxu3 }
 0x128   :  { %v1067_v63 = vadd.f32 %v930_v62, %v1914_v2  ;;  %v683_v0 = vpop.f32.mrf.mxu0 }
 0x129   :  { %v1004_v3 = vadd.f32 %v683_v0, %v1912_v1  ;;  %v852_v4 = vpop.f32.mrf.mxu1 }
 0x12a   :  { %v1405_v5 = vpack.c.bf16 %v1067_v63, %v1066_v61  ;;  %v1005_v6 = vadd.f32 %v852_v4, %v1914_v2 }
 0x12c   :  { %1469 = vst [vmem:[%s2287_s3 + $0x180] sm:$0xff] %v1405_v5  ;;  %v1374_v7 = vpack.c.bf16 %v1005_v6, %v1004_v3 }
 0x12e   :  { %1438 = vst [vmem:[%s2287_s3 + $0x88] sm:$0xff] %v1374_v7  ;;  %v763_v8 = vpop.f32.mrf.mxu2 }
 0x12f   :  { %v1068_v9 = vadd.f32 %v763_v8, %v1912_v1  ;;  %v932_v10 = vpop.f32.mrf.mxu3 }
 0x130   :  { %v1069_v11 = vadd.f32 %v932_v10, %v1914_v2  ;;  %v686_v12 = vpop.f32.mrf.mxu0 }
 0x131   :  { %v1006_v13 = vadd.f32 %v686_v12, %v1912_v1  ;;  %v855_v14 = vpop.f32.mrf.mxu1 }
 0x132   :  { %v1406_v15 = vpack.c.bf16 %v1069_v11, %v1068_v9  ;;  %v1007_v16 = vadd.f32 %v855_v14, %v1914_v2 }
 0x134   :  { %1470 = vst [vmem:[%s2287_s3 + $0x188] sm:$0xff] %v1406_v15  ;;  %v1375_v17 = vpack.c.bf16 %v1007_v16, %v1006_v13 }
 0x136   :  { %1439 = vst [vmem:[%s2287_s3 + $0x90] sm:$0xff] %v1375_v17  ;;  %v766_v18 = vpop.f32.mrf.mxu2 }
 0x137   :  { %v1070_v19 = vadd.f32 %v766_v18, %v1912_v1  ;;  %v935_v20 = vpop.f32.mrf.mxu3 }
 0x138   :  { %v1071_v21 = vadd.f32 %v935_v20, %v1914_v2  ;;  %v688_v22 = vpop.f32.mrf.mxu0 }
 0x139   :  { %v1008_v23 = vadd.f32 %v688_v22, %v1912_v1  ;;  %v857_v24 = vpop.f32.mrf.mxu1 }
 0x13a   :  { %v1407_v25 = vpack.c.bf16 %v1071_v21, %v1070_v19  ;;  %v1009_v26 = vadd.f32 %v857_v24, %v1914_v2 }
 0x13c   :  { %1471 = vst [vmem:[%s2287_s3 + $0x190] sm:$0xff] %v1407_v25  ;;  %v1376_v27 = vpack.c.bf16 %v1009_v26, %v1008_v23 }
 0x13e   :  { %1440 = vst [vmem:[%s2287_s3 + $0x98] sm:$0xff] %v1376_v27  ;;  %v768_v28 = vpop.f32.mrf.mxu2 }
 0x13f   :  { %v1072_v29 = vadd.f32 %v768_v28, %v1912_v1  ;;  %v937_v30 = vpop.f32.mrf.mxu3 }
 0x140   :  { %v1073_v31 = vadd.f32 %v937_v30, %v1914_v2  ;;  %v691_v32 = vpop.f32.mrf.mxu0 }
 0x141   :  { %v1010_v33 = vadd.f32 %v691_v32, %v1912_v1  ;;  %v860_v34 = vpop.f32.mrf.mxu1 }
 0x142   :  { %v1408_v35 = vpack.c.bf16 %v1073_v31, %v1072_v29  ;;  %v1011_v36 = vadd.f32 %v860_v34, %v1914_v2 }
 0x144   :  { %1472 = vst [vmem:[%s2287_s3 + $0x198] sm:$0xff] %v1408_v35  ;;  %v1377_v37 = vpack.c.bf16 %v1011_v36, %v1010_v33 }
 0x146   :  { %1441 = vst [vmem:[%s2287_s3 + $0xa0] sm:$0xff] %v1377_v37  ;;  %v771_v38 = vpop.f32.mrf.mxu2 }
 0x147   :  { %v1074_v39 = vadd.f32 %v771_v38, %v1912_v1  ;;  %v940_v40 = vpop.f32.mrf.mxu3 }
 0x148   :  { %v1075_v41 = vadd.f32 %v940_v40, %v1914_v2  ;;  %v693_v42 = vpop.f32.mrf.mxu0 }
 0x149   :  { %v1012_v43 = vadd.f32 %v693_v42, %v1912_v1  ;;  %v862_v44 = vpop.f32.mrf.mxu1 }
 0x14a   :  { %v1409_v45 = vpack.c.bf16 %v1075_v41, %v1074_v39  ;;  %v1013_v46 = vadd.f32 %v862_v44, %v1914_v2 }
 0x14c   :  { %1473 = vst [vmem:[%s2287_s3 + $0x1a0] sm:$0xff] %v1409_v45  ;;  %v1378_v47 = vpack.c.bf16 %v1013_v46, %v1012_v43 }
 0x14e   :  { %1442 = vst [vmem:[%s2287_s3 + $0xa8] sm:$0xff] %v1378_v47  ;;  %v773_v48 = vpop.f32.mrf.mxu2 }
 0x14f   :  { %v1076_v49 = vadd.f32 %v773_v48, %v1912_v1  ;;  %v942_v50 = vpop.f32.mrf.mxu3 }
 0x150   :  { %v1077_v51 = vadd.f32 %v942_v50, %v1914_v2  ;;  %v696_v52 = vpop.f32.mrf.mxu0 }
 0x151   :  { %v1014_v53 = vadd.f32 %v696_v52, %v1912_v1  ;;  %v865_v54 = vpop.f32.mrf.mxu1 }
 0x152   :  { %v1410_v55 = vpack.c.bf16 %v1077_v51, %v1076_v49  ;;  %v1015_v56 = vadd.f32 %v865_v54, %v1914_v2 }
 0x154   :  { %1474 = vst [vmem:[%s2287_s3 + $0x1a8] sm:$0xff] %v1410_v55  ;;  %v1379_v57 = vpack.c.bf16 %v1015_v56, %v1014_v53 }
 0x156   :  { %1443 = vst [vmem:[%s2287_s3 + $0xb0] sm:$0xff] %v1379_v57  ;;  %v776_v58 = vpop.f32.mrf.mxu2 }
 0x157   :  { %v1078_v59 = vadd.f32 %v776_v58, %v1912_v1  ;;  %v945_v60 = vpop.f32.mrf.mxu3 }
 0x158   :  { %v1079_v61 = vadd.f32 %v945_v60, %v1914_v2  ;;  %v698_v62 = vpop.f32.mrf.mxu0 }
 0x159   :  { %v1016_v63 = vadd.f32 %v698_v62, %v1912_v1  ;;  %v867_v0 = vpop.f32.mrf.mxu1 }
 0x15a   :  { %v1411_v3 = vpack.c.bf16 %v1079_v61, %v1078_v59  ;;  %v1017_v4 = vadd.f32 %v867_v0, %v1914_v2 }
 0x15c   :  { %1475 = vst [vmem:[%s2287_s3 + $0x1b0] sm:$0xff] %v1411_v3  ;;  %v1380_v5 = vpack.c.bf16 %v1017_v4, %v1016_v63 }
 0x15e   :  { %1444 = vst [vmem:[%s2287_s3 + $0xb8] sm:$0xff] %v1380_v5  ;;  %v778_v6 = vpop.f32.mrf.mxu2 }
 0x15f   :  { %v1080_v7 = vadd.f32 %v778_v6, %v1912_v1  ;;  %v947_v8 = vpop.f32.mrf.mxu3 }
 0x160   :  { %v1081_v9 = vadd.f32 %v947_v8, %v1914_v2  ;;  %v701_v10 = vpop.f32.mrf.mxu0 }
 0x161   :  { %v1018_v11 = vadd.f32 %v701_v10, %v1912_v1  ;;  %v870_v12 = vpop.f32.mrf.mxu1 }
 0x162   :  { %v1412_v13 = vpack.c.bf16 %v1081_v9, %v1080_v7  ;;  %v1019_v14 = vadd.f32 %v870_v12, %v1914_v2 }
 0x164   :  { %1476 = vst [vmem:[%s2287_s3 + $0x1b8] sm:$0xff] %v1412_v13  ;;  %v1381_v15 = vpack.c.bf16 %v1019_v14, %v1018_v11 }
 0x166   :  { %1445 = vst [vmem:[%s2287_s3 + $0xc0] sm:$0xff] %v1381_v15  ;;  %v781_v16 = vpop.f32.mrf.mxu2 }
 0x167   :  { %v1082_v17 = vadd.f32 %v781_v16, %v1912_v1  ;;  %v950_v18 = vpop.f32.mrf.mxu3 }
 0x168   :  { %v1083_v19 = vadd.f32 %v950_v18, %v1914_v2  ;;  %v703_v20 = vpop.f32.mrf.mxu0 }
 0x169   :  { %v1020_v21 = vadd.f32 %v703_v20, %v1912_v1  ;;  %v872_v22 = vpop.f32.mrf.mxu1 }
 0x16a   :  { %v1413_v23 = vpack.c.bf16 %v1083_v19, %v1082_v17  ;;  %v1021_v24 = vadd.f32 %v872_v22, %v1914_v2 }
 0x16c   :  { %1477 = vst [vmem:[%s2287_s3 + $0x1c0] sm:$0xff] %v1413_v23  ;;  %v1382_v25 = vpack.c.bf16 %v1021_v24, %v1020_v21 }
 0x16e   :  { %1446 = vst [vmem:[%s2287_s3 + $0xc8] sm:$0xff] %v1382_v25  ;;  %v783_v26 = vpop.f32.mrf.mxu2 }
 0x16f   :  { %v1084_v27 = vadd.f32 %v783_v26, %v1912_v1  ;;  %v952_v28 = vpop.f32.mrf.mxu3 }
 0x170   :  { %v1085_v29 = vadd.f32 %v952_v28, %v1914_v2  ;;  %v706_v30 = vpop.f32.mrf.mxu0 }
 0x171   :  { %v1022_v31 = vadd.f32 %v706_v30, %v1912_v1  ;;  %v875_v32 = vpop.f32.mrf.mxu1 }
 0x172   :  { %v1414_v33 = vpack.c.bf16 %v1085_v29, %v1084_v27  ;;  %v1023_v34 = vadd.f32 %v875_v32, %v1914_v2 }
 0x174   :  { %1478 = vst [vmem:[%s2287_s3 + $0x1c8] sm:$0xff] %v1414_v33  ;;  %v1383_v35 = vpack.c.bf16 %v1023_v34, %v1022_v31 }
 0x176   :  { %1447 = vst [vmem:[%s2287_s3 + $0xd0] sm:$0xff] %v1383_v35  ;;  %v786_v36 = vpop.f32.mrf.mxu2 }
 0x177   :  { %v1086_v37 = vadd.f32 %v786_v36, %v1912_v1  ;;  %v955_v38 = vpop.f32.mrf.mxu3 }
 0x178   :  { %v1087_v39 = vadd.f32 %v955_v38, %v1914_v2  ;;  %v708_v40 = vpop.f32.mrf.mxu0 }
 0x179   :  { %v1024_v41 = vadd.f32 %v708_v40, %v1912_v1  ;;  %v877_v42 = vpop.f32.mrf.mxu1 }
 0x17a   :  { %v1415_v43 = vpack.c.bf16 %v1087_v39, %v1086_v37  ;;  %v1025_v44 = vadd.f32 %v877_v42, %v1914_v2 }
 0x17c   :  { %1479 = vst [vmem:[%s2287_s3 + $0x1d0] sm:$0xff] %v1415_v43  ;;  %v1384_v45 = vpack.c.bf16 %v1025_v44, %v1024_v41 }
 0x17e   :  { %1448 = vst [vmem:[%s2287_s3 + $0xd8] sm:$0xff] %v1384_v45  ;;  %v788_v46 = vpop.f32.mrf.mxu2 }
 0x17f   :  { %v1088_v47 = vadd.f32 %v788_v46, %v1912_v1  ;;  %v957_v48 = vpop.f32.mrf.mxu3 }
 0x180   :  { %v1089_v49 = vadd.f32 %v957_v48, %v1914_v2  ;;  %v711_v50 = vpop.f32.mrf.mxu0 }
 0x181   :  { %v1026_v51 = vadd.f32 %v711_v50, %v1912_v1  ;;  %v880_v52 = vpop.f32.mrf.mxu1 }
 0x182   :  { %v1416_v53 = vpack.c.bf16 %v1089_v49, %v1088_v47  ;;  %v1027_v54 = vadd.f32 %v880_v52, %v1914_v2 }
 0x184   :  { %1480 = vst [vmem:[%s2287_s3 + $0x1d8] sm:$0xff] %v1416_v53  ;;  %v1385_v55 = vpack.c.bf16 %v1027_v54, %v1026_v51 }
 0x186   :  { %1449 = vst [vmem:[%s2287_s3 + $0xe0] sm:$0xff] %v1385_v55  ;;  %v791_v56 = vpop.f32.mrf.mxu2 }
 0x187   :  { %v1090_v57 = vadd.f32 %v791_v56, %v1912_v1  ;;  %v960_v58 = vpop.f32.mrf.mxu3 }
 0x188   :  { %v1091_v59 = vadd.f32 %v960_v58, %v1914_v2  ;;  %v713_v60 = vpop.f32.mrf.mxu0 }
 0x189   :  { %v1028_v61 = vadd.f32 %v713_v60, %v1912_v1  ;;  %v882_v62 = vpop.f32.mrf.mxu1 }
 0x18a   :  { %v1417_v63 = vpack.c.bf16 %v1091_v59, %v1090_v57  ;;  %v1029_v0 = vadd.f32 %v882_v62, %v1914_v2 }
 0x18c   :  { %1481 = vst [vmem:[%s2287_s3 + $0x1e0] sm:$0xff] %v1417_v63  ;;  %v1386_v3 = vpack.c.bf16 %v1029_v0, %v1028_v61 }
 0x18e   :  { %1450 = vst [vmem:[%s2287_s3 + $0xe8] sm:$0xff] %v1386_v3  ;;  %v793_v4 = vpop.f32.mrf.mxu2 }
 0x18f   :  { %v1092_v5 = vadd.f32 %v793_v4, %v1912_v1  ;;  %v962_v6 = vpop.f32.mrf.mxu3 }
 0x190   :  { %v1093_v7 = vadd.f32 %v962_v6, %v1914_v2  ;;  %v716_v8 = vpop.f32.mrf.mxu0 }
 0x191   :  { %v1030_v9 = vadd.f32 %v716_v8, %v1912_v1  ;;  %v885_v10 = vpop.f32.mrf.mxu1 }
 0x192   :  { %v1418_v11 = vpack.c.bf16 %v1093_v7, %v1092_v5  ;;  %v1031_v12 = vadd.f32 %v885_v10, %v1914_v2 }
 0x194   :  { %1482 = vst [vmem:[%s2287_s3 + $0x1e8] sm:$0xff] %v1418_v11  ;;  %v1387_v13 = vpack.c.bf16 %v1031_v12, %v1030_v9 }
 0x196   :  { %1451 = vst [vmem:[%s2287_s3 + $0xf0] sm:$0xff] %v1387_v13  ;;  %v796_v14 = vpop.f32.mrf.mxu2 }
 0x197   :  { %v1094_v15 = vadd.f32 %v796_v14, %v1912_v1  ;;  %v965_v16 = vpop.f32.mrf.mxu3 }
 0x198   :  { %v1095_v17 = vadd.f32 %v965_v16, %v1914_v2  ;;  %v718_v18 = vpop.f32.mrf.mxu0 }
 0x199   :  { %v1032_v19 = vadd.f32 %v718_v18, %v1912_v1  ;;  %v887_v20 = vpop.f32.mrf.mxu1 }
 0x19a   :  { %v1419_v21 = vpack.c.bf16 %v1095_v17, %v1094_v15  ;;  %v1033_v22 = vadd.f32 %v887_v20, %v1914_v2 }
 0x19c   :  { %1483 = vst [vmem:[%s2287_s3 + $0x1f0] sm:$0xff] %v1419_v21  ;;  %v1388_v23 = vpack.c.bf16 %v1033_v22, %v1032_v19 }
 0x19e   :  { %1452 = vst [vmem:[%s2287_s3 + $0xf8] sm:$0xff] %v1388_v23  ;;  %v798_v24 = vpop.f32.mrf.mxu2 }
 0x19f   :  { %v1096_v25 = vadd.f32 %v798_v24, %v1912_v1  ;;  %v967_v26 = vpop.f32.mrf.mxu3 }
 0x1a0   :  { %v1097_v27 = vadd.f32 %v967_v26, %v1914_v2 }
 0x1a2   :  { %v1420_v28 = vpack.c.bf16 %v1097_v27, %v1096_v25 }
 0x1a4   :  { %1484 = vst [vmem:[%s2287_s3 + $0x1f8] sm:$0xff] %v1420_v28 }

// kernel: sage_forward.7
= control target key start
LH: loop header
LB: loop body
LE: loop exit
PB: predicated region body
PF: predicated region fallthrough
CT: control target
= control target key end

     0   :  { %s3769_s15 = smov 0   ;;  %s3771_s16 = smov 0   ;;  %s4918_s0 = inlined_call_operand.vmem [shape: bf16[512,512], index: 0, kind: input, shape index: {}]   ;;  %s4919_s1 = inlined_call_operand.vmem [shape: bf16[512,256], index: 1, kind: input, shape index: {}, may-alias: {1,2}]   ;;  %s4920_s2 = inlined_call_operand.vmem [shape: bf16[512,256], index: 2, kind: input, shape index: {}, may-alias: {1,2}]   ;;  %s4921_s3 = inlined_call_operand.vmem [shape: f32[512,1], index: 3, kind: input, shape index: {}]   ;;  %s4922_s4 = inlined_call_operand.vmem [shape: f32[512,128], index: 4, kind: output, shape index: {}]  }
   0x1   :  { %s3773_s17 = smov 0   ;;  %s3775_s18 = smov 0  }
   0x2   :  { %s3777_s19 = smov 0  }
   0x3 LB: > { %s3028_s20 = sadd.s32 4294967295, %s3740_s19   ;;  %s23_s21 = sadd.s32 1, %s3736_s18  ;;  %s3740_s19 = sphi %s3777_s19, %s14_s19   ;;  %s3736_s18 = sphi %s3775_s18, %s4928_s18   ;;  %s3732_s17 = sphi %s3773_s17, %s4927_s17   ;;  %s3728_s16 = sphi %s3771_s16, %s4926_s16   ;;  %s3724_s15 = sphi %s3769_s15, %s4925_s15  }
   0x4   : > { %p24_p0 = scmp.ge.s32.totalorder %s23_s21, 2  ;;  %s35_s22 = sadd.s32 1, %s3728_s16 }
   0x5   : > { %p42_p1 = scmp.ne.s32.totalorder %s3728_s16, %s3724_s15  ;;  %p43_p2 = scmp.eq.s32.totalorder %s3740_s19, 0 }
   0x6   : > { %s4930_s21 = smov (%p24_p0, %s23_s21), 0  ;;  %p3029_p4 = scmp.ge.s32.totalorder %s3740_s19, 1 }
   0x7   : > { %p3802_p3 = por %p43_p2, %p42_p1  ;;  %s31_s24 = ssub.s32 %s3736_s18, %s4930_s21 }
   0x8   : > { %p163_p5 = scmp.lt.s32.totalorder %s3740_s19, 3  ;;  %p33_p6 = scmp.eq.s32.totalorder %s31_s24, 0 }
   0xa   : > { %p3810_p7 = pnand %p3029_p4, %p163_p5 }
   0xb   : > { %s3815_s26 = scalar_select %p33_p6, %s3728_s16, %s35_s22  }
   0xc   : > { %167 = sbr.rel (%p3810_p7) target bundleno = 87 (0x57), region = 12  ;;  %p3030_p8 = scmp.ne.s32.totalorder (!%p3810_p7), %s3028_s20, 0 }
  0x11   : > { %171 = sbr.rel (%p3030_p8) target bundleno = 87 (0x57), region = 16 }
  0x16   : > { %v192_v0 = vld [vmem:[%s4920_s2] sm:$0xf]  ;;  %v194_v1 = vld [vmem:[%s4920_s2 + $0x8] sm:$0xf]  ;;  %v196_v2 = vld [vmem:[%s4920_s2 + $0x10] sm:$0xf] }
  0x17   : > { %193 = vst [vmem:[#allocation5] sm:$0xf] %v192_v0  ;;  %v198_v3 = vld [vmem:[%s4920_s2 + $0x18] sm:$0xf]  ;;  %v200_v4 = vld [vmem:[%s4920_s2 + $0x20] sm:$0xf] }
  0x18   : > { %195 = vst [vmem:[#allocation5 + $0x4] sm:$0xf] %v194_v1  ;;  %v202_v5 = vld [vmem:[%s4920_s2 + $0x28] sm:$0xf]  ;;  %v204_v6 = vld [vmem:[%s4920_s2 + $0x30] sm:$0xf] }
  0x19   : > { %197 = vst [vmem:[#allocation5 + $0x8] sm:$0xf] %v196_v2  ;;  %v206_v7 = vld [vmem:[%s4920_s2 + $0x38] sm:$0xf]  ;;  %v208_v8 = vld [vmem:[%s4920_s2 + $0x40] sm:$0xf] }
  0x1a   : > { %199 = vst [vmem:[#allocation5 + $0xc] sm:$0xf] %v198_v3  ;;  %v210_v9 = vld [vmem:[%s4920_s2 + $0x48] sm:$0xf]  ;;  %v212_v10 = vld [vmem:[%s4920_s2 + $0x50] sm:$0xf] }
  0x1b   : > { %201 = vst [vmem:[#allocation5 + $0x10] sm:$0xf] %v200_v4  ;;  %v214_v11 = vld [vmem:[%s4920_s2 + $0x58] sm:$0xf]  ;;  %v216_v12 = vld [vmem:[%s4920_s2 + $0x60] sm:$0xf] }
  0x1c   : > { %203 = vst [vmem:[#allocation5 + $0x14] sm:$0xf] %v202_v5  ;;  %v218_v13 = vld [vmem:[%s4920_s2 + $0x68] sm:$0xf]  ;;  %v220_v14 = vld [vmem:[%s4920_s2 + $0x70] sm:$0xf] }
  0x1d   : > { %205 = vst [vmem:[#allocation5 + $0x18] sm:$0xf] %v204_v6  ;;  %v222_v15 = vld [vmem:[%s4920_s2 + $0x78] sm:$0xf]  ;;  %v224_v16 = vld [vmem:[%s4920_s2 + $0x80] sm:$0xf] }
  0x1e   : > { %207 = vst [vmem:[#allocation5 + $0x1c] sm:$0xf] %v206_v7  ;;  %v226_v17 = vld [vmem:[%s4920_s2 + $0x88] sm:$0xf]  ;;  %v228_v18 = vld [vmem:[%s4920_s2 + $0x90] sm:$0xf] }
  0x1f   : > { %209 = vst [vmem:[#allocation5 + $0x20] sm:$0xf] %v208_v8  ;;  %v230_v19 = vld [vmem:[%s4920_s2 + $0x98] sm:$0xf]  ;;  %v232_v20 = vld [vmem:[%s4920_s2 + $0xa0] sm:$0xf] }
  0x20   : > { %211 = vst [vmem:[#allocation5 + $0x24] sm:$0xf] %v210_v9  ;;  %v234_v21 = vld [vmem:[%s4920_s2 + $0xa8] sm:$0xf]  ;;  %v236_v22 = vld [vmem:[%s4920_s2 + $0xb0] sm:$0xf] }
  0x21   : > { %213 = vst [vmem:[#allocation5 + $0x28] sm:$0xf] %v212_v10  ;;  %v238_v23 = vld [vmem:[%s4920_s2 + $0xb8] sm:$0xf]  ;;  %v240_v24 = vld [vmem:[%s4920_s2 + $0xc0] sm:$0xf] }
  0x22   : > { %215 = vst [vmem:[#allocation5 + $0x2c] sm:$0xf] %v214_v11  ;;  %v242_v25 = vld [vmem:[%s4920_s2 + $0xc8] sm:$0xf]  ;;  %v244_v26 = vld [vmem:[%s4920_s2 + $0xd0] sm:$0xf] }
  0x23   : > { %217 = vst [vmem:[#allocation5 + $0x30] sm:$0xf] %v216_v12  ;;  %v246_v27 = vld [vmem:[%s4920_s2 + $0xd8] sm:$0xf]  ;;  %v248_v28 = vld [vmem:[%s4920_s2 + $0xe0] sm:$0xf] }
  0x24   : > { %219 = vst [vmem:[#allocation5 + $0x34] sm:$0xf] %v218_v13  ;;  %v250_v29 = vld [vmem:[%s4920_s2 + $0xe8] sm:$0xf]  ;;  %v252_v30 = vld [vmem:[%s4920_s2 + $0xf0] sm:$0xf] }
  0x25   : > { %221 = vst [vmem:[#allocation5 + $0x38] sm:$0xf] %v220_v14  ;;  %v254_v31 = vld [vmem:[%s4920_s2 + $0xf8] sm:$0xf]  ;;  %v256_v32 = vld [vmem:[%s4920_s2 + $0x100] sm:$0xf] }
  0x26   : > { %223 = vst [vmem:[#allocation5 + $0x3c] sm:$0xf] %v222_v15  ;;  %v258_v33 = vld [vmem:[%s4920_s2 + $0x108] sm:$0xf]  ;;  %v260_v34 = vld [vmem:[%s4920_s2 + $0x110] sm:$0xf] }
  0x27   : > { %225 = vst [vmem:[#allocation5 + $0x40] sm:$0xf] %v224_v16  ;;  %v262_v35 = vld [vmem:[%s4920_s2 + $0x118] sm:$0xf]  ;;  %v264_v36 = vld [vmem:[%s4920_s2 + $0x120] sm:$0xf] }
  0x28   : > { %227 = vst [vmem:[#allocation5 + $0x44] sm:$0xf] %v226_v17  ;;  %v266_v37 = vld [vmem:[%s4920_s2 + $0x128] sm:$0xf]  ;;  %v268_v38 = vld [vmem:[%s4920_s2 + $0x130] sm:$0xf] }
  0x29   : > { %229 = vst [vmem:[#allocation5 + $0x48] sm:$0xf] %v228_v18  ;;  %v270_v39 = vld [vmem:[%s4920_s2 + $0x138] sm:$0xf]  ;;  %v272_v40 = vld [vmem:[%s4920_s2 + $0x140] sm:$0xf] }
  0x2a   : > { %231 = vst [vmem:[#allocation5 + $0x4c] sm:$0xf] %v230_v19  ;;  %v274_v41 = vld [vmem:[%s4920_s2 + $0x148] sm:$0xf]  ;;  %v276_v42 = vld [vmem:[%s4920_s2 + $0x150] sm:$0xf] }
  0x2b   : > { %233 = vst [vmem:[#allocation5 + $0x50] sm:$0xf] %v232_v20  ;;  %v278_v43 = vld [vmem:[%s4920_s2 + $0x158] sm:$0xf]  ;;  %v280_v44 = vld [vmem:[%s4920_s2 + $0x160] sm:$0xf] }
  0x2c   : > { %235 = vst [vmem:[#allocation5 + $0x54] sm:$0xf] %v234_v21  ;;  %v282_v45 = vld [vmem:[%s4920_s2 + $0x168] sm:$0xf]  ;;  %v284_v46 = vld [vmem:[%s4920_s2 + $0x170] sm:$0xf] }
  0x2d   : > { %237 = vst [vmem:[#allocation5 + $0x58] sm:$0xf] %v236_v22  ;;  %v286_v47 = vld [vmem:[%s4920_s2 + $0x178] sm:$0xf]  ;;  %v288_v48 = vld [vmem:[%s4920_s2 + $0x180] sm:$0xf] }
  0x2e   : > { %239 = vst [vmem:[#allocation5 + $0x5c] sm:$0xf] %v238_v23  ;;  %v290_v49 = vld [vmem:[%s4920_s2 + $0x188] sm:$0xf]  ;;  %v292_v50 = vld [vmem:[%s4920_s2 + $0x190] sm:$0xf] }
  0x2f   : > { %241 = vst [vmem:[#allocation5 + $0x60] sm:$0xf] %v240_v24  ;;  %v294_v51 = vld [vmem:[%s4920_s2 + $0x198] sm:$0xf]  ;;  %v296_v52 = vld [vmem:[%s4920_s2 + $0x1a0] sm:$0xf] }
  0x30   : > { %243 = vst [vmem:[#allocation5 + $0x64] sm:$0xf] %v242_v25  ;;  %v298_v53 = vld [vmem:[%s4920_s2 + $0x1a8] sm:$0xf]  ;;  %v300_v54 = vld [vmem:[%s4920_s2 + $0x1b0] sm:$0xf] }
  0x31   : > { %245 = vst [vmem:[#allocation5 + $0x68] sm:$0xf] %v244_v26  ;;  %v302_v55 = vld [vmem:[%s4920_s2 + $0x1b8] sm:$0xf]  ;;  %v304_v56 = vld [vmem:[%s4920_s2 + $0x1c0] sm:$0xf] }
  0x32   : > { %247 = vst [vmem:[#allocation5 + $0x6c] sm:$0xf] %v246_v27  ;;  %v306_v57 = vld [vmem:[%s4920_s2 + $0x1c8] sm:$0xf]  ;;  %v308_v58 = vld [vmem:[%s4920_s2 + $0x1d0] sm:$0xf] }
  0x33   : > { %249 = vst [vmem:[#allocation5 + $0x70] sm:$0xf] %v248_v28  ;;  %v310_v59 = vld [vmem:[%s4920_s2 + $0x1d8] sm:$0xf]  ;;  %v312_v60 = vld [vmem:[%s4920_s2 + $0x1e0] sm:$0xf] }
  0x34   : > { %251 = vst [vmem:[#allocation5 + $0x74] sm:$0xf] %v250_v29  ;;  %v314_v61 = vld [vmem:[%s4920_s2 + $0x1e8] sm:$0xf]  ;;  %v316_v62 = vld [vmem:[%s4920_s2 + $0x1f0] sm:$0xf] }
  0x35   : > { %253 = vst [vmem:[#allocation5 + $0x78] sm:$0xf] %v252_v30  ;;  %v318_v63 = vld [vmem:[%s4920_s2 + $0x1f8] sm:$0xf] }
  0x36   : > { %255 = vst [vmem:[#allocation5 + $0x7c] sm:$0xf] %v254_v31 }
  0x37   : > { %257 = vst [vmem:[#allocation5 + $0x80] sm:$0xf] %v256_v32 }
  0x38   : > { %259 = vst [vmem:[#allocation5 + $0x84] sm:$0xf] %v258_v33 }
  0x39   : > { %261 = vst [vmem:[#allocation5 + $0x88] sm:$0xf] %v260_v34 }
  0x3a   : > { %263 = vst [vmem:[#allocation5 + $0x8c] sm:$0xf] %v262_v35 }
  0x3b   : > { %265 = vst [vmem:[#allocation5 + $0x90] sm:$0xf] %v264_v36 }
  0x3c   : > { %267 = vst [vmem:[#allocation5 + $0x94] sm:$0xf] %v266_v37 }
  0x3d   : > { %269 = vst [vmem:[#allocation5 + $0x98] sm:$0xf] %v268_v38 }
  0x3e   : > { %271 = vst [vmem:[#allocation5 + $0x9c] sm:$0xf] %v270_v39 }
  0x3f   : > { %273 = vst [vmem:[#allocation5 + $0xa0] sm:$0xf] %v272_v40 }
  0x40   : > { %275 = vst [vmem:[#allocation5 + $0xa4] sm:$0xf] %v274_v41 }
  0x41   : > { %277 = vst [vmem:[#allocation5 + $0xa8] sm:$0xf] %v276_v42 }
  0x42   : > { %279 = vst [vmem:[#allocation5 + $0xac] sm:$0xf] %v278_v43 }
  0x43   : > { %281 = vst [vmem:[#allocation5 + $0xb0] sm:$0xf] %v280_v44 }
  0x44   : > { %283 = vst [vmem:[#allocation5 + $0xb4] sm:$0xf] %v282_v45 }
  0x45   : > { %285 = vst [vmem:[#allocation5 + $0xb8] sm:$0xf] %v284_v46 }
  0x46   : > { %287 = vst [vmem:[#allocation5 + $0xbc] sm:$0xf] %v286_v47 }
  0x47   : > { %289 = vst [vmem:[#allocation5 + $0xc0] sm:$0xf] %v288_v48 }
  0x48   : > { %291 = vst [vmem:[#allocation5 + $0xc4] sm:$0xf] %v290_v49 }
  0x49   : > { %293 = vst [vmem:[#allocation5 + $0xc8] sm:$0xf] %v292_v50 }
  0x4a   : > { %295 = vst [vmem:[#allocation5 + $0xcc] sm:$0xf] %v294_v51 }
  0x4b   : > { %297 = vst [vmem:[#allocation5 + $0xd0] sm:$0xf] %v296_v52 }
  0x4c   : > { %299 = vst [vmem:[#allocation5 + $0xd4] sm:$0xf] %v298_v53 }
  0x4d   : > { %301 = vst [vmem:[#allocation5 + $0xd8] sm:$0xf] %v300_v54 }
  0x4e   : > { %303 = vst [vmem:[#allocation5 + $0xdc] sm:$0xf] %v302_v55 }
  0x4f   : > { %305 = vst [vmem:[#allocation5 + $0xe0] sm:$0xf] %v304_v56 }
  0x50   : > { %307 = vst [vmem:[#allocation5 + $0xe4] sm:$0xf] %v306_v57 }
  0x51   : > { %309 = vst [vmem:[#allocation5 + $0xe8] sm:$0xf] %v308_v58 }
  0x52   : > { %311 = vst [vmem:[#allocation5 + $0xec] sm:$0xf] %v310_v59 }
  0x53   : > { %313 = vst [vmem:[#allocation5 + $0xf0] sm:$0xf] %v312_v60 }
  0x54   : > { %315 = vst [vmem:[#allocation5 + $0xf4] sm:$0xf] %v314_v61 }
  0x55   : > { %317 = vst [vmem:[#allocation5 + $0xf8] sm:$0xf] %v316_v62 }
  0x56   : > { %319 = vst [vmem:[#allocation5 + $0xfc] sm:$0xf] %v318_v63 }
  0x57 PF: > { %p3032_p9 = scmp.ge.s32.totalorder %s3740_s19, 2 }
  0x59   : > { %481 = sbr.rel (%p3032_p9) target bundleno = 198 (0xc6), region = 61 }
  0x5e   : > { %484 = sbr.rel (!%p3802_p3) target bundleno = 162 (0xa2), region = 65  ;;  %s486_s10 = sand.u32 (%p3802_p3), 1, %s3728_s16  }
  0x5f   : > { %s3400_s11 = sshll.u32 (%p3802_p3), %s3736_s18, 3  ;;  %s3033_s12 = sshll.u32 (%p3802_p3), %s486_s10, 9 }
  0x60   : > { %s4019_s20 = scalar_lea.vmem (%p3802_p3), %s4918_s0, %s3400_s11  ;;  %s4024_s22 = scalar_lea.vmem (%p3802_p3), [#allocation3], %s3033_s12 }
  0x61   : > { %v649_v0 = vld [vmem:[%s4019_s20] sm:$0xff] (%p3802_p3)  ;;  %v651_v1 = vld [vmem:[%s4019_s20 + $0x10] sm:$0xff] (%p3802_p3) }
  0x62   : > { %v653_v2 = vld [vmem:[%s4019_s20 + $0x20] sm:$0xff] (%p3802_p3)  ;;  %650 = vst [vmem:[%s4024_s22] sm:$0xff] (%p3802_p3), %v649_v0  ;;  %v655_v3 = vld [vmem:[%s4019_s20 + $0x30] sm:$0xff] (%p3802_p3) }
  0x63   : > { %652 = vst [vmem:[%s4024_s22 + $0x8] sm:$0xff] %v651_v1  ;;  %v657_v4 = vld [vmem:[%s4019_s20 + $0x40] sm:$0xff]  ;;  %v659_v5 = vld [vmem:[%s4019_s20 + $0x50] sm:$0xff] }
  0x64   : > { %654 = vst [vmem:[%s4024_s22 + $0x10] sm:$0xff] %v653_v2  ;;  %v661_v6 = vld [vmem:[%s4019_s20 + $0x60] sm:$0xff]  ;;  %v663_v7 = vld [vmem:[%s4019_s20 + $0x70] sm:$0xff] }
  0x65   : > { %656 = vst [vmem:[%s4024_s22 + $0x18] sm:$0xff] %v655_v3  ;;  %v665_v8 = vld [vmem:[%s4019_s20 + $0x80] sm:$0xff]  ;;  %v667_v9 = vld [vmem:[%s4019_s20 + $0x90] sm:$0xff] }
  0x66   : > { %658 = vst [vmem:[%s4024_s22 + $0x20] sm:$0xff] %v657_v4  ;;  %v669_v10 = vld [vmem:[%s4019_s20 + $0xa0] sm:$0xff]  ;;  %v671_v11 = vld [vmem:[%s4019_s20 + $0xb0] sm:$0xff] }
  0x67   : > { %660 = vst [vmem:[%s4024_s22 + $0x28] sm:$0xff] %v659_v5  ;;  %v673_v12 = vld [vmem:[%s4019_s20 + $0xc0] sm:$0xff]  ;;  %v675_v13 = vld [vmem:[%s4019_s20 + $0xd0] sm:$0xff] }
  0x68   : > { %662 = vst [vmem:[%s4024_s22 + $0x30] sm:$0xff] %v661_v6  ;;  %v677_v14 = vld [vmem:[%s4019_s20 + $0xe0] sm:$0xff]  ;;  %v679_v15 = vld [vmem:[%s4019_s20 + $0xf0] sm:$0xff] }
  0x69   : > { %664 = vst [vmem:[%s4024_s22 + $0x38] sm:$0xff] %v663_v7  ;;  %v681_v16 = vld [vmem:[%s4019_s20 + $0x100] sm:$0xff]  ;;  %v683_v17 = vld [vmem:[%s4019_s20 + $0x110] sm:$0xff] }
  0x6a   : > { %666 = vst [vmem:[%s4024_s22 + $0x40] sm:$0xff] %v665_v8  ;;  %v685_v18 = vld [vmem:[%s4019_s20 + $0x120] sm:$0xff]  ;;  %v687_v19 = vld [vmem:[%s4019_s20 + $0x130] sm:$0xff] }
  0x6b   : > { %668 = vst [vmem:[%s4024_s22 + $0x48] sm:$0xff] %v667_v9  ;;  %v689_v20 = vld [vmem:[%s4019_s20 + $0x140] sm:$0xff]  ;;  %v691_v21 = vld [vmem:[%s4019_s20 + $0x150] sm:$0xff] }
  0x6c   : > { %670 = vst [vmem:[%s4024_s22 + $0x50] sm:$0xff] %v669_v10  ;;  %v693_v22 = vld [vmem:[%s4019_s20 + $0x160] sm:$0xff]  ;;  %v695_v23 = vld [vmem:[%s4019_s20 + $0x170] sm:$0xff] }
  0x6d   : > { %672 = vst [vmem:[%s4024_s22 + $0x58] sm:$0xff] %v671_v11  ;;  %v697_v24 = vld [vmem:[%s4019_s20 + $0x180] sm:$0xff]  ;;  %v699_v25 = vld [vmem:[%s4019_s20 + $0x190] sm:$0xff] }
  0x6e   : > { %674 = vst [vmem:[%s4024_s22 + $0x60] sm:$0xff] %v673_v12  ;;  %v701_v26 = vld [vmem:[%s4019_s20 + $0x1a0] sm:$0xff]  ;;  %v703_v27 = vld [vmem:[%s4019_s20 + $0x1b0] sm:$0xff] }
  0x6f   : > { %676 = vst [vmem:[%s4024_s22 + $0x68] sm:$0xff] %v675_v13  ;;  %v705_v28 = vld [vmem:[%s4019_s20 + $0x1c0] sm:$0xff]  ;;  %v707_v29 = vld [vmem:[%s4019_s20 + $0x1d0] sm:$0xff] }
  0x70   : > { %678 = vst [vmem:[%s4024_s22 + $0x70] sm:$0xff] %v677_v14  ;;  %v709_v30 = vld [vmem:[%s4019_s20 + $0x1e0] sm:$0xff]  ;;  %v711_v31 = vld [vmem:[%s4019_s20 + $0x1f0] sm:$0xff] }
  0x71   : > { %680 = vst [vmem:[%s4024_s22 + $0x78] sm:$0xff] %v679_v15  ;;  %v713_v32 = vld [vmem:[%s4019_s20 + $0x200] sm:$0xff]  ;;  %v715_v33 = vld [vmem:[%s4019_s20 + $0x210] sm:$0xff] }
  0x72   : > { %682 = vst [vmem:[%s4024_s22 + $0x80] sm:$0xff] %v681_v16  ;;  %v717_v34 = vld [vmem:[%s4019_s20 + $0x220] sm:$0xff]  ;;  %v719_v35 = vld [vmem:[%s4019_s20 + $0x230] sm:$0xff] }
  0x73   : > { %684 = vst [vmem:[%s4024_s22 + $0x88] sm:$0xff] %v683_v17  ;;  %v721_v36 = vld [vmem:[%s4019_s20 + $0x240] sm:$0xff]  ;;  %v723_v37 = vld [vmem:[%s4019_s20 + $0x250] sm:$0xff] }
  0x74   : > { %686 = vst [vmem:[%s4024_s22 + $0x90] sm:$0xff] %v685_v18  ;;  %v725_v38 = vld [vmem:[%s4019_s20 + $0x260] sm:$0xff]  ;;  %v727_v39 = vld [vmem:[%s4019_s20 + $0x270] sm:$0xff] }
  0x75   : > { %688 = vst [vmem:[%s4024_s22 + $0x98] sm:$0xff] %v687_v19  ;;  %v729_v40 = vld [vmem:[%s4019_s20 + $0x280] sm:$0xff]  ;;  %v731_v41 = vld [vmem:[%s4019_s20 + $0x290] sm:$0xff] }
  0x76   : > { %690 = vst [vmem:[%s4024_s22 + $0xa0] sm:$0xff] %v689_v20  ;;  %v733_v42 = vld [vmem:[%s4019_s20 + $0x2a0] sm:$0xff]  ;;  %v735_v43 = vld [vmem:[%s4019_s20 + $0x2b0] sm:$0xff] }
  0x77   : > { %692 = vst [vmem:[%s4024_s22 + $0xa8] sm:$0xff] %v691_v21  ;;  %v737_v44 = vld [vmem:[%s4019_s20 + $0x2c0] sm:$0xff]  ;;  %v739_v45 = vld [vmem:[%s4019_s20 + $0x2d0] sm:$0xff] }
  0x78   : > { %694 = vst [vmem:[%s4024_s22 + $0xb0] sm:$0xff] %v693_v22  ;;  %v741_v46 = vld [vmem:[%s4019_s20 + $0x2e0] sm:$0xff]  ;;  %v743_v47 = vld [vmem:[%s4019_s20 + $0x2f0] sm:$0xff] }
  0x79   : > { %696 = vst [vmem:[%s4024_s22 + $0xb8] sm:$0xff] %v695_v23  ;;  %v745_v48 = vld [vmem:[%s4019_s20 + $0x300] sm:$0xff]  ;;  %v747_v49 = vld [vmem:[%s4019_s20 + $0x310] sm:$0xff] }
  0x7a   : > { %698 = vst [vmem:[%s4024_s22 + $0xc0] sm:$0xff] %v697_v24  ;;  %v749_v50 = vld [vmem:[%s4019_s20 + $0x320] sm:$0xff]  ;;  %v751_v51 = vld [vmem:[%s4019_s20 + $0x330] sm:$0xff] }
  0x7b   : > { %700 = vst [vmem:[%s4024_s22 + $0xc8] sm:$0xff] %v699_v25  ;;  %v753_v52 = vld [vmem:[%s4019_s20 + $0x340] sm:$0xff]  ;;  %v755_v53 = vld [vmem:[%s4019_s20 + $0x350] sm:$0xff] }
  0x7c   : > { %702 = vst [vmem:[%s4024_s22 + $0xd0] sm:$0xff] %v701_v26  ;;  %v757_v54 = vld [vmem:[%s4019_s20 + $0x360] sm:$0xff]  ;;  %v759_v55 = vld [vmem:[%s4019_s20 + $0x370] sm:$0xff] }
  0x7d   : > { %704 = vst [vmem:[%s4024_s22 + $0xd8] sm:$0xff] %v703_v27  ;;  %v761_v56 = vld [vmem:[%s4019_s20 + $0x380] sm:$0xff]  ;;  %v763_v57 = vld [vmem:[%s4019_s20 + $0x390] sm:$0xff] }
  0x7e   : > { %706 = vst [vmem:[%s4024_s22 + $0xe0] sm:$0xff] %v705_v28  ;;  %v765_v58 = vld [vmem:[%s4019_s20 + $0x3a0] sm:$0xff]  ;;  %v767_v59 = vld [vmem:[%s4019_s20 + $0x3b0] sm:$0xff] }
  0x7f   : > { %708 = vst [vmem:[%s4024_s22 + $0xe8] sm:$0xff] %v707_v29  ;;  %v769_v60 = vld [vmem:[%s4019_s20 + $0x3c0] sm:$0xff]  ;;  %v771_v61 = vld [vmem:[%s4019_s20 + $0x3d0] sm:$0xff] }
  0x80   : > { %710 = vst [vmem:[%s4024_s22 + $0xf0] sm:$0xff] %v709_v30  ;;  %v773_v62 = vld [vmem:[%s4019_s20 + $0x3e0] sm:$0xff]  ;;  %v775_v63 = vld [vmem:[%s4019_s20 + $0x3f0] sm:$0xff] }
  0x81   : > { %712 = vst [vmem:[%s4024_s22 + $0xf8] sm:$0xff] %v711_v31 }
  0x82   : > { %714 = vst [vmem:[%s4024_s22 + $0x100] sm:$0xff] %v713_v32 }
  0x83   : > { %716 = vst [vmem:[%s4024_s22 + $0x108] sm:$0xff] %v715_v33 }
  0x84   : > { %718 = vst [vmem:[%s4024_s22 + $0x110] sm:$0xff] %v717_v34 }
  0x85   : > { %720 = vst [vmem:[%s4024_s22 + $0x118] sm:$0xff] %v719_v35 }
  0x86   : > { %722 = vst [vmem:[%s4024_s22 + $0x120] sm:$0xff] %v721_v36 }
  0x87   : > { %724 = vst [vmem:[%s4024_s22 + $0x128] sm:$0xff] %v723_v37 }
  0x88   : > { %726 = vst [vmem:[%s4024_s22 + $0x130] sm:$0xff] %v725_v38 }
  0x89   : > { %728 = vst [vmem:[%s4024_s22 + $0x138] sm:$0xff] %v727_v39 }
  0x8a   : > { %730 = vst [vmem:[%s4024_s22 + $0x140] sm:$0xff] %v729_v40 }
  0x8b   : > { %732 = vst [vmem:[%s4024_s22 + $0x148] sm:$0xff] %v731_v41 }
  0x8c   : > { %734 = vst [vmem:[%s4024_s22 + $0x150] sm:$0xff] %v733_v42 }
  0x8d   : > { %736 = vst [vmem:[%s4024_s22 + $0x158] sm:$0xff] %v735_v43 }
  0x8e   : > { %738 = vst [vmem:[%s4024_s22 + $0x160] sm:$0xff] %v737_v44 }
  0x8f   : > { %740 = vst [vmem:[%s4024_s22 + $0x168] sm:$0xff] %v739_v45 }
  0x90   : > { %742 = vst [vmem:[%s4024_s22 + $0x170] sm:$0xff] %v741_v46 }
  0x91   : > { %744 = vst [vmem:[%s4024_s22 + $0x178] sm:$0xff] %v743_v47 }
  0x92   : > { %746 = vst [vmem:[%s4024_s22 + $0x180] sm:$0xff] %v745_v48 }
  0x93   : > { %748 = vst [vmem:[%s4024_s22 + $0x188] sm:$0xff] %v747_v49 }
  0x94   : > { %750 = vst [vmem:[%s4024_s22 + $0x190] sm:$0xff] %v749_v50 }
  0x95   : > { %752 = vst [vmem:[%s4024_s22 + $0x198] sm:$0xff] %v751_v51 }
  0x96   : > { %754 = vst [vmem:[%s4024_s22 + $0x1a0] sm:$0xff] %v753_v52 }
  0x97   : > { %756 = vst [vmem:[%s4024_s22 + $0x1a8] sm:$0xff] %v755_v53 }
  0x98   : > { %758 = vst [vmem:[%s4024_s22 + $0x1b0] sm:$0xff] %v757_v54 }
  0x99   : > { %760 = vst [vmem:[%s4024_s22 + $0x1b8] sm:$0xff] %v759_v55 }
  0x9a   : > { %762 = vst [vmem:[%s4024_s22 + $0x1c0] sm:$0xff] %v761_v56 }
  0x9b   : > { %764 = vst [vmem:[%s4024_s22 + $0x1c8] sm:$0xff] %v763_v57 }
  0x9c   : > { %766 = vst [vmem:[%s4024_s22 + $0x1d0] sm:$0xff] %v765_v58 }
  0x9d   : > { %768 = vst [vmem:[%s4024_s22 + $0x1d8] sm:$0xff] %v767_v59 }
  0x9e   : > { %770 = vst [vmem:[%s4024_s22 + $0x1e0] sm:$0xff] %v769_v60 }
  0x9f   : > { %772 = vst [vmem:[%s4024_s22 + $0x1e8] sm:$0xff] %v771_v61 }
  0xa0   : > { %774 = vst [vmem:[%s4024_s22 + $0x1f0] sm:$0xff] %v773_v62 }
  0xa1   : > { %776 = vst [vmem:[%s4024_s22 + $0x1f8] sm:$0xff] %v775_v63 }
  0xa2 PF: > { %782 = sbr.rel (!%p3802_p3) target bundleno = 198 (0xc6), region = 103  ;;  %s784_s24 = sand.u32 (%p3802_p3), 1, %s3728_s16  }
  0xa3   : > { %s3401_s27 = sshll.u32 (%p3802_p3), %s3736_s18, 8  ;;  %s3036_s28 = sshll.u32 (%p3802_p3), %s784_s24, 7 }
  0xa4   : > { %s4158_s5 = scalar_lea.vmem (%p3802_p3), %s4919_s1, %s3401_s27  ;;  %s4162_s23 = scalar_lea.vmem (%p3802_p3), [#allocation4], %s3036_s28 }
  0xa5   : > { %v3039_v0 = vld [vmem:[%s4158_s5 + $0x4] sm:$0xf] (%p3802_p3)  ;;  %v3040_v1 = vld [vmem:[%s4158_s5 + $0xc] sm:$0xf] (%p3802_p3)  ;;  %v3041_v2 = vld [vmem:[%s4158_s5 + $0x14] sm:$0xf] (%p3802_p3) }
  0xa6   : > { %809 = vst [vmem:[%s4162_s23] sm:$0xf] (%p3802_p3), %v3039_v0  ;;  %v3042_v3 = vld [vmem:[%s4158_s5 + $0x1c] sm:$0xf] (%p3802_p3)  ;;  %v3043_v4 = vld [vmem:[%s4158_s5 + $0x24] sm:$0xf] (%p3802_p3) }
  0xa7   : > { %811 = vst [vmem:[%s4162_s23 + $0x4] sm:$0xf] %v3040_v1  ;;  %v3044_v5 = vld [vmem:[%s4158_s5 + $0x2c] sm:$0xf]  ;;  %v3045_v6 = vld [vmem:[%s4158_s5 + $0x34] sm:$0xf] }
  0xa8   : > { %813 = vst [vmem:[%s4162_s23 + $0x8] sm:$0xf] %v3041_v2  ;;  %v3046_v7 = vld [vmem:[%s4158_s5 + $0x3c] sm:$0xf]  ;;  %v3047_v8 = vld [vmem:[%s4158_s5 + $0x44] sm:$0xf] }
  0xa9   : > { %815 = vst [vmem:[%s4162_s23 + $0xc] sm:$0xf] %v3042_v3  ;;  %v3048_v9 = vld [vmem:[%s4158_s5 + $0x4c] sm:$0xf]  ;;  %v3049_v10 = vld [vmem:[%s4158_s5 + $0x54] sm:$0xf] }
  0xaa   : > { %817 = vst [vmem:[%s4162_s23 + $0x10] sm:$0xf] %v3043_v4  ;;  %v3050_v11 = vld [vmem:[%s4158_s5 + $0x5c] sm:$0xf]  ;;  %v3051_v12 = vld [vmem:[%s4158_s5 + $0x64] sm:$0xf] }
  0xab   : > { %819 = vst [vmem:[%s4162_s23 + $0x14] sm:$0xf] %v3044_v5  ;;  %v3052_v13 = vld [vmem:[%s4158_s5 + $0x6c] sm:$0xf]  ;;  %v3053_v14 = vld [vmem:[%s4158_s5 + $0x74] sm:$0xf] }
  0xac   : > { %821 = vst [vmem:[%s4162_s23 + $0x18] sm:$0xf] %v3045_v6  ;;  %v3054_v15 = vld [vmem:[%s4158_s5 + $0x7c] sm:$0xf]  ;;  %v3055_v16 = vld [vmem:[%s4158_s5 + $0x84] sm:$0xf] }
  0xad   : > { %823 = vst [vmem:[%s4162_s23 + $0x1c] sm:$0xf] %v3046_v7  ;;  %v3056_v17 = vld [vmem:[%s4158_s5 + $0x8c] sm:$0xf]  ;;  %v3057_v18 = vld [vmem:[%s4158_s5 + $0x94] sm:$0xf] }
  0xae   : > { %825 = vst [vmem:[%s4162_s23 + $0x20] sm:$0xf] %v3047_v8  ;;  %v3058_v19 = vld [vmem:[%s4158_s5 + $0x9c] sm:$0xf]  ;;  %v3059_v20 = vld [vmem:[%s4158_s5 + $0xa4] sm:$0xf] }
  0xaf   : > { %827 = vst [vmem:[%s4162_s23 + $0x24] sm:$0xf] %v3048_v9  ;;  %v3060_v21 = vld [vmem:[%s4158_s5 + $0xac] sm:$0xf]  ;;  %v3061_v22 = vld [vmem:[%s4158_s5 + $0xb4] sm:$0xf] }
  0xb0   : > { %829 = vst [vmem:[%s4162_s23 + $0x28] sm:$0xf] %v3049_v10  ;;  %v3062_v23 = vld [vmem:[%s4158_s5 + $0xbc] sm:$0xf]  ;;  %v3063_v24 = vld [vmem:[%s4158_s5 + $0xc4] sm:$0xf] }
  0xb1   : > { %831 = vst [vmem:[%s4162_s23 + $0x2c] sm:$0xf] %v3050_v11  ;;  %v3064_v25 = vld [vmem:[%s4158_s5 + $0xcc] sm:$0xf]  ;;  %v3065_v26 = vld [vmem:[%s4158_s5 + $0xd4] sm:$0xf] }
  0xb2   : > { %833 = vst [vmem:[%s4162_s23 + $0x30] sm:$0xf] %v3051_v12  ;;  %v3066_v27 = vld [vmem:[%s4158_s5 + $0xdc] sm:$0xf]  ;;  %v3067_v28 = vld [vmem:[%s4158_s5 + $0xe4] sm:$0xf] }
  0xb3   : > { %835 = vst [vmem:[%s4162_s23 + $0x34] sm:$0xf] %v3052_v13  ;;  %v3068_v29 = vld [vmem:[%s4158_s5 + $0xec] sm:$0xf]  ;;  %v3069_v30 = vld [vmem:[%s4158_s5 + $0xf4] sm:$0xf] }
  0xb4   : > { %837 = vst [vmem:[%s4162_s23 + $0x38] sm:$0xf] %v3053_v14  ;;  %v3070_v31 = vld [vmem:[%s4158_s5 + $0xfc] sm:$0xf] }
  0xb5   : > { %839 = vst [vmem:[%s4162_s23 + $0x3c] sm:$0xf] %v3054_v15 }
  0xb6   : > { %841 = vst [vmem:[%s4162_s23 + $0x40] sm:$0xf] %v3055_v16 }
  0xb7   : > { %843 = vst [vmem:[%s4162_s23 + $0x44] sm:$0xf] %v3056_v17 }
  0xb8   : > { %845 = vst [vmem:[%s4162_s23 + $0x48] sm:$0xf] %v3057_v18 }
  0xb9   : > { %847 = vst [vmem:[%s4162_s23 + $0x4c] sm:$0xf] %v3058_v19 }
  0xba   : > { %849 = vst [vmem:[%s4162_s23 + $0x50] sm:$0xf] %v3059_v20 }
  0xbb   : > { %851 = vst [vmem:[%s4162_s23 + $0x54] sm:$0xf] %v3060_v21 }
  0xbc   : > { %853 = vst [vmem:[%s4162_s23 + $0x58] sm:$0xf] %v3061_v22 }
  0xbd   : > { %855 = vst [vmem:[%s4162_s23 + $0x5c] sm:$0xf] %v3062_v23 }
  0xbe   : > { %857 = vst [vmem:[%s4162_s23 + $0x60] sm:$0xf] %v3063_v24 }
  0xbf   : > { %859 = vst [vmem:[%s4162_s23 + $0x64] sm:$0xf] %v3064_v25 }
  0xc0   : > { %861 = vst [vmem:[%s4162_s23 + $0x68] sm:$0xf] %v3065_v26 }
  0xc1   : > { %863 = vst [vmem:[%s4162_s23 + $0x6c] sm:$0xf] %v3066_v27 }
  0xc2   : > { %865 = vst [vmem:[%s4162_s23 + $0x70] sm:$0xf] %v3067_v28 }
  0xc3   : > { %867 = vst [vmem:[%s4162_s23 + $0x74] sm:$0xf] %v3068_v29 }
  0xc4   : > { %869 = vst [vmem:[%s4162_s23 + $0x78] sm:$0xf] %v3069_v30 }
  0xc5   : > { %871 = vst [vmem:[%s4162_s23 + $0x7c] sm:$0xf] %v3070_v31 }
  0xc6 PF: > { %962 = sbr.rel (%p3810_p7) target bundleno = 982 (0x3d6), region = 144  ;;  %s965_s6 = sand.u32 (!%p3810_p7), 1, %s3724_s15  }
  0xc7   : > { %s3072_s7 = sshll.u32 (!%p3810_p7), %s965_s6, 9  ;;  %s3073_s8 = sshll.u32 (!%p3810_p7), %s965_s6, 7 }
  0xc8   : > { %s4229_s9 = scalar_lea.vmem (!%p3810_p7), [#allocation3], %s3072_s7  ;;  %s4231_s10 = scalar_lea.vmem (!%p3810_p7), [#allocation4], %s3073_s8 }
  0xc9   : > { %p3074_p10 = scmp.ne.s32.totalorder (!%p3810_p7), %s3732_s17, 0 }
  0xcb   : > { %1028 = sbr.rel (%p3074_p10) target bundleno = 273 (0x111), region = 160 }
  0xd0   : > { %v3742_v32 = vmov 0.0  }
  0xd1   : > { %1029 = vst [vmem:[#allocation2 + $0xb0] sm:$0xff] %v3742_v32 }
  0xd2   : > { %1030 = vst [vmem:[#allocation2 + $0x1b0] sm:$0xff] %v3742_v32 }
  0xd3   : > { %1031 = vst [vmem:[#allocation2 + $0xd8] sm:$0xff] %v3742_v32 }
  0xd4   : > { %1032 = vst [vmem:[#allocation2 + $0x18] sm:$0xff] %v3742_v32 }
  0xd5   : > { %1033 = vst [vmem:[#allocation2 + $0x50] sm:$0xff] %v3742_v32 }
  0xd6   : > { %1034 = vst [vmem:[#allocation2 + $0x168] sm:$0xff] %v3742_v32 }
  0xd7   : > { %1035 = vst [vmem:[#allocation2 + $0x130] sm:$0xff] %v3742_v32 }
  0xd8   : > { %1036 = vst [vmem:[#allocation2 + $0x48] sm:$0xff] %v3742_v32 }
  0xd9   : > { %1037 = vst [vmem:[#allocation2 + $0x180] sm:$0xff] %v3742_v32 }
  0xda   : > { %1038 = vst [vmem:[#allocation2 + $0x110] sm:$0xff] %v3742_v32 }
  0xdb   : > { %1039 = vst [vmem:[#allocation2 + $0x118] sm:$0xff] %v3742_v32 }
  0xdc   : > { %1040 = vst [vmem:[#allocation2 + $0x98] sm:$0xff] %v3742_v32 }
  0xdd   : > { %1041 = vst [vmem:[#allocation2 + $0x120] sm:$0xff] %v3742_v32 }
  0xde   : > { %1042 = vst [vmem:[#allocation2 + $0x150] sm:$0xff] %v3742_v32 }
  0xdf   : > { %1043 = vst [vmem:[#allocation2 + $0x108] sm:$0xff] %v3742_v32 }
  0xe0   : > { %1044 = vst [vmem:[#allocation2 + $0x60] sm:$0xff] %v3742_v32 }
  0xe1   : > { %1045 = vst [vmem:[#allocation2 + $0xe0] sm:$0xff] %v3742_v32 }
  0xe2   : > { %1046 = vst [vmem:[#allocation2 + $0x188] sm:$0xff] %v3742_v32 }
  0xe3   : > { %1047 = vst [vmem:[#allocation2 + $0x138] sm:$0xff] %v3742_v32 }
  0xe4   : > { %1048 = vst [vmem:[#allocation2 + $0x140] sm:$0xff] %v3742_v32 }
  0xe5   : > { %1049 = vst [vmem:[#allocation2 + $0x80] sm:$0xff] %v3742_v32 }
  0xe6   : > { %1050 = vst [vmem:[#allocation2 + $0x1a8] sm:$0xff] %v3742_v32 }
  0xe7   : > { %1051 = vst [vmem:[#allocation2 + $0x1b8] sm:$0xff] %v3742_v32 }
  0xe8   : > { %1052 = vst [vmem:[#allocation2 + $0x28] sm:$0xff] %v3742_v32 }
  0xe9   : > { %1053 = vst [vmem:[#allocation2 + $0x1e8] sm:$0xff] %v3742_v32 }
  0xea   : > { %1054 = vst [vmem:[#allocation2 + $0xf8] sm:$0xff] %v3742_v32 }
  0xeb   : > { %1055 = vst [vmem:[#allocation2 + $0x160] sm:$0xff] %v3742_v32 }
  0xec   : > { %1056 = vst [vmem:[#allocation2 + $0x30] sm:$0xff] %v3742_v32 }
  0xed   : > { %1057 = vst [vmem:[#allocation2 + $0x1e0] sm:$0xff] %v3742_v32 }
  0xee   : > { %1058 = vst [vmem:[#allocation2] sm:$0xff] %v3742_v32 }
  0xef   : > { %1059 = vst [vmem:[#allocation2 + $0xf0] sm:$0xff] %v3742_v32 }
  0xf0   : > { %1060 = vst [vmem:[#allocation2 + $0x8] sm:$0xff] %v3742_v32 }
  0xf1   : > { %1061 = vst [vmem:[#allocation2 + $0x148] sm:$0xff] %v3742_v32 }
  0xf2   : > { %1062 = vst [vmem:[#allocation2 + $0x1d0] sm:$0xff] %v3742_v32 }
  0xf3   : > { %1063 = vst [vmem:[#allocation2 + $0x100] sm:$0xff] %v3742_v32 }
  0xf4   : > { %1064 = vst [vmem:[#allocation2 + $0xc8] sm:$0xff] %v3742_v32 }
  0xf5   : > { %1065 = vst [vmem:[#allocation2 + $0x40] sm:$0xff] %v3742_v32 }
  0xf6   : > { %1066 = vst [vmem:[#allocation2 + $0x1f8] sm:$0xff] %v3742_v32 }
  0xf7   : > { %1067 = vst [vmem:[#allocation2 + $0x20] sm:$0xff] %v3742_v32 }
  0xf8   : > { %1068 = vst [vmem:[#allocation2 + $0x128] sm:$0xff] %v3742_v32 }
  0xf9   : > { %1069 = vst [vmem:[#allocation2 + $0x1a0] sm:$0xff] %v3742_v32 }
  0xfa   : > { %1070 = vst [vmem:[#allocation2 + $0x1f0] sm:$0xff] %v3742_v32 }
  0xfb   : > { %1071 = vst [vmem:[#allocation2 + $0xe8] sm:$0xff] %v3742_v32 }
  0xfc   : > { %1072 = vst [vmem:[#allocation2 + $0x78] sm:$0xff] %v3742_v32 }
  0xfd   : > { %1073 = vst [vmem:[#allocation2 + $0x70] sm:$0xff] %v3742_v32 }
  0xfe   : > { %1074 = vst [vmem:[#allocation2 + $0x90] sm:$0xff] %v3742_v32 }
  0xff   : > { %1075 = vst [vmem:[#allocation2 + $0x1d8] sm:$0xff] %v3742_v32 }
 0x100   : > { %1076 = vst [vmem:[#allocation2 + $0xd0] sm:$0xff] %v3742_v32 }
 0x101   : > { %1077 = vst [vmem:[#allocation2 + $0xb8] sm:$0xff] %v3742_v32 }
 0x102   : > { %1078 = vst [vmem:[#allocation2 + $0x88] sm:$0xff] %v3742_v32 }
 0x103   : > { %1079 = vst [vmem:[#allocation2 + $0xa8] sm:$0xff] %v3742_v32 }
 0x104   : > { %1080 = vst [vmem:[#allocation2 + $0x1c8] sm:$0xff] %v3742_v32 }
 0x105   : > { %1081 = vst [vmem:[#allocation2 + $0x170] sm:$0xff] %v3742_v32 }
 0x106   : > { %1082 = vst [vmem:[#allocation2 + $0x178] sm:$0xff] %v3742_v32 }
 0x107   : > { %1083 = vst [vmem:[#allocation2 + $0x68] sm:$0xff] %v3742_v32 }
 0x108   : > { %1084 = vst [vmem:[#allocation2 + $0x190] sm:$0xff] %v3742_v32 }
 0x109   : > { %1085 = vst [vmem:[#allocation2 + $0x198] sm:$0xff] %v3742_v32 }
 0x10a   : > { %1086 = vst [vmem:[#allocation2 + $0x38] sm:$0xff] %v3742_v32 }
 0x10b   : > { %1087 = vst [vmem:[#allocation2 + $0xc0] sm:$0xff] %v3742_v32 }
 0x10c   : > { %1088 = vst [vmem:[#allocation2 + $0x1c0] sm:$0xff] %v3742_v32 }
 0x10d   : > { %1089 = vst [vmem:[#allocation2 + $0x158] sm:$0xff] %v3742_v32 }
 0x10e   : > { %1090 = vst [vmem:[#allocation2 + $0x10] sm:$0xff] %v3742_v32 }
 0x10f   : > { %1091 = vst [vmem:[#allocation2 + $0x58] sm:$0xff] %v3742_v32 }
 0x110   : > { %1092 = vst [vmem:[#allocation2 + $0xa0] sm:$0xff] %v3742_v32 }
 0x111 PF: > { %v3473_v33 = vld [vmem:[%s4231_s10 + $0x38] sm:$0xff]  ;;  %v3472_v35 = vld [vmem:[%s4231_s10 + $0x30] sm:$0xff]  ;;  %v3471_v37 = vld [vmem:[%s4231_s10 + $0x28] sm:$0xff]  ;;  %p3395_p11 = scmp.ne.s32.totalorder %s3732_s17, 1 }
 0x112   : > { %v3481_v34 = vld [vmem:[%s4231_s10 + $0x78] sm:$0xff]  ;;  %1669 = vmatpush.bf16.msra.mxu0 %v3473_v33  ;;  %3641 = vmatpush.bf16.msra.mxu2 %v3473_v33  ;;  %v3480_v36 = vld [vmem:[%s4231_s10 + $0x70] sm:$0xff]  ;;  %v3479_v38 = vld [vmem:[%s4231_s10 + $0x68] sm:$0xff] }
 0x113   : > { %1838 = vmatpush.bf16.msra.mxu1 %v3481_v34  ;;  %3649 = vmatpush.bf16.msra.mxu3 %v3481_v34  ;;  %v3470_v39 = vld [vmem:[%s4231_s10 + $0x20] sm:$0xff]  ;;  %v3469_v41 = vld [vmem:[%s4231_s10 + $0x18] sm:$0xff]  ;;  %v3468_v43 = vld [vmem:[%s4231_s10 + $0x10] sm:$0xff] }
 0x114   : > { %v3478_v40 = vld [vmem:[%s4231_s10 + $0x60] sm:$0xff]  ;;  %v3477_v42 = vld [vmem:[%s4231_s10 + $0x58] sm:$0xff]  ;;  %v3476_v44 = vld [vmem:[%s4231_s10 + $0x50] sm:$0xff] }
 0x115   : > { %v3467_v45 = vld [vmem:[%s4231_s10 + $0x8] sm:$0xff]  ;;  %v3466_v47 = vld [vmem:[%s4231_s10] sm:$0xff]  ;;  %v3085_v61 = vld [vmem:[%s4229_s9 + $0x10] sm:$0xf] }
 0x116   : > { %1670 = vmatpush.bf16.msra.mxu0 %v3472_v35  ;;  %3642 = vmatpush.bf16.msra.mxu2 %v3472_v35  ;;  %v3475_v46 = vld [vmem:[%s4231_s10 + $0x48] sm:$0xff]  ;;  %v3474_v48 = vld [vmem:[%s4231_s10 + $0x40] sm:$0xff]  ;;  %v3405_v62 = vld [vmem:[%s4229_s9 + $0x14] sm:$0xf0] }
 0x117   : > { %1839 = vmatpush.bf16.msra.mxu1 %v3480_v36  ;;  %3650 = vmatpush.bf16.msra.mxu3 %v3480_v36  ;;  %v3077_v49 = vld [vmem:[%s4229_s9] sm:$0xf]  ;;  %v3403_v50 = vld [vmem:[%s4229_s9 + $0x4] sm:$0xf0]  ;;  %v3402_v53 = vld [vmem:[%s4229_s9 + $0x4] sm:$0xf]  ;;  %v3086_v5 = vor.u32 %v3405_v62, %v3085_v61 }
 0x118   : > { %v3205_v51 = vld [vmem:[%s4229_s9 + $0x100] sm:$0xf]  ;;  %v3435_v52 = vld [vmem:[%s4229_s9 + $0x104] sm:$0xf0]  ;;  %v3079_v54 = vld [vmem:[%s4229_s9 + $0x8] sm:$0xf0]  ;;  %v3078_v57 = vor.u32 %v3403_v50, %v3077_v49 }
 0x119   : > { %v3434_v55 = vld [vmem:[%s4229_s9 + $0x104] sm:$0xf]  ;;  %v3207_v56 = vld [vmem:[%s4229_s9 + $0x108] sm:$0xf0]  ;;  %v3206_v58 = vor.u32 %v3435_v52, %v3205_v51  ;;  %v3082_v59 = vor.u32 %v3402_v53, %v3079_v54  ;;  %v3213_v63 = vld [vmem:[%s4229_s9 + $0x110] sm:$0xf] }
 0x11a   : > { %1671 = vmatpush.bf16.msra.mxu0 %v3471_v37  ;;  %3643 = vmatpush.bf16.msra.mxu2 %v3471_v37  ;;  %v3210_v60 = vor.u32 %v3434_v55, %v3207_v56  ;;  %v3437_v0 = vld [vmem:[%s4229_s9 + $0x114] sm:$0xf0]  ;;  %v3404_v1 = vld [vmem:[%s4229_s9 + $0x14] sm:$0xf]  ;;  %v3087_v2 = vld [vmem:[%s4229_s9 + $0x18] sm:$0xf0] }
 0x11b   : > { %1840 = vmatpush.bf16.msra.mxu1 %v3479_v38  ;;  %3651 = vmatpush.bf16.msra.mxu3 %v3479_v38  ;;  %v3436_v3 = vld [vmem:[%s4229_s9 + $0x114] sm:$0xf]  ;;  %v3215_v4 = vld [vmem:[%s4229_s9 + $0x118] sm:$0xf0]  ;;  %v3214_v6 = vor.u32 %v3437_v0, %v3213_v63  ;;  %v3090_v7 = vor.u32 %v3404_v1, %v3087_v2  ;;  %v3093_v9 = vld [vmem:[%s4229_s9 + $0x20] sm:$0xf] }
 0x11c   : > { %v3218_v8 = vor.u32 %v3436_v3, %v3215_v4  ;;  %v3407_v10 = vld [vmem:[%s4229_s9 + $0x24] sm:$0xf0]  ;;  %v3221_v11 = vld [vmem:[%s4229_s9 + $0x120] sm:$0xf]  ;;  %v3406_v13 = vld [vmem:[%s4229_s9 + $0x24] sm:$0xf] }
 0x11d   : > { %v3439_v12 = vld [vmem:[%s4229_s9 + $0x124] sm:$0xf0]  ;;  %v3095_v14 = vld [vmem:[%s4229_s9 + $0x28] sm:$0xf0]  ;;  %v3438_v15 = vld [vmem:[%s4229_s9 + $0x124] sm:$0xf]  ;;  %v3094_v17 = vor.u32 %v3407_v10, %v3093_v9 }
 0x11e   : > { %1672 = vmatpush.bf16.msra.mxu0 %v3470_v39  ;;  %3644 = vmatpush.bf16.msra.mxu2 %v3470_v39  ;;  %v3223_v16 = vld [vmem:[%s4229_s9 + $0x128] sm:$0xf0]  ;;  %v3222_v18 = vor.u32 %v3439_v12, %v3221_v11  ;;  %v3098_v19 = vor.u32 %v3406_v13, %v3095_v14  ;;  %v3101_v21 = vld [vmem:[%s4229_s9 + $0x30] sm:$0xf]  ;;  %v3409_v22 = vld [vmem:[%s4229_s9 + $0x34] sm:$0xf0] }
 0x11f   : > { %1841 = vmatpush.bf16.msra.mxu1 %v3478_v40  ;;  %3652 = vmatpush.bf16.msra.mxu3 %v3478_v40  ;;  %v3226_v20 = vor.u32 %v3438_v15, %v3223_v16  ;;  %v3229_v23 = vld [vmem:[%s4229_s9 + $0x130] sm:$0xf]  ;;  %v3441_v24 = vld [vmem:[%s4229_s9 + $0x134] sm:$0xf0]  ;;  %v3408_v25 = vld [vmem:[%s4229_s9 + $0x34] sm:$0xf]  ;;  %v3102_v29 = vor.u32 %v3409_v22, %v3101_v21 }
 0x120   : > { %v3103_v26 = vld [vmem:[%s4229_s9 + $0x38] sm:$0xf0]  ;;  %v3440_v27 = vld [vmem:[%s4229_s9 + $0x134] sm:$0xf]  ;;  %v3230_v30 = vor.u32 %v3441_v24, %v3229_v23  ;;  %v3109_v33 = vld [vmem:[%s4229_s9 + $0x40] sm:$0xf] }
 0x121   : > { %v3231_v28 = vld [vmem:[%s4229_s9 + $0x138] sm:$0xf0]  ;;  %v3106_v31 = vor.u32 %v3408_v25, %v3103_v26  ;;  %v3411_v34 = vld [vmem:[%s4229_s9 + $0x44] sm:$0xf0]  ;;  %v3237_v35 = vld [vmem:[%s4229_s9 + $0x140] sm:$0xf] }
 0x122   : > { %1673 = vmatpush.bf16.msra.mxu0 %v3469_v41  ;;  %3645 = vmatpush.bf16.msra.mxu2 %v3469_v41  ;;  %v3234_v32 = vor.u32 %v3440_v27, %v3231_v28  ;;  %v3443_v36 = vld [vmem:[%s4229_s9 + $0x144] sm:$0xf0]  ;;  %v3410_v37 = vld [vmem:[%s4229_s9 + $0x44] sm:$0xf]  ;;  %v3111_v38 = vld [vmem:[%s4229_s9 + $0x48] sm:$0xf0]  ;;  %v3110_v41 = vor.u32 %v3411_v34, %v3109_v33 }
 0x123   : > { %1842 = vmatpush.bf16.msra.mxu1 %v3477_v42  ;;  %3653 = vmatpush.bf16.msra.mxu3 %v3477_v42  ;;  %v3442_v39 = vld [vmem:[%s4229_s9 + $0x144] sm:$0xf]  ;;  %v3239_v40 = vld [vmem:[%s4229_s9 + $0x148] sm:$0xf0]  ;;  %v3238_v42 = vor.u32 %v3443_v36, %v3237_v35  ;;  %v3412_v49 = vld [vmem:[%s4229_s9 + $0x54] sm:$0xf] }
 0x124   : > { %v3119_v50 = vld [vmem:[%s4229_s9 + $0x58] sm:$0xf0]  ;;  %v3444_v51 = vld [vmem:[%s4229_s9 + $0x154] sm:$0xf]  ;;  %v3414_v61 = vld [vmem:[%s4229_s9 + $0x64] sm:$0xf] }
 0x125   : > { %v3247_v52 = vld [vmem:[%s4229_s9 + $0x158] sm:$0xf0]  ;;  %v3122_v55 = vor.u32 %v3412_v49, %v3119_v50  ;;  %v3127_v62 = vld [vmem:[%s4229_s9 + $0x68] sm:$0xf0]  ;;  %v3446_v63 = vld [vmem:[%s4229_s9 + $0x164] sm:$0xf] }
 0x126   : > { %1674 = vmatpush.bf16.msra.mxu0 %v3468_v43  ;;  %3646 = vmatpush.bf16.msra.mxu2 %v3468_v43  ;;  %v3114_v43 = vor.u32 %v3410_v37, %v3111_v38  ;;  %v3250_v56 = vor.u32 %v3444_v51, %v3247_v52  ;;  %v3255_v0 = vld [vmem:[%s4229_s9 + $0x168] sm:$0xf0]  ;;  %v3130_v3 = vor.u32 %v3414_v61, %v3127_v62  ;;  %v3416_v9 = vld [vmem:[%s4229_s9 + $0x74] sm:$0xf]  ;;  %v3135_v10 = vld [vmem:[%s4229_s9 + $0x78] sm:$0xf0] }
 0x127   : > { %1843 = vmatpush.bf16.msra.mxu1 %v3476_v44  ;;  %3654 = vmatpush.bf16.msra.mxu3 %v3476_v44  ;;  %v3242_v44 = vor.u32 %v3442_v39, %v3239_v40  ;;  %v3258_v4 = vor.u32 %v3446_v63, %v3255_v0  ;;  %v3448_v11 = vld [vmem:[%s4229_s9 + $0x174] sm:$0xf]  ;;  %v3263_v12 = vld [vmem:[%s4229_s9 + $0x178] sm:$0xf0]  ;;  %v3138_v15 = vor.u32 %v3416_v9, %v3135_v10  ;;  %v3418_v21 = vld [vmem:[%s4229_s9 + $0x84] sm:$0xf] }
 0x128   : > { %v3266_v16 = vor.u32 %v3448_v11, %v3263_v12  ;;  %v3143_v22 = vld [vmem:[%s4229_s9 + $0x88] sm:$0xf0]  ;;  %v3450_v23 = vld [vmem:[%s4229_s9 + $0x184] sm:$0xf]  ;;  %v1094_v39 = vld [vmem:[#allocation2 + $0x1b0] sm:$0xff] }
 0x129   : > { %v3271_v24 = vld [vmem:[%s4229_s9 + $0x188] sm:$0xf0]  ;;  %v3146_v28 = vor.u32 %v3418_v21, %v3143_v22  ;;  %v3151_v49 = vld [vmem:[%s4229_s9 + $0x98] sm:$0xf0]  ;;  %v3452_v50 = vld [vmem:[%s4229_s9 + $0x194] sm:$0xf] }
 0x12a   : > { %1675 = vmatpush.bf16.msra.mxu0 %v3467_v45  ;;  %3647 = vmatpush.bf16.msra.mxu2 %v3467_v45  ;;  %v3117_v45 = vld [vmem:[%s4229_s9 + $0x50] sm:$0xf]  ;;  %v1125_v35 = vld [vmem:[#allocation2 + $0x148] sm:$0xff]  ;;  %v3279_v51 = vld [vmem:[%s4229_s9 + $0x198] sm:$0xf0] }
 0x12b   : > { %1844 = vmatpush.bf16.msra.mxu1 %v3475_v46  ;;  %3655 = vmatpush.bf16.msra.mxu3 %v3475_v46  ;;  %v3413_v46 = vld [vmem:[%s4229_s9 + $0x54] sm:$0xf0]  ;;  %v3157_v11 = vld [vmem:[%s4229_s9 + $0xa0] sm:$0xf]  ;;  %v3423_v12 = vld [vmem:[%s4229_s9 + $0xa4] sm:$0xf0] }
 0x12c   : > { %v3118_v53 = vor.u32 %v3413_v46, %v3117_v45  ;;  %v3277_v45 = vld [vmem:[%s4229_s9 + $0x190] sm:$0xf]  ;;  %v1095_v61 = vld [vmem:[#allocation2 + $0xd8] sm:$0xff]  ;;  %v1128_v21 = vld [vmem:[#allocation2 + $0xc8] sm:$0xff] }
 0x12e   : > { %1676 = vmatpush.bf16.msra.mxu0 %v3466_v47  ;;  %3648 = vmatpush.bf16.msra.mxu2 %v3466_v47  ;;  %v3245_v47 = vld [vmem:[%s4229_s9 + $0x150] sm:$0xf] }
 0x12f   : > { %1845 = vmatpush.bf16.msra.mxu1 %v3474_v48  ;;  %3656 = vmatpush.bf16.msra.mxu3 %v3474_v48  ;;  %v3445_v48 = vld [vmem:[%s4229_s9 + $0x154] sm:$0xf0] }
 0x130   : > { %v3246_v54 = vor.u32 %v3445_v48, %v3245_v47  ;;  %v3453_v47 = vld [vmem:[%s4229_s9 + $0x194] sm:$0xf0]  ;;  %v3420_v48 = vld [vmem:[%s4229_s9 + $0x94] sm:$0xf] }
 0x131   : > { %1677 = vmatmul.bf16.vlgmr.msra.gmra.mxu0 %v3078_v57  ;;  %1757 = vmatmul.bf16.vlgmr.msra.gmra.mxu2 %v3206_v58  ;;  %v3125_v57 = vld [vmem:[%s4229_s9 + $0x60] sm:$0xf]  ;;  %v3415_v58 = vld [vmem:[%s4229_s9 + $0x64] sm:$0xf0] }
 0x132   : > { %1846 = vmatmul.bf16.vlgmr.msra.gmra.mxu1 %v3082_v59  ;;  %1926 = vmatmul.bf16.vlgmr.msra.gmra.mxu3 %v3210_v60  ;;  %v3253_v59 = vld [vmem:[%s4229_s9 + $0x160] sm:$0xf]  ;;  %v3447_v60 = vld [vmem:[%s4229_s9 + $0x164] sm:$0xf0]  ;;  %v3126_v1 = vor.u32 %v3415_v58, %v3125_v57 }
 0x133   : > { %v3254_v2 = vor.u32 %v3447_v60, %v3253_v59  ;;  %v3154_v59 = vor.u32 %v3420_v48, %v3151_v49  ;;  %v3282_v60 = vor.u32 %v3452_v50, %v3279_v51  ;;  %v3424_v48 = vld [vmem:[%s4229_s9 + $0xb4] sm:$0xf]  ;;  %v3167_v49 = vld [vmem:[%s4229_s9 + $0xb8] sm:$0xf0] }
 0x134   : > { %v3456_v50 = vld [vmem:[%s4229_s9 + $0x1b4] sm:$0xf]  ;;  %v3295_v51 = vld [vmem:[%s4229_s9 + $0x1b8] sm:$0xf0] }
 0x141   : > { %1682 = vmatmul.bf16.gmra.mxu0 %v3086_v5  ;;  %1762 = vmatmul.bf16.gmra.mxu2 %v3214_v6  ;;  %v3133_v5 = vld [vmem:[%s4229_s9 + $0x70] sm:$0xf]  ;;  %v3417_v6 = vld [vmem:[%s4229_s9 + $0x74] sm:$0xf0] }
 0x142   : > { %1851 = vmatmul.bf16.gmra.mxu1 %v3090_v7  ;;  %1931 = vmatmul.bf16.gmra.mxu3 %v3218_v8  ;;  %v3261_v7 = vld [vmem:[%s4229_s9 + $0x170] sm:$0xf]  ;;  %v3449_v8 = vld [vmem:[%s4229_s9 + $0x174] sm:$0xf0]  ;;  %v3134_v13 = vor.u32 %v3417_v6, %v3133_v5 }
 0x143   : > { %v3262_v14 = vor.u32 %v3449_v8, %v3261_v7  ;;  %v1096_v7 = vld [vmem:[#allocation2 + $0x18] sm:$0xff] }
 0x151   : > { %1687 = vmatmul.bf16.gmra.mxu0 %v3094_v17  ;;  %1767 = vmatmul.bf16.gmra.mxu2 %v3222_v18  ;;  %v3141_v17 = vld [vmem:[%s4229_s9 + $0x80] sm:$0xf]  ;;  %v3419_v18 = vld [vmem:[%s4229_s9 + $0x84] sm:$0xf0] }
 0x152   : > { %1856 = vmatmul.bf16.gmra.mxu1 %v3098_v19  ;;  %1936 = vmatmul.bf16.gmra.mxu3 %v3226_v20  ;;  %v3269_v19 = vld [vmem:[%s4229_s9 + $0x180] sm:$0xf]  ;;  %v3451_v20 = vld [vmem:[%s4229_s9 + $0x184] sm:$0xf0]  ;;  %v3142_v25 = vor.u32 %v3419_v18, %v3141_v17  ;;  %v3159_v17 = vld [vmem:[%s4229_s9 + $0xa8] sm:$0xf0] }
 0x153   : > { %v3270_v26 = vor.u32 %v3451_v20, %v3269_v19  ;;  %v3454_v18 = vld [vmem:[%s4229_s9 + $0x1a4] sm:$0xf]  ;;  %v3287_v19 = vld [vmem:[%s4229_s9 + $0x1a8] sm:$0xf0] }
 0x161   : > { %1692 = vmatmul.bf16.gmra.mxu0 %v3102_v29  ;;  %1772 = vmatmul.bf16.gmra.mxu2 %v3230_v30  ;;  %v3274_v29 = vor.u32 %v3450_v23, %v3271_v24  ;;  %v1093_v30 = vld [vmem:[#allocation2 + $0xb0] sm:$0xff]  ;;  %v3158_v23 = vor.u32 %v3423_v12, %v3157_v11  ;;  %v3173_v11 = vld [vmem:[%s4229_s9 + $0xc0] sm:$0xf]  ;;  %v3427_v12 = vld [vmem:[%s4229_s9 + $0xc4] sm:$0xf0] }
 0x162   : > { %1861 = vmatmul.bf16.gmra.mxu1 %v3106_v31  ;;  %1941 = vmatmul.bf16.gmra.mxu3 %v3234_v32 }
 0x171   : > { %1697 = vmatmul.bf16.gmra.mxu0 %v3110_v41  ;;  %1777 = vmatmul.bf16.gmra.mxu2 %v3238_v42 }
 0x172   : > { %1866 = vmatmul.bf16.gmra.mxu1 %v3114_v43  ;;  %1946 = vmatmul.bf16.gmra.mxu3 %v3242_v44  ;;  %v3149_v43 = vld [vmem:[%s4229_s9 + $0x90] sm:$0xf]  ;;  %v3421_v44 = vld [vmem:[%s4229_s9 + $0x94] sm:$0xf0] }
 0x181   : > { %1702 = vmatmul.bf16.gmra.mxu0 %v3118_v53  ;;  %1782 = vmatmul.bf16.gmra.mxu2 %v3246_v54  ;;  %v1126_v53 = vld [vmem:[#allocation2 + $0x1d0] sm:$0xff] }
 0x182   : > { %1871 = vmatmul.bf16.gmra.mxu1 %v3122_v55  ;;  %1951 = vmatmul.bf16.gmra.mxu3 %v3250_v56  ;;  %v3150_v55 = vor.u32 %v3421_v44, %v3149_v43  ;;  %v3278_v56 = vor.u32 %v3453_v47, %v3277_v45  ;;  %v3165_v43 = vld [vmem:[%s4229_s9 + $0xb0] sm:$0xf]  ;;  %v3425_v44 = vld [vmem:[%s4229_s9 + $0xb4] sm:$0xf0] }
 0x183   : > { %v3293_v45 = vld [vmem:[%s4229_s9 + $0x1b0] sm:$0xf]  ;;  %v3457_v47 = vld [vmem:[%s4229_s9 + $0x1b4] sm:$0xf0] }
 0x191   : > { %1707 = vmatmul.bf16.gmra.mxu0 %v3126_v1  ;;  %1787 = vmatmul.bf16.gmra.mxu2 %v3254_v2 }
 0x192   : > { %1876 = vmatmul.bf16.gmra.mxu1 %v3130_v3  ;;  %1956 = vmatmul.bf16.gmra.mxu3 %v3258_v4  ;;  %v1127_v3 = vld [vmem:[#allocation2 + $0x100] sm:$0xff] }
 0x1a1   : > { %1712 = vmatmul.bf16.gmra.mxu0 %v3134_v13  ;;  %1792 = vmatmul.bf16.gmra.mxu2 %v3262_v14  ;;  %v3285_v13 = vld [vmem:[%s4229_s9 + $0x1a0] sm:$0xf] }
 0x1a2   : > { %1881 = vmatmul.bf16.gmra.mxu1 %v3138_v15  ;;  %1961 = vmatmul.bf16.gmra.mxu3 %v3266_v16  ;;  %v3455_v15 = vld [vmem:[%s4229_s9 + $0x1a4] sm:$0xf0]  ;;  %v3422_v16 = vld [vmem:[%s4229_s9 + $0xa4] sm:$0xf] }
 0x1a3   : > { %v3286_v24 = vor.u32 %v3455_v15, %v3285_v13  ;;  %v3301_v13 = vld [vmem:[%s4229_s9 + $0x1c0] sm:$0xf]  ;;  %v3459_v15 = vld [vmem:[%s4229_s9 + $0x1c4] sm:$0xf0] }
 0x1ae   : > { %v1678_v27 = vpop.f32.mrf.mxu0 }
 0x1af   : > { %v1847_v31 = vpop.f32.mrf.mxu1 }
 0x1b0   : > { %v1848_v32 = vadd.f32 %v1847_v31, %v1678_v27  ;;  %v3162_v27 = vor.u32 %v3422_v16, %v3159_v17  ;;  %v3426_v16 = vld [vmem:[%s4229_s9 + $0xc4] sm:$0xf]  ;;  %v3175_v17 = vld [vmem:[%s4229_s9 + $0xc8] sm:$0xf0] }
 0x1b1   : > { %1717 = vmatmul.bf16.gmra.mxu0 %v3142_v25  ;;  %1797 = vmatmul.bf16.gmra.mxu2 %v3270_v26 }
 0x1b2   : > { %v2007_v33 = vadd.f32 %v1848_v32, %v1093_v30  ;;  %1886 = vmatmul.bf16.gmra.mxu1 %v3146_v28  ;;  %1966 = vmatmul.bf16.gmra.mxu3 %v3274_v29  ;;  %v3290_v28 = vor.u32 %v3454_v18, %v3287_v19  ;;  %v1097_v29 = vld [vmem:[#allocation2 + $0x50] sm:$0xff]  ;;  %v3458_v18 = vld [vmem:[%s4229_s9 + $0x1c4] sm:$0xf]  ;;  %v3303_v19 = vld [vmem:[%s4229_s9 + $0x1c8] sm:$0xf0] }
 0x1b4   : > { %2071 = vst [vmem:[#allocation2 + $0xb0] sm:$0xff] %v2007_v33  ;;  %v1758_v34 = vpop.f32.mrf.mxu2 }
 0x1b5   : > { %v1927_v36 = vpop.f32.mrf.mxu3 }
 0x1b6   : > { %v1928_v37 = vadd.f32 %v1927_v36, %v1758_v34  ;;  %v1680_v38 = vpop.f32.mrf.mxu0 }
 0x1b7   : > { %v1849_v40 = vpop.f32.mrf.mxu1 }
 0x1b8   : > { %v2039_v41 = vadd.f32 %v1928_v37, %v1125_v35  ;;  %v1850_v42 = vadd.f32 %v1849_v40, %v1680_v38  ;;  %v1129_v35 = vld [vmem:[#allocation2 + $0x40] sm:$0xff] }
 0x1ba   : > { %2103 = vst [vmem:[#allocation2 + $0x148] sm:$0xff] %v2039_v41  ;;  %v2008_v46 = vadd.f32 %v1850_v42, %v1094_v39  ;;  %v1098_v39 = vld [vmem:[#allocation2 + $0x168] sm:$0xff] }
 0x1bc   : > { %2072 = vst [vmem:[#allocation2 + $0x1b0] sm:$0xff] %v2008_v46  ;;  %v1760_v52 = vpop.f32.mrf.mxu2 }
 0x1bd   : > { %v1929_v54 = vpop.f32.mrf.mxu3 }
 0x1be   : > { %v1930_v57 = vadd.f32 %v1929_v54, %v1760_v52  ;;  %v1683_v58 = vpop.f32.mrf.mxu0 }
 0x1bf   : > { %v1852_v62 = vpop.f32.mrf.mxu1 }
 0x1c0   : > { %v2040_v63 = vadd.f32 %v1930_v57, %v1126_v53  ;;  %v1853_v0 = vadd.f32 %v1852_v62, %v1683_v58  ;;  %v1130_v53 = vld [vmem:[#allocation2 + $0x1f8] sm:$0xff] }
 0x1c1   : > { %1722 = vmatmul.bf16.gmra.mxu0 %v3150_v55  ;;  %1802 = vmatmul.bf16.gmra.mxu2 %v3278_v56  ;;  %v3166_v55 = vor.u32 %v3425_v44, %v3165_v43  ;;  %v3294_v56 = vor.u32 %v3457_v47, %v3293_v45  ;;  %v3181_v43 = vld [vmem:[%s4229_s9 + $0xd0] sm:$0xf]  ;;  %v3429_v44 = vld [vmem:[%s4229_s9 + $0xd4] sm:$0xf0] }
 0x1c2   : > { %2104 = vst [vmem:[#allocation2 + $0x1d0] sm:$0xff] %v2040_v63  ;;  %v2009_v1 = vadd.f32 %v1853_v0, %v1095_v61  ;;  %1891 = vmatmul.bf16.gmra.mxu1 %v3154_v59  ;;  %1971 = vmatmul.bf16.gmra.mxu3 %v3282_v60  ;;  %v3170_v59 = vor.u32 %v3424_v48, %v3167_v49  ;;  %v1099_v61 = vld [vmem:[#allocation2 + $0x130] sm:$0xff]  ;;  %v3461_v47 = vld [vmem:[%s4229_s9 + $0x1d4] sm:$0xf0]  ;;  %v3183_v49 = vld [vmem:[%s4229_s9 + $0xd8] sm:$0xf0] }
 0x1c3   : > { %v3298_v60 = vor.u32 %v3456_v50, %v3295_v51  ;;  %v3309_v45 = vld [vmem:[%s4229_s9 + $0x1d0] sm:$0xf]  ;;  %v3428_v48 = vld [vmem:[%s4229_s9 + $0xd4] sm:$0xf]  ;;  %v3311_v51 = vld [vmem:[%s4229_s9 + $0x1d8] sm:$0xf0] }
 0x1c4   : > { %2073 = vst [vmem:[#allocation2 + $0xd8] sm:$0xff] %v2009_v1  ;;  %v1763_v2 = vpop.f32.mrf.mxu2  ;;  %v3460_v50 = vld [vmem:[%s4229_s9 + $0x1d4] sm:$0xf] }
 0x1c5   : > { %v1932_v4 = vpop.f32.mrf.mxu3 }
 0x1c6   : > { %v1933_v5 = vadd.f32 %v1932_v4, %v1763_v2  ;;  %v1685_v6 = vpop.f32.mrf.mxu0 }
 0x1c7   : > { %v1854_v8 = vpop.f32.mrf.mxu1 }
 0x1c8   : > { %v2041_v9 = vadd.f32 %v1933_v5, %v1127_v3  ;;  %v1855_v10 = vadd.f32 %v1854_v8, %v1685_v6  ;;  %v1131_v3 = vld [vmem:[#allocation2 + $0x20] sm:$0xff] }
 0x1ca   : > { %2105 = vst [vmem:[#allocation2 + $0x100] sm:$0xff] %v2041_v9  ;;  %v2010_v14 = vadd.f32 %v1855_v10, %v1096_v7  ;;  %v1100_v7 = vld [vmem:[#allocation2 + $0x48] sm:$0xff] }
 0x1cc   : > { %2074 = vst [vmem:[#allocation2 + $0x18] sm:$0xff] %v2010_v14  ;;  %v1765_v20 = vpop.f32.mrf.mxu2 }
 0x1cd   : > { %v1934_v22 = vpop.f32.mrf.mxu3 }
 0x1ce   : > { %v1935_v25 = vadd.f32 %v1934_v22, %v1765_v20  ;;  %v1688_v26 = vpop.f32.mrf.mxu0 }
 0x1cf   : > { %v1857_v30 = vpop.f32.mrf.mxu1 }
 0x1d0   : > { %v2042_v31 = vadd.f32 %v1935_v25, %v1128_v21  ;;  %v1858_v32 = vadd.f32 %v1857_v30, %v1688_v26  ;;  %v1132_v21 = vld [vmem:[#allocation2 + $0x128] sm:$0xff] }
 0x1d1   : > { %1727 = vmatmul.bf16.gmra.mxu0 %v3158_v23  ;;  %1807 = vmatmul.bf16.gmra.mxu2 %v3286_v24  ;;  %v3174_v23 = vor.u32 %v3427_v12, %v3173_v11  ;;  %v3302_v24 = vor.u32 %v3459_v15, %v3301_v13  ;;  %v3189_v11 = vld [vmem:[%s4229_s9 + $0xe0] sm:$0xf]  ;;  %v3431_v12 = vld [vmem:[%s4229_s9 + $0xe4] sm:$0xf0] }
 0x1d2   : > { %2106 = vst [vmem:[#allocation2 + $0xc8] sm:$0xff] %v2042_v31  ;;  %v2011_v33 = vadd.f32 %v1858_v32, %v1097_v29  ;;  %1896 = vmatmul.bf16.gmra.mxu1 %v3162_v27  ;;  %1976 = vmatmul.bf16.gmra.mxu3 %v3290_v28  ;;  %v3178_v27 = vor.u32 %v3426_v16, %v3175_v17  ;;  %v1101_v29 = vld [vmem:[#allocation2 + $0x180] sm:$0xff]  ;;  %v3463_v15 = vld [vmem:[%s4229_s9 + $0x1e4] sm:$0xf0]  ;;  %v3191_v17 = vld [vmem:[%s4229_s9 + $0xe8] sm:$0xf0] }
 0x1d3   : > { %v3306_v28 = vor.u32 %v3458_v18, %v3303_v19  ;;  %v3317_v13 = vld [vmem:[%s4229_s9 + $0x1e0] sm:$0xf]  ;;  %v3430_v16 = vld [vmem:[%s4229_s9 + $0xe4] sm:$0xf]  ;;  %v3319_v19 = vld [vmem:[%s4229_s9 + $0x1e8] sm:$0xf0] }
 0x1d4   : > { %2075 = vst [vmem:[#allocation2 + $0x50] sm:$0xff] %v2011_v33  ;;  %v1768_v34 = vpop.f32.mrf.mxu2  ;;  %v3462_v18 = vld [vmem:[%s4229_s9 + $0x1e4] sm:$0xf] }
 0x1d5   : > { %v1937_v36 = vpop.f32.mrf.mxu3 }
 0x1d6   : > { %v1938_v37 = vadd.f32 %v1937_v36, %v1768_v34  ;;  %v1690_v38 = vpop.f32.mrf.mxu0 }
 0x1d7   : > { %v1859_v40 = vpop.f32.mrf.mxu1 }
 0x1d8   : > { %v2043_v41 = vadd.f32 %v1938_v37, %v1129_v35  ;;  %v1860_v42 = vadd.f32 %v1859_v40, %v1690_v38  ;;  %v1133_v35 = vld [vmem:[#allocation2 + $0x1a0] sm:$0xff] }
 0x1da   : > { %2107 = vst [vmem:[#allocation2 + $0x40] sm:$0xff] %v2043_v41  ;;  %v2012_v46 = vadd.f32 %v1860_v42, %v1098_v39  ;;  %v1102_v39 = vld [vmem:[#allocation2 + $0x110] sm:$0xff] }
 0x1dc   : > { %2076 = vst [vmem:[#allocation2 + $0x168] sm:$0xff] %v2012_v46  ;;  %v1770_v52 = vpop.f32.mrf.mxu2 }
 0x1dd   : > { %v1939_v54 = vpop.f32.mrf.mxu3 }
 0x1de   : > { %v1940_v57 = vadd.f32 %v1939_v54, %v1770_v52  ;;  %v1693_v58 = vpop.f32.mrf.mxu0 }
 0x1df   : > { %v1862_v62 = vpop.f32.mrf.mxu1 }
 0x1e0   : > { %v2044_v63 = vadd.f32 %v1940_v57, %v1130_v53  ;;  %v1863_v0 = vadd.f32 %v1862_v62, %v1693_v58  ;;  %v1134_v53 = vld [vmem:[#allocation2 + $0x1f0] sm:$0xff] }
 0x1e1   : > { %1732 = vmatmul.bf16.gmra.mxu0 %v3166_v55  ;;  %1812 = vmatmul.bf16.gmra.mxu2 %v3294_v56  ;;  %v3182_v55 = vor.u32 %v3429_v44, %v3181_v43  ;;  %v3310_v56 = vor.u32 %v3461_v47, %v3309_v45  ;;  %v3197_v43 = vld [vmem:[%s4229_s9 + $0xf0] sm:$0xf]  ;;  %v3433_v44 = vld [vmem:[%s4229_s9 + $0xf4] sm:$0xf0] }
 0x1e2   : > { %2108 = vst [vmem:[#allocation2 + $0x1f8] sm:$0xff] %v2044_v63  ;;  %v2013_v1 = vadd.f32 %v1863_v0, %v1099_v61  ;;  %1901 = vmatmul.bf16.gmra.mxu1 %v3170_v59  ;;  %1981 = vmatmul.bf16.gmra.mxu3 %v3298_v60  ;;  %v3186_v59 = vor.u32 %v3428_v48, %v3183_v49  ;;  %v1103_v61 = vld [vmem:[#allocation2 + $0x118] sm:$0xff]  ;;  %v3325_v45 = vld [vmem:[%s4229_s9 + $0x1f0] sm:$0xf]  ;;  %v3432_v48 = vld [vmem:[%s4229_s9 + $0xf4] sm:$0xf] }
 0x1e3   : > { %v3314_v60 = vor.u32 %v3460_v50, %v3311_v51  ;;  %v3465_v47 = vld [vmem:[%s4229_s9 + $0x1f4] sm:$0xf0]  ;;  %v3199_v49 = vld [vmem:[%s4229_s9 + $0xf8] sm:$0xf0]  ;;  %v3464_v50 = vld [vmem:[%s4229_s9 + $0x1f4] sm:$0xf] }
 0x1e4   : > { %2077 = vst [vmem:[#allocation2 + $0x130] sm:$0xff] %v2013_v1  ;;  %v1773_v2 = vpop.f32.mrf.mxu2  ;;  %v3327_v51 = vld [vmem:[%s4229_s9 + $0x1f8] sm:$0xf0] }
 0x1e5   : > { %v1942_v4 = vpop.f32.mrf.mxu3 }
 0x1e6   : > { %v1943_v5 = vadd.f32 %v1942_v4, %v1773_v2  ;;  %v1695_v6 = vpop.f32.mrf.mxu0 }
 0x1e7   : > { %v1864_v8 = vpop.f32.mrf.mxu1 }
 0x1e8   : > { %v2045_v9 = vadd.f32 %v1943_v5, %v1131_v3  ;;  %v1865_v10 = vadd.f32 %v1864_v8, %v1695_v6  ;;  %v1135_v3 = vld [vmem:[#allocation2 + $0xe8] sm:$0xff] }
 0x1ea   : > { %2109 = vst [vmem:[#allocation2 + $0x20] sm:$0xff] %v2045_v9  ;;  %v2014_v14 = vadd.f32 %v1865_v10, %v1100_v7  ;;  %v1104_v7 = vld [vmem:[#allocation2 + $0x98] sm:$0xff] }
 0x1ec   : > { %2078 = vst [vmem:[#allocation2 + $0x48] sm:$0xff] %v2014_v14  ;;  %v1775_v20 = vpop.f32.mrf.mxu2 }
 0x1ed   : > { %v1944_v22 = vpop.f32.mrf.mxu3 }
 0x1ee   : > { %v1945_v25 = vadd.f32 %v1944_v22, %v1775_v20  ;;  %v1698_v26 = vpop.f32.mrf.mxu0 }
 0x1ef   : > { %v1867_v30 = vpop.f32.mrf.mxu1 }
 0x1f0   : > { %v2046_v31 = vadd.f32 %v1945_v25, %v1132_v21  ;;  %v1868_v32 = vadd.f32 %v1867_v30, %v1698_v26  ;;  %v1136_v21 = vld [vmem:[#allocation2 + $0x78] sm:$0xff] }
 0x1f1   : > { %1737 = vmatmul.bf16.gmra.mxu0 %v3174_v23  ;;  %1817 = vmatmul.bf16.gmra.mxu2 %v3302_v24  ;;  %v3190_v23 = vor.u32 %v3431_v12, %v3189_v11  ;;  %v3318_v24 = vor.u32 %v3463_v15, %v3317_v13  ;;  %v1140_v13 = vld [vmem:[#allocation2 + $0xd0] sm:$0xff] }
 0x1f2   : > { %2110 = vst [vmem:[#allocation2 + $0x128] sm:$0xff] %v2046_v31  ;;  %v2015_v33 = vadd.f32 %v1868_v32, %v1101_v29  ;;  %1906 = vmatmul.bf16.gmra.mxu1 %v3178_v27  ;;  %1986 = vmatmul.bf16.gmra.mxu3 %v3306_v28  ;;  %v3194_v27 = vor.u32 %v3430_v16, %v3191_v17  ;;  %v1105_v29 = vld [vmem:[#allocation2 + $0x120] sm:$0xff] }
 0x1f3   : > { %v3322_v28 = vor.u32 %v3462_v18, %v3319_v19  ;;  %v1109_v17 = vld [vmem:[#allocation2 + $0xe0] sm:$0xff] }
 0x1f4   : > { %2079 = vst [vmem:[#allocation2 + $0x180] sm:$0xff] %v2015_v33  ;;  %v1778_v34 = vpop.f32.mrf.mxu2 }
 0x1f5   : > { %v1947_v36 = vpop.f32.mrf.mxu3 }
 0x1f6   : > { %v1948_v37 = vadd.f32 %v1947_v36, %v1778_v34  ;;  %v1700_v38 = vpop.f32.mrf.mxu0 }
 0x1f7   : > { %v1869_v40 = vpop.f32.mrf.mxu1 }
 0x1f8   : > { %v2047_v41 = vadd.f32 %v1948_v37, %v1133_v35  ;;  %v1870_v42 = vadd.f32 %v1869_v40, %v1700_v38  ;;  %v1137_v35 = vld [vmem:[#allocation2 + $0x70] sm:$0xff] }
 0x1fa   : > { %2111 = vst [vmem:[#allocation2 + $0x1a0] sm:$0xff] %v2047_v41  ;;  %v2016_v46 = vadd.f32 %v1870_v42, %v1102_v39  ;;  %v1106_v39 = vld [vmem:[#allocation2 + $0x150] sm:$0xff] }
 0x1fc   : > { %2080 = vst [vmem:[#allocation2 + $0x110] sm:$0xff] %v2016_v46  ;;  %v1780_v52 = vpop.f32.mrf.mxu2 }
 0x1fd   : > { %v1949_v54 = vpop.f32.mrf.mxu3 }
 0x1fe   : > { %v1950_v57 = vadd.f32 %v1949_v54, %v1780_v52  ;;  %v1703_v58 = vpop.f32.mrf.mxu0 }
 0x1ff   : > { %v1872_v62 = vpop.f32.mrf.mxu1 }
 0x200   : > { %v2048_v63 = vadd.f32 %v1950_v57, %v1134_v53  ;;  %v1873_v0 = vadd.f32 %v1872_v62, %v1703_v58  ;;  %v1138_v53 = vld [vmem:[#allocation2 + $0x90] sm:$0xff] }
 0x201   : > { %1742 = vmatmul.bf16.gmra.mxu0 %v3182_v55  ;;  %1822 = vmatmul.bf16.gmra.mxu2 %v3310_v56  ;;  %v3198_v55 = vor.u32 %v3433_v44, %v3197_v43  ;;  %v3326_v56 = vor.u32 %v3465_v47, %v3325_v45  ;;  %v1143_v43 = vld [vmem:[#allocation2 + $0xa8] sm:$0xff]  ;;  %v1112_v47 = vld [vmem:[#allocation2 + $0x140] sm:$0xff] }
 0x202   : > { %2112 = vst [vmem:[#allocation2 + $0x1f0] sm:$0xff] %v2048_v63  ;;  %v2017_v1 = vadd.f32 %v1873_v0, %v1103_v61  ;;  %1911 = vmatmul.bf16.gmra.mxu1 %v3186_v59  ;;  %1991 = vmatmul.bf16.gmra.mxu3 %v3314_v60  ;;  %v3202_v59 = vor.u32 %v3432_v48, %v3199_v49  ;;  %v1107_v61 = vld [vmem:[#allocation2 + $0x108] sm:$0xff] }
 0x203   : > { %v3330_v60 = vor.u32 %v3464_v50, %v3327_v51 }
 0x204   : > { %2081 = vst [vmem:[#allocation2 + $0x118] sm:$0xff] %v2017_v1  ;;  %v1783_v2 = vpop.f32.mrf.mxu2 }
 0x205   : > { %v1952_v4 = vpop.f32.mrf.mxu3 }
 0x206   : > { %v1953_v5 = vadd.f32 %v1952_v4, %v1783_v2  ;;  %v1705_v6 = vpop.f32.mrf.mxu0 }
 0x207   : > { %v1874_v8 = vpop.f32.mrf.mxu1 }
 0x208   : > { %v2049_v9 = vadd.f32 %v1953_v5, %v1135_v3  ;;  %v1875_v10 = vadd.f32 %v1874_v8, %v1705_v6  ;;  %v1139_v3 = vld [vmem:[#allocation2 + $0x1d8] sm:$0xff] }
 0x20a   : > { %2113 = vst [vmem:[#allocation2 + $0xe8] sm:$0xff] %v2049_v9  ;;  %v2018_v14 = vadd.f32 %v1875_v10, %v1104_v7  ;;  %v1108_v7 = vld [vmem:[#allocation2 + $0x60] sm:$0xff] }
 0x20c   : > { %2082 = vst [vmem:[#allocation2 + $0x98] sm:$0xff] %v2018_v14  ;;  %v1785_v20 = vpop.f32.mrf.mxu2 }
 0x20d   : > { %v1954_v22 = vpop.f32.mrf.mxu3 }
 0x20e   : > { %v1955_v25 = vadd.f32 %v1954_v22, %v1785_v20  ;;  %v1708_v26 = vpop.f32.mrf.mxu0 }
 0x20f   : > { %v1877_v30 = vpop.f32.mrf.mxu1 }
 0x210   : > { %v2050_v31 = vadd.f32 %v1955_v25, %v1136_v21  ;;  %v1878_v32 = vadd.f32 %v1877_v30, %v1708_v26 }
 0x211   : > { %1747 = vmatmul.bf16.gmra.mxu0 %v3190_v23  ;;  %1827 = vmatmul.bf16.gmra.mxu2 %v3318_v24  ;;  %v1141_v23 = vld [vmem:[#allocation2 + $0xb8] sm:$0xff] }
 0x212   : > { %2114 = vst [vmem:[#allocation2 + $0x78] sm:$0xff] %v2050_v31  ;;  %v2019_v33 = vadd.f32 %v1878_v32, %v1105_v29  ;;  %1916 = vmatmul.bf16.gmra.mxu1 %v3194_v27  ;;  %1996 = vmatmul.bf16.gmra.mxu3 %v3322_v28  ;;  %v1110_v27 = vld [vmem:[#allocation2 + $0x188] sm:$0xff] }
 0x214   : > { %2083 = vst [vmem:[#allocation2 + $0x120] sm:$0xff] %v2019_v33  ;;  %v1788_v34 = vpop.f32.mrf.mxu2  ;;  %v1142_v33 = vld [vmem:[#allocation2 + $0x88] sm:$0xff] }
 0x215   : > { %v1957_v36 = vpop.f32.mrf.mxu3 }
 0x216   : > { %v1958_v37 = vadd.f32 %v1957_v36, %v1788_v34  ;;  %v1710_v38 = vpop.f32.mrf.mxu0 }
 0x217   : > { %v1879_v40 = vpop.f32.mrf.mxu1 }
 0x218   : > { %v2051_v41 = vadd.f32 %v1958_v37, %v1137_v35  ;;  %v1880_v42 = vadd.f32 %v1879_v40, %v1710_v38  ;;  %v1111_v37 = vld [vmem:[#allocation2 + $0x138] sm:$0xff] }
 0x21a   : > { %2115 = vst [vmem:[#allocation2 + $0x70] sm:$0xff] %v2051_v41  ;;  %v2020_v46 = vadd.f32 %v1880_v42, %v1106_v39 }
 0x21c   : > { %2084 = vst [vmem:[#allocation2 + $0x150] sm:$0xff] %v2020_v46  ;;  %v1790_v52 = vpop.f32.mrf.mxu2 }
 0x21d   : > { %v1959_v54 = vpop.f32.mrf.mxu3 }
 0x21e   : > { %v1960_v57 = vadd.f32 %v1959_v54, %v1790_v52  ;;  %v1713_v58 = vpop.f32.mrf.mxu0 }
 0x21f   : > { %v1882_v62 = vpop.f32.mrf.mxu1 }
 0x220   : > { %v2052_v63 = vadd.f32 %v1960_v57, %v1138_v53  ;;  %v1883_v0 = vadd.f32 %v1882_v62, %v1713_v58  ;;  %v1144_v53 = vld [vmem:[#allocation2 + $0x1c8] sm:$0xff]  ;;  %v1113_v57 = vld [vmem:[#allocation2 + $0x80] sm:$0xff] }
 0x221   : > { %1752 = vmatmul.bf16.gmra.mxu0 %v3198_v55  ;;  %1832 = vmatmul.bf16.gmra.mxu2 %v3326_v56 }
 0x222   : > { %2116 = vst [vmem:[#allocation2 + $0x90] sm:$0xff] %v2052_v63  ;;  %v2021_v1 = vadd.f32 %v1883_v0, %v1107_v61  ;;  %1921 = vmatmul.bf16.gmra.mxu1 %v3202_v59  ;;  %2001 = vmatmul.bf16.gmra.mxu3 %v3330_v60  ;;  %v1145_v63 = vld [vmem:[#allocation2 + $0x170] sm:$0xff] }
 0x224   : > { %2085 = vst [vmem:[#allocation2 + $0x108] sm:$0xff] %v2021_v1  ;;  %v1793_v2 = vpop.f32.mrf.mxu2 }
 0x225   : > { %v1962_v4 = vpop.f32.mrf.mxu3 }
 0x226   : > { %v1963_v5 = vadd.f32 %v1962_v4, %v1793_v2  ;;  %v1715_v6 = vpop.f32.mrf.mxu0 }
 0x227   : > { %v1884_v8 = vpop.f32.mrf.mxu1 }
 0x228   : > { %v2053_v9 = vadd.f32 %v1963_v5, %v1139_v3  ;;  %v1885_v10 = vadd.f32 %v1884_v8, %v1715_v6  ;;  %v1114_v3 = vld [vmem:[#allocation2 + $0x1a8] sm:$0xff] }
 0x22a   : > { %2117 = vst [vmem:[#allocation2 + $0x1d8] sm:$0xff] %v2053_v9  ;;  %v2022_v11 = vadd.f32 %v1885_v10, %v1108_v7  ;;  %v1146_v9 = vld [vmem:[#allocation2 + $0x178] sm:$0xff] }
 0x22c   : > { %2086 = vst [vmem:[#allocation2 + $0x60] sm:$0xff] %v2022_v11  ;;  %v1795_v12 = vpop.f32.mrf.mxu2 }
 0x22d   : > { %v1964_v14 = vpop.f32.mrf.mxu3 }
 0x22e   : > { %v1965_v15 = vadd.f32 %v1964_v14, %v1795_v12  ;;  %v1718_v16 = vpop.f32.mrf.mxu0 }
 0x22f   : > { %v1887_v18 = vpop.f32.mrf.mxu1 }
 0x230   : > { %v2054_v19 = vadd.f32 %v1965_v15, %v1140_v13  ;;  %v1888_v20 = vadd.f32 %v1887_v18, %v1718_v16  ;;  %v1115_v13 = vld [vmem:[#allocation2 + $0x1b8] sm:$0xff] }
 0x232   : > { %2118 = vst [vmem:[#allocation2 + $0xd0] sm:$0xff] %v2054_v19  ;;  %v2023_v21 = vadd.f32 %v1888_v20, %v1109_v17  ;;  %v1147_v19 = vld [vmem:[#allocation2 + $0x68] sm:$0xff] }
 0x234   : > { %2087 = vst [vmem:[#allocation2 + $0xe0] sm:$0xff] %v2023_v21  ;;  %v1798_v22 = vpop.f32.mrf.mxu2 }
 0x235   : > { %v1967_v24 = vpop.f32.mrf.mxu3 }
 0x236   : > { %v1968_v25 = vadd.f32 %v1967_v24, %v1798_v22  ;;  %v1720_v26 = vpop.f32.mrf.mxu0 }
 0x237   : > { %v1889_v28 = vpop.f32.mrf.mxu1 }
 0x238   : > { %v2055_v29 = vadd.f32 %v1968_v25, %v1141_v23  ;;  %v1890_v30 = vadd.f32 %v1889_v28, %v1720_v26  ;;  %v1116_v23 = vld [vmem:[#allocation2 + $0x28] sm:$0xff] }
 0x23a   : > { %2119 = vst [vmem:[#allocation2 + $0xb8] sm:$0xff] %v2055_v29  ;;  %v2024_v31 = vadd.f32 %v1890_v30, %v1110_v27  ;;  %v1148_v29 = vld [vmem:[#allocation2 + $0x190] sm:$0xff] }
 0x23c   : > { %2088 = vst [vmem:[#allocation2 + $0x188] sm:$0xff] %v2024_v31  ;;  %v1800_v32 = vpop.f32.mrf.mxu2 }
 0x23d   : > { %v1969_v34 = vpop.f32.mrf.mxu3 }
 0x23e   : > { %v1970_v35 = vadd.f32 %v1969_v34, %v1800_v32  ;;  %v1723_v36 = vpop.f32.mrf.mxu0 }
 0x23f   : > { %v1892_v38 = vpop.f32.mrf.mxu1 }
 0x240   : > { %v2056_v39 = vadd.f32 %v1970_v35, %v1142_v33  ;;  %v1893_v40 = vadd.f32 %v1892_v38, %v1723_v36  ;;  %v1117_v33 = vld [vmem:[#allocation2 + $0x1e8] sm:$0xff] }
 0x242   : > { %2120 = vst [vmem:[#allocation2 + $0x88] sm:$0xff] %v2056_v39  ;;  %v2025_v41 = vadd.f32 %v1893_v40, %v1111_v37  ;;  %v1149_v39 = vld [vmem:[#allocation2 + $0x198] sm:$0xff] }
 0x244   : > { %2089 = vst [vmem:[#allocation2 + $0x138] sm:$0xff] %v2025_v41  ;;  %v1803_v42 = vpop.f32.mrf.mxu2 }
 0x245   : > { %v1972_v44 = vpop.f32.mrf.mxu3 }
 0x246   : > { %v1973_v45 = vadd.f32 %v1972_v44, %v1803_v42  ;;  %v1725_v46 = vpop.f32.mrf.mxu0 }
 0x247   : > { %v1894_v48 = vpop.f32.mrf.mxu1 }
 0x248   : > { %v2057_v49 = vadd.f32 %v1973_v45, %v1143_v43  ;;  %v1895_v50 = vadd.f32 %v1894_v48, %v1725_v46  ;;  %v1118_v43 = vld [vmem:[#allocation2 + $0xf8] sm:$0xff] }
 0x24a   : > { %2121 = vst [vmem:[#allocation2 + $0xa8] sm:$0xff] %v2057_v49  ;;  %v2026_v51 = vadd.f32 %v1895_v50, %v1112_v47  ;;  %v1150_v49 = vld [vmem:[#allocation2 + $0x38] sm:$0xff] }
 0x24c   : > { %2090 = vst [vmem:[#allocation2 + $0x140] sm:$0xff] %v2026_v51  ;;  %v1805_v52 = vpop.f32.mrf.mxu2 }
 0x24d   : > { %v1974_v54 = vpop.f32.mrf.mxu3 }
 0x24e   : > { %v1975_v55 = vadd.f32 %v1974_v54, %v1805_v52  ;;  %v1728_v56 = vpop.f32.mrf.mxu0 }
 0x24f   : > { %v1897_v58 = vpop.f32.mrf.mxu1 }
 0x250   : > { %v2058_v59 = vadd.f32 %v1975_v55, %v1144_v53  ;;  %v1898_v60 = vadd.f32 %v1897_v58, %v1728_v56  ;;  %v1119_v53 = vld [vmem:[#allocation2 + $0x160] sm:$0xff] }
 0x252   : > { %2122 = vst [vmem:[#allocation2 + $0x1c8] sm:$0xff] %v2058_v59  ;;  %v2027_v61 = vadd.f32 %v1898_v60, %v1113_v57  ;;  %v1151_v59 = vld [vmem:[#allocation2 + $0xc0] sm:$0xff] }
 0x254   : > { %2091 = vst [vmem:[#allocation2 + $0x80] sm:$0xff] %v2027_v61  ;;  %v1808_v62 = vpop.f32.mrf.mxu2 }
 0x255   : > { %v1977_v0 = vpop.f32.mrf.mxu3 }
 0x256   : > { %v1978_v1 = vadd.f32 %v1977_v0, %v1808_v62  ;;  %v1730_v2 = vpop.f32.mrf.mxu0 }
 0x257   : > { %v1899_v4 = vpop.f32.mrf.mxu1 }
 0x258   : > { %v2059_v5 = vadd.f32 %v1978_v1, %v1145_v63  ;;  %v1900_v6 = vadd.f32 %v1899_v4, %v1730_v2  ;;  %v1120_v63 = vld [vmem:[#allocation2 + $0x30] sm:$0xff] }
 0x25a   : > { %2123 = vst [vmem:[#allocation2 + $0x170] sm:$0xff] %v2059_v5  ;;  %v2028_v7 = vadd.f32 %v1900_v6, %v1114_v3  ;;  %v1152_v5 = vld [vmem:[#allocation2 + $0x1c0] sm:$0xff] }
 0x25c   : > { %2092 = vst [vmem:[#allocation2 + $0x1a8] sm:$0xff] %v2028_v7  ;;  %v1810_v8 = vpop.f32.mrf.mxu2 }
 0x25d   : > { %v1979_v10 = vpop.f32.mrf.mxu3 }
 0x25e   : > { %v1980_v11 = vadd.f32 %v1979_v10, %v1810_v8  ;;  %v1733_v12 = vpop.f32.mrf.mxu0 }
 0x25f   : > { %v1902_v14 = vpop.f32.mrf.mxu1 }
 0x260   : > { %v2060_v15 = vadd.f32 %v1980_v11, %v1146_v9  ;;  %v1903_v16 = vadd.f32 %v1902_v14, %v1733_v12  ;;  %v1121_v9 = vld [vmem:[#allocation2 + $0x1e0] sm:$0xff] }
 0x262   : > { %2124 = vst [vmem:[#allocation2 + $0x178] sm:$0xff] %v2060_v15  ;;  %v2029_v17 = vadd.f32 %v1903_v16, %v1115_v13  ;;  %v1153_v15 = vld [vmem:[#allocation2 + $0x158] sm:$0xff] }
 0x264   : > { %2093 = vst [vmem:[#allocation2 + $0x1b8] sm:$0xff] %v2029_v17  ;;  %v1813_v18 = vpop.f32.mrf.mxu2 }
 0x265   : > { %v1982_v20 = vpop.f32.mrf.mxu3 }
 0x266   : > { %v1983_v21 = vadd.f32 %v1982_v20, %v1813_v18  ;;  %v1735_v22 = vpop.f32.mrf.mxu0 }
 0x267   : > { %v1904_v24 = vpop.f32.mrf.mxu1 }
 0x268   : > { %v2061_v25 = vadd.f32 %v1983_v21, %v1147_v19  ;;  %v1905_v26 = vadd.f32 %v1904_v24, %v1735_v22  ;;  %v1122_v19 = vld [vmem:[#allocation2] sm:$0xff] }
 0x26a   : > { %2125 = vst [vmem:[#allocation2 + $0x68] sm:$0xff] %v2061_v25  ;;  %v2030_v27 = vadd.f32 %v1905_v26, %v1116_v23  ;;  %v1154_v25 = vld [vmem:[#allocation2 + $0x10] sm:$0xff] }
 0x26c   : > { %2094 = vst [vmem:[#allocation2 + $0x28] sm:$0xff] %v2030_v27  ;;  %v1815_v28 = vpop.f32.mrf.mxu2 }
 0x26d   : > { %v1984_v30 = vpop.f32.mrf.mxu3 }
 0x26e   : > { %v1985_v31 = vadd.f32 %v1984_v30, %v1815_v28  ;;  %v1738_v32 = vpop.f32.mrf.mxu0 }
 0x26f   : > { %v1907_v34 = vpop.f32.mrf.mxu1 }
 0x270   : > { %v2062_v35 = vadd.f32 %v1985_v31, %v1148_v29  ;;  %v1908_v36 = vadd.f32 %v1907_v34, %v1738_v32  ;;  %v1123_v29 = vld [vmem:[#allocation2 + $0xf0] sm:$0xff] }
 0x272   : > { %2126 = vst [vmem:[#allocation2 + $0x190] sm:$0xff] %v2062_v35  ;;  %v2031_v37 = vadd.f32 %v1908_v36, %v1117_v33  ;;  %v1155_v35 = vld [vmem:[#allocation2 + $0x58] sm:$0xff] }
 0x274   : > { %2095 = vst [vmem:[#allocation2 + $0x1e8] sm:$0xff] %v2031_v37  ;;  %v1818_v38 = vpop.f32.mrf.mxu2 }
 0x275   : > { %v1987_v40 = vpop.f32.mrf.mxu3 }
 0x276   : > { %v1988_v41 = vadd.f32 %v1987_v40, %v1818_v38  ;;  %v1740_v42 = vpop.f32.mrf.mxu0 }
 0x277   : > { %v1909_v44 = vpop.f32.mrf.mxu1 }
 0x278   : > { %v2063_v45 = vadd.f32 %v1988_v41, %v1149_v39  ;;  %v1910_v46 = vadd.f32 %v1909_v44, %v1740_v42  ;;  %v1124_v39 = vld [vmem:[#allocation2 + $0x8] sm:$0xff] }
 0x27a   : > { %2127 = vst [vmem:[#allocation2 + $0x198] sm:$0xff] %v2063_v45  ;;  %v2032_v47 = vadd.f32 %v1910_v46, %v1118_v43  ;;  %v1156_v45 = vld [vmem:[#allocation2 + $0xa0] sm:$0xff] }
 0x27c   : > { %2096 = vst [vmem:[#allocation2 + $0xf8] sm:$0xff] %v2032_v47  ;;  %v1820_v48 = vpop.f32.mrf.mxu2 }
 0x27d   : > { %v1989_v50 = vpop.f32.mrf.mxu3 }
 0x27e   : > { %v1990_v51 = vadd.f32 %v1989_v50, %v1820_v48  ;;  %v1743_v52 = vpop.f32.mrf.mxu0 }
 0x27f   : > { %v1912_v54 = vpop.f32.mrf.mxu1 }
 0x280   : > { %v2064_v55 = vadd.f32 %v1990_v51, %v1150_v49  ;;  %v1913_v56 = vadd.f32 %v1912_v54, %v1743_v52 }
 0x282   : > { %2128 = vst [vmem:[#allocation2 + $0x38] sm:$0xff] %v2064_v55  ;;  %v2033_v57 = vadd.f32 %v1913_v56, %v1119_v53 }
 0x284   : > { %2097 = vst [vmem:[#allocation2 + $0x160] sm:$0xff] %v2033_v57  ;;  %v1823_v58 = vpop.f32.mrf.mxu2 }
 0x285   : > { %v1992_v60 = vpop.f32.mrf.mxu3 }
 0x286   : > { %v1993_v61 = vadd.f32 %v1992_v60, %v1823_v58  ;;  %v1745_v62 = vpop.f32.mrf.mxu0 }
 0x287   : > { %v1914_v0 = vpop.f32.mrf.mxu1 }
 0x288   : > { %v2065_v1 = vadd.f32 %v1993_v61, %v1151_v59  ;;  %v1915_v2 = vadd.f32 %v1914_v0, %v1745_v62 }
 0x28a   : > { %2129 = vst [vmem:[#allocation2 + $0xc0] sm:$0xff] %v2065_v1  ;;  %v2034_v3 = vadd.f32 %v1915_v2, %v1120_v63 }
 0x28c   : > { %2098 = vst [vmem:[#allocation2 + $0x30] sm:$0xff] %v2034_v3  ;;  %v1825_v4 = vpop.f32.mrf.mxu2 }
 0x28d   : > { %v1994_v6 = vpop.f32.mrf.mxu3 }
 0x28e   : > { %v1995_v7 = vadd.f32 %v1994_v6, %v1825_v4  ;;  %v1748_v8 = vpop.f32.mrf.mxu0 }
 0x28f   : > { %v1917_v10 = vpop.f32.mrf.mxu1 }
 0x290   : > { %v2066_v11 = vadd.f32 %v1995_v7, %v1152_v5  ;;  %v1918_v12 = vadd.f32 %v1917_v10, %v1748_v8 }
 0x292   : > { %2130 = vst [vmem:[#allocation2 + $0x1c0] sm:$0xff] %v2066_v11  ;;  %v2035_v13 = vadd.f32 %v1918_v12, %v1121_v9 }
 0x294   : > { %2099 = vst [vmem:[#allocation2 + $0x1e0] sm:$0xff] %v2035_v13  ;;  %v1828_v14 = vpop.f32.mrf.mxu2 }
 0x295   : > { %v1997_v16 = vpop.f32.mrf.mxu3 }
 0x296   : > { %v1998_v17 = vadd.f32 %v1997_v16, %v1828_v14  ;;  %v1750_v18 = vpop.f32.mrf.mxu0 }
 0x297   : > { %v1919_v20 = vpop.f32.mrf.mxu1 }
 0x298   : > { %v2067_v21 = vadd.f32 %v1998_v17, %v1153_v15  ;;  %v1920_v22 = vadd.f32 %v1919_v20, %v1750_v18 }
 0x29a   : > { %2131 = vst [vmem:[#allocation2 + $0x158] sm:$0xff] %v2067_v21  ;;  %v2036_v23 = vadd.f32 %v1920_v22, %v1122_v19 }
 0x29c   : > { %2100 = vst [vmem:[#allocation2] sm:$0xff] %v2036_v23  ;;  %v1830_v24 = vpop.f32.mrf.mxu2 }
 0x29d   : > { %v1999_v26 = vpop.f32.mrf.mxu3 }
 0x29e   : > { %v2000_v27 = vadd.f32 %v1999_v26, %v1830_v24  ;;  %v1753_v28 = vpop.f32.mrf.mxu0 }
 0x29f   : > { %v1922_v30 = vpop.f32.mrf.mxu1 }
 0x2a0   : > { %v2068_v31 = vadd.f32 %v2000_v27, %v1154_v25  ;;  %v1923_v32 = vadd.f32 %v1922_v30, %v1753_v28 }
 0x2a2   : > { %2132 = vst [vmem:[#allocation2 + $0x10] sm:$0xff] %v2068_v31  ;;  %v2037_v33 = vadd.f32 %v1923_v32, %v1123_v29 }
 0x2a4   : > { %2101 = vst [vmem:[#allocation2 + $0xf0] sm:$0xff] %v2037_v33  ;;  %v1833_v34 = vpop.f32.mrf.mxu2 }
 0x2a5   : > { %v2002_v36 = vpop.f32.mrf.mxu3 }
 0x2a6   : > { %v2003_v37 = vadd.f32 %v2002_v36, %v1833_v34  ;;  %v1755_v38 = vpop.f32.mrf.mxu0 }
 0x2a7   : > { %v1924_v40 = vpop.f32.mrf.mxu1 }
 0x2a8   : > { %v2069_v41 = vadd.f32 %v2003_v37, %v1155_v35  ;;  %v1925_v42 = vadd.f32 %v1924_v40, %v1755_v38 }
 0x2aa   : > { %2133 = vst [vmem:[#allocation2 + $0x58] sm:$0xff] %v2069_v41  ;;  %v2038_v43 = vadd.f32 %v1925_v42, %v1124_v39 }
 0x2ac   : > { %2102 = vst [vmem:[#allocation2 + $0x8] sm:$0xff] %v2038_v43  ;;  %v1835_v44 = vpop.f32.mrf.mxu2 }
 0x2ad   : > { %v2004_v46 = vpop.f32.mrf.mxu3 }
 0x2ae   : > { %v2005_v47 = vadd.f32 %v2004_v46, %v1835_v44  ;;  %2138 = sbr.rel (%p3395_p11) target bundleno = 982 (0x3d6), region = 164 }
 0x2b0   : > { %v2070_v48 = vadd.f32 %v2005_v47, %v1156_v45 }
 0x2b2   : > { %2134 = vst [vmem:[#allocation2 + $0xa0] sm:$0xff] %v2070_v48 }
 0x2b3   : > { %v2207_v49 = vld [vmem:[%s4921_s3 + $0x20] sm:$0xff]  ;;  %v2205_v50 = vld [vmem:[%s4921_s3 + $0x10] sm:$0xff]  ;;  %v3743_v52 = vmov 0   ;;  %v2208_v53 = vld [vmem:[%s4921_s3 + $0x28] sm:$0xff] }
 0x2b4   : > { %v2203_v51 = vld [vmem:[%s4921_s3] sm:$0xff]  ;;  %3701 = vset.pattern.permute.xlu2 %v3743_v52  ;;  %3700 = vset.pattern.permute.xlu1 %v3743_v52  ;;  %v2206_v54 = vld [vmem:[%s4921_s3 + $0x18] sm:$0xff]  ;;  %v2204_v55 = vld [vmem:[%s4921_s3 + $0x8] sm:$0xff] }
 0x2b5   : > { %3699 = vset.pattern.permute.xlu0 %v3743_v52  ;;  %2289 = vperm.xlu2 %3701, %v2207_v49   ;;  %v2211_v56 = vld [vmem:[%s4921_s3 + $0x40] sm:$0xff]  ;;  %v2210_v57 = vld [vmem:[%s4921_s3 + $0x38] sm:$0xff]  ;;  %v2209_v58 = vld [vmem:[%s4921_s3 + $0x30] sm:$0xff] }
 0x2b6   : > { %2279 = vperm.xlu1 %3700, %v2205_v50   ;;  %2269 = vperm.xlu0 %3699, %v2203_v51   ;;  %v2214_v59 = vld [vmem:[%s4921_s3 + $0x58] sm:$0xff]  ;;  %v2213_v60 = vld [vmem:[%s4921_s3 + $0x50] sm:$0xff]  ;;  %v2212_v61 = vld [vmem:[%s4921_s3 + $0x48] sm:$0xff] }
 0x2b7   : > { %v2217_v62 = vld [vmem:[%s4921_s3 + $0x70] sm:$0xff]  ;;  %v2216_v63 = vld [vmem:[%s4921_s3 + $0x68] sm:$0xff]  ;;  %v2215_v0 = vld [vmem:[%s4921_s3 + $0x60] sm:$0xff] }
 0x2b8   : > { %v2220_v1 = vld [vmem:[%s4921_s3 + $0x88] sm:$0xff]  ;;  %v2219_v2 = vld [vmem:[%s4921_s3 + $0x80] sm:$0xff]  ;;  %v2218_v3 = vld [vmem:[%s4921_s3 + $0x78] sm:$0xff] }
 0x2b9   : > { %v2223_v4 = vld [vmem:[%s4921_s3 + $0xa0] sm:$0xff]  ;;  %v2222_v5 = vld [vmem:[%s4921_s3 + $0x98] sm:$0xff]  ;;  %v2221_v6 = vld [vmem:[%s4921_s3 + $0x90] sm:$0xff] }
 0x2ba   : > { %v2226_v7 = vld [vmem:[%s4921_s3 + $0xb8] sm:$0xff]  ;;  %v2225_v8 = vld [vmem:[%s4921_s3 + $0xb0] sm:$0xff]  ;;  %v2224_v9 = vld [vmem:[%s4921_s3 + $0xa8] sm:$0xff] }
 0x2bb   : > { %v2229_v10 = vld [vmem:[%s4921_s3 + $0xd0] sm:$0xff]  ;;  %v2228_v11 = vld [vmem:[%s4921_s3 + $0xc8] sm:$0xff]  ;;  %v2227_v12 = vld [vmem:[%s4921_s3 + $0xc0] sm:$0xff] }
 0x2bc   : > { %v2232_v13 = vld [vmem:[%s4921_s3 + $0xe8] sm:$0xff]  ;;  %v2231_v14 = vld [vmem:[%s4921_s3 + $0xe0] sm:$0xff]  ;;  %v2230_v15 = vld [vmem:[%s4921_s3 + $0xd8] sm:$0xff] }
 0x2bd   : > { %2294 = vperm.xlu2 %3701, %v2208_v53   ;;  %v2235_v16 = vld [vmem:[%s4921_s3 + $0x100] sm:$0xff]  ;;  %v2234_v17 = vld [vmem:[%s4921_s3 + $0xf8] sm:$0xff]  ;;  %v2233_v18 = vld [vmem:[%s4921_s3 + $0xf0] sm:$0xff] }
 0x2be   : > { %2284 = vperm.xlu1 %3700, %v2206_v54   ;;  %2274 = vperm.xlu0 %3699, %v2204_v55   ;;  %v2238_v19 = vld [vmem:[%s4921_s3 + $0x118] sm:$0xff]  ;;  %v2237_v20 = vld [vmem:[%s4921_s3 + $0x110] sm:$0xff]  ;;  %v2236_v21 = vld [vmem:[%s4921_s3 + $0x108] sm:$0xff] }
 0x2bf   : > { %v3611_v22 = vld [vmem:[#allocation5 + $0x10] sm:$0xff]   ;;  %v2240_v29 = vld [vmem:[%s4921_s3 + $0x128] sm:$0xff]  ;;  %v2239_v30 = vld [vmem:[%s4921_s3 + $0x120] sm:$0xff] }
 0x2c0   : > { %v2143_v23 = vld [vmem:[#allocation2 + $0x50] sm:$0xff]  ;;  %v3492_v24 = vunpack.c.l.bf16 %v3611_v22  ;;  %v2144_v31 = vld [vmem:[#allocation2 + $0x168] sm:$0xff]  ;;  %v3493_v32 = vunpack.c.h.bf16 %v3611_v22  ;;  %v2243_v37 = vld [vmem:[%s4921_s3 + $0x140] sm:$0xff] }
 0x2c1   : > { %v2241_v28 = vld [vmem:[%s4921_s3 + $0x130] sm:$0xff]  ;;  %v2244_v36 = vld [vmem:[%s4921_s3 + $0x148] sm:$0xff]  ;;  %v2242_v38 = vld [vmem:[%s4921_s3 + $0x138] sm:$0xff] }
 0x2c2   : > { %v4572_v39 = vld [vmem:[#allocation5 + $0x20] sm:$0xff]   ;;  %v2246_v46 = vld [vmem:[%s4921_s3 + $0x158] sm:$0xff]  ;;  %v2245_v47 = vld [vmem:[%s4921_s3 + $0x150] sm:$0xff] }
 0x2c3   : > { %v2147_v40 = vld [vmem:[#allocation2 + $0x180] sm:$0xff]  ;;  %v3500_v41 = vunpack.c.l.bf16 %v4572_v39  ;;  %v4587_v48 = vld [vmem:[#allocation5 + $0x28] sm:$0xff]   ;;  %v2150_v51 = vld [vmem:[#allocation2 + $0x98] sm:$0xff] }
 0x2c4   : > { %v2247_v45 = vld [vmem:[%s4921_s3 + $0x160] sm:$0xff]  ;;  %v3610_v49 = vld [vmem:[#allocation5 + $0x8] sm:$0xff]   ;;  %v3505_v52 = vunpack.c.h.bf16 %v4587_v48  ;;  %v2141_v53 = vld [vmem:[#allocation2 + $0xd8] sm:$0xff] }
 0x2c5   : > { %2309 = vperm.xlu2 %3701, %v2211_v56   ;;  %v3483_v50 = vld [vmem:[#allocation5] sm:$0xff]   ;;  %v2139_v54 = vld [vmem:[#allocation2 + $0xb0] sm:$0xff]  ;;  %v3488_v56 = vunpack.c.l.bf16 %v3610_v49  ;;  %v2252_v22 = vld [vmem:[%s4921_s3 + $0x188] sm:$0xff] }
 0x2c6   : > { %2304 = vperm.xlu1 %3700, %v2210_v57   ;;  %2299 = vperm.xlu0 %3699, %v2209_v58   ;;  %v3484_v57 = vunpack.c.l.bf16 %v3483_v50 }
 0x2cd   : > { %2324 = vperm.xlu2 %3701, %v2214_v59  }
 0x2ce   : > { %2319 = vperm.xlu1 %3700, %v2213_v60   ;;  %2314 = vperm.xlu0 %3699, %v2212_v61  }
 0x2d5   : > { %2339 = vperm.xlu2 %3701, %v2217_v62  }
 0x2d6   : > { %2334 = vperm.xlu1 %3700, %v2216_v63   ;;  %2329 = vperm.xlu0 %3699, %v2215_v0   ;;  %v2250_v0 = vld [vmem:[%s4921_s3 + $0x178] sm:$0xff] }
 0x2dd   : > { %2354 = vperm.xlu2 %3701, %v2220_v1  }
 0x2de   : > { %2349 = vperm.xlu1 %3700, %v2219_v2   ;;  %2344 = vperm.xlu0 %3699, %v2218_v3   ;;  %v2249_v3 = vld [vmem:[%s4921_s3 + $0x170] sm:$0xff] }
 0x2e5   : > { %2369 = vperm.xlu2 %3701, %v2223_v4   ;;  %v2248_v4 = vld [vmem:[%s4921_s3 + $0x168] sm:$0xff] }
 0x2e6   : > { %2364 = vperm.xlu1 %3700, %v2222_v5   ;;  %2359 = vperm.xlu0 %3699, %v2221_v6   ;;  %v4602_v5 = vld [vmem:[#allocation5 + $0x38] sm:$0xff]   ;;  %v2153_v6 = vld [vmem:[#allocation2 + $0x108] sm:$0xff] }
 0x2ed   : > { %2384 = vperm.xlu2 %3701, %v2226_v7   ;;  %v3512_v7 = vunpack.c.l.bf16 %v4602_v5 }
 0x2ee   : > { %2379 = vperm.xlu1 %3700, %v2225_v8   ;;  %2374 = vperm.xlu0 %3699, %v2224_v9   ;;  %v2142_v8 = vld [vmem:[#allocation2 + $0x18] sm:$0xff]  ;;  %v2140_v9 = vld [vmem:[#allocation2 + $0x1b0] sm:$0xff] }
 0x2f5   : > { %2399 = vperm.xlu2 %3701, %v2229_v10  }
 0x2f6   : > { %2394 = vperm.xlu1 %3700, %v2228_v11   ;;  %2389 = vperm.xlu0 %3699, %v2227_v12   ;;  %v3489_v11 = vunpack.c.h.bf16 %v3610_v49  ;;  %v3485_v12 = vunpack.c.h.bf16 %v3483_v50  ;;  %v2149_v49 = vld [vmem:[#allocation2 + $0x118] sm:$0xff]  ;;  %v2148_v50 = vld [vmem:[#allocation2 + $0x110] sm:$0xff] }
 0x2fd   : > { %2414 = vperm.xlu2 %3701, %v2232_v13  }
 0x2fe   : > { %2409 = vperm.xlu1 %3700, %v2231_v14   ;;  %2404 = vperm.xlu0 %3699, %v2230_v15  }
 0x305   : > { %2429 = vperm.xlu2 %3701, %v2235_v16  }
 0x306   : > { %2424 = vperm.xlu1 %3700, %v2234_v17   ;;  %2419 = vperm.xlu0 %3699, %v2233_v18  }
 0x30d   : > { %2444 = vperm.xlu2 %3701, %v2238_v19   ;;  %v2253_v19 = vld [vmem:[%s4921_s3 + $0x190] sm:$0xff] }
 0x30e   : > { %2439 = vperm.xlu1 %3700, %v2237_v20   ;;  %2434 = vperm.xlu0 %3699, %v2236_v21  }
 0x30f   : > { %v2290_v25 = vpop.permute.xlu2 %2289 }
 0x310   : > { %v2591_v26 = vmul.f32 %v2290_v25, %v2143_v23  ;;  %v2251_v23 = vld [vmem:[%s4921_s3 + $0x180] sm:$0xff]  ;;  %v3612_v25 = vld [vmem:[#allocation5 + $0x18] sm:$0xff]  }
 0x312   : > { %v2783_v27 = vadd.f32 %v3492_v24, %v2591_v26  ;;  %v4623_v24 = vld [vmem:[#allocation5 + $0x40] sm:$0xff]   ;;  %v2156_v26 = vld [vmem:[#allocation2 + $0x188] sm:$0xff] }
 0x314   : > { %2847 = vst [vmem:[%s4922_s4 + $0x20] sm:$0xff] %v2783_v27  ;;  %v3517_v27 = vunpack.c.h.bf16 %v4623_v24 }
 0x315   : > { %2459 = vperm.xlu2 %3701, %v2241_v28   ;;  %v2146_v28 = vld [vmem:[#allocation2 + $0x48] sm:$0xff] }
 0x316   : > { %2454 = vperm.xlu1 %3700, %v2240_v29   ;;  %2449 = vperm.xlu0 %3699, %v2239_v30   ;;  %v2145_v29 = vld [vmem:[#allocation2 + $0x130] sm:$0xff] }
 0x317   : > { %v2295_v33 = vpop.permute.xlu2 %2294 }
 0x318   : > { %v2592_v34 = vmul.f32 %v2295_v33, %v2144_v31  ;;  %v3497_v31 = vunpack.c.h.bf16 %v3612_v25 }
 0x31a   : > { %v2784_v35 = vadd.f32 %v3493_v32, %v2592_v34  ;;  %v3496_v32 = vunpack.c.l.bf16 %v3612_v25  ;;  %v2154_v25 = vld [vmem:[#allocation2 + $0x60] sm:$0xff] }
 0x31c   : > { %2848 = vst [vmem:[%s4922_s4 + $0x28] sm:$0xff] %v2784_v35 }
 0x31d   : > { %2474 = vperm.xlu2 %3701, %v2244_v36  }
 0x31e   : > { %2469 = vperm.xlu1 %3700, %v2243_v37   ;;  %2464 = vperm.xlu0 %3699, %v2242_v38  }
 0x31f   : > { %v2310_v42 = vpop.permute.xlu2 %2309 }
 0x320   : > { %v2595_v43 = vmul.f32 %v2310_v42, %v2147_v40  ;;  %v2256_v40 = vld [vmem:[%s4921_s3 + $0x1a8] sm:$0xff] }
 0x322   : > { %v2787_v44 = vadd.f32 %v3500_v41, %v2595_v43  ;;  %v2255_v43 = vld [vmem:[%s4921_s3 + $0x1a0] sm:$0xff] }
 0x324   : > { %2851 = vst [vmem:[%s4922_s4 + $0x40] sm:$0xff] %v2787_v44  ;;  %v2254_v44 = vld [vmem:[%s4921_s3 + $0x198] sm:$0xff] }
 0x325   : > { %2489 = vperm.xlu2 %3701, %v2247_v45   ;;  %v4644_v45 = vld [vmem:[#allocation5 + $0x50] sm:$0xff]  }
 0x326   : > { %2484 = vperm.xlu1 %3700, %v2246_v46   ;;  %2479 = vperm.xlu0 %3699, %v2245_v47   ;;  %v2159_v46 = vld [vmem:[#allocation2 + $0x80] sm:$0xff]  ;;  %v3524_v47 = vunpack.c.l.bf16 %v4644_v45 }
 0x327   : > { %v2325_v55 = vpop.permute.xlu2 %2324 }
 0x328   : > { %v2598_v58 = vmul.f32 %v2325_v55, %v2150_v51  ;;  %v2280_v59 = vpop.permute.xlu1 %2279  ;;  %v2270_v60 = vpop.permute.xlu0 %2269 }
 0x329   : > { %v2589_v61 = vmul.f32 %v2280_v59, %v2141_v53  ;;  %v2587_v62 = vmul.f32 %v2270_v60, %v2139_v54  ;;  %v3501_v53 = vunpack.c.h.bf16 %v4572_v39  ;;  %v2259_v60 = vld [vmem:[%s4921_s3 + $0x1c0] sm:$0xff]  ;;  %v2257_v39 = vld [vmem:[%s4921_s3 + $0x1b0] sm:$0xff] }
 0x32a   : > { %v2790_v63 = vadd.f32 %v3505_v52, %v2598_v58  ;;  %v3504_v52 = vunpack.c.l.bf16 %v4587_v48  ;;  %v4667_v48 = vld [vmem:[#allocation5 + $0x58] sm:$0xff]  }
 0x32b   : > { %v2781_v1 = vadd.f32 %v3488_v56, %v2589_v61  ;;  %v2779_v2 = vadd.f32 %v3484_v57, %v2587_v62 }
 0x32c   : > { %2854 = vst [vmem:[%s4922_s4 + $0x58] sm:$0xff] %v2790_v63  ;;  %v2258_v63 = vld [vmem:[%s4921_s3 + $0x1b8] sm:$0xff] }
 0x32d   : > { %2845 = vst [vmem:[%s4922_s4 + $0x10] sm:$0xff] %v2781_v1  ;;  %2504 = vperm.xlu2 %3701, %v2250_v0   ;;  %v3615_v0 = vld [vmem:[#allocation5 + $0x30] sm:$0xff]   ;;  %v2162_v1 = vld [vmem:[#allocation2 + $0x28] sm:$0xff] }
 0x32e   : > { %2843 = vst [vmem:[%s4922_s4] sm:$0xff] %v2779_v2  ;;  %2499 = vperm.xlu1 %3700, %v2249_v3   ;;  %2494 = vperm.xlu0 %3699, %v2248_v4   ;;  %v3529_v2 = vunpack.c.h.bf16 %v4667_v48  ;;  %v2152_v3 = vld [vmem:[#allocation2 + $0x150] sm:$0xff]  ;;  %v2151_v4 = vld [vmem:[#allocation2 + $0x120] sm:$0xff] }
 0x32f   : > { %v2340_v10 = vpop.permute.xlu2 %2339 }
 0x330   : > { %v2601_v13 = vmul.f32 %v2340_v10, %v2153_v6  ;;  %v2285_v14 = vpop.permute.xlu1 %2284  ;;  %v2275_v15 = vpop.permute.xlu0 %2274 }
 0x331   : > { %v2590_v16 = vmul.f32 %v2285_v14, %v2142_v8  ;;  %v2588_v17 = vmul.f32 %v2275_v15, %v2140_v9  ;;  %v3508_v8 = vunpack.c.l.bf16 %v3615_v0  ;;  %v2262_v15 = vld [vmem:[%s4921_s3 + $0x1d8] sm:$0xff] }
 0x332   : > { %v2793_v18 = vadd.f32 %v3512_v7, %v2601_v13  ;;  %v3509_v7 = vunpack.c.h.bf16 %v3615_v0  ;;  %v3528_v0 = vunpack.c.l.bf16 %v4667_v48 }
 0x333   : > { %v2782_v20 = vadd.f32 %v3489_v11, %v2590_v16  ;;  %v2780_v21 = vadd.f32 %v3485_v12, %v2588_v17 }
 0x334   : > { %2857 = vst [vmem:[%s4922_s4 + $0x70] sm:$0xff] %v2793_v18  ;;  %v2261_v18 = vld [vmem:[%s4921_s3 + $0x1d0] sm:$0xff] }
 0x335   : > { %2846 = vst [vmem:[%s4922_s4 + $0x18] sm:$0xff] %v2782_v20  ;;  %2519 = vperm.xlu2 %3701, %v2253_v19   ;;  %v2260_v19 = vld [vmem:[%s4921_s3 + $0x1c8] sm:$0xff] }
 0x336   : > { %2844 = vst [vmem:[%s4922_s4 + $0x8] sm:$0xff] %v2780_v21  ;;  %2514 = vperm.xlu1 %3700, %v2252_v22   ;;  %2509 = vperm.xlu0 %3699, %v2251_v23   ;;  %v4688_v20 = vld [vmem:[#allocation5 + $0x68] sm:$0xff]   ;;  %v2165_v21 = vld [vmem:[#allocation2 + $0x160] sm:$0xff] }
 0x337   : > { %v2355_v30 = vpop.permute.xlu2 %2354  ;;  %v3536_v22 = vunpack.c.l.bf16 %v4688_v20  ;;  %v2155_v23 = vld [vmem:[#allocation2 + $0xe0] sm:$0xff] }
 0x338   : > { %v2604_v33 = vmul.f32 %v2355_v30, %v2156_v26  ;;  %v2305_v34 = vpop.permute.xlu1 %2304  ;;  %v2300_v35 = vpop.permute.xlu0 %2299 }
 0x339   : > { %v2594_v36 = vmul.f32 %v2305_v34, %v2146_v28  ;;  %v2593_v37 = vmul.f32 %v2300_v35, %v2145_v29  ;;  %v3513_v28 = vunpack.c.h.bf16 %v4602_v5  ;;  %v2265_v35 = vld [vmem:[%s4921_s3 + $0x1f0] sm:$0xff]  ;;  %v2263_v5 = vld [vmem:[%s4921_s3 + $0x1e0] sm:$0xff] }
 0x33a   : > { %v2796_v38 = vadd.f32 %v3517_v27, %v2604_v33  ;;  %v3516_v27 = vunpack.c.l.bf16 %v4623_v24  ;;  %v4711_v24 = vld [vmem:[#allocation5 + $0x70] sm:$0xff]  }
 0x33b   : > { %v2786_v41 = vadd.f32 %v3497_v31, %v2594_v36  ;;  %v2785_v42 = vadd.f32 %v3496_v32, %v2593_v37 }
 0x33c   : > { %2860 = vst [vmem:[%s4922_s4 + $0x88] sm:$0xff] %v2796_v38  ;;  %v2264_v38 = vld [vmem:[%s4921_s3 + $0x1e8] sm:$0xff] }
 0x33d   : > { %2850 = vst [vmem:[%s4922_s4 + $0x38] sm:$0xff] %v2786_v41  ;;  %2534 = vperm.xlu2 %3701, %v2256_v40   ;;  %v3618_v40 = vld [vmem:[#allocation5 + $0x48] sm:$0xff]   ;;  %v2168_v41 = vld [vmem:[#allocation2] sm:$0xff] }
 0x33e   : > { %2849 = vst [vmem:[%s4922_s4 + $0x30] sm:$0xff] %v2785_v42  ;;  %2529 = vperm.xlu1 %3700, %v2255_v43   ;;  %2524 = vperm.xlu0 %3699, %v2254_v44   ;;  %v3541_v42 = vunpack.c.h.bf16 %v4711_v24  ;;  %v2158_v43 = vld [vmem:[#allocation2 + $0x140] sm:$0xff]  ;;  %v2157_v44 = vld [vmem:[#allocation2 + $0x138] sm:$0xff] }
 0x33f   : > { %v2370_v51 = vpop.permute.xlu2 %2369 }
 0x340   : > { %v2607_v54 = vmul.f32 %v2370_v51, %v2159_v46  ;;  %v2320_v55 = vpop.permute.xlu1 %2319  ;;  %v2315_v56 = vpop.permute.xlu0 %2314 }
 0x341   : > { %v2597_v57 = vmul.f32 %v2320_v55, %v2149_v49  ;;  %v2596_v58 = vmul.f32 %v2315_v56, %v2148_v50  ;;  %v3520_v49 = vunpack.c.l.bf16 %v3618_v40 }
 0x342   : > { %v2799_v59 = vadd.f32 %v3524_v47, %v2607_v54  ;;  %v3521_v47 = vunpack.c.h.bf16 %v3618_v40 }
 0x343   : > { %v2789_v61 = vadd.f32 %v3504_v52, %v2597_v57  ;;  %v2788_v62 = vadd.f32 %v3501_v53, %v2596_v58  ;;  %v2266_v58 = vld [vmem:[%s4921_s3 + $0x1f8] sm:$0xff] }
 0x344   : > { %2863 = vst [vmem:[%s4922_s4 + $0xa0] sm:$0xff] %v2799_v59  ;;  %v4726_v59 = vld [vmem:[#allocation5 + $0x80] sm:$0xff]  }
 0x345   : > { %2853 = vst [vmem:[%s4922_s4 + $0x50] sm:$0xff] %v2789_v61  ;;  %2549 = vperm.xlu2 %3701, %v2259_v60   ;;  %v2171_v60 = vld [vmem:[#allocation2 + $0x148] sm:$0xff]  ;;  %v3548_v61 = vunpack.c.l.bf16 %v4726_v59 }
 0x346   : > { %2852 = vst [vmem:[%s4922_s4 + $0x48] sm:$0xff] %v2788_v62  ;;  %2544 = vperm.xlu1 %3700, %v2258_v63   ;;  %2539 = vperm.xlu0 %3699, %v2257_v39   ;;  %v2161_v62 = vld [vmem:[#allocation2 + $0x1b8] sm:$0xff]  ;;  %v2160_v63 = vld [vmem:[#allocation2 + $0x1a8] sm:$0xff] }
 0x347   : > { %v2385_v6 = vpop.permute.xlu2 %2384 }
 0x348   : > { %v2610_v9 = vmul.f32 %v2385_v6, %v2162_v1  ;;  %v2335_v10 = vpop.permute.xlu1 %2334  ;;  %v2330_v11 = vpop.permute.xlu0 %2329  ;;  %v3525_v1 = vunpack.c.h.bf16 %v4644_v45  ;;  %v2174_v45 = vld [vmem:[#allocation2 + $0xc8] sm:$0xff] }
 0x349   : > { %v2600_v12 = vmul.f32 %v2335_v10, %v2152_v3  ;;  %v2599_v13 = vmul.f32 %v2330_v11, %v2151_v4  ;;  %v4740_v11 = vld [vmem:[#allocation5 + $0x88] sm:$0xff]  }
 0x34a   : > { %v2802_v14 = vadd.f32 %v3529_v2, %v2610_v9  ;;  %v3553_v48 = vunpack.c.h.bf16 %v4740_v11 }
 0x34b   : > { %v2792_v16 = vadd.f32 %v3509_v7, %v2600_v12  ;;  %v2791_v17 = vadd.f32 %v3508_v8, %v2599_v13  ;;  %v3621_v12 = vld [vmem:[#allocation5 + $0x60] sm:$0xff]   ;;  %v2164_v13 = vld [vmem:[#allocation2 + $0xf8] sm:$0xff] }
 0x34c   : > { %2866 = vst [vmem:[%s4922_s4 + $0xb8] sm:$0xff] %v2802_v14  ;;  %v2163_v14 = vld [vmem:[#allocation2 + $0x1e8] sm:$0xff] }
 0x34d   : > { %2856 = vst [vmem:[%s4922_s4 + $0x68] sm:$0xff] %v2792_v16  ;;  %2564 = vperm.xlu2 %3701, %v2262_v15   ;;  %v3533_v16 = vunpack.c.h.bf16 %v3621_v12 }
 0x34e   : > { %2855 = vst [vmem:[%s4922_s4 + $0x60] sm:$0xff] %v2791_v17  ;;  %2559 = vperm.xlu1 %3700, %v2261_v18   ;;  %2554 = vperm.xlu0 %3699, %v2260_v19   ;;  %v3532_v17 = vunpack.c.l.bf16 %v3621_v12 }
 0x34f   : > { %v2400_v26 = vpop.permute.xlu2 %2399 }
 0x350   : > { %v2613_v29 = vmul.f32 %v2400_v26, %v2165_v21  ;;  %v2350_v30 = vpop.permute.xlu1 %2349  ;;  %v2345_v31 = vpop.permute.xlu0 %2344 }
 0x351   : > { %v2603_v32 = vmul.f32 %v2350_v30, %v2155_v23  ;;  %v2602_v33 = vmul.f32 %v2345_v31, %v2154_v25  ;;  %v2167_v31 = vld [vmem:[#allocation2 + $0x1e0] sm:$0xff] }
 0x352   : > { %v2805_v34 = vadd.f32 %v3536_v22, %v2613_v29  ;;  %v2177_v29 = vld [vmem:[#allocation2 + $0x20] sm:$0xff] }
 0x353   : > { %v2795_v36 = vadd.f32 %v3516_v27, %v2603_v32  ;;  %v2794_v37 = vadd.f32 %v3513_v28, %v2602_v33  ;;  %v4752_v28 = vld [vmem:[#allocation5 + $0x98] sm:$0xff]   ;;  %v2166_v32 = vld [vmem:[#allocation2 + $0x30] sm:$0xff] }
 0x354   : > { %2869 = vst [vmem:[%s4922_s4 + $0xd0] sm:$0xff] %v2805_v34  ;;  %v3560_v30 = vunpack.c.l.bf16 %v4752_v28  ;;  %v3540_v34 = vunpack.c.l.bf16 %v4711_v24 }
 0x355   : > { %2859 = vst [vmem:[%s4922_s4 + $0x80] sm:$0xff] %v2795_v36  ;;  %2579 = vperm.xlu2 %3701, %v2265_v35   ;;  %v3537_v35 = vunpack.c.h.bf16 %v4688_v20  ;;  %v2180_v20 = vld [vmem:[#allocation2 + $0x1f0] sm:$0xff] }
 0x356   : > { %2858 = vst [vmem:[%s4922_s4 + $0x78] sm:$0xff] %v2794_v37  ;;  %2574 = vperm.xlu1 %3700, %v2264_v38   ;;  %2569 = vperm.xlu0 %3699, %v2263_v5  }
 0x357   : > { %v2415_v46 = vpop.permute.xlu2 %2414 }
 0x358   : > { %v2616_v50 = vmul.f32 %v2415_v46, %v2168_v41  ;;  %v2365_v51 = vpop.permute.xlu1 %2364  ;;  %v2360_v52 = vpop.permute.xlu0 %2359  ;;  %v3624_v46 = vld [vmem:[#allocation5 + $0x78] sm:$0xff]  }
 0x359   : > { %v2606_v53 = vmul.f32 %v2365_v51, %v2158_v43  ;;  %v2605_v54 = vmul.f32 %v2360_v52, %v2157_v44  ;;  %v4766_v44 = vld [vmem:[#allocation5 + $0xa0] sm:$0xff]   ;;  %v3545_v51 = vunpack.c.h.bf16 %v3624_v46  ;;  %v3544_v52 = vunpack.c.l.bf16 %v3624_v46 }
 0x35a   : > { %v2808_v55 = vadd.f32 %v3541_v42, %v2616_v50  ;;  %v3565_v24 = vunpack.c.h.bf16 %v4766_v44 }
 0x35b   : > { %v2798_v56 = vadd.f32 %v3521_v47, %v2606_v53  ;;  %v2797_v57 = vadd.f32 %v3520_v49, %v2605_v54  ;;  %v2170_v47 = vld [vmem:[#allocation2 + $0x8] sm:$0xff]  ;;  %v2169_v49 = vld [vmem:[#allocation2 + $0xf0] sm:$0xff] }
 0x35c   : > { %2872 = vst [vmem:[%s4922_s4 + $0xe8] sm:$0xff] %v2808_v55 }
 0x35d   : > { %2862 = vst [vmem:[%s4922_s4 + $0x98] sm:$0xff] %v2798_v56 }
 0x35e   : > { %2861 = vst [vmem:[%s4922_s4 + $0x90] sm:$0xff] %v2797_v57  ;;  %2584 = vperm.xlu0 %3699, %v2266_v58  }
 0x35f   : > { %v2430_v39 = vpop.permute.xlu2 %2429 }
 0x360   : > { %v2619_v2 = vmul.f32 %v2430_v39, %v2171_v60  ;;  %v2380_v3 = vpop.permute.xlu1 %2379  ;;  %v2375_v4 = vpop.permute.xlu0 %2374 }
 0x361   : > { %v2609_v6 = vmul.f32 %v2380_v3, %v2161_v62  ;;  %v2608_v7 = vmul.f32 %v2375_v4, %v2160_v63  ;;  %v4778_v62 = vld [vmem:[#allocation5 + $0xb0] sm:$0xff]   ;;  %v3552_v3 = vunpack.c.l.bf16 %v4740_v11  ;;  %v3549_v4 = vunpack.c.h.bf16 %v4726_v59 }
 0x362   : > { %v2811_v8 = vadd.f32 %v3548_v61, %v2619_v2  ;;  %v2183_v63 = vld [vmem:[#allocation2 + $0x70] sm:$0xff]  ;;  %v3572_v39 = vunpack.c.l.bf16 %v4778_v62 }
 0x363   : > { %v2801_v9 = vadd.f32 %v3528_v0, %v2609_v6  ;;  %v2800_v10 = vadd.f32 %v3525_v1, %v2608_v7  ;;  %v2173_v0 = vld [vmem:[#allocation2 + $0x100] sm:$0xff]  ;;  %v2172_v1 = vld [vmem:[#allocation2 + $0x1d0] sm:$0xff] }
 0x364   : > { %2875 = vst [vmem:[%s4922_s4 + $0x100] sm:$0xff] %v2811_v8  ;;  %v2186_v59 = vld [vmem:[#allocation2 + $0xd0] sm:$0xff] }
 0x365   : > { %2865 = vst [vmem:[%s4922_s4 + $0xb0] sm:$0xff] %v2801_v9 }
 0x366   : > { %2864 = vst [vmem:[%s4922_s4 + $0xa8] sm:$0xff] %v2800_v10 }
 0x367   : > { %v2445_v15 = vpop.permute.xlu2 %2444 }
 0x368   : > { %v2622_v18 = vmul.f32 %v2445_v15, %v2174_v45  ;;  %v2395_v19 = vpop.permute.xlu1 %2394  ;;  %v2390_v21 = vpop.permute.xlu0 %2389  ;;  %v2176_v15 = vld [vmem:[#allocation2 + $0x1f8] sm:$0xff] }
 0x369   : > { %v2612_v22 = vmul.f32 %v2395_v19, %v2164_v13  ;;  %v2611_v23 = vmul.f32 %v2390_v21, %v2163_v14  ;;  %v4792_v13 = vld [vmem:[#allocation5 + $0xb8] sm:$0xff]   ;;  %v3627_v14 = vld [vmem:[#allocation5 + $0x90] sm:$0xff]  }
 0x36a   : > { %v2814_v25 = vadd.f32 %v3553_v48, %v2622_v18  ;;  %v3577_v11 = vunpack.c.h.bf16 %v4792_v13  ;;  %v3557_v18 = vunpack.c.h.bf16 %v3627_v14  ;;  %v3556_v19 = vunpack.c.l.bf16 %v3627_v14 }
 0x36b   : > { %v2804_v26 = vadd.f32 %v3533_v16, %v2612_v22  ;;  %v2803_v27 = vadd.f32 %v3532_v17, %v2611_v23  ;;  %v2175_v16 = vld [vmem:[#allocation2 + $0x40] sm:$0xff] }
 0x36c   : > { %2878 = vst [vmem:[%s4922_s4 + $0x118] sm:$0xff] %v2814_v25 }
 0x36d   : > { %2868 = vst [vmem:[%s4922_s4 + $0xc8] sm:$0xff] %v2804_v26 }
 0x36e   : > { %2867 = vst [vmem:[%s4922_s4 + $0xc0] sm:$0xff] %v2803_v27 }
 0x36f   : > { %v2460_v33 = vpop.permute.xlu2 %2459 }
 0x370   : > { %v2625_v36 = vmul.f32 %v2460_v33, %v2177_v29  ;;  %v2410_v37 = vpop.permute.xlu1 %2409  ;;  %v2405_v38 = vpop.permute.xlu0 %2404 }
 0x371   : > { %v2615_v5 = vmul.f32 %v2410_v37, %v2167_v31  ;;  %v2614_v40 = vmul.f32 %v2405_v38, %v2166_v32  ;;  %v4804_v31 = vld [vmem:[#allocation5 + $0xc8] sm:$0xff]   ;;  %v3564_v37 = vunpack.c.l.bf16 %v4766_v44  ;;  %v3561_v38 = vunpack.c.h.bf16 %v4752_v28  ;;  %v2192_v28 = vld [vmem:[#allocation2 + $0x178] sm:$0xff] }
 0x372   : > { %v2817_v41 = vadd.f32 %v3560_v30, %v2625_v36  ;;  %v2189_v32 = vld [vmem:[#allocation2 + $0xa8] sm:$0xff]  ;;  %v3584_v33 = vunpack.c.l.bf16 %v4804_v31 }
 0x373   : > { %v2807_v42 = vadd.f32 %v3540_v34, %v2615_v5  ;;  %v2806_v43 = vadd.f32 %v3537_v35, %v2614_v40  ;;  %v2179_v34 = vld [vmem:[#allocation2 + $0x1a0] sm:$0xff]  ;;  %v2178_v35 = vld [vmem:[#allocation2 + $0x128] sm:$0xff] }
 0x374   : > { %2881 = vst [vmem:[%s4922_s4 + $0x130] sm:$0xff] %v2817_v41 }
 0x375   : > { %2871 = vst [vmem:[%s4922_s4 + $0xe0] sm:$0xff] %v2807_v42 }
 0x376   : > { %2870 = vst [vmem:[%s4922_s4 + $0xd8] sm:$0xff] %v2806_v43 }
 0x377   : > { %v2475_v50 = vpop.permute.xlu2 %2474 }
 0x378   : > { %v2628_v53 = vmul.f32 %v2475_v50, %v2180_v20  ;;  %v2425_v54 = vpop.permute.xlu1 %2424  ;;  %v2420_v55 = vpop.permute.xlu0 %2419  ;;  %v2182_v50 = vld [vmem:[#allocation2 + $0x78] sm:$0xff] }
 0x379   : > { %v2618_v56 = vmul.f32 %v2425_v54, %v2170_v47  ;;  %v2617_v57 = vmul.f32 %v2420_v55, %v2169_v49  ;;  %v4818_v47 = vld [vmem:[#allocation5 + $0xd0] sm:$0xff]   ;;  %v3630_v49 = vld [vmem:[#allocation5 + $0xa8] sm:$0xff]  }
 0x37a   : > { %v2820_v58 = vadd.f32 %v3565_v24, %v2628_v53  ;;  %v3589_v44 = vunpack.c.h.bf16 %v4818_v47  ;;  %v3569_v53 = vunpack.c.h.bf16 %v3630_v49  ;;  %v3568_v54 = vunpack.c.l.bf16 %v3630_v49 }
 0x37b   : > { %v2810_v60 = vadd.f32 %v3545_v51, %v2618_v56  ;;  %v2809_v61 = vadd.f32 %v3544_v52, %v2617_v57  ;;  %v2181_v51 = vld [vmem:[#allocation2 + $0xe8] sm:$0xff] }
 0x37c   : > { %2884 = vst [vmem:[%s4922_s4 + $0x148] sm:$0xff] %v2820_v58 }
 0x37d   : > { %2874 = vst [vmem:[%s4922_s4 + $0xf8] sm:$0xff] %v2810_v60 }
 0x37e   : > { %2873 = vst [vmem:[%s4922_s4 + $0xf0] sm:$0xff] %v2809_v61 }
 0x37f   : > { %v2490_v2 = vpop.permute.xlu2 %2489 }
 0x380   : > { %v2631_v6 = vmul.f32 %v2490_v2, %v2183_v63  ;;  %v2440_v7 = vpop.permute.xlu1 %2439  ;;  %v2435_v8 = vpop.permute.xlu0 %2434 }
 0x381   : > { %v2621_v9 = vmul.f32 %v2440_v7, %v2173_v0  ;;  %v2620_v10 = vmul.f32 %v2435_v8, %v2172_v1  ;;  %v4830_v0 = vld [vmem:[#allocation5 + $0xe0] sm:$0xff]   ;;  %v2195_v1 = vld [vmem:[#allocation2 + $0x198] sm:$0xff]  ;;  %v3576_v7 = vunpack.c.l.bf16 %v4792_v13  ;;  %v3573_v8 = vunpack.c.h.bf16 %v4778_v62 }
 0x382   : > { %v2823_v12 = vadd.f32 %v3572_v39, %v2631_v6  ;;  %v3596_v2 = vunpack.c.l.bf16 %v4830_v0  ;;  %v2198_v62 = vld [vmem:[#allocation2 + $0x1c0] sm:$0xff] }
 0x383   : > { %v2813_v45 = vadd.f32 %v3552_v3, %v2621_v9  ;;  %v2812_v48 = vadd.f32 %v3549_v4, %v2620_v10  ;;  %v2185_v3 = vld [vmem:[#allocation2 + $0x1d8] sm:$0xff]  ;;  %v2184_v4 = vld [vmem:[#allocation2 + $0x90] sm:$0xff] }
 0x384   : > { %2887 = vst [vmem:[%s4922_s4 + $0x160] sm:$0xff] %v2823_v12 }
 0x385   : > { %2877 = vst [vmem:[%s4922_s4 + $0x110] sm:$0xff] %v2813_v45 }
 0x386   : > { %2876 = vst [vmem:[%s4922_s4 + $0x108] sm:$0xff] %v2812_v48 }
 0x387   : > { %v2505_v17 = vpop.permute.xlu2 %2504 }
 0x388   : > { %v2634_v21 = vmul.f32 %v2505_v17, %v2186_v59  ;;  %v2455_v22 = vpop.permute.xlu1 %2454  ;;  %v2450_v23 = vpop.permute.xlu0 %2449  ;;  %v2188_v17 = vld [vmem:[#allocation2 + $0x88] sm:$0xff] }
 0x389   : > { %v2624_v25 = vmul.f32 %v2455_v22, %v2176_v15  ;;  %v2623_v26 = vmul.f32 %v2450_v23, %v2175_v16  ;;  %v4844_v15 = vld [vmem:[#allocation5 + $0xe8] sm:$0xff]   ;;  %v3633_v16 = vld [vmem:[#allocation5 + $0xc0] sm:$0xff]  }
 0x38a   : > { %v2826_v27 = vadd.f32 %v3577_v11, %v2634_v21  ;;  %v3601_v13 = vunpack.c.h.bf16 %v4844_v15  ;;  %v3581_v21 = vunpack.c.h.bf16 %v3633_v16  ;;  %v3580_v22 = vunpack.c.l.bf16 %v3633_v16  ;;  %v2202_v16 = vld [vmem:[#allocation2 + $0xa0] sm:$0xff] }
 0x38b   : > { %v2816_v29 = vadd.f32 %v3557_v18, %v2624_v25  ;;  %v2815_v30 = vadd.f32 %v3556_v19, %v2623_v26  ;;  %v2187_v18 = vld [vmem:[#allocation2 + $0xb8] sm:$0xff] }
 0x38c   : > { %2890 = vst [vmem:[%s4922_s4 + $0x178] sm:$0xff] %v2826_v27 }
 0x38d   : > { %2880 = vst [vmem:[%s4922_s4 + $0x128] sm:$0xff] %v2816_v29 }
 0x38e   : > { %2879 = vst [vmem:[%s4922_s4 + $0x120] sm:$0xff] %v2815_v30 }
 0x38f   : > { %v2520_v36 = vpop.permute.xlu2 %2519 }
 0x390   : > { %v2637_v5 = vmul.f32 %v2520_v36, %v2189_v32  ;;  %v2470_v40 = vpop.permute.xlu1 %2469  ;;  %v2465_v41 = vpop.permute.xlu0 %2464 }
 0x391   : > { %v2627_v42 = vmul.f32 %v2470_v40, %v2179_v34  ;;  %v2626_v43 = vmul.f32 %v2465_v41, %v2178_v35  ;;  %v4856_v34 = vld [vmem:[#allocation5 + $0xf8] sm:$0xff]   ;;  %v3588_v40 = vunpack.c.l.bf16 %v4818_v47  ;;  %v3585_v41 = vunpack.c.h.bf16 %v4804_v31  ;;  %v2194_v31 = vld [vmem:[#allocation2 + $0x190] sm:$0xff]  ;;  %v2193_v47 = vld [vmem:[#allocation2 + $0x68] sm:$0xff] }
 0x392   : > { %v2829_v46 = vadd.f32 %v3584_v33, %v2637_v5  ;;  %v2201_v35 = vld [vmem:[#allocation2 + $0x58] sm:$0xff]  ;;  %v3608_v36 = vunpack.c.l.bf16 %v4856_v34 }
 0x393   : > { %v2819_v20 = vadd.f32 %v3564_v37, %v2627_v42  ;;  %v2818_v24 = vadd.f32 %v3561_v38, %v2626_v43  ;;  %v2191_v37 = vld [vmem:[#allocation2 + $0x170] sm:$0xff]  ;;  %v2190_v38 = vld [vmem:[#allocation2 + $0x1c8] sm:$0xff] }
 0x394   : > { %2893 = vst [vmem:[%s4922_s4 + $0x190] sm:$0xff] %v2829_v46 }
 0x395   : > { %2883 = vst [vmem:[%s4922_s4 + $0x140] sm:$0xff] %v2819_v20 }
 0x396   : > { %2882 = vst [vmem:[%s4922_s4 + $0x138] sm:$0xff] %v2818_v24 }
 0x397   : > { %v2535_v52 = vpop.permute.xlu2 %2534 }
 0x398   : > { %v2640_v55 = vmul.f32 %v2535_v52, %v2192_v28  ;;  %v2485_v56 = vpop.permute.xlu1 %2484  ;;  %v2480_v57 = vpop.permute.xlu0 %2479 }
 0x399   : > { %v2630_v58 = vmul.f32 %v2485_v56, %v2182_v50  ;;  %v2629_v60 = vmul.f32 %v2480_v57, %v2181_v51  ;;  %v3636_v50 = vld [vmem:[#allocation5 + $0xd8] sm:$0xff]  }
 0x39a   : > { %v2832_v61 = vadd.f32 %v3589_v44, %v2640_v55  ;;  %v3593_v51 = vunpack.c.h.bf16 %v3636_v50  ;;  %v3592_v52 = vunpack.c.l.bf16 %v3636_v50 }
 0x39b   : > { %v2822_v63 = vadd.f32 %v3569_v53, %v2630_v58  ;;  %v2821_v39 = vadd.f32 %v3568_v54, %v2629_v60  ;;  %v2197_v60 = vld [vmem:[#allocation2 + $0xc0] sm:$0xff] }
 0x39c   : > { %2896 = vst [vmem:[%s4922_s4 + $0x1a8] sm:$0xff] %v2832_v61  ;;  %v2196_v61 = vld [vmem:[#allocation2 + $0x38] sm:$0xff] }
 0x39d   : > { %2886 = vst [vmem:[%s4922_s4 + $0x158] sm:$0xff] %v2822_v63  ;;  %v3600_v63 = vunpack.c.l.bf16 %v4844_v15 }
 0x39e   : > { %2885 = vst [vmem:[%s4922_s4 + $0x150] sm:$0xff] %v2821_v39  ;;  %v3597_v39 = vunpack.c.h.bf16 %v4830_v0 }
 0x39f   : > { %v2550_v6 = vpop.permute.xlu2 %2549 }
 0x3a0   : > { %v2643_v9 = vmul.f32 %v2550_v6, %v2195_v1  ;;  %v2500_v10 = vpop.permute.xlu1 %2499  ;;  %v2495_v12 = vpop.permute.xlu0 %2494 }
 0x3a1   : > { %v2633_v45 = vmul.f32 %v2500_v10, %v2185_v3  ;;  %v2632_v48 = vmul.f32 %v2495_v12, %v2184_v4  ;;  %v2199_v10 = vld [vmem:[#allocation2 + $0x158] sm:$0xff] }
 0x3a2   : > { %v2835_v14 = vadd.f32 %v3596_v2, %v2643_v9  ;;  %v2200_v9 = vld [vmem:[#allocation2 + $0x10] sm:$0xff] }
 0x3a3   : > { %v2825_v59 = vadd.f32 %v3576_v7, %v2633_v45  ;;  %v2824_v11 = vadd.f32 %v3573_v8, %v2632_v48  ;;  %v3639_v8 = vld [vmem:[#allocation5 + $0xf0] sm:$0xff]  }
 0x3a4   : > { %2899 = vst [vmem:[%s4922_s4 + $0x1c0] sm:$0xff] %v2835_v14  ;;  %v3605_v12 = vunpack.c.h.bf16 %v3639_v8  ;;  %v3604_v45 = vunpack.c.l.bf16 %v3639_v8 }
 0x3a5   : > { %2889 = vst [vmem:[%s4922_s4 + $0x170] sm:$0xff] %v2825_v59 }
 0x3a6   : > { %2888 = vst [vmem:[%s4922_s4 + $0x168] sm:$0xff] %v2824_v11 }
 0x3a7   : > { %v2565_v19 = vpop.permute.xlu2 %2564 }
 0x3a8   : > { %v2646_v23 = vmul.f32 %v2565_v19, %v2198_v62  ;;  %v2515_v25 = vpop.permute.xlu1 %2514  ;;  %v2510_v26 = vpop.permute.xlu0 %2509  ;;  %v3609_v62 = vunpack.c.h.bf16 %v4856_v34 }
 0x3a9   : > { %v2636_v27 = vmul.f32 %v2515_v25, %v2188_v17  ;;  %v2635_v29 = vmul.f32 %v2510_v26, %v2187_v18 }
 0x3aa   : > { %v2838_v30 = vadd.f32 %v3601_v13, %v2646_v23 }
 0x3ab   : > { %v2828_v32 = vadd.f32 %v3581_v21, %v2636_v27  ;;  %v2827_v33 = vadd.f32 %v3580_v22, %v2635_v29 }
 0x3ac   : > { %2902 = vst [vmem:[%s4922_s4 + $0x1d8] sm:$0xff] %v2838_v30 }
 0x3ad   : > { %2892 = vst [vmem:[%s4922_s4 + $0x188] sm:$0xff] %v2828_v32 }
 0x3ae   : > { %2891 = vst [vmem:[%s4922_s4 + $0x180] sm:$0xff] %v2827_v33 }
 0x3af   : > { %v2580_v5 = vpop.permute.xlu2 %2579 }
 0x3b0   : > { %v2649_v42 = vmul.f32 %v2580_v5, %v2201_v35  ;;  %v2530_v43 = vpop.permute.xlu1 %2529  ;;  %v2525_v46 = vpop.permute.xlu0 %2524 }
 0x3b1   : > { %v2639_v20 = vmul.f32 %v2530_v43, %v2191_v37  ;;  %v2638_v24 = vmul.f32 %v2525_v46, %v2190_v38 }
 0x3b2   : > { %v2841_v49 = vadd.f32 %v3608_v36, %v2649_v42 }
 0x3b3   : > { %v2831_v28 = vadd.f32 %v3588_v40, %v2639_v20  ;;  %v2830_v44 = vadd.f32 %v3585_v41, %v2638_v24 }
 0x3b4   : > { %2905 = vst [vmem:[%s4922_s4 + $0x1f0] sm:$0xff] %v2841_v49 }
 0x3b5   : > { %2895 = vst [vmem:[%s4922_s4 + $0x1a0] sm:$0xff] %v2831_v28 }
 0x3b6   : > { %2894 = vst [vmem:[%s4922_s4 + $0x198] sm:$0xff] %v2830_v44 }
 0x3b8   : > { %v2545_v53 = vpop.permute.xlu1 %2544  ;;  %v2540_v54 = vpop.permute.xlu0 %2539 }
 0x3b9   : > { %v2642_v55 = vmul.f32 %v2545_v53, %v2194_v31  ;;  %v2641_v56 = vmul.f32 %v2540_v54, %v2193_v47 }
 0x3bb   : > { %v2834_v57 = vadd.f32 %v3593_v51, %v2642_v55  ;;  %v2833_v58 = vadd.f32 %v3592_v52, %v2641_v56 }
 0x3bd   : > { %2898 = vst [vmem:[%s4922_s4 + $0x1b8] sm:$0xff] %v2834_v57 }
 0x3be   : > { %2897 = vst [vmem:[%s4922_s4 + $0x1b0] sm:$0xff] %v2833_v58 }
 0x3c0   : > { %v2560_v1 = vpop.permute.xlu1 %2559  ;;  %v2555_v2 = vpop.permute.xlu0 %2554 }
 0x3c1   : > { %v2645_v3 = vmul.f32 %v2560_v1, %v2197_v60  ;;  %v2644_v4 = vmul.f32 %v2555_v2, %v2196_v61 }
 0x3c3   : > { %v2837_v6 = vadd.f32 %v3600_v63, %v2645_v3  ;;  %v2836_v7 = vadd.f32 %v3597_v39, %v2644_v4 }
 0x3c5   : > { %2901 = vst [vmem:[%s4922_s4 + $0x1d0] sm:$0xff] %v2837_v6 }
 0x3c6   : > { %2900 = vst [vmem:[%s4922_s4 + $0x1c8] sm:$0xff] %v2836_v7 }
 0x3c8   : > { %v2575_v0 = vpop.permute.xlu1 %2574  ;;  %v2570_v48 = vpop.permute.xlu0 %2569 }
 0x3c9   : > { %v2648_v14 = vmul.f32 %v2575_v0, %v2200_v9  ;;  %v2647_v59 = vmul.f32 %v2570_v48, %v2199_v10 }
 0x3cb   : > { %v2840_v11 = vadd.f32 %v3605_v12, %v2648_v14  ;;  %v2839_v15 = vadd.f32 %v3604_v45, %v2647_v59 }
 0x3cd   : > { %2904 = vst [vmem:[%s4922_s4 + $0x1e8] sm:$0xff] %v2840_v11 }
 0x3ce   : > { %2903 = vst [vmem:[%s4922_s4 + $0x1e0] sm:$0xff] %v2839_v15 }
 0x3d0   : > { %v2585_v13 = vpop.permute.xlu0 %2584 }
 0x3d1   : > { %v2650_v17 = vmul.f32 %v2585_v13, %v2202_v16 }
 0x3d3   : > { %v2842_v18 = vadd.f32 %v3609_v62, %v2650_v17 }
 0x3d5   : > { %2906 = vst [vmem:[%s4922_s4 + $0x1f8] sm:$0xff] %v2842_v18 }
 0x3d6 PF: > { %s14_s19 = sadd.s32 1, %s3740_s19   ;;  %s4925_s15 = smov %s3728_s16 }
 0x3d7   : > { %p11_p12 = scmp.ge.s32.totalorder %s14_s19, 4   ;;  %s4926_s16 = smov %s3815_s26 }
 0x3d8   : > { %s4927_s17 = smov %s3736_s18  ;;  %s4928_s18 = smov %s4930_s21 }
 0x3d9   :  { %13 = sbr.rel (!%p11_p12) target bundleno = 3 (0x3), region = 215 }

// kernel: sage_forward.4
= control target key start
LH: loop header
LB: loop body
LE: loop exit
PB: predicated region body
PF: predicated region fallthrough
CT: control target
= control target key end

     0   :  { %s1980_s1 = inlined_call_operand.vmem [shape: f32[128,256], index: 1, kind: input, shape index: {}]   ;;  %s1981_s0 = inlined_call_operand.vmem [shape: f32[512,128], index: 0, kind: input, shape index: {}]   ;;  %s1982_s2 = inlined_call_operand.vmem [shape: f32[1,256], index: 2, kind: input, shape index: {}]   ;;  %s1983_s3 = inlined_call_operand.vmem [shape: bf16[512,256], index: 3, kind: output, shape index: {}]  }
   0x1   :  { %v374_v0 = vld [vmem:[%s1980_s1 + $0xf0] sm:$0xff]  ;;  %v375_v1 = vld [vmem:[%s1980_s1 + $0xf8] sm:$0xff]  ;;  %v372_v2 = vld [vmem:[%s1980_s1 + $0xe0] sm:$0xff] }
   0x2   :  { %1313 = vmatpush.msra.mxu2 %v374_v0  ;;  %1329 = vmatpush.msra.mxu3 %v375_v1  ;;  %v373_v3 = vld [vmem:[%s1980_s1 + $0xe8] sm:$0xff]  ;;  %v370_v4 = vld [vmem:[%s1980_s1 + $0xd0] sm:$0xff]  ;;  %v371_v5 = vld [vmem:[%s1980_s1 + $0xd8] sm:$0xff] }
   0x3   :  { %376 = vmatpush.msra.mxu0 %v374_v0  ;;  %585 = vmatpush.msra.mxu1 %v375_v1  ;;  %v368_v6 = vld [vmem:[%s1980_s1 + $0xc0] sm:$0xff]  ;;  %v369_v7 = vld [vmem:[%s1980_s1 + $0xc8] sm:$0xff]  ;;  %v366_v8 = vld [vmem:[%s1980_s1 + $0xb0] sm:$0xff] }
   0x4   :  { %1314 = vmatpush.msra.mxu2 %v372_v2  ;;  %1330 = vmatpush.msra.mxu3 %v373_v3  ;;  %v367_v9 = vld [vmem:[%s1980_s1 + $0xb8] sm:$0xff]  ;;  %v364_v10 = vld [vmem:[%s1980_s1 + $0xa0] sm:$0xff]  ;;  %v365_v11 = vld [vmem:[%s1980_s1 + $0xa8] sm:$0xff] }
   0x5   :  { %377 = vmatpush.msra.mxu0 %v372_v2  ;;  %586 = vmatpush.msra.mxu1 %v373_v3  ;;  %v362_v12 = vld [vmem:[%s1980_s1 + $0x90] sm:$0xff]  ;;  %v363_v13 = vld [vmem:[%s1980_s1 + $0x98] sm:$0xff]  ;;  %v360_v14 = vld [vmem:[%s1980_s1 + $0x80] sm:$0xff] }
   0x6   :  { %1315 = vmatpush.msra.mxu2 %v370_v4  ;;  %1331 = vmatpush.msra.mxu3 %v371_v5  ;;  %v361_v15 = vld [vmem:[%s1980_s1 + $0x88] sm:$0xff]  ;;  %v358_v16 = vld [vmem:[%s1980_s1 + $0x70] sm:$0xff]  ;;  %v359_v17 = vld [vmem:[%s1980_s1 + $0x78] sm:$0xff] }
   0x7   :  { %378 = vmatpush.msra.mxu0 %v370_v4  ;;  %587 = vmatpush.msra.mxu1 %v371_v5  ;;  %v356_v18 = vld [vmem:[%s1980_s1 + $0x60] sm:$0xff]  ;;  %v357_v19 = vld [vmem:[%s1980_s1 + $0x68] sm:$0xff]  ;;  %v354_v20 = vld [vmem:[%s1980_s1 + $0x50] sm:$0xff] }
   0x8   :  { %1316 = vmatpush.msra.mxu2 %v368_v6  ;;  %1332 = vmatpush.msra.mxu3 %v369_v7  ;;  %v355_v21 = vld [vmem:[%s1980_s1 + $0x58] sm:$0xff]  ;;  %v352_v22 = vld [vmem:[%s1980_s1 + $0x40] sm:$0xff]  ;;  %v353_v23 = vld [vmem:[%s1980_s1 + $0x48] sm:$0xff] }
   0x9   :  { %379 = vmatpush.msra.mxu0 %v368_v6  ;;  %588 = vmatpush.msra.mxu1 %v369_v7  ;;  %v350_v24 = vld [vmem:[%s1980_s1 + $0x30] sm:$0xff]  ;;  %v351_v25 = vld [vmem:[%s1980_s1 + $0x38] sm:$0xff]  ;;  %v348_v26 = vld [vmem:[%s1980_s1 + $0x20] sm:$0xff] }
   0xa   :  { %1317 = vmatpush.msra.mxu2 %v366_v8  ;;  %1333 = vmatpush.msra.mxu3 %v367_v9  ;;  %v349_v27 = vld [vmem:[%s1980_s1 + $0x28] sm:$0xff]  ;;  %v346_v28 = vld [vmem:[%s1980_s1 + $0x10] sm:$0xff]  ;;  %v347_v29 = vld [vmem:[%s1980_s1 + $0x18] sm:$0xff] }
   0xb   :  { %380 = vmatpush.msra.mxu0 %v366_v8  ;;  %589 = vmatpush.msra.mxu1 %v367_v9  ;;  %v344_v30 = vld [vmem:[%s1980_s1] sm:$0xff]  ;;  %v345_v31 = vld [vmem:[%s1980_s1 + $0x8] sm:$0xff]  ;;  %v314_v36 = vld [vmem:[%s1981_s0 + $0x110] sm:$0xff] }
   0xc   :  { %1318 = vmatpush.msra.mxu2 %v364_v10  ;;  %1334 = vmatpush.msra.mxu3 %v365_v11  ;;  %v312_v32 = vld [vmem:[%s1981_s0 + $0x100] sm:$0xff]  ;;  %v313_v34 = vld [vmem:[%s1981_s0 + $0x108] sm:$0xff]  ;;  %v282_v37 = vld [vmem:[%s1981_s0 + $0x10] sm:$0xff] }
   0xd   :  { %381 = vmatpush.msra.mxu0 %v364_v10  ;;  %590 = vmatpush.msra.mxu1 %v365_v11  ;;  %v280_v33 = vld [vmem:[%s1981_s0] sm:$0xff]  ;;  %v281_v35 = vld [vmem:[%s1981_s0 + $0x8] sm:$0xff]  ;;  %v315_v38 = vld [vmem:[%s1981_s0 + $0x118] sm:$0xff] }
   0xe   :  { %1319 = vmatpush.msra.mxu2 %v362_v12  ;;  %1335 = vmatpush.msra.mxu3 %v363_v13  ;;  %v283_v39 = vld [vmem:[%s1981_s0 + $0x18] sm:$0xff]  ;;  %v316_v40 = vld [vmem:[%s1981_s0 + $0x120] sm:$0xff]  ;;  %v317_v42 = vld [vmem:[%s1981_s0 + $0x128] sm:$0xff] }
   0xf   :  { %382 = vmatpush.msra.mxu0 %v362_v12  ;;  %591 = vmatpush.msra.mxu1 %v363_v13  ;;  %v284_v41 = vld [vmem:[%s1981_s0 + $0x20] sm:$0xff]  ;;  %v285_v43 = vld [vmem:[%s1981_s0 + $0x28] sm:$0xff]  ;;  %v318_v44 = vld [vmem:[%s1981_s0 + $0x130] sm:$0xff] }
  0x10   :  { %1320 = vmatpush.msra.mxu2 %v360_v14  ;;  %1336 = vmatpush.msra.mxu3 %v361_v15  ;;  %v286_v45 = vld [vmem:[%s1981_s0 + $0x30] sm:$0xff]  ;;  %v319_v46 = vld [vmem:[%s1981_s0 + $0x138] sm:$0xff]  ;;  %v320_v48 = vld [vmem:[%s1981_s0 + $0x140] sm:$0xff] }
  0x11   :  { %383 = vmatpush.msra.mxu0 %v360_v14  ;;  %592 = vmatpush.msra.mxu1 %v361_v15  ;;  %v287_v47 = vld [vmem:[%s1981_s0 + $0x38] sm:$0xff]  ;;  %v288_v49 = vld [vmem:[%s1981_s0 + $0x40] sm:$0xff]  ;;  %v321_v50 = vld [vmem:[%s1981_s0 + $0x148] sm:$0xff] }
  0x12   :  { %1321 = vmatpush.msra.mxu2 %v358_v16  ;;  %1337 = vmatpush.msra.mxu3 %v359_v17  ;;  %v289_v51 = vld [vmem:[%s1981_s0 + $0x48] sm:$0xff]  ;;  %v322_v52 = vld [vmem:[%s1981_s0 + $0x150] sm:$0xff]  ;;  %v323_v54 = vld [vmem:[%s1981_s0 + $0x158] sm:$0xff] }
  0x13   :  { %384 = vmatpush.msra.mxu0 %v358_v16  ;;  %593 = vmatpush.msra.mxu1 %v359_v17  ;;  %v290_v53 = vld [vmem:[%s1981_s0 + $0x50] sm:$0xff]  ;;  %v291_v55 = vld [vmem:[%s1981_s0 + $0x58] sm:$0xff]  ;;  %v324_v56 = vld [vmem:[%s1981_s0 + $0x160] sm:$0xff] }
  0x14   :  { %1322 = vmatpush.msra.mxu2 %v356_v18  ;;  %1338 = vmatpush.msra.mxu3 %v357_v19  ;;  %v292_v57 = vld [vmem:[%s1981_s0 + $0x60] sm:$0xff]  ;;  %v325_v58 = vld [vmem:[%s1981_s0 + $0x168] sm:$0xff]  ;;  %v326_v60 = vld [vmem:[%s1981_s0 + $0x170] sm:$0xff] }
  0x15   :  { %385 = vmatpush.msra.mxu0 %v356_v18  ;;  %594 = vmatpush.msra.mxu1 %v357_v19  ;;  %v293_v59 = vld [vmem:[%s1981_s0 + $0x68] sm:$0xff]  ;;  %v294_v61 = vld [vmem:[%s1981_s0 + $0x70] sm:$0xff]  ;;  %v327_v62 = vld [vmem:[%s1981_s0 + $0x178] sm:$0xff] }
  0x16   :  { %1323 = vmatpush.msra.mxu2 %v354_v20  ;;  %1339 = vmatpush.msra.mxu3 %v355_v21  ;;  %v295_v63 = vld [vmem:[%s1981_s0 + $0x78] sm:$0xff]  ;;  %v18_v0 = vld [vmem:[%s1982_s2] sm:$0x3]  ;;  %v329_v14 = vld [vmem:[%s1981_s0 + $0x188] sm:$0xff] }
  0x17   :  { %386 = vmatpush.msra.mxu0 %v354_v20  ;;  %595 = vmatpush.msra.mxu1 %v355_v21  ;;  %v1560_v1 = vperm.slane %v18_v0, 0  ;;  %v1562_v2 = vperm.slane %v18_v0, 1  ;;  %v328_v3 = vld [vmem:[%s1981_s0 + $0x180] sm:$0xff]  ;;  %v297_v18 = vld [vmem:[%s1981_s0 + $0x88] sm:$0xff] }
  0x18   :  { %1324 = vmatpush.msra.mxu2 %v352_v22  ;;  %1340 = vmatpush.msra.mxu3 %v353_v23  ;;  %v296_v6 = vld [vmem:[%s1981_s0 + $0x80] sm:$0xff] }
  0x19   :  { %387 = vmatpush.msra.mxu0 %v352_v22  ;;  %596 = vmatpush.msra.mxu1 %v353_v23 }
  0x1a   :  { %1325 = vmatpush.msra.mxu2 %v350_v24  ;;  %1341 = vmatpush.msra.mxu3 %v351_v25 }
  0x1b   :  { %388 = vmatpush.msra.mxu0 %v350_v24  ;;  %597 = vmatpush.msra.mxu1 %v351_v25 }
  0x1c   :  { %1326 = vmatpush.msra.mxu2 %v348_v26  ;;  %1342 = vmatpush.msra.mxu3 %v349_v27 }
  0x1d   :  { %389 = vmatpush.msra.mxu0 %v348_v26  ;;  %598 = vmatpush.msra.mxu1 %v349_v27  ;;  %v330_v26 = vld [vmem:[%s1981_s0 + $0x190] sm:$0xff] }
  0x1e   :  { %1327 = vmatpush.msra.mxu2 %v346_v28  ;;  %1343 = vmatpush.msra.mxu3 %v347_v29 }
  0x1f   :  { %390 = vmatpush.msra.mxu0 %v346_v28  ;;  %599 = vmatpush.msra.mxu1 %v347_v29 }
  0x20   :  { %1328 = vmatpush.msra.mxu2 %v344_v30  ;;  %1344 = vmatpush.msra.mxu3 %v345_v31 }
  0x21   :  { %488 = vmatmul.f32.vlgmr.msra.gmra.mxu2 %v312_v32  ;;  %697 = vmatmul.f32.vlgmr.msra.gmra.mxu3 %v312_v32 }
  0x22   :  { %391 = vmatpush.msra.mxu0 %v344_v30  ;;  %600 = vmatpush.msra.mxu1 %v345_v31  ;;  %v298_v30 = vld [vmem:[%s1981_s0 + $0x90] sm:$0xff] }
  0x23   :  { %392 = vmatmul.f32.vlgmr.msra.gmra.mxu0 %v280_v33  ;;  %601 = vmatmul.f32.vlgmr.msra.gmra.mxu1 %v280_v33 }
  0x29   :  { %491 = vmatmul.f32.gmra.mxu2 %v313_v34  ;;  %700 = vmatmul.f32.gmra.mxu3 %v313_v34 }
  0x2b   :  { %395 = vmatmul.f32.gmra.mxu0 %v281_v35  ;;  %604 = vmatmul.f32.gmra.mxu1 %v281_v35 }
  0x31   :  { %494 = vmatmul.f32.gmra.mxu2 %v314_v36  ;;  %703 = vmatmul.f32.gmra.mxu3 %v314_v36 }
  0x33   :  { %398 = vmatmul.f32.gmra.mxu0 %v282_v37  ;;  %607 = vmatmul.f32.gmra.mxu1 %v282_v37 }
  0x39   :  { %497 = vmatmul.f32.gmra.mxu2 %v315_v38  ;;  %706 = vmatmul.f32.gmra.mxu3 %v315_v38  ;;  %v331_v38 = vld [vmem:[%s1981_s0 + $0x198] sm:$0xff] }
  0x3b   :  { %401 = vmatmul.f32.gmra.mxu0 %v283_v39  ;;  %610 = vmatmul.f32.gmra.mxu1 %v283_v39 }
  0x41   :  { %500 = vmatmul.f32.gmra.mxu2 %v316_v40  ;;  %709 = vmatmul.f32.gmra.mxu3 %v316_v40 }
  0x43   :  { %404 = vmatmul.f32.gmra.mxu0 %v284_v41  ;;  %613 = vmatmul.f32.gmra.mxu1 %v284_v41 }
  0x49   :  { %503 = vmatmul.f32.gmra.mxu2 %v317_v42  ;;  %712 = vmatmul.f32.gmra.mxu3 %v317_v42  ;;  %v299_v42 = vld [vmem:[%s1981_s0 + $0x98] sm:$0xff] }
  0x4b   :  { %407 = vmatmul.f32.gmra.mxu0 %v285_v43  ;;  %616 = vmatmul.f32.gmra.mxu1 %v285_v43 }
  0x51   :  { %506 = vmatmul.f32.gmra.mxu2 %v318_v44  ;;  %715 = vmatmul.f32.gmra.mxu3 %v318_v44 }
  0x53   :  { %410 = vmatmul.f32.gmra.mxu0 %v286_v45  ;;  %619 = vmatmul.f32.gmra.mxu1 %v286_v45 }
  0x59   :  { %509 = vmatmul.f32.gmra.mxu2 %v319_v46  ;;  %718 = vmatmul.f32.gmra.mxu3 %v319_v46 }
  0x5b   :  { %413 = vmatmul.f32.gmra.mxu0 %v287_v47  ;;  %622 = vmatmul.f32.gmra.mxu1 %v287_v47 }
  0x61   :  { %512 = vmatmul.f32.gmra.mxu2 %v320_v48  ;;  %721 = vmatmul.f32.gmra.mxu3 %v320_v48 }
  0x63   :  { %416 = vmatmul.f32.gmra.mxu0 %v288_v49  ;;  %625 = vmatmul.f32.gmra.mxu1 %v288_v49 }
  0x69   :  { %515 = vmatmul.f32.gmra.mxu2 %v321_v50  ;;  %724 = vmatmul.f32.gmra.mxu3 %v321_v50  ;;  %v332_v50 = vld [vmem:[%s1981_s0 + $0x1a0] sm:$0xff] }
  0x6b   :  { %419 = vmatmul.f32.gmra.mxu0 %v289_v51  ;;  %628 = vmatmul.f32.gmra.mxu1 %v289_v51 }
  0x71   :  { %518 = vmatmul.f32.gmra.mxu2 %v322_v52  ;;  %727 = vmatmul.f32.gmra.mxu3 %v322_v52 }
  0x73   :  { %422 = vmatmul.f32.gmra.mxu0 %v290_v53  ;;  %631 = vmatmul.f32.gmra.mxu1 %v290_v53 }
  0x79   :  { %521 = vmatmul.f32.gmra.mxu2 %v323_v54  ;;  %730 = vmatmul.f32.gmra.mxu3 %v323_v54  ;;  %v300_v54 = vld [vmem:[%s1981_s0 + $0xa0] sm:$0xff] }
  0x7b   :  { %425 = vmatmul.f32.gmra.mxu0 %v291_v55  ;;  %634 = vmatmul.f32.gmra.mxu1 %v291_v55 }
  0x81   :  { %524 = vmatmul.f32.gmra.mxu2 %v324_v56  ;;  %733 = vmatmul.f32.gmra.mxu3 %v324_v56 }
  0x83   :  { %428 = vmatmul.f32.gmra.mxu0 %v292_v57  ;;  %637 = vmatmul.f32.gmra.mxu1 %v292_v57 }
  0x89   :  { %527 = vmatmul.f32.gmra.mxu2 %v325_v58  ;;  %736 = vmatmul.f32.gmra.mxu3 %v325_v58 }
  0x8b   :  { %431 = vmatmul.f32.gmra.mxu0 %v293_v59  ;;  %640 = vmatmul.f32.gmra.mxu1 %v293_v59 }
  0x91   :  { %530 = vmatmul.f32.gmra.mxu2 %v326_v60  ;;  %739 = vmatmul.f32.gmra.mxu3 %v326_v60 }
  0x93   :  { %434 = vmatmul.f32.gmra.mxu0 %v294_v61  ;;  %643 = vmatmul.f32.gmra.mxu1 %v294_v61 }
  0x99   :  { %533 = vmatmul.f32.gmra.mxu2 %v327_v62  ;;  %742 = vmatmul.f32.gmra.mxu3 %v327_v62  ;;  %v333_v62 = vld [vmem:[%s1981_s0 + $0x1a8] sm:$0xff] }
  0x9b   :  { %437 = vmatmul.f32.gmra.mxu0 %v295_v63  ;;  %646 = vmatmul.f32.gmra.mxu1 %v295_v63 }
  0xa0   :  { %v393_v4 = vpop.f32.mrf.mxu0  ;;  %v602_v5 = vpop.f32.mrf.mxu1 }
  0xa1   :  { %536 = vmatmul.f32.gmra.mxu2 %v328_v3  ;;  %745 = vmatmul.f32.gmra.mxu3 %v328_v3  ;;  %v794_v7 = vadd.f32 %v393_v4, %v1560_v1  ;;  %v795_v8 = vadd.f32 %v602_v5, %v1562_v2  ;;  %v301_v4 = vld [vmem:[%s1981_s0 + $0xa8] sm:$0xff] }
  0xa3   :  { %v1181_v9 = vpack.c.bf16 %v795_v8, %v794_v7  ;;  %440 = vmatmul.f32.gmra.mxu0 %v296_v6  ;;  %649 = vmatmul.f32.gmra.mxu1 %v296_v6 }
  0xa4   :  { %v489_v10 = vpop.f32.mrf.mxu2  ;;  %v698_v11 = vpop.f32.mrf.mxu3 }
  0xa5   :  { %v858_v12 = vadd.f32 %v489_v10, %v1560_v1  ;;  %1245 = vst [vmem:[%s1983_s3] sm:$0xff] %v1181_v9  ;;  %v859_v13 = vadd.f32 %v698_v11, %v1562_v2 }
  0xa7   :  { %v1213_v15 = vpack.c.bf16 %v859_v13, %v858_v12  ;;  %v334_v12 = vld [vmem:[%s1981_s0 + $0x1b0] sm:$0xff] }
  0xa8   :  { %v396_v16 = vpop.f32.mrf.mxu0  ;;  %v605_v17 = vpop.f32.mrf.mxu1 }
  0xa9   :  { %1277 = vst [vmem:[%s1983_s3 + $0x100] sm:$0xff] %v1213_v15  ;;  %539 = vmatmul.f32.gmra.mxu2 %v329_v14  ;;  %748 = vmatmul.f32.gmra.mxu3 %v329_v14  ;;  %v796_v19 = vadd.f32 %v396_v16, %v1560_v1  ;;  %v797_v20 = vadd.f32 %v605_v17, %v1562_v2  ;;  %v302_v16 = vld [vmem:[%s1981_s0 + $0xb0] sm:$0xff] }
  0xab   :  { %v1182_v21 = vpack.c.bf16 %v797_v20, %v796_v19  ;;  %443 = vmatmul.f32.gmra.mxu0 %v297_v18  ;;  %652 = vmatmul.f32.gmra.mxu1 %v297_v18 }
  0xac   :  { %v492_v22 = vpop.f32.mrf.mxu2  ;;  %v701_v23 = vpop.f32.mrf.mxu3 }
  0xad   :  { %v860_v24 = vadd.f32 %v492_v22, %v1560_v1  ;;  %1246 = vst [vmem:[%s1983_s3 + $0x8] sm:$0xff] %v1182_v21  ;;  %v861_v25 = vadd.f32 %v701_v23, %v1562_v2 }
  0xaf   :  { %v1214_v27 = vpack.c.bf16 %v861_v25, %v860_v24  ;;  %v335_v24 = vld [vmem:[%s1981_s0 + $0x1b8] sm:$0xff] }
  0xb0   :  { %v399_v28 = vpop.f32.mrf.mxu0  ;;  %v608_v29 = vpop.f32.mrf.mxu1 }
  0xb1   :  { %1278 = vst [vmem:[%s1983_s3 + $0x108] sm:$0xff] %v1214_v27  ;;  %542 = vmatmul.f32.gmra.mxu2 %v330_v26  ;;  %751 = vmatmul.f32.gmra.mxu3 %v330_v26  ;;  %v798_v31 = vadd.f32 %v399_v28, %v1560_v1  ;;  %v799_v32 = vadd.f32 %v608_v29, %v1562_v2  ;;  %v303_v28 = vld [vmem:[%s1981_s0 + $0xb8] sm:$0xff] }
  0xb3   :  { %v1183_v33 = vpack.c.bf16 %v799_v32, %v798_v31  ;;  %446 = vmatmul.f32.gmra.mxu0 %v298_v30  ;;  %655 = vmatmul.f32.gmra.mxu1 %v298_v30 }
  0xb4   :  { %v495_v34 = vpop.f32.mrf.mxu2  ;;  %v704_v35 = vpop.f32.mrf.mxu3 }
  0xb5   :  { %v862_v36 = vadd.f32 %v495_v34, %v1560_v1  ;;  %1247 = vst [vmem:[%s1983_s3 + $0x10] sm:$0xff] %v1183_v33  ;;  %v863_v37 = vadd.f32 %v704_v35, %v1562_v2 }
  0xb7   :  { %v1215_v39 = vpack.c.bf16 %v863_v37, %v862_v36  ;;  %v336_v36 = vld [vmem:[%s1981_s0 + $0x1c0] sm:$0xff] }
  0xb8   :  { %v402_v40 = vpop.f32.mrf.mxu0  ;;  %v611_v41 = vpop.f32.mrf.mxu1 }
  0xb9   :  { %1279 = vst [vmem:[%s1983_s3 + $0x110] sm:$0xff] %v1215_v39  ;;  %545 = vmatmul.f32.gmra.mxu2 %v331_v38  ;;  %754 = vmatmul.f32.gmra.mxu3 %v331_v38  ;;  %v800_v43 = vadd.f32 %v402_v40, %v1560_v1  ;;  %v801_v44 = vadd.f32 %v611_v41, %v1562_v2  ;;  %v304_v40 = vld [vmem:[%s1981_s0 + $0xc0] sm:$0xff] }
  0xbb   :  { %v1184_v45 = vpack.c.bf16 %v801_v44, %v800_v43  ;;  %449 = vmatmul.f32.gmra.mxu0 %v299_v42  ;;  %658 = vmatmul.f32.gmra.mxu1 %v299_v42 }
  0xbc   :  { %v498_v46 = vpop.f32.mrf.mxu2  ;;  %v707_v47 = vpop.f32.mrf.mxu3 }
  0xbd   :  { %v864_v48 = vadd.f32 %v498_v46, %v1560_v1  ;;  %1248 = vst [vmem:[%s1983_s3 + $0x18] sm:$0xff] %v1184_v45  ;;  %v865_v49 = vadd.f32 %v707_v47, %v1562_v2 }
  0xbf   :  { %v1216_v51 = vpack.c.bf16 %v865_v49, %v864_v48  ;;  %v337_v48 = vld [vmem:[%s1981_s0 + $0x1c8] sm:$0xff] }
  0xc0   :  { %v405_v52 = vpop.f32.mrf.mxu0  ;;  %v614_v53 = vpop.f32.mrf.mxu1 }
  0xc1   :  { %1280 = vst [vmem:[%s1983_s3 + $0x118] sm:$0xff] %v1216_v51  ;;  %548 = vmatmul.f32.gmra.mxu2 %v332_v50  ;;  %757 = vmatmul.f32.gmra.mxu3 %v332_v50  ;;  %v802_v55 = vadd.f32 %v405_v52, %v1560_v1  ;;  %v803_v56 = vadd.f32 %v614_v53, %v1562_v2  ;;  %v305_v52 = vld [vmem:[%s1981_s0 + $0xc8] sm:$0xff] }
  0xc3   :  { %v1185_v57 = vpack.c.bf16 %v803_v56, %v802_v55  ;;  %452 = vmatmul.f32.gmra.mxu0 %v300_v54  ;;  %661 = vmatmul.f32.gmra.mxu1 %v300_v54 }
  0xc4   :  { %v501_v58 = vpop.f32.mrf.mxu2  ;;  %v710_v59 = vpop.f32.mrf.mxu3 }
  0xc5   :  { %v866_v60 = vadd.f32 %v501_v58, %v1560_v1  ;;  %1249 = vst [vmem:[%s1983_s3 + $0x20] sm:$0xff] %v1185_v57  ;;  %v867_v61 = vadd.f32 %v710_v59, %v1562_v2 }
  0xc7   :  { %v1217_v63 = vpack.c.bf16 %v867_v61, %v866_v60  ;;  %v338_v60 = vld [vmem:[%s1981_s0 + $0x1d0] sm:$0xff] }
  0xc8   :  { %v408_v0 = vpop.f32.mrf.mxu0  ;;  %v617_v3 = vpop.f32.mrf.mxu1 }
  0xc9   :  { %1281 = vst [vmem:[%s1983_s3 + $0x120] sm:$0xff] %v1217_v63  ;;  %551 = vmatmul.f32.gmra.mxu2 %v333_v62  ;;  %760 = vmatmul.f32.gmra.mxu3 %v333_v62  ;;  %v804_v5 = vadd.f32 %v408_v0, %v1560_v1  ;;  %v805_v6 = vadd.f32 %v617_v3, %v1562_v2  ;;  %v306_v0 = vld [vmem:[%s1981_s0 + $0xd0] sm:$0xff] }
  0xcb   :  { %v1186_v7 = vpack.c.bf16 %v805_v6, %v804_v5  ;;  %455 = vmatmul.f32.gmra.mxu0 %v301_v4  ;;  %664 = vmatmul.f32.gmra.mxu1 %v301_v4 }
  0xcc   :  { %v504_v8 = vpop.f32.mrf.mxu2  ;;  %v713_v9 = vpop.f32.mrf.mxu3 }
  0xcd   :  { %v868_v10 = vadd.f32 %v504_v8, %v1560_v1  ;;  %1250 = vst [vmem:[%s1983_s3 + $0x28] sm:$0xff] %v1186_v7  ;;  %v869_v11 = vadd.f32 %v713_v9, %v1562_v2 }
  0xcf   :  { %v1218_v13 = vpack.c.bf16 %v869_v11, %v868_v10  ;;  %v339_v10 = vld [vmem:[%s1981_s0 + $0x1d8] sm:$0xff] }
  0xd0   :  { %v411_v14 = vpop.f32.mrf.mxu0  ;;  %v620_v15 = vpop.f32.mrf.mxu1 }
  0xd1   :  { %1282 = vst [vmem:[%s1983_s3 + $0x128] sm:$0xff] %v1218_v13  ;;  %554 = vmatmul.f32.gmra.mxu2 %v334_v12  ;;  %763 = vmatmul.f32.gmra.mxu3 %v334_v12  ;;  %v806_v17 = vadd.f32 %v411_v14, %v1560_v1  ;;  %v807_v18 = vadd.f32 %v620_v15, %v1562_v2  ;;  %v307_v14 = vld [vmem:[%s1981_s0 + $0xd8] sm:$0xff] }
  0xd3   :  { %v1187_v19 = vpack.c.bf16 %v807_v18, %v806_v17  ;;  %458 = vmatmul.f32.gmra.mxu0 %v302_v16  ;;  %667 = vmatmul.f32.gmra.mxu1 %v302_v16 }
  0xd4   :  { %v507_v20 = vpop.f32.mrf.mxu2  ;;  %v716_v21 = vpop.f32.mrf.mxu3 }
  0xd5   :  { %v870_v22 = vadd.f32 %v507_v20, %v1560_v1  ;;  %1251 = vst [vmem:[%s1983_s3 + $0x30] sm:$0xff] %v1187_v19  ;;  %v871_v23 = vadd.f32 %v716_v21, %v1562_v2 }
  0xd7   :  { %v1219_v25 = vpack.c.bf16 %v871_v23, %v870_v22  ;;  %v340_v22 = vld [vmem:[%s1981_s0 + $0x1e0] sm:$0xff] }
  0xd8   :  { %v414_v26 = vpop.f32.mrf.mxu0  ;;  %v623_v27 = vpop.f32.mrf.mxu1 }
  0xd9   :  { %1283 = vst [vmem:[%s1983_s3 + $0x130] sm:$0xff] %v1219_v25  ;;  %557 = vmatmul.f32.gmra.mxu2 %v335_v24  ;;  %766 = vmatmul.f32.gmra.mxu3 %v335_v24  ;;  %v808_v29 = vadd.f32 %v414_v26, %v1560_v1  ;;  %v809_v30 = vadd.f32 %v623_v27, %v1562_v2  ;;  %v308_v26 = vld [vmem:[%s1981_s0 + $0xe0] sm:$0xff] }
  0xdb   :  { %v1188_v31 = vpack.c.bf16 %v809_v30, %v808_v29  ;;  %461 = vmatmul.f32.gmra.mxu0 %v303_v28  ;;  %670 = vmatmul.f32.gmra.mxu1 %v303_v28 }
  0xdc   :  { %v510_v32 = vpop.f32.mrf.mxu2  ;;  %v719_v33 = vpop.f32.mrf.mxu3 }
  0xdd   :  { %v872_v34 = vadd.f32 %v510_v32, %v1560_v1  ;;  %1252 = vst [vmem:[%s1983_s3 + $0x38] sm:$0xff] %v1188_v31  ;;  %v873_v35 = vadd.f32 %v719_v33, %v1562_v2 }
  0xdf   :  { %v1220_v37 = vpack.c.bf16 %v873_v35, %v872_v34  ;;  %v341_v34 = vld [vmem:[%s1981_s0 + $0x1e8] sm:$0xff] }
  0xe0   :  { %v417_v38 = vpop.f32.mrf.mxu0  ;;  %v626_v39 = vpop.f32.mrf.mxu1 }
  0xe1   :  { %1284 = vst [vmem:[%s1983_s3 + $0x138] sm:$0xff] %v1220_v37  ;;  %560 = vmatmul.f32.gmra.mxu2 %v336_v36  ;;  %769 = vmatmul.f32.gmra.mxu3 %v336_v36  ;;  %v810_v41 = vadd.f32 %v417_v38, %v1560_v1  ;;  %v811_v42 = vadd.f32 %v626_v39, %v1562_v2  ;;  %v309_v38 = vld [vmem:[%s1981_s0 + $0xe8] sm:$0xff] }
  0xe3   :  { %v1189_v43 = vpack.c.bf16 %v811_v42, %v810_v41  ;;  %464 = vmatmul.f32.gmra.mxu0 %v304_v40  ;;  %673 = vmatmul.f32.gmra.mxu1 %v304_v40 }
  0xe4   :  { %v513_v44 = vpop.f32.mrf.mxu2  ;;  %v722_v45 = vpop.f32.mrf.mxu3 }
  0xe5   :  { %v874_v46 = vadd.f32 %v513_v44, %v1560_v1  ;;  %1253 = vst [vmem:[%s1983_s3 + $0x40] sm:$0xff] %v1189_v43  ;;  %v875_v47 = vadd.f32 %v722_v45, %v1562_v2 }
  0xe7   :  { %v1221_v49 = vpack.c.bf16 %v875_v47, %v874_v46  ;;  %v342_v46 = vld [vmem:[%s1981_s0 + $0x1f0] sm:$0xff] }
  0xe8   :  { %v420_v50 = vpop.f32.mrf.mxu0  ;;  %v629_v51 = vpop.f32.mrf.mxu1 }
  0xe9   :  { %1285 = vst [vmem:[%s1983_s3 + $0x140] sm:$0xff] %v1221_v49  ;;  %563 = vmatmul.f32.gmra.mxu2 %v337_v48  ;;  %772 = vmatmul.f32.gmra.mxu3 %v337_v48  ;;  %v812_v53 = vadd.f32 %v420_v50, %v1560_v1  ;;  %v813_v54 = vadd.f32 %v629_v51, %v1562_v2  ;;  %v310_v50 = vld [vmem:[%s1981_s0 + $0xf0] sm:$0xff] }
  0xeb   :  { %v1190_v55 = vpack.c.bf16 %v813_v54, %v812_v53  ;;  %467 = vmatmul.f32.gmra.mxu0 %v305_v52  ;;  %676 = vmatmul.f32.gmra.mxu1 %v305_v52 }
  0xec   :  { %v516_v56 = vpop.f32.mrf.mxu2  ;;  %v725_v57 = vpop.f32.mrf.mxu3 }
  0xed   :  { %v876_v58 = vadd.f32 %v516_v56, %v1560_v1  ;;  %1254 = vst [vmem:[%s1983_s3 + $0x48] sm:$0xff] %v1190_v55  ;;  %v877_v59 = vadd.f32 %v725_v57, %v1562_v2 }
  0xef   :  { %v1222_v61 = vpack.c.bf16 %v877_v59, %v876_v58  ;;  %v343_v58 = vld [vmem:[%s1981_s0 + $0x1f8] sm:$0xff] }
  0xf0   :  { %v423_v62 = vpop.f32.mrf.mxu0  ;;  %v632_v63 = vpop.f32.mrf.mxu1 }
  0xf1   :  { %1286 = vst [vmem:[%s1983_s3 + $0x148] sm:$0xff] %v1222_v61  ;;  %566 = vmatmul.f32.gmra.mxu2 %v338_v60  ;;  %775 = vmatmul.f32.gmra.mxu3 %v338_v60  ;;  %v814_v3 = vadd.f32 %v423_v62, %v1560_v1  ;;  %v815_v4 = vadd.f32 %v632_v63, %v1562_v2  ;;  %v311_v62 = vld [vmem:[%s1981_s0 + $0xf8] sm:$0xff] }
  0xf3   :  { %v1191_v5 = vpack.c.bf16 %v815_v4, %v814_v3  ;;  %470 = vmatmul.f32.gmra.mxu0 %v306_v0  ;;  %679 = vmatmul.f32.gmra.mxu1 %v306_v0 }
  0xf4   :  { %v519_v6 = vpop.f32.mrf.mxu2  ;;  %v728_v7 = vpop.f32.mrf.mxu3 }
  0xf5   :  { %v878_v8 = vadd.f32 %v519_v6, %v1560_v1  ;;  %1255 = vst [vmem:[%s1983_s3 + $0x50] sm:$0xff] %v1191_v5  ;;  %v879_v9 = vadd.f32 %v728_v7, %v1562_v2 }
  0xf7   :  { %v1223_v11 = vpack.c.bf16 %v879_v9, %v878_v8 }
  0xf8   :  { %v426_v12 = vpop.f32.mrf.mxu0  ;;  %v635_v13 = vpop.f32.mrf.mxu1 }
  0xf9   :  { %1287 = vst [vmem:[%s1983_s3 + $0x150] sm:$0xff] %v1223_v11  ;;  %569 = vmatmul.f32.gmra.mxu2 %v339_v10  ;;  %778 = vmatmul.f32.gmra.mxu3 %v339_v10  ;;  %v816_v15 = vadd.f32 %v426_v12, %v1560_v1  ;;  %v817_v16 = vadd.f32 %v635_v13, %v1562_v2 }
  0xfb   :  { %v1192_v17 = vpack.c.bf16 %v817_v16, %v816_v15  ;;  %473 = vmatmul.f32.gmra.mxu0 %v307_v14  ;;  %682 = vmatmul.f32.gmra.mxu1 %v307_v14 }
  0xfc   :  { %v522_v18 = vpop.f32.mrf.mxu2  ;;  %v731_v19 = vpop.f32.mrf.mxu3 }
  0xfd   :  { %v880_v20 = vadd.f32 %v522_v18, %v1560_v1  ;;  %1256 = vst [vmem:[%s1983_s3 + $0x58] sm:$0xff] %v1192_v17  ;;  %v881_v21 = vadd.f32 %v731_v19, %v1562_v2 }
  0xff   :  { %v1224_v23 = vpack.c.bf16 %v881_v21, %v880_v20 }
 0x100   :  { %v429_v24 = vpop.f32.mrf.mxu0  ;;  %v638_v25 = vpop.f32.mrf.mxu1 }
 0x101   :  { %1288 = vst [vmem:[%s1983_s3 + $0x158] sm:$0xff] %v1224_v23  ;;  %572 = vmatmul.f32.gmra.mxu2 %v340_v22  ;;  %781 = vmatmul.f32.gmra.mxu3 %v340_v22  ;;  %v818_v27 = vadd.f32 %v429_v24, %v1560_v1  ;;  %v819_v28 = vadd.f32 %v638_v25, %v1562_v2 }
 0x103   :  { %v1193_v29 = vpack.c.bf16 %v819_v28, %v818_v27  ;;  %476 = vmatmul.f32.gmra.mxu0 %v308_v26  ;;  %685 = vmatmul.f32.gmra.mxu1 %v308_v26 }
 0x104   :  { %v525_v30 = vpop.f32.mrf.mxu2  ;;  %v734_v31 = vpop.f32.mrf.mxu3 }
 0x105   :  { %v882_v32 = vadd.f32 %v525_v30, %v1560_v1  ;;  %1257 = vst [vmem:[%s1983_s3 + $0x60] sm:$0xff] %v1193_v29  ;;  %v883_v33 = vadd.f32 %v734_v31, %v1562_v2 }
 0x107   :  { %v1225_v35 = vpack.c.bf16 %v883_v33, %v882_v32 }
 0x108   :  { %v432_v36 = vpop.f32.mrf.mxu0  ;;  %v641_v37 = vpop.f32.mrf.mxu1 }
 0x109   :  { %1289 = vst [vmem:[%s1983_s3 + $0x160] sm:$0xff] %v1225_v35  ;;  %575 = vmatmul.f32.gmra.mxu2 %v341_v34  ;;  %784 = vmatmul.f32.gmra.mxu3 %v341_v34  ;;  %v820_v39 = vadd.f32 %v432_v36, %v1560_v1  ;;  %v821_v40 = vadd.f32 %v641_v37, %v1562_v2 }
 0x10b   :  { %v1194_v41 = vpack.c.bf16 %v821_v40, %v820_v39  ;;  %479 = vmatmul.f32.gmra.mxu0 %v309_v38  ;;  %688 = vmatmul.f32.gmra.mxu1 %v309_v38 }
 0x10c   :  { %v528_v42 = vpop.f32.mrf.mxu2  ;;  %v737_v43 = vpop.f32.mrf.mxu3 }
 0x10d   :  { %v884_v44 = vadd.f32 %v528_v42, %v1560_v1  ;;  %1258 = vst [vmem:[%s1983_s3 + $0x68] sm:$0xff] %v1194_v41  ;;  %v885_v45 = vadd.f32 %v737_v43, %v1562_v2 }
 0x10f   :  { %v1226_v47 = vpack.c.bf16 %v885_v45, %v884_v44 }
 0x110   :  { %v435_v48 = vpop.f32.mrf.mxu0  ;;  %v644_v49 = vpop.f32.mrf.mxu1 }
 0x111   :  { %1290 = vst [vmem:[%s1983_s3 + $0x168] sm:$0xff] %v1226_v47  ;;  %578 = vmatmul.f32.gmra.mxu2 %v342_v46  ;;  %787 = vmatmul.f32.gmra.mxu3 %v342_v46  ;;  %v822_v51 = vadd.f32 %v435_v48, %v1560_v1  ;;  %v823_v52 = vadd.f32 %v644_v49, %v1562_v2 }
 0x113   :  { %v1195_v53 = vpack.c.bf16 %v823_v52, %v822_v51  ;;  %482 = vmatmul.f32.gmra.mxu0 %v310_v50  ;;  %691 = vmatmul.f32.gmra.mxu1 %v310_v50 }
 0x114   :  { %v531_v54 = vpop.f32.mrf.mxu2  ;;  %v740_v55 = vpop.f32.mrf.mxu3 }
 0x115   :  { %v886_v56 = vadd.f32 %v531_v54, %v1560_v1  ;;  %1259 = vst [vmem:[%s1983_s3 + $0x70] sm:$0xff] %v1195_v53  ;;  %v887_v57 = vadd.f32 %v740_v55, %v1562_v2 }
 0x117   :  { %v1227_v59 = vpack.c.bf16 %v887_v57, %v886_v56 }
 0x118   :  { %v438_v60 = vpop.f32.mrf.mxu0  ;;  %v647_v61 = vpop.f32.mrf.mxu1 }
 0x119   :  { %1291 = vst [vmem:[%s1983_s3 + $0x170] sm:$0xff] %v1227_v59  ;;  %581 = vmatmul.f32.gmra.mxu2 %v343_v58  ;;  %790 = vmatmul.f32.gmra.mxu3 %v343_v58  ;;  %v824_v63 = vadd.f32 %v438_v60, %v1560_v1  ;;  %v825_v0 = vadd.f32 %v647_v61, %v1562_v2 }
 0x11b   :  { %v1196_v3 = vpack.c.bf16 %v825_v0, %v824_v63  ;;  %485 = vmatmul.f32.gmra.mxu0 %v311_v62  ;;  %694 = vmatmul.f32.gmra.mxu1 %v311_v62 }
 0x11c   :  { %v534_v4 = vpop.f32.mrf.mxu2  ;;  %v743_v5 = vpop.f32.mrf.mxu3 }
 0x11d   :  { %v888_v6 = vadd.f32 %v534_v4, %v1560_v1  ;;  %1260 = vst [vmem:[%s1983_s3 + $0x78] sm:$0xff] %v1196_v3  ;;  %v889_v7 = vadd.f32 %v743_v5, %v1562_v2 }
 0x11f   :  { %v1228_v8 = vpack.c.bf16 %v889_v7, %v888_v6 }
 0x120   :  { %v441_v9 = vpop.f32.mrf.mxu0  ;;  %v650_v10 = vpop.f32.mrf.mxu1 }
 0x121   :  { %1292 = vst [vmem:[%s1983_s3 + $0x178] sm:$0xff] %v1228_v8  ;;  %v826_v11 = vadd.f32 %v441_v9, %v1560_v1  ;;  %v827_v12 = vadd.f32 %v650_v10, %v1562_v2 }
 0x123   :  { %v1197_v13 = vpack.c.bf16 %v827_v12, %v826_v11 }
 0x124   :  { %v537_v14 = vpop.f32.mrf.mxu2  ;;  %v746_v15 = vpop.f32.mrf.mxu3 }
 0x125   :  { %v890_v16 = vadd.f32 %v537_v14, %v1560_v1  ;;  %1261 = vst [vmem:[%s1983_s3 + $0x80] sm:$0xff] %v1197_v13  ;;  %v891_v17 = vadd.f32 %v746_v15, %v1562_v2 }
 0x127   :  { %v1229_v18 = vpack.c.bf16 %v891_v17, %v890_v16 }
 0x128   :  { %v444_v19 = vpop.f32.mrf.mxu0  ;;  %v653_v20 = vpop.f32.mrf.mxu1 }
 0x129   :  { %1293 = vst [vmem:[%s1983_s3 + $0x180] sm:$0xff] %v1229_v18  ;;  %v828_v21 = vadd.f32 %v444_v19, %v1560_v1  ;;  %v829_v22 = vadd.f32 %v653_v20, %v1562_v2 }
 0x12b   :  { %v1198_v23 = vpack.c.bf16 %v829_v22, %v828_v21 }
 0x12c   :  { %v540_v24 = vpop.f32.mrf.mxu2  ;;  %v749_v25 = vpop.f32.mrf.mxu3 }
 0x12d   :  { %v892_v26 = vadd.f32 %v540_v24, %v1560_v1  ;;  %1262 = vst [vmem:[%s1983_s3 + $0x88] sm:$0xff] %v1198_v23  ;;  %v893_v27 = vadd.f32 %v749_v25, %v1562_v2 }
 0x12f   :  { %v1230_v28 = vpack.c.bf16 %v893_v27, %v892_v26 }
 0x130   :  { %v447_v29 = vpop.f32.mrf.mxu0  ;;  %v656_v30 = vpop.f32.mrf.mxu1 }
 0x131   :  { %1294 = vst [vmem:[%s1983_s3 + $0x188] sm:$0xff] %v1230_v28  ;;  %v830_v31 = vadd.f32 %v447_v29, %v1560_v1  ;;  %v831_v32 = vadd.f32 %v656_v30, %v1562_v2 }
 0x133   :  { %v1199_v33 = vpack.c.bf16 %v831_v32, %v830_v31 }
 0x134   :  { %v543_v34 = vpop.f32.mrf.mxu2  ;;  %v752_v35 = vpop.f32.mrf.mxu3 }
 0x135   :  { %v894_v36 = vadd.f32 %v543_v34, %v1560_v1  ;;  %1263 = vst [vmem:[%s1983_s3 + $0x90] sm:$0xff] %v1199_v33  ;;  %v895_v37 = vadd.f32 %v752_v35, %v1562_v2 }
 0x137   :  { %v1231_v38 = vpack.c.bf16 %v895_v37, %v894_v36 }
 0x138   :  { %v450_v39 = vpop.f32.mrf.mxu0  ;;  %v659_v40 = vpop.f32.mrf.mxu1 }
 0x139   :  { %1295 = vst [vmem:[%s1983_s3 + $0x190] sm:$0xff] %v1231_v38  ;;  %v832_v41 = vadd.f32 %v450_v39, %v1560_v1  ;;  %v833_v42 = vadd.f32 %v659_v40, %v1562_v2 }
 0x13b   :  { %v1200_v43 = vpack.c.bf16 %v833_v42, %v832_v41 }
 0x13c   :  { %v546_v44 = vpop.f32.mrf.mxu2  ;;  %v755_v45 = vpop.f32.mrf.mxu3 }
 0x13d   :  { %v896_v46 = vadd.f32 %v546_v44, %v1560_v1  ;;  %1264 = vst [vmem:[%s1983_s3 + $0x98] sm:$0xff] %v1200_v43  ;;  %v897_v47 = vadd.f32 %v755_v45, %v1562_v2 }
 0x13f   :  { %v1232_v48 = vpack.c.bf16 %v897_v47, %v896_v46 }
 0x140   :  { %v453_v49 = vpop.f32.mrf.mxu0  ;;  %v662_v50 = vpop.f32.mrf.mxu1 }
 0x141   :  { %1296 = vst [vmem:[%s1983_s3 + $0x198] sm:$0xff] %v1232_v48  ;;  %v834_v51 = vadd.f32 %v453_v49, %v1560_v1  ;;  %v835_v52 = vadd.f32 %v662_v50, %v1562_v2 }
 0x143   :  { %v1201_v53 = vpack.c.bf16 %v835_v52, %v834_v51 }
 0x144   :  { %v549_v54 = vpop.f32.mrf.mxu2  ;;  %v758_v55 = vpop.f32.mrf.mxu3 }
 0x145   :  { %v898_v56 = vadd.f32 %v549_v54, %v1560_v1  ;;  %1265 = vst [vmem:[%s1983_s3 + $0xa0] sm:$0xff] %v1201_v53  ;;  %v899_v57 = vadd.f32 %v758_v55, %v1562_v2 }
 0x147   :  { %v1233_v58 = vpack.c.bf16 %v899_v57, %v898_v56 }
 0x148   :  { %v456_v59 = vpop.f32.mrf.mxu0  ;;  %v665_v60 = vpop.f32.mrf.mxu1 }
 0x149   :  { %1297 = vst [vmem:[%s1983_s3 + $0x1a0] sm:$0xff] %v1233_v58  ;;  %v836_v61 = vadd.f32 %v456_v59, %v1560_v1  ;;  %v837_v62 = vadd.f32 %v665_v60, %v1562_v2 }
 0x14b   :  { %v1202_v63 = vpack.c.bf16 %v837_v62, %v836_v61 }
 0x14c   :  { %v552_v0 = vpop.f32.mrf.mxu2  ;;  %v761_v3 = vpop.f32.mrf.mxu3 }
 0x14d   :  { %v900_v4 = vadd.f32 %v552_v0, %v1560_v1  ;;  %1266 = vst [vmem:[%s1983_s3 + $0xa8] sm:$0xff] %v1202_v63  ;;  %v901_v5 = vadd.f32 %v761_v3, %v1562_v2 }
 0x14f   :  { %v1234_v6 = vpack.c.bf16 %v901_v5, %v900_v4 }
 0x150   :  { %v459_v7 = vpop.f32.mrf.mxu0  ;;  %v668_v8 = vpop.f32.mrf.mxu1 }
 0x151   :  { %1298 = vst [vmem:[%s1983_s3 + $0x1a8] sm:$0xff] %v1234_v6  ;;  %v838_v9 = vadd.f32 %v459_v7, %v1560_v1  ;;  %v839_v10 = vadd.f32 %v668_v8, %v1562_v2 }
 0x153   :  { %v1203_v11 = vpack.c.bf16 %v839_v10, %v838_v9 }
 0x154   :  { %v555_v12 = vpop.f32.mrf.mxu2  ;;  %v764_v13 = vpop.f32.mrf.mxu3 }
 0x155   :  { %v902_v14 = vadd.f32 %v555_v12, %v1560_v1  ;;  %1267 = vst [vmem:[%s1983_s3 + $0xb0] sm:$0xff] %v1203_v11  ;;  %v903_v15 = vadd.f32 %v764_v13, %v1562_v2 }
 0x157   :  { %v1235_v16 = vpack.c.bf16 %v903_v15, %v902_v14 }
 0x158   :  { %v462_v17 = vpop.f32.mrf.mxu0  ;;  %v671_v18 = vpop.f32.mrf.mxu1 }
 0x159   :  { %1299 = vst [vmem:[%s1983_s3 + $0x1b0] sm:$0xff] %v1235_v16  ;;  %v840_v19 = vadd.f32 %v462_v17, %v1560_v1  ;;  %v841_v20 = vadd.f32 %v671_v18, %v1562_v2 }
 0x15b   :  { %v1204_v21 = vpack.c.bf16 %v841_v20, %v840_v19 }
 0x15c   :  { %v558_v22 = vpop.f32.mrf.mxu2  ;;  %v767_v23 = vpop.f32.mrf.mxu3 }
 0x15d   :  { %v904_v24 = vadd.f32 %v558_v22, %v1560_v1  ;;  %1268 = vst [vmem:[%s1983_s3 + $0xb8] sm:$0xff] %v1204_v21  ;;  %v905_v25 = vadd.f32 %v767_v23, %v1562_v2 }
 0x15f   :  { %v1236_v26 = vpack.c.bf16 %v905_v25, %v904_v24 }
 0x160   :  { %v465_v27 = vpop.f32.mrf.mxu0  ;;  %v674_v28 = vpop.f32.mrf.mxu1 }
 0x161   :  { %1300 = vst [vmem:[%s1983_s3 + $0x1b8] sm:$0xff] %v1236_v26  ;;  %v842_v29 = vadd.f32 %v465_v27, %v1560_v1  ;;  %v843_v30 = vadd.f32 %v674_v28, %v1562_v2 }
 0x163   :  { %v1205_v31 = vpack.c.bf16 %v843_v30, %v842_v29 }
 0x164   :  { %v561_v32 = vpop.f32.mrf.mxu2  ;;  %v770_v33 = vpop.f32.mrf.mxu3 }
 0x165   :  { %v906_v34 = vadd.f32 %v561_v32, %v1560_v1  ;;  %1269 = vst [vmem:[%s1983_s3 + $0xc0] sm:$0xff] %v1205_v31  ;;  %v907_v35 = vadd.f32 %v770_v33, %v1562_v2 }
 0x167   :  { %v1237_v36 = vpack.c.bf16 %v907_v35, %v906_v34 }
 0x168   :  { %v468_v37 = vpop.f32.mrf.mxu0  ;;  %v677_v38 = vpop.f32.mrf.mxu1 }
 0x169   :  { %1301 = vst [vmem:[%s1983_s3 + $0x1c0] sm:$0xff] %v1237_v36  ;;  %v844_v39 = vadd.f32 %v468_v37, %v1560_v1  ;;  %v845_v40 = vadd.f32 %v677_v38, %v1562_v2 }
 0x16b   :  { %v1206_v41 = vpack.c.bf16 %v845_v40, %v844_v39 }
 0x16c   :  { %v564_v42 = vpop.f32.mrf.mxu2  ;;  %v773_v43 = vpop.f32.mrf.mxu3 }
 0x16d   :  { %v908_v44 = vadd.f32 %v564_v42, %v1560_v1  ;;  %1270 = vst [vmem:[%s1983_s3 + $0xc8] sm:$0xff] %v1206_v41  ;;  %v909_v45 = vadd.f32 %v773_v43, %v1562_v2 }
 0x16f   :  { %v1238_v46 = vpack.c.bf16 %v909_v45, %v908_v44 }
 0x170   :  { %v471_v47 = vpop.f32.mrf.mxu0  ;;  %v680_v48 = vpop.f32.mrf.mxu1 }
 0x171   :  { %1302 = vst [vmem:[%s1983_s3 + $0x1c8] sm:$0xff] %v1238_v46  ;;  %v846_v49 = vadd.f32 %v471_v47, %v1560_v1  ;;  %v847_v50 = vadd.f32 %v680_v48, %v1562_v2 }
 0x173   :  { %v1207_v51 = vpack.c.bf16 %v847_v50, %v846_v49 }
 0x174   :  { %v567_v52 = vpop.f32.mrf.mxu2  ;;  %v776_v53 = vpop.f32.mrf.mxu3 }
 0x175   :  { %v910_v54 = vadd.f32 %v567_v52, %v1560_v1  ;;  %1271 = vst [vmem:[%s1983_s3 + $0xd0] sm:$0xff] %v1207_v51  ;;  %v911_v55 = vadd.f32 %v776_v53, %v1562_v2 }
 0x177   :  { %v1239_v56 = vpack.c.bf16 %v911_v55, %v910_v54 }
 0x178   :  { %v474_v57 = vpop.f32.mrf.mxu0  ;;  %v683_v58 = vpop.f32.mrf.mxu1 }
 0x179   :  { %1303 = vst [vmem:[%s1983_s3 + $0x1d0] sm:$0xff] %v1239_v56  ;;  %v848_v59 = vadd.f32 %v474_v57, %v1560_v1  ;;  %v849_v60 = vadd.f32 %v683_v58, %v1562_v2 }
 0x17b   :  { %v1208_v61 = vpack.c.bf16 %v849_v60, %v848_v59 }
 0x17c   :  { %v570_v62 = vpop.f32.mrf.mxu2  ;;  %v779_v63 = vpop.f32.mrf.mxu3 }
 0x17d   :  { %v912_v0 = vadd.f32 %v570_v62, %v1560_v1  ;;  %1272 = vst [vmem:[%s1983_s3 + $0xd8] sm:$0xff] %v1208_v61  ;;  %v913_v3 = vadd.f32 %v779_v63, %v1562_v2 }
 0x17f   :  { %v1240_v4 = vpack.c.bf16 %v913_v3, %v912_v0 }
 0x180   :  { %v477_v5 = vpop.f32.mrf.mxu0  ;;  %v686_v6 = vpop.f32.mrf.mxu1 }
 0x181   :  { %1304 = vst [vmem:[%s1983_s3 + $0x1d8] sm:$0xff] %v1240_v4  ;;  %v850_v7 = vadd.f32 %v477_v5, %v1560_v1  ;;  %v851_v8 = vadd.f32 %v686_v6, %v1562_v2 }
 0x183   :  { %v1209_v9 = vpack.c.bf16 %v851_v8, %v850_v7 }
 0x184   :  { %v573_v10 = vpop.f32.mrf.mxu2  ;;  %v782_v11 = vpop.f32.mrf.mxu3 }
 0x185   :  { %v914_v12 = vadd.f32 %v573_v10, %v1560_v1  ;;  %1273 = vst [vmem:[%s1983_s3 + $0xe0] sm:$0xff] %v1209_v9  ;;  %v915_v13 = vadd.f32 %v782_v11, %v1562_v2 }
 0x187   :  { %v1241_v14 = vpack.c.bf16 %v915_v13, %v914_v12 }
 0x188   :  { %v480_v15 = vpop.f32.mrf.mxu0  ;;  %v689_v16 = vpop.f32.mrf.mxu1 }
 0x189   :  { %1305 = vst [vmem:[%s1983_s3 + $0x1e0] sm:$0xff] %v1241_v14  ;;  %v852_v17 = vadd.f32 %v480_v15, %v1560_v1  ;;  %v853_v18 = vadd.f32 %v689_v16, %v1562_v2 }
 0x18b   :  { %v1210_v19 = vpack.c.bf16 %v853_v18, %v852_v17 }
 0x18c   :  { %v576_v20 = vpop.f32.mrf.mxu2  ;;  %v785_v21 = vpop.f32.mrf.mxu3 }
 0x18d   :  { %v916_v22 = vadd.f32 %v576_v20, %v1560_v1  ;;  %1274 = vst [vmem:[%s1983_s3 + $0xe8] sm:$0xff] %v1210_v19  ;;  %v917_v23 = vadd.f32 %v785_v21, %v1562_v2 }
 0x18f   :  { %v1242_v24 = vpack.c.bf16 %v917_v23, %v916_v22 }
 0x190   :  { %v483_v25 = vpop.f32.mrf.mxu0  ;;  %v692_v26 = vpop.f32.mrf.mxu1 }
 0x191   :  { %1306 = vst [vmem:[%s1983_s3 + $0x1e8] sm:$0xff] %v1242_v24  ;;  %v854_v27 = vadd.f32 %v483_v25, %v1560_v1  ;;  %v855_v28 = vadd.f32 %v692_v26, %v1562_v2 }
 0x193   :  { %v1211_v29 = vpack.c.bf16 %v855_v28, %v854_v27 }
 0x194   :  { %v579_v30 = vpop.f32.mrf.mxu2  ;;  %v788_v31 = vpop.f32.mrf.mxu3 }
 0x195   :  { %v918_v32 = vadd.f32 %v579_v30, %v1560_v1  ;;  %1275 = vst [vmem:[%s1983_s3 + $0xf0] sm:$0xff] %v1211_v29  ;;  %v919_v33 = vadd.f32 %v788_v31, %v1562_v2 }
 0x197   :  { %v1243_v34 = vpack.c.bf16 %v919_v33, %v918_v32 }
 0x198   :  { %v486_v35 = vpop.f32.mrf.mxu0  ;;  %v695_v36 = vpop.f32.mrf.mxu1 }
 0x199   :  { %1307 = vst [vmem:[%s1983_s3 + $0x1f0] sm:$0xff] %v1243_v34  ;;  %v856_v37 = vadd.f32 %v486_v35, %v1560_v1  ;;  %v857_v38 = vadd.f32 %v695_v36, %v1562_v2 }
 0x19b   :  { %v1212_v39 = vpack.c.bf16 %v857_v38, %v856_v37 }
 0x19c   :  { %v582_v40 = vpop.f32.mrf.mxu2  ;;  %v791_v41 = vpop.f32.mrf.mxu3 }
 0x19d   :  { %v920_v42 = vadd.f32 %v582_v40, %v1560_v1  ;;  %1276 = vst [vmem:[%s1983_s3 + $0xf8] sm:$0xff] %v1212_v39  ;;  %v921_v43 = vadd.f32 %v791_v41, %v1562_v2 }
 0x19f   :  { %v1244_v44 = vpack.c.bf16 %v921_v43, %v920_v42 }
 0x1a1   :  { %1308 = vst [vmem:[%s1983_s3 + $0x1f8] sm:$0xff] %v1244_v44 }

</bundles_post_ra>
